<compile_context>
chip_gen: v6e
topology: v6e:2x2x1
jax: 0.10.0
libtpu: 0.0.40
codegen_flags: <defaults>
</compile_context>

<pallas_src>
import functools
import math

import jax
import jax.numpy as jnp
from jax.experimental import pallas as pl
from jax.experimental.pallas import tpu as pltpu


def _layernorm(x, gamma, beta, eps=1e-5):
    mu = jnp.mean(x, axis=-1, keepdims=True)
    var = jnp.mean((x - mu) ** 2, axis=-1, keepdims=True)
    return (x - mu) * jax.lax.rsqrt(var + eps) * gamma + beta


def encoder_layer_kernel(
    x_ref,                            # (S, H)  f32 — full sequence for this batch
    wq_ref, wk_ref, wv_ref, wo_ref,   # (H, H)  bf16
    w1_ref, w2_ref,                   # (H, F) / (F, H) bf16
    hvec_ref,                         # (9, H)  f32: bq,bk,bv,bo,b2,ln1_g,ln1_b,ln2_g,ln2_b
    b1_ref,                           # (1, F)  f32
    out_ref,                          # (TQ, H) f32
    k_cache, v_cache,                 # bf16 VMEM scratch (K/V cached per batch)
    *, num_heads: int, q_tile: int, heads_via_reshape: bool,
):
    seq, hidden = x_ref.shape
    dh = hidden // num_heads
    scale = 1.0 / math.sqrt(dh)
    t = pl.program_id(1)

    hv = hvec_ref[...]
    bq, bk, bvv, bo, b2 = hv[0], hv[1], hv[2], hv[3], hv[4]
    ln1_g, ln1_b, ln2_g, ln2_b = hv[5], hv[6], hv[7], hv[8]

    def split_heads_stacked(z):        # (rows, H) -> (NH, rows, dh) (fallback path)
        return jnp.stack(
            [z[:, h * dh:(h + 1) * dh] for h in range(num_heads)], axis=0)

    # K / V projection for the whole sequence: done once per batch (first
    # seq-tile); the seq-tile grid axis is "arbitrary" so the VMEM scratch
    # carries the cached K/V across the remaining q-tiles of this batch.
    @pl.when(t == 0)
    def _():
        xf16 = x_ref[...].astype(jnp.bfloat16)
        k = jnp.dot(xf16, wk_ref[...], preferred_element_type=jnp.float32) + bk
        v = jnp.dot(xf16, wv_ref[...], preferred_element_type=jnp.float32) + bvv
        if heads_via_reshape:
            k_cache[...] = k.astype(jnp.bfloat16)                        # (S, H)
            v_cache[...] = v.astype(jnp.bfloat16)
        else:
            k_cache[...] = split_heads_stacked(k).astype(jnp.bfloat16)   # (NH, S, dh)
            v_cache[...] = split_heads_stacked(v).astype(jnp.bfloat16)

    # Query rows for this step come straight out of the resident x block —
    # no separate pipelined x_tile input stream.
    q_start = pl.multiple_of(t * q_tile, 8)
    x_tile = x_ref[pl.ds(q_start, q_tile), :]                            # (TQ, H) f32

    q = jnp.dot(x_tile.astype(jnp.bfloat16), wq_ref[...],
                preferred_element_type=jnp.float32) + bq
    q = q * scale            # fold 1/sqrt(dh) into q (TQ*H muls, not NH*TQ*S)

    # Attention: contraction over dh is the least MXU-efficient matmul on the
    # 256-deep MXU generations — keep TQ / S large so M and N fill the MXU.
    if heads_via_reshape:
        qh = q.reshape(q_tile, num_heads, dh).astype(jnp.bfloat16)       # (TQ, NH, dh)
        kh = k_cache[...].reshape(seq, num_heads, dh)                    # (S,  NH, dh)
        vh = v_cache[...].reshape(seq, num_heads, dh)
        scores = jnp.einsum("qhd,khd->hqk", qh, kh,
                            preferred_element_type=jnp.float32)          # (NH, TQ, S)
    else:
        qh = split_heads_stacked(q).astype(jnp.bfloat16)                 # (NH, TQ, dh)
        kh = k_cache[...]                                                # (NH, S, dh)
        vh = v_cache[...]
        scores = jnp.einsum("hqd,hkd->hqk", qh, kh,
                            preferred_element_type=jnp.float32)

    scores = scores - jnp.max(scores, axis=-1, keepdims=True)
    p = jnp.exp(scores)
    p = p * pl.reciprocal(jnp.sum(p, axis=-1, keepdims=True), approx=True)
    p = p.astype(jnp.bfloat16)

    if heads_via_reshape:
        ctx = jnp.einsum("hqk,khd->qhd", p, vh,
                         preferred_element_type=jnp.float32)             # (TQ, NH, dh)
        attn = ctx.reshape(q_tile, hidden)
    else:
        ctx = jnp.einsum("hqk,hkd->hqd", p, vh,
                         preferred_element_type=jnp.float32)             # (NH, TQ, dh)
        attn = jnp.concatenate([ctx[h] for h in range(num_heads)], axis=-1)

    attn = jnp.dot(attn.astype(jnp.bfloat16), wo_ref[...],
                   preferred_element_type=jnp.float32) + bo

    h1 = _layernorm(x_tile + attn, ln1_g, ln1_b)

    ff = jnp.dot(h1.astype(jnp.bfloat16), w1_ref[...],
                 preferred_element_type=jnp.float32) + b1_ref[0]
    # TODO(synk): HF encoders vary between exact-erf and tanh GELU; tanh-approx kept.
    ff = jax.nn.gelu(ff)
    ff = jnp.dot(ff.astype(jnp.bfloat16), w2_ref[...],
                 preferred_element_type=jnp.float32) + b2

    out_ref[...] = _layernorm(h1 + ff, ln2_g, ln2_b)


def _vmem_limit_bytes():
    """Per-generation VMEM request (physical: 128 MiB v5e/v6e, 64 MiB v7x)."""
    cap = 128 * 1024 * 1024
    try:
        cap = int(pltpu.get_tpu_info().vmem_capacity_bytes)
    except Exception:       # non-TPU query path / older jaxlib: keep default
        pass
    # Leave headroom for compiler-internal scratch; never ask above 100 MiB.
    return max(32 * 1024 * 1024, min(cap - 16 * 1024 * 1024, 100 * 1024 * 1024))


def summary_adapter_forward(x_embed, params, *, num_heads, q_tile=None):
    """x_embed: [B, S, H] float32 (already embedded input_ids)."""
    B, S, H = x_embed.shape
    F = params["w1"].shape[-1]
    dh = H // num_heads
    # Largest sublane-aligned q tile (per-step overhead ~600 cycles); for small
    # S use the whole sequence.  Callers can pass q_tile per generation.
    TQ = q_tile if q_tile is not None else min(S, 256)
    assert S % TQ == 0 and TQ % 8 == 0, "q tile must divide S and be sublane aligned"
    assert H % 128 == 0, "hidden must be lane-dense (multiple of 128)"
    assert H % num_heads == 0

    bf16 = jnp.bfloat16
    wq = params["wq"].astype(bf16)
    wk = params["wk"].astype(bf16)
    wv = params["wv"].astype(bf16)
    wo = params["wo"].astype(bf16)
    w1 = params["w1"].astype(bf16)
    w2 = params["w2"].astype(bf16)
    # Consolidate the ten small bias / LayerNorm vectors into one (9, H) slab
    # plus a (1, F) slab: one BlockSpec / DMA stream each instead of ten.
    hvec = jnp.concatenate(
        [params["bq"], params["bk"], params["bv"], params["bo"], params["b2"],
         params["ln1_g"], params["ln1_b"], params["ln2_g"], params["ln2_b"]],
        axis=0).astype(jnp.float32)
    b1 = params["b1"].astype(jnp.float32)

    flops = int(B * (8 * S * H * H + 4 * S * S * H + 4 * S * H * F))
    transcendentals = int(B * S * (num_heads * S + F))
    # x is DMA'd once per batch (index_map constant over the seq-tile axis) and
    # K/V live in VMEM scratch, so HBM traffic = weights once + activations in/out.
    bytes_accessed = int(
        (4 * H * H + 2 * H * F) * 2          # bf16 weights
        + (9 * H + F) * 4                    # f32 bias + LN slabs
        + 2 * B * S * H * 4)                 # activations in / out

    vmem_limit = _vmem_limit_bytes()

    def call(heads_via_reshape, single_buffer_weights):
        def wspec(shape):
            # Grid-invariant weights / biases (constant index_map).  Single-
            # buffer them where supported — halves weight VMEM (v7x-critical).
            if single_buffer_weights:
                return pl.BlockSpec(shape, lambda b, t: (0, 0),
                                    pipeline_mode=pl.Buffered(1))
            return pl.BlockSpec(shape, lambda b, t: (0, 0))

        in_specs = [
            pl.BlockSpec((pl.Squeezed(), S, H), lambda b, t: (b, 0, 0)),  # x full seq
            wspec((H, H)), wspec((H, H)), wspec((H, H)), wspec((H, H)),   # wq wk wv wo
            wspec((H, F)), wspec((F, H)),                                 # w1 w2
            wspec((9, H)), wspec((1, F)),                                 # bias/LN slabs
        ]
        out_spec = pl.BlockSpec((pl.Squeezed(), TQ, H), lambda b, t: (b, t, 0))
        kv_shape = (S, H) if heads_via_reshape else (num_heads, S, dh)
        scratch = [pltpu.VMEM(kv_shape, bf16), pltpu.VMEM(kv_shape, bf16)]

        kernel = functools.partial(
            encoder_layer_kernel, num_heads=num_heads, q_tile=TQ,
            heads_via_reshape=heads_via_reshape)
        return pl.pallas_call(
            kernel,
            out_shape=jax.ShapeDtypeStruct((B, S, H), jnp.float32),
            grid_spec=pltpu.PrefetchScalarGridSpec(
                num_scalar_prefetch=0,
                grid=(B, S // TQ),
                in_specs=in_specs,
                out_specs=out_spec,
                scratch_shapes=scratch,
            ),
            compiler_params=pltpu.CompilerParams(
                # seq-tile axis carries the per-batch K/V scratch -> "arbitrary";
                # batch axis is independent -> "parallel" (megacore friendly).
                dimension_semantics=("parallel", "arbitrary"),
                vmem_limit_bytes=vmem_limit,
            ),
            cost_estimate=pl.CostEstimate(
                flops=flops, transcendentals=transcendentals,
                bytes_accessed=bytes_accessed),
        )(x_embed, wq, wk, wv, wo, w1, w2, hvec, b1)

    # Preferred config first; later entries are jaxlib-portability fallbacks
    # only (some versions reject pipeline_mode=Buffered(1) or the reshape-based
    # head relayout).  All variants compute identical results.
    last_exc = None
    for heads_via_reshape, single_buffer in (
            (True, True), (True, False), (False, True), (False, False)):
        try:
            return call(heads_via_reshape, single_buffer)
        except Exception as exc:   # noqa: BLE001 — feature-portability fallback
            last_exc = exc
    raise last_exc


def reference_forward(x, p, num_heads):
    """Pure-JAX f32 reference of the same synthetic encoder layer."""
    B, S, H = x.shape
    dh = H // num_heads
    q = x @ p["wq"] + p["bq"][0]
    k = x @ p["wk"] + p["bk"][0]
    v = x @ p["wv"] + p["bv"][0]
    q = q.reshape(B, S, num_heads, dh).transpose(0, 2, 1, 3)
    k = k.reshape(B, S, num_heads, dh).transpose(0, 2, 1, 3)
    v = v.reshape(B, S, num_heads, dh).transpose(0, 2, 1, 3)
    s = jnp.einsum("bhqd,bhkd->bhqk", q, k) / math.sqrt(dh)
    a = jax.nn.softmax(s, axis=-1)
    ctx = jnp.einsum("bhqk,bhkd->bhqd", a, v)
    ctx = ctx.transpose(0, 2, 1, 3).reshape(B, S, H)
    attn = ctx @ p["wo"] + p["bo"][0]
    h1 = _layernorm(x + attn, p["ln1_g"][0], p["ln1_b"][0])
    ff = jax.nn.gelu(h1 @ p["w1"] + p["b1"][0])
    ff = ff @ p["w2"] + p["b2"][0]
    return _layernorm(h1 + ff, p["ln2_g"][0], p["ln2_b"][0])


def init_params(key, hidden, ffn):
    ks = jax.random.split(key, 8)
    s = 0.02
    p = {
        "wq": jax.random.normal(ks[0], (hidden, hidden), jnp.float32) * s,
        "wk": jax.random.normal(ks[1], (hidden, hidden), jnp.float32) * s,
        "wv": jax.random.normal(ks[2], (hidden, hidden), jnp.float32) * s,
        "wo": jax.random.normal(ks[3], (hidden, hidden), jnp.float32) * s,
        "w1": jax.random.normal(ks[4], (hidden, ffn), jnp.float32) * s,
        "w2": jax.random.normal(ks[5], (ffn, hidden), jnp.float32) * s,
        "bq": jnp.zeros((1, hidden), jnp.float32),
        "bk": jnp.zeros((1, hidden), jnp.float32),
        "bv": jnp.zeros((1, hidden), jnp.float32),
        "bo": jnp.zeros((1, hidden), jnp.float32),
        "b1": jnp.zeros((1, ffn), jnp.float32),
        "b2": jnp.zeros((1, hidden), jnp.float32),
        "ln1_g": jnp.ones((1, hidden), jnp.float32),
        "ln1_b": jnp.zeros((1, hidden), jnp.float32),
        "ln2_g": jnp.ones((1, hidden), jnp.float32),
        "ln2_b": jnp.zeros((1, hidden), jnp.float32),
    }
    return p, ks[6], ks[7]


if __name__ == "__main__":
    # H is a multiple of 128 (lane-dense); q tiles are multiples of 8.
    B, S, H, NH, FFN, VOCAB = 2, 16, 128, 4, 256, 50

    key = jax.random.PRNGKey(0)
    params, k_emb, k_ids = init_params(key, H, FFN)

    # Glue: token + position embedding (part of self.net in the original module).
    input_ids = jax.random.randint(k_ids, (B, S), 0, VOCAB)
    k_tok, k_pos = jax.random.split(k_emb)
    tok_emb = jax.random.normal(k_tok, (VOCAB, H), jnp.float32) * 0.02
    pos_emb = jax.random.normal(k_pos, (S, H), jnp.float32) * 0.02
    x_embed = jnp.take(tok_emb, input_ids, axis=0) + pos_emb[None, :, :]

    ref = reference_forward(x_embed, params, NH)

    # Default tile (TQ = S here -> grid (B, 1)).
    out_full = jax.block_until_ready(
        summary_adapter_forward(x_embed, params, num_heads=NH))
    # Multi-tile run: exercises the per-batch K/V scratch reuse (t > 0 path).
    out_tiled = jax.block_until_ready(
        summary_adapter_forward(x_embed, params, num_heads=NH, q_tile=8))

    for out in (out_full, out_tiled):
        assert out.shape == (B, S, H)
        assert bool(jnp.all(jnp.isfinite(out)))
        max_err = float(jnp.max(jnp.abs(out - ref)))
        assert max_err < 5e-2, f"kernel deviates from reference: {max_err}"

    print("KERNEL_OK")
</pallas_src>

<mosaic_0001>
module attributes {stable_mosaic.version = 11 : i64} {
  func.func @encoder_layer_kernel(%arg0: i32, %arg1: i32, %arg2: memref<1x16x128xf32, #tpu.memory_space<vmem>>, %arg3: memref<128x128xbf16, #tpu.memory_space<vmem>>, %arg4: memref<128x128xbf16, #tpu.memory_space<vmem>>, %arg5: memref<128x128xbf16, #tpu.memory_space<vmem>>, %arg6: memref<128x128xbf16, #tpu.memory_space<vmem>>, %arg7: memref<128x256xbf16, #tpu.memory_space<vmem>>, %arg8: memref<256x128xbf16, #tpu.memory_space<vmem>>, %arg9: memref<9x128xf32, #tpu.memory_space<vmem>>, %arg10: memref<1x256xf32, #tpu.memory_space<vmem>>, %arg11: memref<1x16x128xf32, #tpu.memory_space<vmem>>, %arg12: memref<16x128xbf16, #tpu.memory_space<vmem>>, %arg13: memref<16x128xbf16, #tpu.memory_space<vmem>>) attributes {dimension_semantics = [#tpu.dimension_semantics<parallel>, #tpu.dimension_semantics<arbitrary>], iteration_bounds = array<i64: 2, 1>, scalar_prefetch = 0 : i64, scratch_operands = 2 : i64, tpu.core_type = #tpu.core_type<tc>, window_params = [{transform_indices = @transform_0, window_bounds = array<i64: 1, 16, 128>}, {pipeline_mode = #tpu.pipeline_mode<synchronous>, transform_indices = @transform_1, window_bounds = array<i64: 128, 128>}, {pipeline_mode = #tpu.pipeline_mode<synchronous>, transform_indices = @transform_2, window_bounds = array<i64: 128, 128>}, {pipeline_mode = #tpu.pipeline_mode<synchronous>, transform_indices = @transform_3, window_bounds = array<i64: 128, 128>}, {pipeline_mode = #tpu.pipeline_mode<synchronous>, transform_indices = @transform_4, window_bounds = array<i64: 128, 128>}, {pipeline_mode = #tpu.pipeline_mode<synchronous>, transform_indices = @transform_5, window_bounds = array<i64: 128, 256>}, {pipeline_mode = #tpu.pipeline_mode<synchronous>, transform_indices = @transform_6, window_bounds = array<i64: 256, 128>}, {pipeline_mode = #tpu.pipeline_mode<synchronous>, transform_indices = @transform_7, window_bounds = array<i64: 9, 128>}, {pipeline_mode = #tpu.pipeline_mode<synchronous>, transform_indices = @transform_8, window_bounds = array<i64: 1, 256>}, {transform_indices = @transform_9, window_bounds = array<i64: 1, 16, 128>}]} {
    %c0 = arith.constant 0 : index
    %c0_0 = arith.constant 0 : index
    %0 = vector.load %arg9[%c0, %c0_0] : memref<9x128xf32, #tpu.memory_space<vmem>>, vector<9x128xf32>
    %1 = vector.extract_strided_slice %0 {offsets = [0, 0], sizes = [1, 128], strides = [1, 1]} : vector<9x128xf32> to vector<1x128xf32>
    %2 = vector.shape_cast %1 : vector<1x128xf32> to vector<128xf32>
    %3 = vector.extract_strided_slice %0 {offsets = [1, 0], sizes = [1, 128], strides = [1, 1]} : vector<9x128xf32> to vector<1x128xf32>
    %4 = vector.shape_cast %3 : vector<1x128xf32> to vector<128xf32>
    %5 = vector.extract_strided_slice %0 {offsets = [2, 0], sizes = [1, 128], strides = [1, 1]} : vector<9x128xf32> to vector<1x128xf32>
    %6 = vector.shape_cast %5 : vector<1x128xf32> to vector<128xf32>
    %7 = vector.extract_strided_slice %0 {offsets = [3, 0], sizes = [1, 128], strides = [1, 1]} : vector<9x128xf32> to vector<1x128xf32>
    %8 = vector.shape_cast %7 : vector<1x128xf32> to vector<128xf32>
    %9 = vector.extract_strided_slice %0 {offsets = [4, 0], sizes = [1, 128], strides = [1, 1]} : vector<9x128xf32> to vector<1x128xf32>
    %10 = vector.shape_cast %9 : vector<1x128xf32> to vector<128xf32>
    %11 = vector.extract_strided_slice %0 {offsets = [5, 0], sizes = [1, 128], strides = [1, 1]} : vector<9x128xf32> to vector<1x128xf32>
    %12 = vector.shape_cast %11 : vector<1x128xf32> to vector<128xf32>
    %13 = vector.extract_strided_slice %0 {offsets = [6, 0], sizes = [1, 128], strides = [1, 1]} : vector<9x128xf32> to vector<1x128xf32>
    %14 = vector.shape_cast %13 : vector<1x128xf32> to vector<128xf32>
    %15 = vector.extract_strided_slice %0 {offsets = [7, 0], sizes = [1, 128], strides = [1, 1]} : vector<9x128xf32> to vector<1x128xf32>
    %16 = vector.shape_cast %15 : vector<1x128xf32> to vector<128xf32>
    %17 = vector.extract_strided_slice %0 {offsets = [8, 0], sizes = [1, 128], strides = [1, 1]} : vector<9x128xf32> to vector<1x128xf32>
    %18 = vector.shape_cast %17 : vector<1x128xf32> to vector<128xf32>
    %c0_i32 = arith.constant 0 : i32
    %19 = arith.cmpi eq, %arg1, %c0_i32 : i32
    %20 = arith.extui %19 : i1 to i32
    %c0_i32_1 = arith.constant 0 : i32
    %21 = arith.cmpi ne, %20, %c0_i32_1 : i32
    scf.if %21 {
      %c0_43 = arith.constant 0 : index
      %c0_44 = arith.constant 0 : index
      %c0_45 = arith.constant 0 : index
      %142 = vector.load %arg2[%c0_43, %c0_44, %c0_45] : memref<1x16x128xf32, #tpu.memory_space<vmem>>, vector<1x16x128xf32>
      %143 = vector.shape_cast %142 : vector<1x16x128xf32> to vector<16x128xf32>
      %144 = arith.truncf %143 : vector<16x128xf32> to vector<16x128xbf16>
      %c0_46 = arith.constant 0 : index
      %c0_47 = arith.constant 0 : index
      %145 = vector.load %arg4[%c0_46, %c0_47] : memref<128x128xbf16, #tpu.memory_space<vmem>>, vector<128x128xbf16>
      %cst_48 = arith.constant dense<0.000000e+00> : vector<16x128xf32>
      %146 = tpu.matmul %144, %145, %cst_48 {dimension_numbers = #tpu.dot_dimension_numbers<[1], [0], [0], [1], [0, 0, 1, 1], [], []>} : vector<16x128xbf16>, vector<128x128xbf16>, vector<16x128xf32> -> vector<16x128xf32>
      %147 = vector.shape_cast %4 : vector<128xf32> to vector<1x128xf32>
      %148 = vector.broadcast %147 : vector<1x128xf32> to vector<16x128xf32>
      %149 = arith.addf %146, %148 : vector<16x128xf32>
      %c0_49 = arith.constant 0 : index
      %c0_50 = arith.constant 0 : index
      %150 = vector.load %arg5[%c0_49, %c0_50] : memref<128x128xbf16, #tpu.memory_space<vmem>>, vector<128x128xbf16>
      %cst_51 = arith.constant dense<0.000000e+00> : vector<16x128xf32>
      %151 = tpu.matmul %144, %150, %cst_51 {dimension_numbers = #tpu.dot_dimension_numbers<[1], [0], [0], [1], [0, 0, 1, 1], [], []>} : vector<16x128xbf16>, vector<128x128xbf16>, vector<16x128xf32> -> vector<16x128xf32>
      %152 = vector.shape_cast %6 : vector<128xf32> to vector<1x128xf32>
      %153 = vector.broadcast %152 : vector<1x128xf32> to vector<16x128xf32>
      %154 = arith.addf %151, %153 : vector<16x128xf32>
      %155 = arith.truncf %149 : vector<16x128xf32> to vector<16x128xbf16>
      %c0_52 = arith.constant 0 : index
      %c0_53 = arith.constant 0 : index
      %156 = vector.load %arg12[%c0_52, %c0_53] : memref<16x128xbf16, #tpu.memory_space<vmem>>, vector<16x128xbf16>
      tpu.vector_store %arg12[%c0_52, %c0_53], %155 {strides = array<i32>} : memref<16x128xbf16, #tpu.memory_space<vmem>>, vector<16x128xbf16>,
      %157 = arith.truncf %154 : vector<16x128xf32> to vector<16x128xbf16>
      %c0_54 = arith.constant 0 : index
      %c0_55 = arith.constant 0 : index
      %158 = vector.load %arg13[%c0_54, %c0_55] : memref<16x128xbf16, #tpu.memory_space<vmem>>, vector<16x128xbf16>
      tpu.vector_store %arg13[%c0_54, %c0_55], %157 {strides = array<i32>} : memref<16x128xbf16, #tpu.memory_space<vmem>>, vector<16x128xbf16>,
    } else {
    }
    %c16_i32 = arith.constant 16 : i32
    %22 = arith.muli %arg1, %c16_i32 : i32
    %23 = tpu.assume_multiple %22, 8 : i32
    %c0_2 = arith.constant 0 : index
    %24 = arith.index_cast %23 : i32 to index
    %c0_3 = arith.constant 0 : index
    %25 = vector.load %arg2[%c0_2, %24, %c0_3] : memref<1x16x128xf32, #tpu.memory_space<vmem>>, vector<1x16x128xf32>
    %26 = vector.shape_cast %25 : vector<1x16x128xf32> to vector<16x128xf32>
    %27 = arith.truncf %26 : vector<16x128xf32> to vector<16x128xbf16>
    %c0_4 = arith.constant 0 : index
    %c0_5 = arith.constant 0 : index
    %28 = vector.load %arg3[%c0_4, %c0_5] : memref<128x128xbf16, #tpu.memory_space<vmem>>, vector<128x128xbf16>
    %cst = arith.constant dense<0.000000e+00> : vector<16x128xf32>
    %29 = tpu.matmul %27, %28, %cst {dimension_numbers = #tpu.dot_dimension_numbers<[1], [0], [0], [1], [0, 0, 1, 1], [], []>} : vector<16x128xbf16>, vector<128x128xbf16>, vector<16x128xf32> -> vector<16x128xf32>
    %30 = vector.shape_cast %2 : vector<128xf32> to vector<1x128xf32>
    %31 = vector.broadcast %30 : vector<1x128xf32> to vector<16x128xf32>
    %32 = arith.addf %29, %31 : vector<16x128xf32>
    %cst_6 = arith.constant 0.176776692 : f32
    %33 = vector.broadcast %cst_6 : f32 to vector<16x128xf32>
    %34 = arith.mulf %32, %33 : vector<16x128xf32>
    %35 = vector.shape_cast %34 : vector<16x128xf32> to vector<16x4x32xf32>
    %36 = arith.truncf %35 : vector<16x4x32xf32> to vector<16x4x32xbf16>
    %c0_7 = arith.constant 0 : index
    %c0_8 = arith.constant 0 : index
    %37 = vector.load %arg12[%c0_7, %c0_8] : memref<16x128xbf16, #tpu.memory_space<vmem>>, vector<16x128xbf16>
    %38 = vector.shape_cast %37 : vector<16x128xbf16> to vector<16x4x32xbf16>
    %c0_9 = arith.constant 0 : index
    %c0_10 = arith.constant 0 : index
    %39 = vector.load %arg13[%c0_9, %c0_10] : memref<16x128xbf16, #tpu.memory_space<vmem>>, vector<16x128xbf16>
    %40 = vector.shape_cast %39 : vector<16x128xbf16> to vector<16x4x32xbf16>
    "tpu.trace_start"() <{level = 10 : i32, message = "qhd,khd->hqk"}> : () -> ()
    %cst_11 = arith.constant dense<0.000000e+00> : vector<4x16x16xf32>
    %41 = tpu.matmul %36, %38, %cst_11 {dimension_numbers = #tpu.dot_dimension_numbers<[2], [2], [0], [0], [0, 1, 0, 0, 1, 0], [1], [1]>} : vector<16x4x32xbf16>, vector<16x4x32xbf16>, vector<4x16x16xf32> -> vector<4x16x16xf32>
    "tpu.trace_stop"() : () -> ()
    %cst_12 = arith.constant dense<0xFF800000> : vector<4x16xf32>
    %42 = vector.multi_reduction <maximumf>, %41, %cst_12 [2] : vector<4x16x16xf32> to vector<4x16xf32>
    %43 = vector.shape_cast %42 : vector<4x16xf32> to vector<4x16x1xf32>
    %44 = vector.broadcast %43 : vector<4x16x1xf32> to vector<4x16x16xf32>
    %45 = arith.subf %41, %44 : vector<4x16x16xf32>
    %46 = math.exp %45 : vector<4x16x16xf32>
    %cst_13 = arith.constant dense<0.000000e+00> : vector<4x16xf32>
    %47 = vector.multi_reduction <add>, %46, %cst_13 [2] : vector<4x16x16xf32> to vector<4x16xf32>
    %48 = vector.shape_cast %47 : vector<4x16xf32> to vector<4x16x1xf32>
    %49 = tpu.reciprocal %48 {approx = true} : vector<4x16x1xf32> -> vector<4x16x1xf32>
    %50 = vector.broadcast %49 : vector<4x16x1xf32> to vector<4x16x16xf32>
    %51 = arith.mulf %46, %50 : vector<4x16x16xf32>
    %52 = arith.truncf %51 : vector<4x16x16xf32> to vector<4x16x16xbf16>
    "tpu.trace_start"() <{level = 10 : i32, message = "hqk,khd->qhd"}> : () -> ()
    %cst_14 = arith.constant dense<0.000000e+00> : vector<4x32x16xf32>
    %53 = tpu.matmul %40, %52, %cst_14 {dimension_numbers = #tpu.dot_dimension_numbers<[0], [2], [2], [1], [0, 1, 0, 2, 1, 1], [1], [0]>} : vector<16x4x32xbf16>, vector<4x16x16xbf16>, vector<4x32x16xf32> -> vector<4x32x16xf32>
    %54 = tpu.transpose %53, [2, 0, 1] : vector<4x32x16xf32> -> vector<16x4x32xf32>
    "tpu.trace_stop"() : () -> ()
    %55 = vector.shape_cast %54 : vector<16x4x32xf32> to vector<16x128xf32>
    %56 = arith.truncf %55 : vector<16x128xf32> to vector<16x128xbf16>
    %c0_15 = arith.constant 0 : index
    %c0_16 = arith.constant 0 : index
    %57 = vector.load %arg6[%c0_15, %c0_16] : memref<128x128xbf16, #tpu.memory_space<vmem>>, vector<128x128xbf16>
    %cst_17 = arith.constant dense<0.000000e+00> : vector<16x128xf32>
    %58 = tpu.matmul %56, %57, %cst_17 {dimension_numbers = #tpu.dot_dimension_numbers<[1], [0], [0], [1], [0, 0, 1, 1], [], []>} : vector<16x128xbf16>, vector<128x128xbf16>, vector<16x128xf32> -> vector<16x128xf32>
    %59 = vector.shape_cast %8 : vector<128xf32> to vector<1x128xf32>
    %60 = vector.broadcast %59 : vector<1x128xf32> to vector<16x128xf32>
    %61 = arith.addf %58, %60 : vector<16x128xf32>
    %62 = arith.addf %26, %61 : vector<16x128xf32>
    %cst_18 = arith.constant dense<0.000000e+00> : vector<16xf32>
    %63 = vector.multi_reduction <add>, %62, %cst_18 [1] : vector<16x128xf32> to vector<16xf32>
    %64 = vector.shape_cast %63 : vector<16xf32> to vector<16x1xf32>
    %cst_19 = arith.constant 1.280000e+02 : f32
    %65 = vector.broadcast %cst_19 : f32 to vector<16x1xf32>
    %66 = arith.divf %64, %65 : vector<16x1xf32>
    %67 = vector.broadcast %66 : vector<16x1xf32> to vector<16x128xf32>
    %68 = arith.subf %62, %67 : vector<16x128xf32>
    %69 = arith.mulf %68, %68 : vector<16x128xf32>
    %cst_20 = arith.constant dense<0.000000e+00> : vector<16xf32>
    %70 = vector.multi_reduction <add>, %69, %cst_20 [1] : vector<16x128xf32> to vector<16xf32>
    %71 = vector.shape_cast %70 : vector<16xf32> to vector<16x1xf32>
    %cst_21 = arith.constant 1.280000e+02 : f32
    %72 = vector.broadcast %cst_21 : f32 to vector<16x1xf32>
    %73 = arith.divf %71, %72 : vector<16x1xf32>
    %74 = vector.broadcast %66 : vector<16x1xf32> to vector<16x128xf32>
    %75 = arith.subf %62, %74 : vector<16x128xf32>
    %cst_22 = arith.constant 9.99999974E-6 : f32
    %76 = vector.broadcast %cst_22 : f32 to vector<16x1xf32>
    %77 = arith.addf %73, %76 : vector<16x1xf32>
    %78 = math.rsqrt %77 : vector<16x1xf32>
    %79 = vector.broadcast %78 : vector<16x1xf32> to vector<16x128xf32>
    %80 = arith.mulf %75, %79 : vector<16x128xf32>
    %81 = vector.shape_cast %12 : vector<128xf32> to vector<1x128xf32>
    %82 = vector.broadcast %81 : vector<1x128xf32> to vector<16x128xf32>
    %83 = arith.mulf %80, %82 : vector<16x128xf32>
    %84 = vector.shape_cast %14 : vector<128xf32> to vector<1x128xf32>
    %85 = vector.broadcast %84 : vector<1x128xf32> to vector<16x128xf32>
    %86 = arith.addf %83, %85 : vector<16x128xf32>
    %87 = arith.truncf %86 : vector<16x128xf32> to vector<16x128xbf16>
    %c0_23 = arith.constant 0 : index
    %c0_24 = arith.constant 0 : index
    %88 = vector.load %arg7[%c0_23, %c0_24] : memref<128x256xbf16, #tpu.memory_space<vmem>>, vector<128x256xbf16>
    %cst_25 = arith.constant dense<0.000000e+00> : vector<16x256xf32>
    %89 = tpu.matmul %87, %88, %cst_25 {dimension_numbers = #tpu.dot_dimension_numbers<[1], [0], [0], [1], [0, 0, 1, 1], [], []>} : vector<16x128xbf16>, vector<128x256xbf16>, vector<16x256xf32> -> vector<16x256xf32>
    %c0_26 = arith.constant 0 : index
    %c0_27 = arith.constant 0 : index
    %90 = vector.load %arg10[%c0_26, %c0_27] : memref<1x256xf32, #tpu.memory_space<vmem>>, vector<1x256xf32>
    %91 = vector.shape_cast %90 : vector<1x256xf32> to vector<256xf32>
    %92 = vector.shape_cast %91 : vector<256xf32> to vector<1x256xf32>
    %93 = vector.broadcast %92 : vector<1x256xf32> to vector<16x256xf32>
    %94 = arith.addf %89, %93 : vector<16x256xf32>
    %95 = arith.mulf %94, %94 : vector<16x256xf32>
    %96 = arith.mulf %94, %95 : vector<16x256xf32>
    %cst_28 = arith.constant 4.471500e-02 : f32
    %97 = vector.broadcast %cst_28 : f32 to vector<16x256xf32>
    %98 = arith.mulf %97, %96 : vector<16x256xf32>
    %99 = arith.addf %94, %98 : vector<16x256xf32>
    %cst_29 = arith.constant 0.797884583 : f32
    %100 = vector.broadcast %cst_29 : f32 to vector<16x256xf32>
    %101 = arith.mulf %100, %99 : vector<16x256xf32>
    %102 = math.tanh %101 : vector<16x256xf32>
    %cst_30 = arith.constant 1.000000e+00 : f32
    %103 = vector.broadcast %cst_30 : f32 to vector<16x256xf32>
    %104 = arith.addf %103, %102 : vector<16x256xf32>
    %cst_31 = arith.constant 5.000000e-01 : f32
    %105 = vector.broadcast %cst_31 : f32 to vector<16x256xf32>
    %106 = arith.mulf %105, %104 : vector<16x256xf32>
    %107 = arith.mulf %94, %106 : vector<16x256xf32>
    %108 = arith.truncf %107 : vector<16x256xf32> to vector<16x256xbf16>
    %c0_32 = arith.constant 0 : index
    %c0_33 = arith.constant 0 : index
    %109 = vector.load %arg8[%c0_32, %c0_33] : memref<256x128xbf16, #tpu.memory_space<vmem>>, vector<256x128xbf16>
    %cst_34 = arith.constant dense<0.000000e+00> : vector<16x128xf32>
    %110 = tpu.matmul %108, %109, %cst_34 {dimension_numbers = #tpu.dot_dimension_numbers<[1], [0], [0], [1], [0, 0, 1, 1], [], []>} : vector<16x256xbf16>, vector<256x128xbf16>, vector<16x128xf32> -> vector<16x128xf32>
    %111 = vector.shape_cast %10 : vector<128xf32> to vector<1x128xf32>
    %112 = vector.broadcast %111 : vector<1x128xf32> to vector<16x128xf32>
    %113 = arith.addf %110, %112 : vector<16x128xf32>
    %114 = arith.addf %86, %113 : vector<16x128xf32>
    %cst_35 = arith.constant dense<0.000000e+00> : vector<16xf32>
    %115 = vector.multi_reduction <add>, %114, %cst_35 [1] : vector<16x128xf32> to vector<16xf32>
    %116 = vector.shape_cast %115 : vector<16xf32> to vector<16x1xf32>
    %cst_36 = arith.constant 1.280000e+02 : f32
    %117 = vector.broadcast %cst_36 : f32 to vector<16x1xf32>
    %118 = arith.divf %116, %117 : vector<16x1xf32>
    %119 = vector.broadcast %118 : vector<16x1xf32> to vector<16x128xf32>
    %120 = arith.subf %114, %119 : vector<16x128xf32>
    %121 = arith.mulf %120, %120 : vector<16x128xf32>
    %cst_37 = arith.constant dense<0.000000e+00> : vector<16xf32>
    %122 = vector.multi_reduction <add>, %121, %cst_37 [1] : vector<16x128xf32> to vector<16xf32>
    %123 = vector.shape_cast %122 : vector<16xf32> to vector<16x1xf32>
    %cst_38 = arith.constant 1.280000e+02 : f32
    %124 = vector.broadcast %cst_38 : f32 to vector<16x1xf32>
    %125 = arith.divf %123, %124 : vector<16x1xf32>
    %126 = vector.broadcast %118 : vector<16x1xf32> to vector<16x128xf32>
    %127 = arith.subf %114, %126 : vector<16x128xf32>
    %cst_39 = arith.constant 9.99999974E-6 : f32
    %128 = vector.broadcast %cst_39 : f32 to vector<16x1xf32>
    %129 = arith.addf %125, %128 : vector<16x1xf32>
    %130 = math.rsqrt %129 : vector<16x1xf32>
    %131 = vector.broadcast %130 : vector<16x1xf32> to vector<16x128xf32>
    %132 = arith.mulf %127, %131 : vector<16x128xf32>
    %133 = vector.shape_cast %16 : vector<128xf32> to vector<1x128xf32>
    %134 = vector.broadcast %133 : vector<1x128xf32> to vector<16x128xf32>
    %135 = arith.mulf %132, %134 : vector<16x128xf32>
    %136 = vector.shape_cast %18 : vector<128xf32> to vector<1x128xf32>
    %137 = vector.broadcast %136 : vector<1x128xf32> to vector<16x128xf32>
    %138 = arith.addf %135, %137 : vector<16x128xf32>
    %c0_40 = arith.constant 0 : index
    %c0_41 = arith.constant 0 : index
    %c0_42 = arith.constant 0 : index
    %139 = vector.load %arg11[%c0_40, %c0_41, %c0_42] : memref<1x16x128xf32, #tpu.memory_space<vmem>>, vector<1x16x128xf32>
    %140 = vector.shape_cast %139 : vector<1x16x128xf32> to vector<16x128xf32>
    %141 = vector.shape_cast %138 : vector<16x128xf32> to vector<1x16x128xf32>
    tpu.vector_store %arg11[%c0_40, %c0_41, %c0_42], %141 {strides = array<i32>} : memref<1x16x128xf32, #tpu.memory_space<vmem>>, vector<1x16x128xf32>,
    return
  }
  func.func @transform_0(%arg0: i32, %arg1: i32) -> (i32, i32, i32) {
    %c0_i32 = arith.constant 0 : i32
    %c0_i32_0 = arith.constant 0 : i32
    %c0_i32_1 = arith.constant 0 : i32
    return %arg0, %c0_i32, %c0_i32_0 : i32, i32, i32
  }
  func.func @transform_1(%arg0: i32, %arg1: i32) -> (i32, i32) {
    %c0_i32 = arith.constant 0 : i32
    %c0_i32_0 = arith.constant 0 : i32
    %c0_i32_1 = arith.constant 0 : i32
    return %c0_i32, %c0_i32_0 : i32, i32
  }
  func.func @transform_2(%arg0: i32, %arg1: i32) -> (i32, i32) {
    %c0_i32 = arith.constant 0 : i32
    %c0_i32_0 = arith.constant 0 : i32
    %c0_i32_1 = arith.constant 0 : i32
    return %c0_i32, %c0_i32_0 : i32, i32
  }
  func.func @transform_3(%arg0: i32, %arg1: i32) -> (i32, i32) {
    %c0_i32 = arith.constant 0 : i32
    %c0_i32_0 = arith.constant 0 : i32
    %c0_i32_1 = arith.constant 0 : i32
    return %c0_i32, %c0_i32_0 : i32, i32
  }
  func.func @transform_4(%arg0: i32, %arg1: i32) -> (i32, i32) {
    %c0_i32 = arith.constant 0 : i32
    %c0_i32_0 = arith.constant 0 : i32
    %c0_i32_1 = arith.constant 0 : i32
    return %c0_i32, %c0_i32_0 : i32, i32
  }
  func.func @transform_5(%arg0: i32, %arg1: i32) -> (i32, i32) {
    %c0_i32 = arith.constant 0 : i32
    %c0_i32_0 = arith.constant 0 : i32
    %c0_i32_1 = arith.constant 0 : i32
    return %c0_i32, %c0_i32_0 : i32, i32
  }
  func.func @transform_6(%arg0: i32, %arg1: i32) -> (i32, i32) {
    %c0_i32 = arith.constant 0 : i32
    %c0_i32_0 = arith.constant 0 : i32
    %c0_i32_1 = arith.constant 0 : i32
    return %c0_i32, %c0_i32_0 : i32, i32
  }
  func.func @transform_7(%arg0: i32, %arg1: i32) -> (i32, i32) {
    %c0_i32 = arith.constant 0 : i32
    %c0_i32_0 = arith.constant 0 : i32
    %c0_i32_1 = arith.constant 0 : i32
    return %c0_i32, %c0_i32_0 : i32, i32
  }
  func.func @transform_8(%arg0: i32, %arg1: i32) -> (i32, i32) {
    %c0_i32 = arith.constant 0 : i32
    %c0_i32_0 = arith.constant 0 : i32
    %c0_i32_1 = arith.constant 0 : i32
    return %c0_i32, %c0_i32_0 : i32, i32
  }
  func.func @transform_9(%arg0: i32, %arg1: i32) -> (i32, i32, i32) {
    %c0_i32 = arith.constant 0 : i32
    %c0_i32_0 = arith.constant 0 : i32
    return %arg0, %arg1, %c0_i32 : i32, i32, i32
  }
}

module attributes {stable_mosaic.version = 11 : i64} {
  func.func @encoder_layer_kernel(%arg0: i32, %arg1: i32, %arg2: memref<1x16x128xf32, #tpu.memory_space<vmem>>, %arg3: memref<128x128xbf16, #tpu.memory_space<vmem>>, %arg4: memref<128x128xbf16, #tpu.memory_space<vmem>>, %arg5: memref<128x128xbf16, #tpu.memory_space<vmem>>, %arg6: memref<128x128xbf16, #tpu.memory_space<vmem>>, %arg7: memref<128x256xbf16, #tpu.memory_space<vmem>>, %arg8: memref<256x128xbf16, #tpu.memory_space<vmem>>, %arg9: memref<9x128xf32, #tpu.memory_space<vmem>>, %arg10: memref<1x256xf32, #tpu.memory_space<vmem>>, %arg11: memref<1x16x128xf32, #tpu.memory_space<vmem>>, %arg12: memref<16x128xbf16, #tpu.memory_space<vmem>>, %arg13: memref<16x128xbf16, #tpu.memory_space<vmem>>) attributes {dimension_semantics = [#tpu.dimension_semantics<parallel>, #tpu.dimension_semantics<arbitrary>], iteration_bounds = array<i64: 2, 1>, scalar_prefetch = 0 : i64, scratch_operands = 2 : i64, tpu.core_type = #tpu.core_type<tc>, window_params = [{transform_indices = @transform_0, window_bounds = array<i64: 1, 16, 128>}, {pipeline_mode = #tpu.pipeline_mode<synchronous>, transform_indices = @transform_1, window_bounds = array<i64: 128, 128>}, {pipeline_mode = #tpu.pipeline_mode<synchronous>, transform_indices = @transform_2, window_bounds = array<i64: 128, 128>}, {pipeline_mode = #tpu.pipeline_mode<synchronous>, transform_indices = @transform_3, window_bounds = array<i64: 128, 128>}, {pipeline_mode = #tpu.pipeline_mode<synchronous>, transform_indices = @transform_4, window_bounds = array<i64: 128, 128>}, {pipeline_mode = #tpu.pipeline_mode<synchronous>, transform_indices = @transform_5, window_bounds = array<i64: 128, 256>}, {pipeline_mode = #tpu.pipeline_mode<synchronous>, transform_indices = @transform_6, window_bounds = array<i64: 256, 128>}, {pipeline_mode = #tpu.pipeline_mode<synchronous>, transform_indices = @transform_7, window_bounds = array<i64: 9, 128>}, {pipeline_mode = #tpu.pipeline_mode<synchronous>, transform_indices = @transform_8, window_bounds = array<i64: 1, 256>}, {transform_indices = @transform_9, window_bounds = array<i64: 1, 16, 128>}]} {
    %c0 = arith.constant 0 : index
    %c0_0 = arith.constant 0 : index
    %0 = vector.load %arg9[%c0, %c0_0] : memref<9x128xf32, #tpu.memory_space<vmem>>, vector<9x128xf32>
    %1 = vector.extract_strided_slice %0 {offsets = [0, 0], sizes = [1, 128], strides = [1, 1]} : vector<9x128xf32> to vector<1x128xf32>
    %2 = vector.shape_cast %1 : vector<1x128xf32> to vector<128xf32>
    %3 = vector.extract_strided_slice %0 {offsets = [1, 0], sizes = [1, 128], strides = [1, 1]} : vector<9x128xf32> to vector<1x128xf32>
    %4 = vector.shape_cast %3 : vector<1x128xf32> to vector<128xf32>
    %5 = vector.extract_strided_slice %0 {offsets = [2, 0], sizes = [1, 128], strides = [1, 1]} : vector<9x128xf32> to vector<1x128xf32>
    %6 = vector.shape_cast %5 : vector<1x128xf32> to vector<128xf32>
    %7 = vector.extract_strided_slice %0 {offsets = [3, 0], sizes = [1, 128], strides = [1, 1]} : vector<9x128xf32> to vector<1x128xf32>
    %8 = vector.shape_cast %7 : vector<1x128xf32> to vector<128xf32>
    %9 = vector.extract_strided_slice %0 {offsets = [4, 0], sizes = [1, 128], strides = [1, 1]} : vector<9x128xf32> to vector<1x128xf32>
    %10 = vector.shape_cast %9 : vector<1x128xf32> to vector<128xf32>
    %11 = vector.extract_strided_slice %0 {offsets = [5, 0], sizes = [1, 128], strides = [1, 1]} : vector<9x128xf32> to vector<1x128xf32>
    %12 = vector.shape_cast %11 : vector<1x128xf32> to vector<128xf32>
    %13 = vector.extract_strided_slice %0 {offsets = [6, 0], sizes = [1, 128], strides = [1, 1]} : vector<9x128xf32> to vector<1x128xf32>
    %14 = vector.shape_cast %13 : vector<1x128xf32> to vector<128xf32>
    %15 = vector.extract_strided_slice %0 {offsets = [7, 0], sizes = [1, 128], strides = [1, 1]} : vector<9x128xf32> to vector<1x128xf32>
    %16 = vector.shape_cast %15 : vector<1x128xf32> to vector<128xf32>
    %17 = vector.extract_strided_slice %0 {offsets = [8, 0], sizes = [1, 128], strides = [1, 1]} : vector<9x128xf32> to vector<1x128xf32>
    %18 = vector.shape_cast %17 : vector<1x128xf32> to vector<128xf32>
    %c0_i32 = arith.constant 0 : i32
    %19 = arith.cmpi eq, %arg1, %c0_i32 : i32
    %20 = arith.extui %19 : i1 to i32
    %c0_i32_1 = arith.constant 0 : i32
    %21 = arith.cmpi ne, %20, %c0_i32_1 : i32
    scf.if %21 {
      %c0_43 = arith.constant 0 : index
      %c0_44 = arith.constant 0 : index
      %c0_45 = arith.constant 0 : index
      %142 = vector.load %arg2[%c0_43, %c0_44, %c0_45] : memref<1x16x128xf32, #tpu.memory_space<vmem>>, vector<1x16x128xf32>
      %143 = vector.shape_cast %142 : vector<1x16x128xf32> to vector<16x128xf32>
      %144 = arith.truncf %143 : vector<16x128xf32> to vector<16x128xbf16>
      %c0_46 = arith.constant 0 : index
      %c0_47 = arith.constant 0 : index
      %145 = vector.load %arg4[%c0_46, %c0_47] : memref<128x128xbf16, #tpu.memory_space<vmem>>, vector<128x128xbf16>
      %cst_48 = arith.constant dense<0.000000e+00> : vector<16x128xf32>
      %146 = tpu.matmul %144, %145, %cst_48 {dimension_numbers = #tpu.dot_dimension_numbers<[1], [0], [0], [1], [0, 0, 1, 1], [], []>} : vector<16x128xbf16>, vector<128x128xbf16>, vector<16x128xf32> -> vector<16x128xf32>
      %147 = vector.shape_cast %4 : vector<128xf32> to vector<1x128xf32>
      %148 = vector.broadcast %147 : vector<1x128xf32> to vector<16x128xf32>
      %149 = arith.addf %146, %148 : vector<16x128xf32>
      %c0_49 = arith.constant 0 : index
      %c0_50 = arith.constant 0 : index
      %150 = vector.load %arg5[%c0_49, %c0_50] : memref<128x128xbf16, #tpu.memory_space<vmem>>, vector<128x128xbf16>
      %cst_51 = arith.constant dense<0.000000e+00> : vector<16x128xf32>
      %151 = tpu.matmul %144, %150, %cst_51 {dimension_numbers = #tpu.dot_dimension_numbers<[1], [0], [0], [1], [0, 0, 1, 1], [], []>} : vector<16x128xbf16>, vector<128x128xbf16>, vector<16x128xf32> -> vector<16x128xf32>
      %152 = vector.shape_cast %6 : vector<128xf32> to vector<1x128xf32>
      %153 = vector.broadcast %152 : vector<1x128xf32> to vector<16x128xf32>
      %154 = arith.addf %151, %153 : vector<16x128xf32>
      %155 = arith.truncf %149 : vector<16x128xf32> to vector<16x128xbf16>
      %c0_52 = arith.constant 0 : index
      %c0_53 = arith.constant 0 : index
      %156 = vector.load %arg12[%c0_52, %c0_53] : memref<16x128xbf16, #tpu.memory_space<vmem>>, vector<16x128xbf16>
      tpu.vector_store %arg12[%c0_52, %c0_53], %155 {strides = array<i32>} : memref<16x128xbf16, #tpu.memory_space<vmem>>, vector<16x128xbf16>,
      %157 = arith.truncf %154 : vector<16x128xf32> to vector<16x128xbf16>
      %c0_54 = arith.constant 0 : index
      %c0_55 = arith.constant 0 : index
      %158 = vector.load %arg13[%c0_54, %c0_55] : memref<16x128xbf16, #tpu.memory_space<vmem>>, vector<16x128xbf16>
      tpu.vector_store %arg13[%c0_54, %c0_55], %157 {strides = array<i32>} : memref<16x128xbf16, #tpu.memory_space<vmem>>, vector<16x128xbf16>,
    } else {
    }
    %c16_i32 = arith.constant 16 : i32
    %22 = arith.muli %arg1, %c16_i32 : i32
    %23 = tpu.assume_multiple %22, 8 : i32
    %c0_2 = arith.constant 0 : index
    %24 = arith.index_cast %23 : i32 to index
    %c0_3 = arith.constant 0 : index
    %25 = vector.load %arg2[%c0_2, %24, %c0_3] : memref<1x16x128xf32, #tpu.memory_space<vmem>>, vector<1x16x128xf32>
    %26 = vector.shape_cast %25 : vector<1x16x128xf32> to vector<16x128xf32>
    %27 = arith.truncf %26 : vector<16x128xf32> to vector<16x128xbf16>
    %c0_4 = arith.constant 0 : index
    %c0_5 = arith.constant 0 : index
    %28 = vector.load %arg3[%c0_4, %c0_5] : memref<128x128xbf16, #tpu.memory_space<vmem>>, vector<128x128xbf16>
    %cst = arith.constant dense<0.000000e+00> : vector<16x128xf32>
    %29 = tpu.matmul %27, %28, %cst {dimension_numbers = #tpu.dot_dimension_numbers<[1], [0], [0], [1], [0, 0, 1, 1], [], []>} : vector<16x128xbf16>, vector<128x128xbf16>, vector<16x128xf32> -> vector<16x128xf32>
    %30 = vector.shape_cast %2 : vector<128xf32> to vector<1x128xf32>
    %31 = vector.broadcast %30 : vector<1x128xf32> to vector<16x128xf32>
    %32 = arith.addf %29, %31 : vector<16x128xf32>
    %cst_6 = arith.constant 0.176776692 : f32
    %33 = vector.broadcast %cst_6 : f32 to vector<16x128xf32>
    %34 = arith.mulf %32, %33 : vector<16x128xf32>
    %35 = vector.shape_cast %34 : vector<16x128xf32> to vector<16x4x32xf32>
    %36 = arith.truncf %35 : vector<16x4x32xf32> to vector<16x4x32xbf16>
    %c0_7 = arith.constant 0 : index
    %c0_8 = arith.constant 0 : index
    %37 = vector.load %arg12[%c0_7, %c0_8] : memref<16x128xbf16, #tpu.memory_space<vmem>>, vector<16x128xbf16>
    %38 = vector.shape_cast %37 : vector<16x128xbf16> to vector<16x4x32xbf16>
    %c0_9 = arith.constant 0 : index
    %c0_10 = arith.constant 0 : index
    %39 = vector.load %arg13[%c0_9, %c0_10] : memref<16x128xbf16, #tpu.memory_space<vmem>>, vector<16x128xbf16>
    %40 = vector.shape_cast %39 : vector<16x128xbf16> to vector<16x4x32xbf16>
    "tpu.trace_start"() <{level = 10 : i32, message = "qhd,khd->hqk"}> : () -> ()
    %cst_11 = arith.constant dense<0.000000e+00> : vector<4x16x16xf32>
    %41 = tpu.matmul %36, %38, %cst_11 {dimension_numbers = #tpu.dot_dimension_numbers<[2], [2], [0], [0], [0, 1, 0, 0, 1, 0], [1], [1]>} : vector<16x4x32xbf16>, vector<16x4x32xbf16>, vector<4x16x16xf32> -> vector<4x16x16xf32>
    "tpu.trace_stop"() : () -> ()
    %cst_12 = arith.constant dense<0xFF800000> : vector<4x16xf32>
    %42 = vector.multi_reduction <maximumf>, %41, %cst_12 [2] : vector<4x16x16xf32> to vector<4x16xf32>
    %43 = vector.shape_cast %42 : vector<4x16xf32> to vector<4x16x1xf32>
    %44 = vector.broadcast %43 : vector<4x16x1xf32> to vector<4x16x16xf32>
    %45 = arith.subf %41, %44 : vector<4x16x16xf32>
    %46 = math.exp %45 : vector<4x16x16xf32>
    %cst_13 = arith.constant dense<0.000000e+00> : vector<4x16xf32>
    %47 = vector.multi_reduction <add>, %46, %cst_13 [2] : vector<4x16x16xf32> to vector<4x16xf32>
    %48 = vector.shape_cast %47 : vector<4x16xf32> to vector<4x16x1xf32>
    %49 = tpu.reciprocal %48 {approx = true} : vector<4x16x1xf32> -> vector<4x16x1xf32>
    %50 = vector.broadcast %49 : vector<4x16x1xf32> to vector<4x16x16xf32>
    %51 = arith.mulf %46, %50 : vector<4x16x16xf32>
    %52 = arith.truncf %51 : vector<4x16x16xf32> to vector<4x16x16xbf16>
    "tpu.trace_start"() <{level = 10 : i32, message = "hqk,khd->qhd"}> : () -> ()
    %cst_14 = arith.constant dense<0.000000e+00> : vector<4x32x16xf32>
    %53 = tpu.matmul %40, %52, %cst_14 {dimension_numbers = #tpu.dot_dimension_numbers<[0], [2], [2], [1], [0, 1, 0, 2, 1, 1], [1], [0]>} : vector<16x4x32xbf16>, vector<4x16x16xbf16>, vector<4x32x16xf32> -> vector<4x32x16xf32>
    %54 = tpu.transpose %53, [2, 0, 1] : vector<4x32x16xf32> -> vector<16x4x32xf32>
    "tpu.trace_stop"() : () -> ()
    %55 = vector.shape_cast %54 : vector<16x4x32xf32> to vector<16x128xf32>
    %56 = arith.truncf %55 : vector<16x128xf32> to vector<16x128xbf16>
    %c0_15 = arith.constant 0 : index
    %c0_16 = arith.constant 0 : index
    %57 = vector.load %arg6[%c0_15, %c0_16] : memref<128x128xbf16, #tpu.memory_space<vmem>>, vector<128x128xbf16>
    %cst_17 = arith.constant dense<0.000000e+00> : vector<16x128xf32>
    %58 = tpu.matmul %56, %57, %cst_17 {dimension_numbers = #tpu.dot_dimension_numbers<[1], [0], [0], [1], [0, 0, 1, 1], [], []>} : vector<16x128xbf16>, vector<128x128xbf16>, vector<16x128xf32> -> vector<16x128xf32>
    %59 = vector.shape_cast %8 : vector<128xf32> to vector<1x128xf32>
    %60 = vector.broadcast %59 : vector<1x128xf32> to vector<16x128xf32>
    %61 = arith.addf %58, %60 : vector<16x128xf32>
    %62 = arith.addf %26, %61 : vector<16x128xf32>
    %cst_18 = arith.constant dense<0.000000e+00> : vector<16xf32>
    %63 = vector.multi_reduction <add>, %62, %cst_18 [1] : vector<16x128xf32> to vector<16xf32>
    %64 = vector.shape_cast %63 : vector<16xf32> to vector<16x1xf32>
    %cst_19 = arith.constant 1.280000e+02 : f32
    %65 = vector.broadcast %cst_19 : f32 to vector<16x1xf32>
    %66 = arith.divf %64, %65 : vector<16x1xf32>
    %67 = vector.broadcast %66 : vector<16x1xf32> to vector<16x128xf32>
    %68 = arith.subf %62, %67 : vector<16x128xf32>
    %69 = arith.mulf %68, %68 : vector<16x128xf32>
    %cst_20 = arith.constant dense<0.000000e+00> : vector<16xf32>
    %70 = vector.multi_reduction <add>, %69, %cst_20 [1] : vector<16x128xf32> to vector<16xf32>
    %71 = vector.shape_cast %70 : vector<16xf32> to vector<16x1xf32>
    %cst_21 = arith.constant 1.280000e+02 : f32
    %72 = vector.broadcast %cst_21 : f32 to vector<16x1xf32>
    %73 = arith.divf %71, %72 : vector<16x1xf32>
    %74 = vector.broadcast %66 : vector<16x1xf32> to vector<16x128xf32>
    %75 = arith.subf %62, %74 : vector<16x128xf32>
    %cst_22 = arith.constant 9.99999974E-6 : f32
    %76 = vector.broadcast %cst_22 : f32 to vector<16x1xf32>
    %77 = arith.addf %73, %76 : vector<16x1xf32>
    %78 = math.rsqrt %77 : vector<16x1xf32>
    %79 = vector.broadcast %78 : vector<16x1xf32> to vector<16x128xf32>
    %80 = arith.mulf %75, %79 : vector<16x128xf32>
    %81 = vector.shape_cast %12 : vector<128xf32> to vector<1x128xf32>
    %82 = vector.broadcast %81 : vector<1x128xf32> to vector<16x128xf32>
    %83 = arith.mulf %80, %82 : vector<16x128xf32>
    %84 = vector.shape_cast %14 : vector<128xf32> to vector<1x128xf32>
    %85 = vector.broadcast %84 : vector<1x128xf32> to vector<16x128xf32>
    %86 = arith.addf %83, %85 : vector<16x128xf32>
    %87 = arith.truncf %86 : vector<16x128xf32> to vector<16x128xbf16>
    %c0_23 = arith.constant 0 : index
    %c0_24 = arith.constant 0 : index
    %88 = vector.load %arg7[%c0_23, %c0_24] : memref<128x256xbf16, #tpu.memory_space<vmem>>, vector<128x256xbf16>
    %cst_25 = arith.constant dense<0.000000e+00> : vector<16x256xf32>
    %89 = tpu.matmul %87, %88, %cst_25 {dimension_numbers = #tpu.dot_dimension_numbers<[1], [0], [0], [1], [0, 0, 1, 1], [], []>} : vector<16x128xbf16>, vector<128x256xbf16>, vector<16x256xf32> -> vector<16x256xf32>
    %c0_26 = arith.constant 0 : index
    %c0_27 = arith.constant 0 : index
    %90 = vector.load %arg10[%c0_26, %c0_27] : memref<1x256xf32, #tpu.memory_space<vmem>>, vector<1x256xf32>
    %91 = vector.shape_cast %90 : vector<1x256xf32> to vector<256xf32>
    %92 = vector.shape_cast %91 : vector<256xf32> to vector<1x256xf32>
    %93 = vector.broadcast %92 : vector<1x256xf32> to vector<16x256xf32>
    %94 = arith.addf %89, %93 : vector<16x256xf32>
    %95 = arith.mulf %94, %94 : vector<16x256xf32>
    %96 = arith.mulf %94, %95 : vector<16x256xf32>
    %cst_28 = arith.constant 4.471500e-02 : f32
    %97 = vector.broadcast %cst_28 : f32 to vector<16x256xf32>
    %98 = arith.mulf %97, %96 : vector<16x256xf32>
    %99 = arith.addf %94, %98 : vector<16x256xf32>
    %cst_29 = arith.constant 0.797884583 : f32
    %100 = vector.broadcast %cst_29 : f32 to vector<16x256xf32>
    %101 = arith.mulf %100, %99 : vector<16x256xf32>
    %102 = math.tanh %101 : vector<16x256xf32>
    %cst_30 = arith.constant 1.000000e+00 : f32
    %103 = vector.broadcast %cst_30 : f32 to vector<16x256xf32>
    %104 = arith.addf %103, %102 : vector<16x256xf32>
    %cst_31 = arith.constant 5.000000e-01 : f32
    %105 = vector.broadcast %cst_31 : f32 to vector<16x256xf32>
    %106 = arith.mulf %105, %104 : vector<16x256xf32>
    %107 = arith.mulf %94, %106 : vector<16x256xf32>
    %108 = arith.truncf %107 : vector<16x256xf32> to vector<16x256xbf16>
    %c0_32 = arith.constant 0 : index
    %c0_33 = arith.constant 0 : index
    %109 = vector.load %arg8[%c0_32, %c0_33] : memref<256x128xbf16, #tpu.memory_space<vmem>>, vector<256x128xbf16>
    %cst_34 = arith.constant dense<0.000000e+00> : vector<16x128xf32>
    %110 = tpu.matmul %108, %109, %cst_34 {dimension_numbers = #tpu.dot_dimension_numbers<[1], [0], [0], [1], [0, 0, 1, 1], [], []>} : vector<16x256xbf16>, vector<256x128xbf16>, vector<16x128xf32> -> vector<16x128xf32>
    %111 = vector.shape_cast %10 : vector<128xf32> to vector<1x128xf32>
    %112 = vector.broadcast %111 : vector<1x128xf32> to vector<16x128xf32>
    %113 = arith.addf %110, %112 : vector<16x128xf32>
    %114 = arith.addf %86, %113 : vector<16x128xf32>
    %cst_35 = arith.constant dense<0.000000e+00> : vector<16xf32>
    %115 = vector.multi_reduction <add>, %114, %cst_35 [1] : vector<16x128xf32> to vector<16xf32>
    %116 = vector.shape_cast %115 : vector<16xf32> to vector<16x1xf32>
    %cst_36 = arith.constant 1.280000e+02 : f32
    %117 = vector.broadcast %cst_36 : f32 to vector<16x1xf32>
    %118 = arith.divf %116, %117 : vector<16x1xf32>
    %119 = vector.broadcast %118 : vector<16x1xf32> to vector<16x128xf32>
    %120 = arith.subf %114, %119 : vector<16x128xf32>
    %121 = arith.mulf %120, %120 : vector<16x128xf32>
    %cst_37 = arith.constant dense<0.000000e+00> : vector<16xf32>
    %122 = vector.multi_reduction <add>, %121, %cst_37 [1] : vector<16x128xf32> to vector<16xf32>
    %123 = vector.shape_cast %122 : vector<16xf32> to vector<16x1xf32>
    %cst_38 = arith.constant 1.280000e+02 : f32
    %124 = vector.broadcast %cst_38 : f32 to vector<16x1xf32>
    %125 = arith.divf %123, %124 : vector<16x1xf32>
    %126 = vector.broadcast %118 : vector<16x1xf32> to vector<16x128xf32>
    %127 = arith.subf %114, %126 : vector<16x128xf32>
    %cst_39 = arith.constant 9.99999974E-6 : f32
    %128 = vector.broadcast %cst_39 : f32 to vector<16x1xf32>
    %129 = arith.addf %125, %128 : vector<16x1xf32>
    %130 = math.rsqrt %129 : vector<16x1xf32>
    %131 = vector.broadcast %130 : vector<16x1xf32> to vector<16x128xf32>
    %132 = arith.mulf %127, %131 : vector<16x128xf32>
    %133 = vector.shape_cast %16 : vector<128xf32> to vector<1x128xf32>
    %134 = vector.broadcast %133 : vector<1x128xf32> to vector<16x128xf32>
    %135 = arith.mulf %132, %134 : vector<16x128xf32>
    %136 = vector.shape_cast %18 : vector<128xf32> to vector<1x128xf32>
    %137 = vector.broadcast %136 : vector<1x128xf32> to vector<16x128xf32>
    %138 = arith.addf %135, %137 : vector<16x128xf32>
    %c0_40 = arith.constant 0 : index
    %c0_41 = arith.constant 0 : index
    %c0_42 = arith.constant 0 : index
    %139 = vector.load %arg11[%c0_40, %c0_41, %c0_42] : memref<1x16x128xf32, #tpu.memory_space<vmem>>, vector<1x16x128xf32>
    %140 = vector.shape_cast %139 : vector<1x16x128xf32> to vector<16x128xf32>
    %141 = vector.shape_cast %138 : vector<16x128xf32> to vector<1x16x128xf32>
    tpu.vector_store %arg11[%c0_40, %c0_41, %c0_42], %141 {strides = array<i32>} : memref<1x16x128xf32, #tpu.memory_space<vmem>>, vector<1x16x128xf32>,
    return
  }
  func.func @transform_0(%arg0: i32, %arg1: i32) -> (i32, i32, i32) {
    %c0_i32 = arith.constant 0 : i32
    %c0_i32_0 = arith.constant 0 : i32
    %c0_i32_1 = arith.constant 0 : i32
    return %arg0, %c0_i32, %c0_i32_0 : i32, i32, i32
  }
  func.func @transform_1(%arg0: i32, %arg1: i32) -> (i32, i32) {
    %c0_i32 = arith.constant 0 : i32
    %c0_i32_0 = arith.constant 0 : i32
    %c0_i32_1 = arith.constant 0 : i32
    return %c0_i32, %c0_i32_0 : i32, i32
  }
  func.func @transform_2(%arg0: i32, %arg1: i32) -> (i32, i32) {
    %c0_i32 = arith.constant 0 : i32
    %c0_i32_0 = arith.constant 0 : i32
    %c0_i32_1 = arith.constant 0 : i32
    return %c0_i32, %c0_i32_0 : i32, i32
  }
  func.func @transform_3(%arg0: i32, %arg1: i32) -> (i32, i32) {
    %c0_i32 = arith.constant 0 : i32
    %c0_i32_0 = arith.constant 0 : i32
    %c0_i32_1 = arith.constant 0 : i32
    return %c0_i32, %c0_i32_0 : i32, i32
  }
  func.func @transform_4(%arg0: i32, %arg1: i32) -> (i32, i32) {
    %c0_i32 = arith.constant 0 : i32
    %c0_i32_0 = arith.constant 0 : i32
    %c0_i32_1 = arith.constant 0 : i32
    return %c0_i32, %c0_i32_0 : i32, i32
  }
  func.func @transform_5(%arg0: i32, %arg1: i32) -> (i32, i32) {
    %c0_i32 = arith.constant 0 : i32
    %c0_i32_0 = arith.constant 0 : i32
    %c0_i32_1 = arith.constant 0 : i32
    return %c0_i32, %c0_i32_0 : i32, i32
  }
  func.func @transform_6(%arg0: i32, %arg1: i32) -> (i32, i32) {
    %c0_i32 = arith.constant 0 : i32
    %c0_i32_0 = arith.constant 0 : i32
    %c0_i32_1 = arith.constant 0 : i32
    return %c0_i32, %c0_i32_0 : i32, i32
  }
  func.func @transform_7(%arg0: i32, %arg1: i32) -> (i32, i32) {
    %c0_i32 = arith.constant 0 : i32
    %c0_i32_0 = arith.constant 0 : i32
    %c0_i32_1 = arith.constant 0 : i32
    return %c0_i32, %c0_i32_0 : i32, i32
  }
  func.func @transform_8(%arg0: i32, %arg1: i32) -> (i32, i32) {
    %c0_i32 = arith.constant 0 : i32
    %c0_i32_0 = arith.constant 0 : i32
    %c0_i32_1 = arith.constant 0 : i32
    return %c0_i32, %c0_i32_0 : i32, i32
  }
  func.func @transform_9(%arg0: i32, %arg1: i32) -> (i32, i32, i32) {
    %c0_i32 = arith.constant 0 : i32
    %c0_i32_0 = arith.constant 0 : i32
    return %arg0, %arg1, %c0_i32 : i32, i32, i32
  }
}

module attributes {stable_mosaic.version = 11 : i64} {
  func.func @encoder_layer_kernel(%arg0: i32, %arg1: i32, %arg2: memref<1x16x128xf32, #tpu.memory_space<vmem>>, %arg3: memref<128x128xbf16, #tpu.memory_space<vmem>>, %arg4: memref<128x128xbf16, #tpu.memory_space<vmem>>, %arg5: memref<128x128xbf16, #tpu.memory_space<vmem>>, %arg6: memref<128x128xbf16, #tpu.memory_space<vmem>>, %arg7: memref<128x256xbf16, #tpu.memory_space<vmem>>, %arg8: memref<256x128xbf16, #tpu.memory_space<vmem>>, %arg9: memref<9x128xf32, #tpu.memory_space<vmem>>, %arg10: memref<1x256xf32, #tpu.memory_space<vmem>>, %arg11: memref<1x16x128xf32, #tpu.memory_space<vmem>>, %arg12: memref<4x16x32xbf16, #tpu.memory_space<vmem>>, %arg13: memref<4x16x32xbf16, #tpu.memory_space<vmem>>) attributes {dimension_semantics = [#tpu.dimension_semantics<parallel>, #tpu.dimension_semantics<arbitrary>], iteration_bounds = array<i64: 2, 1>, scalar_prefetch = 0 : i64, scratch_operands = 2 : i64, tpu.core_type = #tpu.core_type<tc>, window_params = [{transform_indices = @transform_0, window_bounds = array<i64: 1, 16, 128>}, {pipeline_mode = #tpu.pipeline_mode<synchronous>, transform_indices = @transform_1, window_bounds = array<i64: 128, 128>}, {pipeline_mode = #tpu.pipeline_mode<synchronous>, transform_indices = @transform_2, window_bounds = array<i64: 128, 128>}, {pipeline_mode = #tpu.pipeline_mode<synchronous>, transform_indices = @transform_3, window_bounds = array<i64: 128, 128>}, {pipeline_mode = #tpu.pipeline_mode<synchronous>, transform_indices = @transform_4, window_bounds = array<i64: 128, 128>}, {pipeline_mode = #tpu.pipeline_mode<synchronous>, transform_indices = @transform_5, window_bounds = array<i64: 128, 256>}, {pipeline_mode = #tpu.pipeline_mode<synchronous>, transform_indices = @transform_6, window_bounds = array<i64: 256, 128>}, {pipeline_mode = #tpu.pipeline_mode<synchronous>, transform_indices = @transform_7, window_bounds = array<i64: 9, 128>}, {pipeline_mode = #tpu.pipeline_mode<synchronous>, transform_indices = @transform_8, window_bounds = array<i64: 1, 256>}, {transform_indices = @transform_9, window_bounds = array<i64: 1, 16, 128>}]} {
    %c0 = arith.constant 0 : index
    %c0_0 = arith.constant 0 : index
    %0 = vector.load %arg9[%c0, %c0_0] : memref<9x128xf32, #tpu.memory_space<vmem>>, vector<9x128xf32>
    %1 = vector.extract_strided_slice %0 {offsets = [0, 0], sizes = [1, 128], strides = [1, 1]} : vector<9x128xf32> to vector<1x128xf32>
    %2 = vector.shape_cast %1 : vector<1x128xf32> to vector<128xf32>
    %3 = vector.extract_strided_slice %0 {offsets = [1, 0], sizes = [1, 128], strides = [1, 1]} : vector<9x128xf32> to vector<1x128xf32>
    %4 = vector.shape_cast %3 : vector<1x128xf32> to vector<128xf32>
    %5 = vector.extract_strided_slice %0 {offsets = [2, 0], sizes = [1, 128], strides = [1, 1]} : vector<9x128xf32> to vector<1x128xf32>
    %6 = vector.shape_cast %5 : vector<1x128xf32> to vector<128xf32>
    %7 = vector.extract_strided_slice %0 {offsets = [3, 0], sizes = [1, 128], strides = [1, 1]} : vector<9x128xf32> to vector<1x128xf32>
    %8 = vector.shape_cast %7 : vector<1x128xf32> to vector<128xf32>
    %9 = vector.extract_strided_slice %0 {offsets = [4, 0], sizes = [1, 128], strides = [1, 1]} : vector<9x128xf32> to vector<1x128xf32>
    %10 = vector.shape_cast %9 : vector<1x128xf32> to vector<128xf32>
    %11 = vector.extract_strided_slice %0 {offsets = [5, 0], sizes = [1, 128], strides = [1, 1]} : vector<9x128xf32> to vector<1x128xf32>
    %12 = vector.shape_cast %11 : vector<1x128xf32> to vector<128xf32>
    %13 = vector.extract_strided_slice %0 {offsets = [6, 0], sizes = [1, 128], strides = [1, 1]} : vector<9x128xf32> to vector<1x128xf32>
    %14 = vector.shape_cast %13 : vector<1x128xf32> to vector<128xf32>
    %15 = vector.extract_strided_slice %0 {offsets = [7, 0], sizes = [1, 128], strides = [1, 1]} : vector<9x128xf32> to vector<1x128xf32>
    %16 = vector.shape_cast %15 : vector<1x128xf32> to vector<128xf32>
    %17 = vector.extract_strided_slice %0 {offsets = [8, 0], sizes = [1, 128], strides = [1, 1]} : vector<9x128xf32> to vector<1x128xf32>
    %18 = vector.shape_cast %17 : vector<1x128xf32> to vector<128xf32>
    %c0_i32 = arith.constant 0 : i32
    %19 = arith.cmpi eq, %arg1, %c0_i32 : i32
    %20 = arith.extui %19 : i1 to i32
    %c0_i32_1 = arith.constant 0 : i32
    %21 = arith.cmpi ne, %20, %c0_i32_1 : i32
    scf.if %21 {
      %c0_45 = arith.constant 0 : index
      %c0_46 = arith.constant 0 : index
      %c0_47 = arith.constant 0 : index
      %155 = vector.load %arg2[%c0_45, %c0_46, %c0_47] : memref<1x16x128xf32, #tpu.memory_space<vmem>>, vector<1x16x128xf32>
      %156 = vector.shape_cast %155 : vector<1x16x128xf32> to vector<16x128xf32>
      %157 = arith.truncf %156 : vector<16x128xf32> to vector<16x128xbf16>
      %c0_48 = arith.constant 0 : index
      %c0_49 = arith.constant 0 : index
      %158 = vector.load %arg4[%c0_48, %c0_49] : memref<128x128xbf16, #tpu.memory_space<vmem>>, vector<128x128xbf16>
      %cst_50 = arith.constant dense<0.000000e+00> : vector<16x128xf32>
      %159 = tpu.matmul %157, %158, %cst_50 {dimension_numbers = #tpu.dot_dimension_numbers<[1], [0], [0], [1], [0, 0, 1, 1], [], []>} : vector<16x128xbf16>, vector<128x128xbf16>, vector<16x128xf32> -> vector<16x128xf32>
      %160 = vector.shape_cast %4 : vector<128xf32> to vector<1x128xf32>
      %161 = vector.broadcast %160 : vector<1x128xf32> to vector<16x128xf32>
      %162 = arith.addf %159, %161 : vector<16x128xf32>
      %c0_51 = arith.constant 0 : index
      %c0_52 = arith.constant 0 : index
      %163 = vector.load %arg5[%c0_51, %c0_52] : memref<128x128xbf16, #tpu.memory_space<vmem>>, vector<128x128xbf16>
      %cst_53 = arith.constant dense<0.000000e+00> : vector<16x128xf32>
      %164 = tpu.matmul %157, %163, %cst_53 {dimension_numbers = #tpu.dot_dimension_numbers<[1], [0], [0], [1], [0, 0, 1, 1], [], []>} : vector<16x128xbf16>, vector<128x128xbf16>, vector<16x128xf32> -> vector<16x128xf32>
      %165 = vector.shape_cast %6 : vector<128xf32> to vector<1x128xf32>
      %166 = vector.broadcast %165 : vector<1x128xf32> to vector<16x128xf32>
      %167 = arith.addf %164, %166 : vector<16x128xf32>
      %168 = vector.extract_strided_slice %162 {offsets = [0, 0], sizes = [16, 32], strides = [1, 1]} : vector<16x128xf32> to vector<16x32xf32>
      %169 = vector.extract_strided_slice %162 {offsets = [0, 32], sizes = [16, 32], strides = [1, 1]} : vector<16x128xf32> to vector<16x32xf32>
      %170 = vector.extract_strided_slice %162 {offsets = [0, 64], sizes = [16, 32], strides = [1, 1]} : vector<16x128xf32> to vector<16x32xf32>
      %171 = vector.extract_strided_slice %162 {offsets = [0, 96], sizes = [16, 32], strides = [1, 1]} : vector<16x128xf32> to vector<16x32xf32>
      %172 = vector.shape_cast %168 : vector<16x32xf32> to vector<1x16x32xf32>
      %173 = vector.shape_cast %169 : vector<16x32xf32> to vector<1x16x32xf32>
      %174 = vector.shape_cast %170 : vector<16x32xf32> to vector<1x16x32xf32>
      %175 = vector.shape_cast %171 : vector<16x32xf32> to vector<1x16x32xf32>
      %176 = tpu.concatenate %172, %173, %174, %175 in 0 : vector<1x16x32xf32>, vector<1x16x32xf32>, vector<1x16x32xf32>, vector<1x16x32xf32> -> vector<4x16x32xf32>
      %177 = arith.truncf %176 : vector<4x16x32xf32> to vector<4x16x32xbf16>
      %c0_54 = arith.constant 0 : index
      %c0_55 = arith.constant 0 : index
      %c0_56 = arith.constant 0 : index
      %178 = vector.load %arg12[%c0_54, %c0_55, %c0_56] : memref<4x16x32xbf16, #tpu.memory_space<vmem>>, vector<4x16x32xbf16>
      tpu.vector_store %arg12[%c0_54, %c0_55, %c0_56], %177 {strides = array<i32>} : memref<4x16x32xbf16, #tpu.memory_space<vmem>>, vector<4x16x32xbf16>,
      %179 = vector.extract_strided_slice %167 {offsets = [0, 0], sizes = [16, 32], strides = [1, 1]} : vector<16x128xf32> to vector<16x32xf32>
      %180 = vector.extract_strided_slice %167 {offsets = [0, 32], sizes = [16, 32], strides = [1, 1]} : vector<16x128xf32> to vector<16x32xf32>
      %181 = vector.extract_strided_slice %167 {offsets = [0, 64], sizes = [16, 32], strides = [1, 1]} : vector<16x128xf32> to vector<16x32xf32>
      %182 = vector.extract_strided_slice %167 {offsets = [0, 96], sizes = [16, 32], strides = [1, 1]} : vector<16x128xf32> to vector<16x32xf32>
      %183 = vector.shape_cast %179 : vector<16x32xf32> to vector<1x16x32xf32>
      %184 = vector.shape_cast %180 : vector<16x32xf32> to vector<1x16x32xf32>
      %185 = vector.shape_cast %181 : vector<16x32xf32> to vector<1x16x32xf32>
      %186 = vector.shape_cast %182 : vector<16x32xf32> to vector<1x16x32xf32>
      %187 = tpu.concatenate %183, %184, %185, %186 in 0 : vector<1x16x32xf32>, vector<1x16x32xf32>, vector<1x16x32xf32>, vector<1x16x32xf32> -> vector<4x16x32xf32>
      %188 = arith.truncf %187 : vector<4x16x32xf32> to vector<4x16x32xbf16>
      %c0_57 = arith.constant 0 : index
      %c0_58 = arith.constant 0 : index
      %c0_59 = arith.constant 0 : index
      %189 = vector.load %arg13[%c0_57, %c0_58, %c0_59] : memref<4x16x32xbf16, #tpu.memory_space<vmem>>, vector<4x16x32xbf16>
      tpu.vector_store %arg13[%c0_57, %c0_58, %c0_59], %188 {strides = array<i32>} : memref<4x16x32xbf16, #tpu.memory_space<vmem>>, vector<4x16x32xbf16>,
    } else {
    }
    %c16_i32 = arith.constant 16 : i32
    %22 = arith.muli %arg1, %c16_i32 : i32
    %23 = tpu.assume_multiple %22, 8 : i32
    %c0_2 = arith.constant 0 : index
    %24 = arith.index_cast %23 : i32 to index
    %c0_3 = arith.constant 0 : index
    %25 = vector.load %arg2[%c0_2, %24, %c0_3] : memref<1x16x128xf32, #tpu.memory_space<vmem>>, vector<1x16x128xf32>
    %26 = vector.shape_cast %25 : vector<1x16x128xf32> to vector<16x128xf32>
    %27 = arith.truncf %26 : vector<16x128xf32> to vector<16x128xbf16>
    %c0_4 = arith.constant 0 : index
    %c0_5 = arith.constant 0 : index
    %28 = vector.load %arg3[%c0_4, %c0_5] : memref<128x128xbf16, #tpu.memory_space<vmem>>, vector<128x128xbf16>
    %cst = arith.constant dense<0.000000e+00> : vector<16x128xf32>
    %29 = tpu.matmul %27, %28, %cst {dimension_numbers = #tpu.dot_dimension_numbers<[1], [0], [0], [1], [0, 0, 1, 1], [], []>} : vector<16x128xbf16>, vector<128x128xbf16>, vector<16x128xf32> -> vector<16x128xf32>
    %30 = vector.shape_cast %2 : vector<128xf32> to vector<1x128xf32>
    %31 = vector.broadcast %30 : vector<1x128xf32> to vector<16x128xf32>
    %32 = arith.addf %29, %31 : vector<16x128xf32>
    %cst_6 = arith.constant 0.176776692 : f32
    %33 = vector.broadcast %cst_6 : f32 to vector<16x128xf32>
    %34 = arith.mulf %32, %33 : vector<16x128xf32>
    %35 = vector.extract_strided_slice %34 {offsets = [0, 0], sizes = [16, 32], strides = [1, 1]} : vector<16x128xf32> to vector<16x32xf32>
    %36 = vector.extract_strided_slice %34 {offsets = [0, 32], sizes = [16, 32], strides = [1, 1]} : vector<16x128xf32> to vector<16x32xf32>
    %37 = vector.extract_strided_slice %34 {offsets = [0, 64], sizes = [16, 32], strides = [1, 1]} : vector<16x128xf32> to vector<16x32xf32>
    %38 = vector.extract_strided_slice %34 {offsets = [0, 96], sizes = [16, 32], strides = [1, 1]} : vector<16x128xf32> to vector<16x32xf32>
    %39 = vector.shape_cast %35 : vector<16x32xf32> to vector<1x16x32xf32>
    %40 = vector.shape_cast %36 : vector<16x32xf32> to vector<1x16x32xf32>
    %41 = vector.shape_cast %37 : vector<16x32xf32> to vector<1x16x32xf32>
    %42 = vector.shape_cast %38 : vector<16x32xf32> to vector<1x16x32xf32>
    %43 = tpu.concatenate %39, %40, %41, %42 in 0 : vector<1x16x32xf32>, vector<1x16x32xf32>, vector<1x16x32xf32>, vector<1x16x32xf32> -> vector<4x16x32xf32>
    %44 = arith.truncf %43 : vector<4x16x32xf32> to vector<4x16x32xbf16>
    %c0_7 = arith.constant 0 : index
    %c0_8 = arith.constant 0 : index
    %c0_9 = arith.constant 0 : index
    %45 = vector.load %arg12[%c0_7, %c0_8, %c0_9] : memref<4x16x32xbf16, #tpu.memory_space<vmem>>, vector<4x16x32xbf16>
    %c0_10 = arith.constant 0 : index
    %c0_11 = arith.constant 0 : index
    %c0_12 = arith.constant 0 : index
    %46 = vector.load %arg13[%c0_10, %c0_11, %c0_12] : memref<4x16x32xbf16, #tpu.memory_space<vmem>>, vector<4x16x32xbf16>
    "tpu.trace_start"() <{level = 10 : i32, message = "hqd,hkd->hqk"}> : () -> ()
    %cst_13 = arith.constant dense<0.000000e+00> : vector<4x16x16xf32>
    %47 = tpu.matmul %44, %45, %cst_13 {dimension_numbers = #tpu.dot_dimension_numbers<[2], [2], [1], [1], [0, 0, 0, 1, 1, 1], [0], [0]>} : vector<4x16x32xbf16>, vector<4x16x32xbf16>, vector<4x16x16xf32> -> vector<4x16x16xf32>
    "tpu.trace_stop"() : () -> ()
    %cst_14 = arith.constant dense<0xFF800000> : vector<4x16xf32>
    %48 = vector.multi_reduction <maximumf>, %47, %cst_14 [2] : vector<4x16x16xf32> to vector<4x16xf32>
    %49 = vector.shape_cast %48 : vector<4x16xf32> to vector<4x16x1xf32>
    %50 = vector.broadcast %49 : vector<4x16x1xf32> to vector<4x16x16xf32>
    %51 = arith.subf %47, %50 : vector<4x16x16xf32>
    %52 = math.exp %51 : vector<4x16x16xf32>
    %cst_15 = arith.constant dense<0.000000e+00> : vector<4x16xf32>
    %53 = vector.multi_reduction <add>, %52, %cst_15 [2] : vector<4x16x16xf32> to vector<4x16xf32>
    %54 = vector.shape_cast %53 : vector<4x16xf32> to vector<4x16x1xf32>
    %55 = tpu.reciprocal %54 {approx = true} : vector<4x16x1xf32> -> vector<4x16x1xf32>
    %56 = vector.broadcast %55 : vector<4x16x1xf32> to vector<4x16x16xf32>
    %57 = arith.mulf %52, %56 : vector<4x16x16xf32>
    %58 = arith.truncf %57 : vector<4x16x16xf32> to vector<4x16x16xbf16>
    "tpu.trace_start"() <{level = 10 : i32, message = "hqk,hkd->hqd"}> : () -> ()
    %cst_16 = arith.constant dense<0.000000e+00> : vector<4x16x32xf32>
    %59 = tpu.matmul %58, %46, %cst_16 {dimension_numbers = #tpu.dot_dimension_numbers<[2], [1], [1], [2], [0, 0, 0, 1, 1, 2], [0], [0]>} : vector<4x16x16xbf16>, vector<4x16x32xbf16>, vector<4x16x32xf32> -> vector<4x16x32xf32>
    "tpu.trace_stop"() : () -> ()
    %60 = vector.extract_strided_slice %59 {offsets = [0, 0, 0], sizes = [1, 16, 32], strides = [1, 1, 1]} : vector<4x16x32xf32> to vector<1x16x32xf32>
    %61 = vector.shape_cast %60 : vector<1x16x32xf32> to vector<16x32xf32>
    %62 = vector.extract_strided_slice %59 {offsets = [1, 0, 0], sizes = [1, 16, 32], strides = [1, 1, 1]} : vector<4x16x32xf32> to vector<1x16x32xf32>
    %63 = vector.shape_cast %62 : vector<1x16x32xf32> to vector<16x32xf32>
    %64 = vector.extract_strided_slice %59 {offsets = [2, 0, 0], sizes = [1, 16, 32], strides = [1, 1, 1]} : vector<4x16x32xf32> to vector<1x16x32xf32>
    %65 = vector.shape_cast %64 : vector<1x16x32xf32> to vector<16x32xf32>
    %66 = vector.extract_strided_slice %59 {offsets = [3, 0, 0], sizes = [1, 16, 32], strides = [1, 1, 1]} : vector<4x16x32xf32> to vector<1x16x32xf32>
    %67 = vector.shape_cast %66 : vector<1x16x32xf32> to vector<16x32xf32>
    %68 = tpu.concatenate %61, %63, %65, %67 in 1 : vector<16x32xf32>, vector<16x32xf32>, vector<16x32xf32>, vector<16x32xf32> -> vector<16x128xf32>
    %69 = arith.truncf %68 : vector<16x128xf32> to vector<16x128xbf16>
    %c0_17 = arith.constant 0 : index
    %c0_18 = arith.constant 0 : index
    %70 = vector.load %arg6[%c0_17, %c0_18] : memref<128x128xbf16, #tpu.memory_space<vmem>>, vector<128x128xbf16>
    %cst_19 = arith.constant dense<0.000000e+00> : vector<16x128xf32>
    %71 = tpu.matmul %69, %70, %cst_19 {dimension_numbers = #tpu.dot_dimension_numbers<[1], [0], [0], [1], [0, 0, 1, 1], [], []>} : vector<16x128xbf16>, vector<128x128xbf16>, vector<16x128xf32> -> vector<16x128xf32>
    %72 = vector.shape_cast %8 : vector<128xf32> to vector<1x128xf32>
    %73 = vector.broadcast %72 : vector<1x128xf32> to vector<16x128xf32>
    %74 = arith.addf %71, %73 : vector<16x128xf32>
    %75 = arith.addf %26, %74 : vector<16x128xf32>
    %cst_20 = arith.constant dense<0.000000e+00> : vector<16xf32>
    %76 = vector.multi_reduction <add>, %75, %cst_20 [1] : vector<16x128xf32> to vector<16xf32>
    %77 = vector.shape_cast %76 : vector<16xf32> to vector<16x1xf32>
    %cst_21 = arith.constant 1.280000e+02 : f32
    %78 = vector.broadcast %cst_21 : f32 to vector<16x1xf32>
    %79 = arith.divf %77, %78 : vector<16x1xf32>
    %80 = vector.broadcast %79 : vector<16x1xf32> to vector<16x128xf32>
    %81 = arith.subf %75, %80 : vector<16x128xf32>
    %82 = arith.mulf %81, %81 : vector<16x128xf32>
    %cst_22 = arith.constant dense<0.000000e+00> : vector<16xf32>
    %83 = vector.multi_reduction <add>, %82, %cst_22 [1] : vector<16x128xf32> to vector<16xf32>
    %84 = vector.shape_cast %83 : vector<16xf32> to vector<16x1xf32>
    %cst_23 = arith.constant 1.280000e+02 : f32
    %85 = vector.broadcast %cst_23 : f32 to vector<16x1xf32>
    %86 = arith.divf %84, %85 : vector<16x1xf32>
    %87 = vector.broadcast %79 : vector<16x1xf32> to vector<16x128xf32>
    %88 = arith.subf %75, %87 : vector<16x128xf32>
    %cst_24 = arith.constant 9.99999974E-6 : f32
    %89 = vector.broadcast %cst_24 : f32 to vector<16x1xf32>
    %90 = arith.addf %86, %89 : vector<16x1xf32>
    %91 = math.rsqrt %90 : vector<16x1xf32>
    %92 = vector.broadcast %91 : vector<16x1xf32> to vector<16x128xf32>
    %93 = arith.mulf %88, %92 : vector<16x128xf32>
    %94 = vector.shape_cast %12 : vector<128xf32> to vector<1x128xf32>
    %95 = vector.broadcast %94 : vector<1x128xf32> to vector<16x128xf32>
    %96 = arith.mulf %93, %95 : vector<16x128xf32>
    %97 = vector.shape_cast %14 : vector<128xf32> to vector<1x128xf32>
    %98 = vector.broadcast %97 : vector<1x128xf32> to vector<16x128xf32>
    %99 = arith.addf %96, %98 : vector<16x128xf32>
    %100 = arith.truncf %99 : vector<16x128xf32> to vector<16x128xbf16>
    %c0_25 = arith.constant 0 : index
    %c0_26 = arith.constant 0 : index
    %101 = vector.load %arg7[%c0_25, %c0_26] : memref<128x256xbf16, #tpu.memory_space<vmem>>, vector<128x256xbf16>
    %cst_27 = arith.constant dense<0.000000e+00> : vector<16x256xf32>
    %102 = tpu.matmul %100, %101, %cst_27 {dimension_numbers = #tpu.dot_dimension_numbers<[1], [0], [0], [1], [0, 0, 1, 1], [], []>} : vector<16x128xbf16>, vector<128x256xbf16>, vector<16x256xf32> -> vector<16x256xf32>
    %c0_28 = arith.constant 0 : index
    %c0_29 = arith.constant 0 : index
    %103 = vector.load %arg10[%c0_28, %c0_29] : memref<1x256xf32, #tpu.memory_space<vmem>>, vector<1x256xf32>
    %104 = vector.shape_cast %103 : vector<1x256xf32> to vector<256xf32>
    %105 = vector.shape_cast %104 : vector<256xf32> to vector<1x256xf32>
    %106 = vector.broadcast %105 : vector<1x256xf32> to vector<16x256xf32>
    %107 = arith.addf %102, %106 : vector<16x256xf32>
    %108 = arith.mulf %107, %107 : vector<16x256xf32>
    %109 = arith.mulf %107, %108 : vector<16x256xf32>
    %cst_30 = arith.constant 4.471500e-02 : f32
    %110 = vector.broadcast %cst_30 : f32 to vector<16x256xf32>
    %111 = arith.mulf %110, %109 : vector<16x256xf32>
    %112 = arith.addf %107, %111 : vector<16x256xf32>
    %cst_31 = arith.constant 0.797884583 : f32
    %113 = vector.broadcast %cst_31 : f32 to vector<16x256xf32>
    %114 = arith.mulf %113, %112 : vector<16x256xf32>
    %115 = math.tanh %114 : vector<16x256xf32>
    %cst_32 = arith.constant 1.000000e+00 : f32
    %116 = vector.broadcast %cst_32 : f32 to vector<16x256xf32>
    %117 = arith.addf %116, %115 : vector<16x256xf32>
    %cst_33 = arith.constant 5.000000e-01 : f32
    %118 = vector.broadcast %cst_33 : f32 to vector<16x256xf32>
    %119 = arith.mulf %118, %117 : vector<16x256xf32>
    %120 = arith.mulf %107, %119 : vector<16x256xf32>
    %121 = arith.truncf %120 : vector<16x256xf32> to vector<16x256xbf16>
    %c0_34 = arith.constant 0 : index
    %c0_35 = arith.constant 0 : index
    %122 = vector.load %arg8[%c0_34, %c0_35] : memref<256x128xbf16, #tpu.memory_space<vmem>>, vector<256x128xbf16>
    %cst_36 = arith.constant dense<0.000000e+00> : vector<16x128xf32>
    %123 = tpu.matmul %121, %122, %cst_36 {dimension_numbers = #tpu.dot_dimension_numbers<[1], [0], [0], [1], [0, 0, 1, 1], [], []>} : vector<16x256xbf16>, vector<256x128xbf16>, vector<16x128xf32> -> vector<16x128xf32>
    %124 = vector.shape_cast %10 : vector<128xf32> to vector<1x128xf32>
    %125 = vector.broadcast %124 : vector<1x128xf32> to vector<16x128xf32>
    %126 = arith.addf %123, %125 : vector<16x128xf32>
    %127 = arith.addf %99, %126 : vector<16x128xf32>
    %cst_37 = arith.constant dense<0.000000e+00> : vector<16xf32>
    %128 = vector.multi_reduction <add>, %127, %cst_37 [1] : vector<16x128xf32> to vector<16xf32>
    %129 = vector.shape_cast %128 : vector<16xf32> to vector<16x1xf32>
    %cst_38 = arith.constant 1.280000e+02 : f32
    %130 = vector.broadcast %cst_38 : f32 to vector<16x1xf32>
    %131 = arith.divf %129, %130 : vector<16x1xf32>
    %132 = vector.broadcast %131 : vector<16x1xf32> to vector<16x128xf32>
    %133 = arith.subf %127, %132 : vector<16x128xf32>
    %134 = arith.mulf %133, %133 : vector<16x128xf32>
    %cst_39 = arith.constant dense<0.000000e+00> : vector<16xf32>
    %135 = vector.multi_reduction <add>, %134, %cst_39 [1] : vector<16x128xf32> to vector<16xf32>
    %136 = vector.shape_cast %135 : vector<16xf32> to vector<16x1xf32>
    %cst_40 = arith.constant 1.280000e+02 : f32
    %137 = vector.broadcast %cst_40 : f32 to vector<16x1xf32>
    %138 = arith.divf %136, %137 : vector<16x1xf32>
    %139 = vector.broadcast %131 : vector<16x1xf32> to vector<16x128xf32>
    %140 = arith.subf %127, %139 : vector<16x128xf32>
    %cst_41 = arith.constant 9.99999974E-6 : f32
    %141 = vector.broadcast %cst_41 : f32 to vector<16x1xf32>
    %142 = arith.addf %138, %141 : vector<16x1xf32>
    %143 = math.rsqrt %142 : vector<16x1xf32>
    %144 = vector.broadcast %143 : vector<16x1xf32> to vector<16x128xf32>
    %145 = arith.mulf %140, %144 : vector<16x128xf32>
    %146 = vector.shape_cast %16 : vector<128xf32> to vector<1x128xf32>
    %147 = vector.broadcast %146 : vector<1x128xf32> to vector<16x128xf32>
    %148 = arith.mulf %145, %147 : vector<16x128xf32>
    %149 = vector.shape_cast %18 : vector<128xf32> to vector<1x128xf32>
    %150 = vector.broadcast %149 : vector<1x128xf32> to vector<16x128xf32>
    %151 = arith.addf %148, %150 : vector<16x128xf32>
    %c0_42 = arith.constant 0 : index
    %c0_43 = arith.constant 0 : index
    %c0_44 = arith.constant 0 : index
    %152 = vector.load %arg11[%c0_42, %c0_43, %c0_44] : memref<1x16x128xf32, #tpu.memory_space<vmem>>, vector<1x16x128xf32>
    %153 = vector.shape_cast %152 : vector<1x16x128xf32> to vector<16x128xf32>
    %154 = vector.shape_cast %151 : vector<16x128xf32> to vector<1x16x128xf32>
    tpu.vector_store %arg11[%c0_42, %c0_43, %c0_44], %154 {strides = array<i32>} : memref<1x16x128xf32, #tpu.memory_space<vmem>>, vector<1x16x128xf32>,
    return
  }
  func.func @transform_0(%arg0: i32, %arg1: i32) -> (i32, i32, i32) {
    %c0_i32 = arith.constant 0 : i32
    %c0_i32_0 = arith.constant 0 : i32
    %c0_i32_1 = arith.constant 0 : i32
    return %arg0, %c0_i32, %c0_i32_0 : i32, i32, i32
  }
  func.func @transform_1(%arg0: i32, %arg1: i32) -> (i32, i32) {
    %c0_i32 = arith.constant 0 : i32
    %c0_i32_0 = arith.constant 0 : i32
    %c0_i32_1 = arith.constant 0 : i32
    return %c0_i32, %c0_i32_0 : i32, i32
  }
  func.func @transform_2(%arg0: i32, %arg1: i32) -> (i32, i32) {
    %c0_i32 = arith.constant 0 : i32
    %c0_i32_0 = arith.constant 0 : i32
    %c0_i32_1 = arith.constant 0 : i32
    return %c0_i32, %c0_i32_0 : i32, i32
  }
  func.func @transform_3(%arg0: i32, %arg1: i32) -> (i32, i32) {
    %c0_i32 = arith.constant 0 : i32
    %c0_i32_0 = arith.constant 0 : i32
    %c0_i32_1 = arith.constant 0 : i32
    return %c0_i32, %c0_i32_0 : i32, i32
  }
  func.func @transform_4(%arg0: i32, %arg1: i32) -> (i32, i32) {
    %c0_i32 = arith.constant 0 : i32
    %c0_i32_0 = arith.constant 0 : i32
    %c0_i32_1 = arith.constant 0 : i32
    return %c0_i32, %c0_i32_0 : i32, i32
  }
  func.func @transform_5(%arg0: i32, %arg1: i32) -> (i32, i32) {
    %c0_i32 = arith.constant 0 : i32
    %c0_i32_0 = arith.constant 0 : i32
    %c0_i32_1 = arith.constant 0 : i32
    return %c0_i32, %c0_i32_0 : i32, i32
  }
  func.func @transform_6(%arg0: i32, %arg1: i32) -> (i32, i32) {
    %c0_i32 = arith.constant 0 : i32
    %c0_i32_0 = arith.constant 0 : i32
    %c0_i32_1 = arith.constant 0 : i32
    return %c0_i32, %c0_i32_0 : i32, i32
  }
  func.func @transform_7(%arg0: i32, %arg1: i32) -> (i32, i32) {
    %c0_i32 = arith.constant 0 : i32
    %c0_i32_0 = arith.constant 0 : i32
    %c0_i32_1 = arith.constant 0 : i32
    return %c0_i32, %c0_i32_0 : i32, i32
  }
  func.func @transform_8(%arg0: i32, %arg1: i32) -> (i32, i32) {
    %c0_i32 = arith.constant 0 : i32
    %c0_i32_0 = arith.constant 0 : i32
    %c0_i32_1 = arith.constant 0 : i32
    return %c0_i32, %c0_i32_0 : i32, i32
  }
  func.func @transform_9(%arg0: i32, %arg1: i32) -> (i32, i32, i32) {
    %c0_i32 = arith.constant 0 : i32
    %c0_i32_0 = arith.constant 0 : i32
    return %arg0, %arg1, %c0_i32 : i32, i32, i32
  }
}

module attributes {stable_mosaic.version = 11 : i64} {
  func.func @encoder_layer_kernel(%arg0: i32, %arg1: i32, %arg2: memref<1x16x128xf32, #tpu.memory_space<vmem>>, %arg3: memref<128x128xbf16, #tpu.memory_space<vmem>>, %arg4: memref<128x128xbf16, #tpu.memory_space<vmem>>, %arg5: memref<128x128xbf16, #tpu.memory_space<vmem>>, %arg6: memref<128x128xbf16, #tpu.memory_space<vmem>>, %arg7: memref<128x256xbf16, #tpu.memory_space<vmem>>, %arg8: memref<256x128xbf16, #tpu.memory_space<vmem>>, %arg9: memref<9x128xf32, #tpu.memory_space<vmem>>, %arg10: memref<1x256xf32, #tpu.memory_space<vmem>>, %arg11: memref<1x16x128xf32, #tpu.memory_space<vmem>>, %arg12: memref<4x16x32xbf16, #tpu.memory_space<vmem>>, %arg13: memref<4x16x32xbf16, #tpu.memory_space<vmem>>) attributes {dimension_semantics = [#tpu.dimension_semantics<parallel>, #tpu.dimension_semantics<arbitrary>], iteration_bounds = array<i64: 2, 1>, scalar_prefetch = 0 : i64, scratch_operands = 2 : i64, tpu.core_type = #tpu.core_type<tc>, window_params = [{transform_indices = @transform_0, window_bounds = array<i64: 1, 16, 128>}, {pipeline_mode = #tpu.pipeline_mode<synchronous>, transform_indices = @transform_1, window_bounds = array<i64: 128, 128>}, {pipeline_mode = #tpu.pipeline_mode<synchronous>, transform_indices = @transform_2, window_bounds = array<i64: 128, 128>}, {pipeline_mode = #tpu.pipeline_mode<synchronous>, transform_indices = @transform_3, window_bounds = array<i64: 128, 128>}, {pipeline_mode = #tpu.pipeline_mode<synchronous>, transform_indices = @transform_4, window_bounds = array<i64: 128, 128>}, {pipeline_mode = #tpu.pipeline_mode<synchronous>, transform_indices = @transform_5, window_bounds = array<i64: 128, 256>}, {pipeline_mode = #tpu.pipeline_mode<synchronous>, transform_indices = @transform_6, window_bounds = array<i64: 256, 128>}, {pipeline_mode = #tpu.pipeline_mode<synchronous>, transform_indices = @transform_7, window_bounds = array<i64: 9, 128>}, {pipeline_mode = #tpu.pipeline_mode<synchronous>, transform_indices = @transform_8, window_bounds = array<i64: 1, 256>}, {transform_indices = @transform_9, window_bounds = array<i64: 1, 16, 128>}]} {
    %c0 = arith.constant 0 : index
    %c0_0 = arith.constant 0 : index
    %0 = vector.load %arg9[%c0, %c0_0] : memref<9x128xf32, #tpu.memory_space<vmem>>, vector<9x128xf32>
    %1 = vector.extract_strided_slice %0 {offsets = [0, 0], sizes = [1, 128], strides = [1, 1]} : vector<9x128xf32> to vector<1x128xf32>
    %2 = vector.shape_cast %1 : vector<1x128xf32> to vector<128xf32>
    %3 = vector.extract_strided_slice %0 {offsets = [1, 0], sizes = [1, 128], strides = [1, 1]} : vector<9x128xf32> to vector<1x128xf32>
    %4 = vector.shape_cast %3 : vector<1x128xf32> to vector<128xf32>
    %5 = vector.extract_strided_slice %0 {offsets = [2, 0], sizes = [1, 128], strides = [1, 1]} : vector<9x128xf32> to vector<1x128xf32>
    %6 = vector.shape_cast %5 : vector<1x128xf32> to vector<128xf32>
    %7 = vector.extract_strided_slice %0 {offsets = [3, 0], sizes = [1, 128], strides = [1, 1]} : vector<9x128xf32> to vector<1x128xf32>
    %8 = vector.shape_cast %7 : vector<1x128xf32> to vector<128xf32>
    %9 = vector.extract_strided_slice %0 {offsets = [4, 0], sizes = [1, 128], strides = [1, 1]} : vector<9x128xf32> to vector<1x128xf32>
    %10 = vector.shape_cast %9 : vector<1x128xf32> to vector<128xf32>
    %11 = vector.extract_strided_slice %0 {offsets = [5, 0], sizes = [1, 128], strides = [1, 1]} : vector<9x128xf32> to vector<1x128xf32>
    %12 = vector.shape_cast %11 : vector<1x128xf32> to vector<128xf32>
    %13 = vector.extract_strided_slice %0 {offsets = [6, 0], sizes = [1, 128], strides = [1, 1]} : vector<9x128xf32> to vector<1x128xf32>
    %14 = vector.shape_cast %13 : vector<1x128xf32> to vector<128xf32>
    %15 = vector.extract_strided_slice %0 {offsets = [7, 0], sizes = [1, 128], strides = [1, 1]} : vector<9x128xf32> to vector<1x128xf32>
    %16 = vector.shape_cast %15 : vector<1x128xf32> to vector<128xf32>
    %17 = vector.extract_strided_slice %0 {offsets = [8, 0], sizes = [1, 128], strides = [1, 1]} : vector<9x128xf32> to vector<1x128xf32>
    %18 = vector.shape_cast %17 : vector<1x128xf32> to vector<128xf32>
    %c0_i32 = arith.constant 0 : i32
    %19 = arith.cmpi eq, %arg1, %c0_i32 : i32
    %20 = arith.extui %19 : i1 to i32
    %c0_i32_1 = arith.constant 0 : i32
    %21 = arith.cmpi ne, %20, %c0_i32_1 : i32
    scf.if %21 {
      %c0_45 = arith.constant 0 : index
      %c0_46 = arith.constant 0 : index
      %c0_47 = arith.constant 0 : index
      %155 = vector.load %arg2[%c0_45, %c0_46, %c0_47] : memref<1x16x128xf32, #tpu.memory_space<vmem>>, vector<1x16x128xf32>
      %156 = vector.shape_cast %155 : vector<1x16x128xf32> to vector<16x128xf32>
      %157 = arith.truncf %156 : vector<16x128xf32> to vector<16x128xbf16>
      %c0_48 = arith.constant 0 : index
      %c0_49 = arith.constant 0 : index
      %158 = vector.load %arg4[%c0_48, %c0_49] : memref<128x128xbf16, #tpu.memory_space<vmem>>, vector<128x128xbf16>
      %cst_50 = arith.constant dense<0.000000e+00> : vector<16x128xf32>
      %159 = tpu.matmul %157, %158, %cst_50 {dimension_numbers = #tpu.dot_dimension_numbers<[1], [0], [0], [1], [0, 0, 1, 1], [], []>} : vector<16x128xbf16>, vector<128x128xbf16>, vector<16x128xf32> -> vector<16x128xf32>
      %160 = vector.shape_cast %4 : vector<128xf32> to vector<1x128xf32>
      %161 = vector.broadcast %160 : vector<1x128xf32> to vector<16x128xf32>
      %162 = arith.addf %159, %161 : vector<16x128xf32>
      %c0_51 = arith.constant 0 : index
      %c0_52 = arith.constant 0 : index
      %163 = vector.load %arg5[%c0_51, %c0_52] : memref<128x128xbf16, #tpu.memory_space<vmem>>, vector<128x128xbf16>
      %cst_53 = arith.constant dense<0.000000e+00> : vector<16x128xf32>
      %164 = tpu.matmul %157, %163, %cst_53 {dimension_numbers = #tpu.dot_dimension_numbers<[1], [0], [0], [1], [0, 0, 1, 1], [], []>} : vector<16x128xbf16>, vector<128x128xbf16>, vector<16x128xf32> -> vector<16x128xf32>
      %165 = vector.shape_cast %6 : vector<128xf32> to vector<1x128xf32>
      %166 = vector.broadcast %165 : vector<1x128xf32> to vector<16x128xf32>
      %167 = arith.addf %164, %166 : vector<16x128xf32>
      %168 = vector.extract_strided_slice %162 {offsets = [0, 0], sizes = [16, 32], strides = [1, 1]} : vector<16x128xf32> to vector<16x32xf32>
      %169 = vector.extract_strided_slice %162 {offsets = [0, 32], sizes = [16, 32], strides = [1, 1]} : vector<16x128xf32> to vector<16x32xf32>
      %170 = vector.extract_strided_slice %162 {offsets = [0, 64], sizes = [16, 32], strides = [1, 1]} : vector<16x128xf32> to vector<16x32xf32>
      %171 = vector.extract_strided_slice %162 {offsets = [0, 96], sizes = [16, 32], strides = [1, 1]} : vector<16x128xf32> to vector<16x32xf32>
      %172 = vector.shape_cast %168 : vector<16x32xf32> to vector<1x16x32xf32>
      %173 = vector.shape_cast %169 : vector<16x32xf32> to vector<1x16x32xf32>
      %174 = vector.shape_cast %170 : vector<16x32xf32> to vector<1x16x32xf32>
      %175 = vector.shape_cast %171 : vector<16x32xf32> to vector<1x16x32xf32>
      %176 = tpu.concatenate %172, %173, %174, %175 in 0 : vector<1x16x32xf32>, vector<1x16x32xf32>, vector<1x16x32xf32>, vector<1x16x32xf32> -> vector<4x16x32xf32>
      %177 = arith.truncf %176 : vector<4x16x32xf32> to vector<4x16x32xbf16>
      %c0_54 = arith.constant 0 : index
      %c0_55 = arith.constant 0 : index
      %c0_56 = arith.constant 0 : index
      %178 = vector.load %arg12[%c0_54, %c0_55, %c0_56] : memref<4x16x32xbf16, #tpu.memory_space<vmem>>, vector<4x16x32xbf16>
      tpu.vector_store %arg12[%c0_54, %c0_55, %c0_56], %177 {strides = array<i32>} : memref<4x16x32xbf16, #tpu.memory_space<vmem>>, vector<4x16x32xbf16>,
      %179 = vector.extract_strided_slice %167 {offsets = [0, 0], sizes = [16, 32], strides = [1, 1]} : vector<16x128xf32> to vector<16x32xf32>
      %180 = vector.extract_strided_slice %167 {offsets = [0, 32], sizes = [16, 32], strides = [1, 1]} : vector<16x128xf32> to vector<16x32xf32>
      %181 = vector.extract_strided_slice %167 {offsets = [0, 64], sizes = [16, 32], strides = [1, 1]} : vector<16x128xf32> to vector<16x32xf32>
      %182 = vector.extract_strided_slice %167 {offsets = [0, 96], sizes = [16, 32], strides = [1, 1]} : vector<16x128xf32> to vector<16x32xf32>
      %183 = vector.shape_cast %179 : vector<16x32xf32> to vector<1x16x32xf32>
      %184 = vector.shape_cast %180 : vector<16x32xf32> to vector<1x16x32xf32>
      %185 = vector.shape_cast %181 : vector<16x32xf32> to vector<1x16x32xf32>
      %186 = vector.shape_cast %182 : vector<16x32xf32> to vector<1x16x32xf32>
      %187 = tpu.concatenate %183, %184, %185, %186 in 0 : vector<1x16x32xf32>, vector<1x16x32xf32>, vector<1x16x32xf32>, vector<1x16x32xf32> -> vector<4x16x32xf32>
      %188 = arith.truncf %187 : vector<4x16x32xf32> to vector<4x16x32xbf16>
      %c0_57 = arith.constant 0 : index
      %c0_58 = arith.constant 0 : index
      %c0_59 = arith.constant 0 : index
      %189 = vector.load %arg13[%c0_57, %c0_58, %c0_59] : memref<4x16x32xbf16, #tpu.memory_space<vmem>>, vector<4x16x32xbf16>
      tpu.vector_store %arg13[%c0_57, %c0_58, %c0_59], %188 {strides = array<i32>} : memref<4x16x32xbf16, #tpu.memory_space<vmem>>, vector<4x16x32xbf16>,
    } else {
    }
    %c16_i32 = arith.constant 16 : i32
    %22 = arith.muli %arg1, %c16_i32 : i32
    %23 = tpu.assume_multiple %22, 8 : i32
    %c0_2 = arith.constant 0 : index
    %24 = arith.index_cast %23 : i32 to index
    %c0_3 = arith.constant 0 : index
    %25 = vector.load %arg2[%c0_2, %24, %c0_3] : memref<1x16x128xf32, #tpu.memory_space<vmem>>, vector<1x16x128xf32>
    %26 = vector.shape_cast %25 : vector<1x16x128xf32> to vector<16x128xf32>
    %27 = arith.truncf %26 : vector<16x128xf32> to vector<16x128xbf16>
    %c0_4 = arith.constant 0 : index
    %c0_5 = arith.constant 0 : index
    %28 = vector.load %arg3[%c0_4, %c0_5] : memref<128x128xbf16, #tpu.memory_space<vmem>>, vector<128x128xbf16>
    %cst = arith.constant dense<0.000000e+00> : vector<16x128xf32>
    %29 = tpu.matmul %27, %28, %cst {dimension_numbers = #tpu.dot_dimension_numbers<[1], [0], [0], [1], [0, 0, 1, 1], [], []>} : vector<16x128xbf16>, vector<128x128xbf16>, vector<16x128xf32> -> vector<16x128xf32>
    %30 = vector.shape_cast %2 : vector<128xf32> to vector<1x128xf32>
    %31 = vector.broadcast %30 : vector<1x128xf32> to vector<16x128xf32>
    %32 = arith.addf %29, %31 : vector<16x128xf32>
    %cst_6 = arith.constant 0.176776692 : f32
    %33 = vector.broadcast %cst_6 : f32 to vector<16x128xf32>
    %34 = arith.mulf %32, %33 : vector<16x128xf32>
    %35 = vector.extract_strided_slice %34 {offsets = [0, 0], sizes = [16, 32], strides = [1, 1]} : vector<16x128xf32> to vector<16x32xf32>
    %36 = vector.extract_strided_slice %34 {offsets = [0, 32], sizes = [16, 32], strides = [1, 1]} : vector<16x128xf32> to vector<16x32xf32>
    %37 = vector.extract_strided_slice %34 {offsets = [0, 64], sizes = [16, 32], strides = [1, 1]} : vector<16x128xf32> to vector<16x32xf32>
    %38 = vector.extract_strided_slice %34 {offsets = [0, 96], sizes = [16, 32], strides = [1, 1]} : vector<16x128xf32> to vector<16x32xf32>
    %39 = vector.shape_cast %35 : vector<16x32xf32> to vector<1x16x32xf32>
    %40 = vector.shape_cast %36 : vector<16x32xf32> to vector<1x16x32xf32>
    %41 = vector.shape_cast %37 : vector<16x32xf32> to vector<1x16x32xf32>
    %42 = vector.shape_cast %38 : vector<16x32xf32> to vector<1x16x32xf32>
    %43 = tpu.concatenate %39, %40, %41, %42 in 0 : vector<1x16x32xf32>, vector<1x16x32xf32>, vector<1x16x32xf32>, vector<1x16x32xf32> -> vector<4x16x32xf32>
    %44 = arith.truncf %43 : vector<4x16x32xf32> to vector<4x16x32xbf16>
    %c0_7 = arith.constant 0 : index
    %c0_8 = arith.constant 0 : index
    %c0_9 = arith.constant 0 : index
    %45 = vector.load %arg12[%c0_7, %c0_8, %c0_9] : memref<4x16x32xbf16, #tpu.memory_space<vmem>>, vector<4x16x32xbf16>
    %c0_10 = arith.constant 0 : index
    %c0_11 = arith.constant 0 : index
    %c0_12 = arith.constant 0 : index
    %46 = vector.load %arg13[%c0_10, %c0_11, %c0_12] : memref<4x16x32xbf16, #tpu.memory_space<vmem>>, vector<4x16x32xbf16>
    "tpu.trace_start"() <{level = 10 : i32, message = "hqd,hkd->hqk"}> : () -> ()
    %cst_13 = arith.constant dense<0.000000e+00> : vector<4x16x16xf32>
    %47 = tpu.matmul %44, %45, %cst_13 {dimension_numbers = #tpu.dot_dimension_numbers<[2], [2], [1], [1], [0, 0, 0, 1, 1, 1], [0], [0]>} : vector<4x16x32xbf16>, vector<4x16x32xbf16>, vector<4x16x16xf32> -> vector<4x16x16xf32>
    "tpu.trace_stop"() : () -> ()
    %cst_14 = arith.constant dense<0xFF800000> : vector<4x16xf32>
    %48 = vector.multi_reduction <maximumf>, %47, %cst_14 [2] : vector<4x16x16xf32> to vector<4x16xf32>
    %49 = vector.shape_cast %48 : vector<4x16xf32> to vector<4x16x1xf32>
    %50 = vector.broadcast %49 : vector<4x16x1xf32> to vector<4x16x16xf32>
    %51 = arith.subf %47, %50 : vector<4x16x16xf32>
    %52 = math.exp %51 : vector<4x16x16xf32>
    %cst_15 = arith.constant dense<0.000000e+00> : vector<4x16xf32>
    %53 = vector.multi_reduction <add>, %52, %cst_15 [2] : vector<4x16x16xf32> to vector<4x16xf32>
    %54 = vector.shape_cast %53 : vector<4x16xf32> to vector<4x16x1xf32>
    %55 = tpu.reciprocal %54 {approx = true} : vector<4x16x1xf32> -> vector<4x16x1xf32>
    %56 = vector.broadcast %55 : vector<4x16x1xf32> to vector<4x16x16xf32>
    %57 = arith.mulf %52, %56 : vector<4x16x16xf32>
    %58 = arith.truncf %57 : vector<4x16x16xf32> to vector<4x16x16xbf16>
    "tpu.trace_start"() <{level = 10 : i32, message = "hqk,hkd->hqd"}> : () -> ()
    %cst_16 = arith.constant dense<0.000000e+00> : vector<4x16x32xf32>
    %59 = tpu.matmul %58, %46, %cst_16 {dimension_numbers = #tpu.dot_dimension_numbers<[2], [1], [1], [2], [0, 0, 0, 1, 1, 2], [0], [0]>} : vector<4x16x16xbf16>, vector<4x16x32xbf16>, vector<4x16x32xf32> -> vector<4x16x32xf32>
    "tpu.trace_stop"() : () -> ()
    %60 = vector.extract_strided_slice %59 {offsets = [0, 0, 0], sizes = [1, 16, 32], strides = [1, 1, 1]} : vector<4x16x32xf32> to vector<1x16x32xf32>
    %61 = vector.shape_cast %60 : vector<1x16x32xf32> to vector<16x32xf32>
    %62 = vector.extract_strided_slice %59 {offsets = [1, 0, 0], sizes = [1, 16, 32], strides = [1, 1, 1]} : vector<4x16x32xf32> to vector<1x16x32xf32>
    %63 = vector.shape_cast %62 : vector<1x16x32xf32> to vector<16x32xf32>
    %64 = vector.extract_strided_slice %59 {offsets = [2, 0, 0], sizes = [1, 16, 32], strides = [1, 1, 1]} : vector<4x16x32xf32> to vector<1x16x32xf32>
    %65 = vector.shape_cast %64 : vector<1x16x32xf32> to vector<16x32xf32>
    %66 = vector.extract_strided_slice %59 {offsets = [3, 0, 0], sizes = [1, 16, 32], strides = [1, 1, 1]} : vector<4x16x32xf32> to vector<1x16x32xf32>
    %67 = vector.shape_cast %66 : vector<1x16x32xf32> to vector<16x32xf32>
    %68 = tpu.concatenate %61, %63, %65, %67 in 1 : vector<16x32xf32>, vector<16x32xf32>, vector<16x32xf32>, vector<16x32xf32> -> vector<16x128xf32>
    %69 = arith.truncf %68 : vector<16x128xf32> to vector<16x128xbf16>
    %c0_17 = arith.constant 0 : index
    %c0_18 = arith.constant 0 : index
    %70 = vector.load %arg6[%c0_17, %c0_18] : memref<128x128xbf16, #tpu.memory_space<vmem>>, vector<128x128xbf16>
    %cst_19 = arith.constant dense<0.000000e+00> : vector<16x128xf32>
    %71 = tpu.matmul %69, %70, %cst_19 {dimension_numbers = #tpu.dot_dimension_numbers<[1], [0], [0], [1], [0, 0, 1, 1], [], []>} : vector<16x128xbf16>, vector<128x128xbf16>, vector<16x128xf32> -> vector<16x128xf32>
    %72 = vector.shape_cast %8 : vector<128xf32> to vector<1x128xf32>
    %73 = vector.broadcast %72 : vector<1x128xf32> to vector<16x128xf32>
    %74 = arith.addf %71, %73 : vector<16x128xf32>
    %75 = arith.addf %26, %74 : vector<16x128xf32>
    %cst_20 = arith.constant dense<0.000000e+00> : vector<16xf32>
    %76 = vector.multi_reduction <add>, %75, %cst_20 [1] : vector<16x128xf32> to vector<16xf32>
    %77 = vector.shape_cast %76 : vector<16xf32> to vector<16x1xf32>
    %cst_21 = arith.constant 1.280000e+02 : f32
    %78 = vector.broadcast %cst_21 : f32 to vector<16x1xf32>
    %79 = arith.divf %77, %78 : vector<16x1xf32>
    %80 = vector.broadcast %79 : vector<16x1xf32> to vector<16x128xf32>
    %81 = arith.subf %75, %80 : vector<16x128xf32>
    %82 = arith.mulf %81, %81 : vector<16x128xf32>
    %cst_22 = arith.constant dense<0.000000e+00> : vector<16xf32>
    %83 = vector.multi_reduction <add>, %82, %cst_22 [1] : vector<16x128xf32> to vector<16xf32>
    %84 = vector.shape_cast %83 : vector<16xf32> to vector<16x1xf32>
    %cst_23 = arith.constant 1.280000e+02 : f32
    %85 = vector.broadcast %cst_23 : f32 to vector<16x1xf32>
    %86 = arith.divf %84, %85 : vector<16x1xf32>
    %87 = vector.broadcast %79 : vector<16x1xf32> to vector<16x128xf32>
    %88 = arith.subf %75, %87 : vector<16x128xf32>
    %cst_24 = arith.constant 9.99999974E-6 : f32
    %89 = vector.broadcast %cst_24 : f32 to vector<16x1xf32>
    %90 = arith.addf %86, %89 : vector<16x1xf32>
    %91 = math.rsqrt %90 : vector<16x1xf32>
    %92 = vector.broadcast %91 : vector<16x1xf32> to vector<16x128xf32>
    %93 = arith.mulf %88, %92 : vector<16x128xf32>
    %94 = vector.shape_cast %12 : vector<128xf32> to vector<1x128xf32>
    %95 = vector.broadcast %94 : vector<1x128xf32> to vector<16x128xf32>
    %96 = arith.mulf %93, %95 : vector<16x128xf32>
    %97 = vector.shape_cast %14 : vector<128xf32> to vector<1x128xf32>
    %98 = vector.broadcast %97 : vector<1x128xf32> to vector<16x128xf32>
    %99 = arith.addf %96, %98 : vector<16x128xf32>
    %100 = arith.truncf %99 : vector<16x128xf32> to vector<16x128xbf16>
    %c0_25 = arith.constant 0 : index
    %c0_26 = arith.constant 0 : index
    %101 = vector.load %arg7[%c0_25, %c0_26] : memref<128x256xbf16, #tpu.memory_space<vmem>>, vector<128x256xbf16>
    %cst_27 = arith.constant dense<0.000000e+00> : vector<16x256xf32>
    %102 = tpu.matmul %100, %101, %cst_27 {dimension_numbers = #tpu.dot_dimension_numbers<[1], [0], [0], [1], [0, 0, 1, 1], [], []>} : vector<16x128xbf16>, vector<128x256xbf16>, vector<16x256xf32> -> vector<16x256xf32>
    %c0_28 = arith.constant 0 : index
    %c0_29 = arith.constant 0 : index
    %103 = vector.load %arg10[%c0_28, %c0_29] : memref<1x256xf32, #tpu.memory_space<vmem>>, vector<1x256xf32>
    %104 = vector.shape_cast %103 : vector<1x256xf32> to vector<256xf32>
    %105 = vector.shape_cast %104 : vector<256xf32> to vector<1x256xf32>
    %106 = vector.broadcast %105 : vector<1x256xf32> to vector<16x256xf32>
    %107 = arith.addf %102, %106 : vector<16x256xf32>
    %108 = arith.mulf %107, %107 : vector<16x256xf32>
    %109 = arith.mulf %107, %108 : vector<16x256xf32>
    %cst_30 = arith.constant 4.471500e-02 : f32
    %110 = vector.broadcast %cst_30 : f32 to vector<16x256xf32>
    %111 = arith.mulf %110, %109 : vector<16x256xf32>
    %112 = arith.addf %107, %111 : vector<16x256xf32>
    %cst_31 = arith.constant 0.797884583 : f32
    %113 = vector.broadcast %cst_31 : f32 to vector<16x256xf32>
    %114 = arith.mulf %113, %112 : vector<16x256xf32>
    %115 = math.tanh %114 : vector<16x256xf32>
    %cst_32 = arith.constant 1.000000e+00 : f32
    %116 = vector.broadcast %cst_32 : f32 to vector<16x256xf32>
    %117 = arith.addf %116, %115 : vector<16x256xf32>
    %cst_33 = arith.constant 5.000000e-01 : f32
    %118 = vector.broadcast %cst_33 : f32 to vector<16x256xf32>
    %119 = arith.mulf %118, %117 : vector<16x256xf32>
    %120 = arith.mulf %107, %119 : vector<16x256xf32>
    %121 = arith.truncf %120 : vector<16x256xf32> to vector<16x256xbf16>
    %c0_34 = arith.constant 0 : index
    %c0_35 = arith.constant 0 : index
    %122 = vector.load %arg8[%c0_34, %c0_35] : memref<256x128xbf16, #tpu.memory_space<vmem>>, vector<256x128xbf16>
    %cst_36 = arith.constant dense<0.000000e+00> : vector<16x128xf32>
    %123 = tpu.matmul %121, %122, %cst_36 {dimension_numbers = #tpu.dot_dimension_numbers<[1], [0], [0], [1], [0, 0, 1, 1], [], []>} : vector<16x256xbf16>, vector<256x128xbf16>, vector<16x128xf32> -> vector<16x128xf32>
    %124 = vector.shape_cast %10 : vector<128xf32> to vector<1x128xf32>
    %125 = vector.broadcast %124 : vector<1x128xf32> to vector<16x128xf32>
    %126 = arith.addf %123, %125 : vector<16x128xf32>
    %127 = arith.addf %99, %126 : vector<16x128xf32>
    %cst_37 = arith.constant dense<0.000000e+00> : vector<16xf32>
    %128 = vector.multi_reduction <add>, %127, %cst_37 [1] : vector<16x128xf32> to vector<16xf32>
    %129 = vector.shape_cast %128 : vector<16xf32> to vector<16x1xf32>
    %cst_38 = arith.constant 1.280000e+02 : f32
    %130 = vector.broadcast %cst_38 : f32 to vector<16x1xf32>
    %131 = arith.divf %129, %130 : vector<16x1xf32>
    %132 = vector.broadcast %131 : vector<16x1xf32> to vector<16x128xf32>
    %133 = arith.subf %127, %132 : vector<16x128xf32>
    %134 = arith.mulf %133, %133 : vector<16x128xf32>
    %cst_39 = arith.constant dense<0.000000e+00> : vector<16xf32>
    %135 = vector.multi_reduction <add>, %134, %cst_39 [1] : vector<16x128xf32> to vector<16xf32>
    %136 = vector.shape_cast %135 : vector<16xf32> to vector<16x1xf32>
    %cst_40 = arith.constant 1.280000e+02 : f32
    %137 = vector.broadcast %cst_40 : f32 to vector<16x1xf32>
    %138 = arith.divf %136, %137 : vector<16x1xf32>
    %139 = vector.broadcast %131 : vector<16x1xf32> to vector<16x128xf32>
    %140 = arith.subf %127, %139 : vector<16x128xf32>
    %cst_41 = arith.constant 9.99999974E-6 : f32
    %141 = vector.broadcast %cst_41 : f32 to vector<16x1xf32>
    %142 = arith.addf %138, %141 : vector<16x1xf32>
    %143 = math.rsqrt %142 : vector<16x1xf32>
    %144 = vector.broadcast %143 : vector<16x1xf32> to vector<16x128xf32>
    %145 = arith.mulf %140, %144 : vector<16x128xf32>
    %146 = vector.shape_cast %16 : vector<128xf32> to vector<1x128xf32>
    %147 = vector.broadcast %146 : vector<1x128xf32> to vector<16x128xf32>
    %148 = arith.mulf %145, %147 : vector<16x128xf32>
    %149 = vector.shape_cast %18 : vector<128xf32> to vector<1x128xf32>
    %150 = vector.broadcast %149 : vector<1x128xf32> to vector<16x128xf32>
    %151 = arith.addf %148, %150 : vector<16x128xf32>
    %c0_42 = arith.constant 0 : index
    %c0_43 = arith.constant 0 : index
    %c0_44 = arith.constant 0 : index
    %152 = vector.load %arg11[%c0_42, %c0_43, %c0_44] : memref<1x16x128xf32, #tpu.memory_space<vmem>>, vector<1x16x128xf32>
    %153 = vector.shape_cast %152 : vector<1x16x128xf32> to vector<16x128xf32>
    %154 = vector.shape_cast %151 : vector<16x128xf32> to vector<1x16x128xf32>
    tpu.vector_store %arg11[%c0_42, %c0_43, %c0_44], %154 {strides = array<i32>} : memref<1x16x128xf32, #tpu.memory_space<vmem>>, vector<1x16x128xf32>,
    return
  }
  func.func @transform_0(%arg0: i32, %arg1: i32) -> (i32, i32, i32) {
    %c0_i32 = arith.constant 0 : i32
    %c0_i32_0 = arith.constant 0 : i32
    %c0_i32_1 = arith.constant 0 : i32
    return %arg0, %c0_i32, %c0_i32_0 : i32, i32, i32
  }
  func.func @transform_1(%arg0: i32, %arg1: i32) -> (i32, i32) {
    %c0_i32 = arith.constant 0 : i32
    %c0_i32_0 = arith.constant 0 : i32
    %c0_i32_1 = arith.constant 0 : i32
    return %c0_i32, %c0_i32_0 : i32, i32
  }
  func.func @transform_2(%arg0: i32, %arg1: i32) -> (i32, i32) {
    %c0_i32 = arith.constant 0 : i32
    %c0_i32_0 = arith.constant 0 : i32
    %c0_i32_1 = arith.constant 0 : i32
    return %c0_i32, %c0_i32_0 : i32, i32
  }
  func.func @transform_3(%arg0: i32, %arg1: i32) -> (i32, i32) {
    %c0_i32 = arith.constant 0 : i32
    %c0_i32_0 = arith.constant 0 : i32
    %c0_i32_1 = arith.constant 0 : i32
    return %c0_i32, %c0_i32_0 : i32, i32
  }
  func.func @transform_4(%arg0: i32, %arg1: i32) -> (i32, i32) {
    %c0_i32 = arith.constant 0 : i32
    %c0_i32_0 = arith.constant 0 : i32
    %c0_i32_1 = arith.constant 0 : i32
    return %c0_i32, %c0_i32_0 : i32, i32
  }
  func.func @transform_5(%arg0: i32, %arg1: i32) -> (i32, i32) {
    %c0_i32 = arith.constant 0 : i32
    %c0_i32_0 = arith.constant 0 : i32
    %c0_i32_1 = arith.constant 0 : i32
    return %c0_i32, %c0_i32_0 : i32, i32
  }
  func.func @transform_6(%arg0: i32, %arg1: i32) -> (i32, i32) {
    %c0_i32 = arith.constant 0 : i32
    %c0_i32_0 = arith.constant 0 : i32
    %c0_i32_1 = arith.constant 0 : i32
    return %c0_i32, %c0_i32_0 : i32, i32
  }
  func.func @transform_7(%arg0: i32, %arg1: i32) -> (i32, i32) {
    %c0_i32 = arith.constant 0 : i32
    %c0_i32_0 = arith.constant 0 : i32
    %c0_i32_1 = arith.constant 0 : i32
    return %c0_i32, %c0_i32_0 : i32, i32
  }
  func.func @transform_8(%arg0: i32, %arg1: i32) -> (i32, i32) {
    %c0_i32 = arith.constant 0 : i32
    %c0_i32_0 = arith.constant 0 : i32
    %c0_i32_1 = arith.constant 0 : i32
    return %c0_i32, %c0_i32_0 : i32, i32
  }
  func.func @transform_9(%arg0: i32, %arg1: i32) -> (i32, i32, i32) {
    %c0_i32 = arith.constant 0 : i32
    %c0_i32_0 = arith.constant 0 : i32
    return %arg0, %arg1, %c0_i32 : i32, i32, i32
  }
}

</mosaic_0001>

<bundles_post_ra>
// kernel: tpu_custom_call.1
= control target key start
LH: loop header
LB: loop body
LE: loop exit
PB: predicated region body
PF: predicated region fallthrough
CT: control target
= control target key end

     0   :  { %s4533_s0 = inlined_call_operand.hbm [shape: f32[2,16,128], index: 0, kind: input, shape index: {}]   ;;  %s4534_s1 = inlined_call_operand.hbm [shape: bf16[128,128], index: 1, kind: input, shape index: {}]   ;;  %s4535_s2 = inlined_call_operand.hbm [shape: bf16[128,128], index: 2, kind: input, shape index: {}]   ;;  %s4536_s3 = inlined_call_operand.hbm [shape: bf16[128,128], index: 3, kind: input, shape index: {}]   ;;  %s4537_s4 = inlined_call_operand.hbm [shape: bf16[128,128], index: 4, kind: input, shape index: {}]   ;;  %s4538_s5 = inlined_call_operand.hbm [shape: bf16[128,256], index: 5, kind: input, shape index: {}]   ;;  %s4539_s6 = inlined_call_operand.hbm [shape: bf16[256,128], index: 6, kind: input, shape index: {}]   ;;  %s4540_s7 = inlined_call_operand.hbm [shape: f32[9,128], index: 7, kind: input, shape index: {}]   ;;  %s4541_s8 = inlined_call_operand.vmem [shape: f32[1,256], index: 8, kind: input, shape index: {}]   ;;  %s4542_s9 = inlined_call_operand.hbm [shape: f32[2,16,128], index: 9, kind: output, shape index: {}]  }
   0x1   :  { %4552 = sst [smem:[#allocation26_spill]] %s4534_s1 }
   0x2   :  { %4553 = sst [smem:[#allocation27_spill]] %s4535_s2 }
   0x3   :  { %4554 = sst [smem:[#allocation28_spill]] %s4536_s3 }
   0x4   :  { %4555 = sst [smem:[#allocation29_spill]] %s4537_s4 }
   0x5   :  { %4556 = sst [smem:[#allocation30_spill]] %s4538_s5 }
   0x6   :  { %4557 = sst [smem:[#allocation31_spill]] %s4539_s6 }
   0x7   :  { %4558 = sst [smem:[#allocation32_spill]] %s4540_s7 }
   0x8   :  { %14 = vsyncpa [#allocation5], 0 }
   0x9   :  { %16 = vsyncpa [#allocation5 + $0x1], 0 }
   0xa   :  { %17 = vsyncpa [#allocation8], 0 }
   0xb   :  { %18 = vsyncpa [#allocation11], 0 }
   0xc   :  { %19 = vsyncpa [#allocation14], 0 }
   0xd   :  { %20 = vsyncpa [#allocation17], 0 }
   0xe   :  { %21 = vsyncpa [#allocation6], 0 }
   0xf   :  { %23 = vsyncpa [#allocation6 + $0x1], 0  ;;  %s3995_s30 = smov 0   ;;  %s3997_s10 = smov 0  }
  0x10   :  { %s3999_s11 = smov 0   ;;  %s4001_s12 = smov 0  }
  0x11   :  { %s4003_s13 = smov 0   ;;  %s4005_s14 = smov 0  }
  0x12 LB: > { %s4543_s15 = sadd.s32 4294967295, %s3920_s14   ;;  %p2961_p0 = scmp.ge.s32.totalorder %s3920_s14, 1  ;;  %s3920_s14 = sphi %s4005_s14, %s29_s14   ;;  %s3916_s13 = sphi %s4003_s13, %s4588_s13   ;;  %s3912_s12 = sphi %s4001_s12, %s4587_s12   ;;  %s3908_s11 = sphi %s3999_s11, %s4586_s11   ;;  %s3904_s10 = sphi %s3997_s10, %s4585_s10   ;;  %s3900_s30 = sphi %s3995_s30, %s4584_s30  }
  0x13   : > { %p4029_p1 = scmp.eq.s32.totalorder %s4543_s15, 0  ;;  %p268_p2 = scmp.lt.s32.totalorder %s3920_s14, 3 }
  0x14   : > { %s3922_s18 = smov [#allocation7]   ;;  %s3923_s21 = smov [#allocation10]  }
  0x15   : > { %p4034_p3 = pnand %p2961_p0, %p268_p2  ;;  %s280_s19 = sshll.u32 %s3922_s18, 4  ;;  %s281_s19 = int_to_ptr.vmem [resolvable:$true] %s280_s19 }
  0x16   : > { %s306_s22 = sshll.u32 %s3923_s21, 4  ;;  %s3924_s23 = smov [#allocation13]   ;;  %s307_s22 = int_to_ptr.vmem [resolvable:$true] %s306_s22 }
  0x17   : > { %p3359_p4 = pneg %p4034_p3  ;;  %s332_s24 = sshll.u32 %s3924_s23, 4  ;;  %s333_s24 = int_to_ptr.vmem [resolvable:$true] %s332_s24 }
  0x18   : > { %s3625_s26 = scalar_lea.vmem %s281_s19, 1024  ;;  %p3633_p11 = scmp.lt.s32.totalorder %s281_s19, %s281_s19 }
  0x19   : > { %p4043_p6 = pnand %p3359_p4, %p4029_p1  ;;  %p3626_p8 = scmp.ne.s32.totalorder %s281_s19, %s3625_s26 }
  0x1a   : > { %p3634_p12 = scmp.lt.s32.totalorder %s3625_s26, %s3625_s26 }
  0x1b   : > { %p4049_p7 = pneg %p4043_p6 }
  0x1c   : > { %p3635_p13 = por %p3634_p12, %p3633_p11 }
  0x1d   : > { %p3628_p9 = pnand %p3626_p8, %p4049_p7 }
  0x1f   : > { %p3629_p10 = pneg %p3628_p9 }
  0x21   : > { %p3636_p0 = pnand %p3635_p13, %p3629_p10 }
  0x23   : > { %3639 = shalt.err (!%p3636_p0)
}
  0x24   : > { %s4544_s27 = smov 64   ;;  %s3926_s28 = smov 4  }
  0x25   : > { %s4563_s1 = sld [smem:[#allocation26_spill]]  ;;  %s3651_s21 = scalar_lea.vmem %s307_s22, 1024 }
  0x26   : > { %p3652_p2 = scmp.ne.s32.totalorder %s307_s22, %s3651_s21  ;;  %p3659_p9 = scmp.lt.s32.totalorder %s307_s22, %s307_s22 }
  0x27   : > { %p3660_p10 = scmp.lt.s32.totalorder %s3651_s21, %s3651_s21 }
  0x28   : > { %p3654_p4 = pnand %p3652_p2, %p4049_p7 }
  0x29   : > { %p3661_p11 = por %p3660_p10, %p3659_p9 }
  0x2a   : > { %p3655_p8 = pneg %p3654_p4 }
  0x2b   : > { %3362 = dma.hbm_to_vmem [thread:$0]  (!%p4043_p6), %s4563_s1, 1024, %s281_s19, [#allocation8], %s4544_s27, %s4544_s27, %s3926_s28  }
  0x2c   : > { %p3662_p12 = pnand %p3661_p11, %p3655_p8 }
  0x2e   : > { %3665 = shalt.err (!%p3662_p12)
}
  0x2f   : > { %s4564_s3 = sld [smem:[#allocation28_spill]]  ;;  %s3677_s19 = scalar_lea.vmem %s333_s24, 2048 }
  0x30   : > { %p3678_p13 = scmp.ne.s32.totalorder %s333_s24, %s3677_s19  ;;  %p3685_p4 = scmp.lt.s32.totalorder %s333_s24, %s333_s24 }
  0x31   : > { %p3686_p9 = scmp.lt.s32.totalorder %s3677_s19, %s3677_s19 }
  0x32   : > { %p3680_p0 = pnand %p3678_p13, %p4049_p7 }
  0x33   : > { %p3687_p8 = por %p3686_p9, %p3685_p4 }
  0x34   : > { %p3681_p2 = pneg %p3680_p0 }
  0x35   : > { %3368 = dma.hbm_to_vmem [thread:$0]  (!%p4043_p6), %s4564_s3, 1024, %s307_s22, [#allocation11], %s4544_s27, %s4544_s27, %s3926_s28  }
  0x36   : > { %p3688_p10 = pnand %p3687_p8, %p3681_p2 }
  0x38   : > { %3691 = shalt.err (!%p3688_p10)
}
  0x39   : > { %s4546_s29 = smov 128   ;;  %s4548_s18 = smov 8  }
  0x3a   : > { %s4565_s5 = sld [smem:[#allocation30_spill]]  ;;  %s3929_s23 = smov [#allocation9]  }
  0x3b   : > { %s293_s26 = sshll.u32 %s3929_s23, 4  ;;  %s3930_s15 = smov [#allocation12]   ;;  %s294_s26 = int_to_ptr.vmem [resolvable:$true] %s293_s26 }
  0x3c   : > { %s319_s19 = sshll.u32 %s3930_s15, 4  ;;  %s3703_s27 = scalar_lea.vmem %s294_s26, 1024  ;;  %s320_s19 = int_to_ptr.vmem [resolvable:$true] %s319_s19 }
  0x3d   : > { %p3704_p11 = scmp.ne.s32.totalorder %s294_s26, %s3703_s27  ;;  %p3711_p0 = scmp.lt.s32.totalorder %s294_s26, %s294_s26 }
  0x3e   : > { %p3712_p2 = scmp.lt.s32.totalorder %s3703_s27, %s3703_s27 }
  0x3f   : > { %p3706_p12 = pnand %p3704_p11, %p4049_p7 }
  0x40   : > { %3374 = dma.hbm_to_vmem [thread:$0]  (!%p4043_p6), %s4565_s5, 2048, %s333_s24, [#allocation14], %s4546_s29, %s4546_s29, %s4548_s18  }
  0x41   : > { %p3707_p13 = pneg %p3706_p12  ;;  %p3713_p4 = por %p3712_p2, %p3711_p0 }
  0x43   : > { %p3714_p9 = pnand %p3713_p4, %p3707_p13 }
  0x45   : > { %3717 = shalt.err (!%p3714_p9)
}
  0x46   : > { %s4566_s22 = smov 64   ;;  %s4567_s2 = sld [smem:[#allocation27_spill]] }
  0x47   : > { %s3729_s15 = scalar_lea.vmem %s320_s19, 1024  ;;  %p3737_p12 = scmp.lt.s32.totalorder %s320_s19, %s320_s19 }
  0x48   : > { %p3730_p8 = scmp.ne.s32.totalorder %s320_s19, %s3729_s15  ;;  %p3738_p0 = scmp.lt.s32.totalorder %s3729_s15, %s3729_s15 }
  0x4a   : > { %p3732_p10 = pnand %p3730_p8, %p4049_p7  ;;  %p3739_p13 = por %p3738_p0, %p3737_p12 }
  0x4c   : > { %3365 = dma.hbm_to_vmem [thread:$0]  (!%p4043_p6), %s4567_s2, 1024, %s294_s26, [#allocation8], %s4566_s22, %s4566_s22, %s3926_s28  }
  0x4d   : > { %p3733_p11 = pneg %p3732_p10 }
  0x4f   : > { %p3740_p2 = pnand %p3739_p13, %p3733_p11 }
  0x51   : > { %3743 = shalt.err (!%p3740_p2)
}
  0x52   : > { %s4568_s4 = sld [smem:[#allocation29_spill]]  ;;  %s3931_s26 = smov [#allocation15]  }
  0x53   : > { %s345_s24 = sshll.u32 %s3931_s26, 4  ;;  %s3932_s21 = smov [#allocation16]   ;;  %s346_s24 = int_to_ptr.vmem [resolvable:$true] %s345_s24 }
  0x54   : > { %s358_s29 = sshll.u32 %s3932_s21, 4  ;;  %s3755_s18 = scalar_lea.vmem %s346_s24, 2048  ;;  %s359_s29 = int_to_ptr.vmem [resolvable:$true] %s358_s29 }
  0x55   : > { %p3756_p4 = scmp.ne.s32.totalorder %s346_s24, %s3755_s18  ;;  %p3763_p10 = scmp.lt.s32.totalorder %s346_s24, %s346_s24 }
  0x56   : > { %p3764_p11 = scmp.lt.s32.totalorder %s3755_s18, %s3755_s18 }
  0x57   : > { %p3758_p9 = pnand %p3756_p4, %p4049_p7 }
  0x58   : > { %3371 = dma.hbm_to_vmem [thread:$0]  (!%p4043_p6), %s4568_s4, 1024, %s320_s19, [#allocation11], %s4566_s22, %s4566_s22, %s3926_s28  }
  0x59   : > { %p3759_p8 = pneg %p3758_p9  ;;  %p3765_p12 = por %p3764_p11, %p3763_p10 }
  0x5b   : > { %p3766_p0 = pnand %p3765_p12, %p3759_p8 }
  0x5d   : > { %3769 = shalt.err (!%p3766_p0)
}
  0x5e   : > { %s4569_s6 = sld [smem:[#allocation31_spill]]  ;;  %s3781_s27 = scalar_lea.vmem %s359_s29, 256 }
  0x5f   : > { %p3782_p13 = scmp.ne.s32.totalorder %s359_s29, %s3781_s27  ;;  %p3789_p9 = scmp.lt.s32.totalorder %s359_s29, %s359_s29 }
  0x60   : > { %p3790_p10 = scmp.lt.s32.totalorder %s3781_s27, %s3781_s27 }
  0x61   : > { %p3784_p2 = pnand %p3782_p13, %p4049_p7 }
  0x62   : > { %p3791_p8 = por %p3790_p10, %p3789_p9 }
  0x63   : > { %p3785_p4 = pneg %p3784_p2 }
  0x64   : > { %3377 = dma.hbm_to_vmem [thread:$0]  (!%p4043_p6), %s4569_s6, 2048, %s346_s24, [#allocation14], %s4566_s22, %s4566_s22, %s3926_s28  }
  0x65   : > { %p3792_p11 = pnand %p3791_p8, %p3785_p4 }
  0x67   : > { %3795 = shalt.err (!%p3792_p11)
}
  0x68   : > { %s4570_s18 = smov 8   ;;  %s4571_s23 = smov 128  }
  0x69   : > { %s4572_s7 = sld [smem:[#allocation32_spill]]  ;;  %s2960_s20 = sadd.s32 4294967294, %s3920_s14  }
  0x6a   : > { %s41_s25 = sadd.s32 1, %s3916_s13  ;;  %s48_s28 = sadd.s32 1, %s3908_s11 }
  0x6b   : > { %p43_p7 = scmp.ge.s32.totalorder %s41_s25, 2  ;;  %p55_p12 = scmp.ne.s32.totalorder %s3908_s11, %s3904_s10 }
  0x6c   : > { %p56_p0 = scmp.eq.s32.totalorder %s3920_s14, 0  ;;  %p61_p13 = scmp.ne.s32.totalorder %s3904_s10, %s3900_s30 }
  0x6d   : > { %s4590_s25 = smov (%p43_p7, %s41_s25), 0  ;;  %s4576_s19 = sadd.s32 4294967295, %s3920_s14  }
  0x6e   : > { %4573 = sst [smem:[#allocation25_spill]] %s4590_s25  ;;  %p4133_p2 = por %p56_p0, %p55_p12 }
  0x6f   : > { %3380 = dma.hbm_to_vmem [thread:$0]  (!%p4043_p6), %s4572_s7, 256, %s359_s29, [#allocation17], %s4571_s23, %s4571_s23, %s4570_s18  }
  0x70   : > { %p4139_p6 = por %p4029_p1, %p61_p13  ;;  %s45_s24 = ssub.s32 %s3916_s13, %s4590_s25 }
  0x71   : > { %p255_p4 = scmp.eq.s32.totalorder %s4576_s19, 1  ;;  %p46_p9 = scmp.eq.s32.totalorder %s45_s24, 0 }
  0x72   : > { %p261_p10 = scmp.eq.s32.totalorder %s2960_s20, 1  ;;  %p3396_p11 = scmp.lt.s32.totalorder %s3920_s14, 2 }
  0x73   : > { %p4147_p8 = por %p255_p4, %p55_p12  ;;  %s375_s21 = sand.u32 1, %s3908_s11  }
  0x74   : > { %s4153_s27 = scalar_select %p46_p9, %s3908_s11, %s48_s28  }
  0x75   : > { %s4577_s15 = scalar_select %p4147_p8, 1, 0 }
  0x76   : > { %p4155_p7 = por %p261_p10, %p61_p13  ;;  %s2970_s1 = sshll.u32 %s375_s21, 4 }
  0x77   : > { %s3089_s2 = sshll.u32 %s3916_s13, 8  ;;  %s379_s24 = scalar_lea.vmem [#allocation4], %s2970_s1 }
  0x78   : > { %s4578_s26 = scalar_select %p4155_p7, 1, 0 }
  0x79   : > { %s385_s19 = scalar_lea.hbm %s4533_s0, %s3089_s2  ;;  %s386_s20 = sshll.u32 %s379_s24, 4  ;;  %s387_s20 = int_to_ptr.vmem [resolvable:$true] %s386_s20 }
  0x7a   : > { %p4166_p12 = pnand %p3396_p11, %p4133_p2  ;;  %s376_s28 = scalar_lea.sflag [#allocation5], %s375_s21 }
  0x7b   : > { %s3809_s6 = scalar_lea.vmem %s387_s20, 256  ;;  %s3933_s7 = smov [#allocation4]  }
  0x7c   : > { %p3798_p0 = pneg %p4166_p12  ;;  %p3810_p13 = scmp.ne.s32.totalorder %s387_s20, %s3809_s6 }
  0x7d   : > { %s3814_s25 = sshll.u32 %s3933_s7, 4  ;;  %s3815_s25 = int_to_ptr.vmem [resolvable:$false] %s3814_s25 }
  0x7e   : > { %p3812_p4 = pnand %p3810_p13, %p3798_p0  ;;  %s3816_s2 = scalar_lea.vmem %s3815_s25, 512 }
  0x7f   : > { %p3817_p10 = scmp.lt.s32.totalorder %s387_s20, %s3815_s25  ;;  %p3818_p5 = scmp.lt.s32.totalorder %s3816_s2, %s3809_s6 }
  0x80   : > { %p3813_p9 = pneg %p3812_p4 }
  0x81   : > { %p3819_p7 = por %p3818_p5, %p3817_p10 }
  0x83   : > { %p3820_p8 = pnand %p3819_p7, %p3813_p9 }
  0x85   : > { %3823 = shalt.err (!%p3820_p8)
}
  0x86   : > { %3384 = dma.hbm_to_vmem [thread:$0]  (!%p4166_p12), %s385_s19, 256, %s387_s20, %s376_s28, %s4571_s23, %s4571_s23, %s4570_s18  }
  0x87   : > { %398 = sbr.rel (%p4034_p3) target bundleno = 2966 (0xb96), region = 56  ;;  %s4180_s1 = sand.u32 (!%p4034_p3), 1, %s3904_s10  }
  0x88   : > { %s2974_s3 = sshll.u32 (!%p4034_p3), %s4180_s1, 4  ;;  %s401_s4 = scalar_lea.sflag (!%p4034_p3), [#allocation5], %s4180_s1 }
  0x89   : > { %s4186_s6 = scalar_lea.vmem (!%p4034_p3), [#allocation4], %s2974_s3 }
  0x8c   : > { %3875 = dma.done.wait (%p4139_p6), %s401_s4, 256  }
  0x8d   : > { %3877 = vsyncadd (%p4139_p6), %s401_s4, 4294967040 }
  0x8e   : > { %3879 = dma.done.wait (%p4029_p1), [#allocation8], 2048  }
  0x8f   : > { %3881 = vsyncadd (%p4029_p1), [#allocation8], 4294965248 }
  0x90   : > { %3883 = dma.done.wait (%p4029_p1), [#allocation11], 2048  }
  0x91   : > { %3885 = vsyncadd (%p4029_p1), [#allocation11], 4294965248 }
  0x92   : > { %3887 = dma.done.wait (%p4029_p1), [#allocation14], 4096  }
  0x93   : > { %3889 = vsyncadd (%p4029_p1), [#allocation14], 4294963200 }
  0x94   : > { %3891 = dma.done.wait (%p4029_p1), [#allocation17], 256  }
  0x95   : > { %3893 = vsyncadd (%p4029_p1), [#allocation17], 4294967040  ;;  %v3934_v0 = vmov 0.0   ;;  %vm3935_vm0 = vmmov 0   ;;  %v3489_v1 = vld [vmem:[#allocation9 + $0x38] sm:$0xff]   ;;  %v3490_v2 = vld [vmem:[#allocation9 + $0x30] sm:$0xff]   ;;  %v494_v27 = vlaneseq }
  0x96   : > { %3187 = vmatprep.subr.bf16.mxu0 %v3934_v0  ;;  %3203 = vmatprep.mubr.msk.bf16.mxu0 %vm3935_vm0, %v3934_v0  ;;  %v3491_v3 = vld [vmem:[#allocation9 + $0x28] sm:$0xff]   ;;  %v3492_v4 = vld [vmem:[#allocation9 + $0x20] sm:$0xff]   ;;  %v3493_v5 = vld [vmem:[#allocation9 + $0x18] sm:$0xff]   ;;  %s3936_s5 = smov 64   ;;  %s3937_s7 = smov 96   ;;  %vm1228_vm1 = vcmask 261120  }
  0x97   : > { %3207 = vmatprep.subr.bf16.mxu1 %v3934_v0  ;;  %3223 = vmatprep.mubr.msk.bf16.mxu1 %vm3935_vm0, %v3934_v0  ;;  %v3494_v6 = vld [vmem:[#allocation9 + $0x10] sm:$0xff]   ;;  %v3495_v7 = vld [vmem:[#allocation9 + $0x8] sm:$0xff]   ;;  %v3496_v8 = vld [vmem:[#allocation9] sm:$0xff]   ;;  %v4247_v28 = vshrl.u32 %v494_v27, 7  ;;  %s3938_s16 = smov 32   ;;  %vm1405_vm2 = vcmask 130048  }
  0x98   : > { %3188 = vmatpush3.bf16.msra.mxu0 %v3489_v1  ;;  %v475_v9 = vld [vmem:[%s4186_s6] sm:$0xff]  ;;  %v476_v10 = vld [vmem:[%s4186_s6 + $0x8] sm:$0xff]  ;;  %v3939_v62 = vmov 1983009808   ;;  %vm2236_vm3 = vcmask 523264   ;;  %vm2239_vm4 = vcmask 785408  }
  0x99   : > { %3189 = vmatprep.subr.bf16.mxu0 %v3934_v0  ;;  %v3497_v11 = vld [vmem:[#allocation7 + $0x38] sm:$0xff]   ;;  %v4223_v12 = vpack.c.bf16 %v476_v10, %v475_v9  ;;  %v3498_v13 = vld [vmem:[#allocation7 + $0x30] sm:$0xff]   ;;  %v3499_v14 = vld [vmem:[#allocation7 + $0x28] sm:$0xff]   ;;  %v496_v29 = vsub.s32 1, %v4247_v28  ;;  %v739_v42 = vsub.s32 0, %v4247_v28  ;;  %v855_v63 = vunpack.c.l.s4 %v3939_v62  ;;  %s3094_s23 = sshll.u32 %s3912_s12, 8 }
  0x9a   : > { %v3500_v15 = vld [vmem:[#allocation7 + $0x20] sm:$0xff]   ;;  %v3501_v16 = vld [vmem:[#allocation7 + $0x18] sm:$0xff]   ;;  %v3502_v17 = vld [vmem:[#allocation7 + $0x10] sm:$0xff]   ;;  %s466_s25 = scalar_lea.vmem [#allocation18], %s2974_s3  ;;  %s4483_s19 = scalar_lea.hbm %s4542_s9, %s3094_s23 }
  0x9b   : > { %v3503_v18 = vld [vmem:[#allocation7 + $0x8] sm:$0xff]   ;;  %v3504_v19 = vld [vmem:[#allocation7] sm:$0xff]   ;;  %v3506_v20 = vld [vmem:[#allocation10 + $0x38] sm:$0xff]   ;;  %s2806_s22 = sshll.u32 %s466_s25, 4  ;;  %s2791_s24 = scalar_lea.sflag [#allocation6], %s4180_s1  ;;  %s4485_s22 = int_to_ptr.vmem [resolvable:$true] %s2806_s22 }
  0x9c   : > { %3190 = vmatpush3.bf16.msra.mxu0 %v3490_v2  ;;  %3208 = vmatpush3.bf16.msra.mxu1 %v3506_v20  ;;  %v3507_v21 = vld [vmem:[#allocation10 + $0x30] sm:$0xff]   ;;  %v3508_v22 = vld [vmem:[#allocation10 + $0x28] sm:$0xff]   ;;  %v3509_v23 = vld [vmem:[#allocation10 + $0x20] sm:$0xff]   ;;  %v3940_v2 = vmov 1934713408   ;;  %s3824_s20 = scalar_lea.vmem %s4485_s22, 256 }
  0x9d   : > { %3191 = vmatprep.subr.bf16.mxu0 %v3934_v0  ;;  %3209 = vmatprep.subr.bf16.mxu1 %v3934_v0  ;;  %v3510_v24 = vld [vmem:[#allocation10 + $0x18] sm:$0xff]   ;;  %v3511_v25 = vld [vmem:[#allocation10 + $0x10] sm:$0xff]   ;;  %v3512_v26 = vld [vmem:[#allocation10 + $0x8] sm:$0xff]   ;;  %p3825_p1 = scmp.ne.s32.totalorder %s4485_s22, %s3824_s20  ;;  %p4580_p3 = scmp.ne.s32.totalorder %s4577_s15, 0 }
  0x9e   : > { %v4250_v30 = vld [vmem:[#allocation16] sm:$0xff]  ;;  %s3942_s12 = smov [#allocation18]  }
  0x9f   : > { %v497_v32 = vrot.slane %v4250_v30, %v496_v29  ;;  %v3513_v34 = vld [vmem:[#allocation10] sm:$0xff]   ;;  %v740_v43 = vrot.slane %v4250_v30, %v739_v42  ;;  %p3826_p5 = pnand %p3825_p1, %p4580_p3  ;;  %s3828_s28 = sshll.u32 %s3942_s12, 4  ;;  %s3829_s28 = int_to_ptr.vmem [resolvable:$false] %s3828_s28 }
  0xa0   : > { %3192 = vmatpush3.bf16.msra.mxu0 %v3491_v3  ;;  %3210 = vmatpush3.bf16.msra.mxu1 %v3507_v21  ;;  %v887_v3 = vunpack.c.l.s4 %v3940_v2  ;;  %s3830_s2 = scalar_lea.vmem %s3829_s28, 512  ;;  %p3831_p6 = scmp.lt.s32.totalorder %s4485_s22, %s3829_s28 }
  0xa1   : > { %3193 = vmatprep.subr.bf16.mxu0 %v3934_v0  ;;  %3211 = vmatprep.subr.bf16.mxu1 %v3934_v0  ;;  %p3827_p2 = pneg %p3826_p5  ;;  %p3832_p8 = scmp.lt.s32.totalorder %s3830_s2, %s3824_s20 }
  0xa3   : > { %p3833_p11 = por %p3832_p8, %p3831_p6 }
  0xa4   : > { %3194 = vmatpush3.bf16.msra.mxu0 %v3492_v4  ;;  %3212 = vmatpush3.bf16.msra.mxu1 %v3508_v22  ;;  %v856_v4 = vunpack.c.0.s8 %v855_v63 }
  0xa5   : > { %3195 = vmatprep.subr.bf16.mxu0 %v3934_v0  ;;  %3213 = vmatprep.subr.bf16.mxu1 %v3934_v0  ;;  %p3834_p7 = pnand %p3833_p11, %p3827_p2 }
  0xa8   : > { %3196 = vmatpush3.bf16.msra.mxu0 %v3493_v5  ;;  %3214 = vmatpush3.bf16.msra.mxu1 %v3509_v23 }
  0xa9   : > { %3197 = vmatprep.subr.bf16.mxu0 %v3934_v0  ;;  %3215 = vmatprep.subr.bf16.mxu1 %v3934_v0 }
  0xac   : > { %3198 = vmatpush3.bf16.msra.mxu0 %v3494_v6  ;;  %3216 = vmatpush3.bf16.msra.mxu1 %v3510_v24 }
  0xad   : > { %3199 = vmatprep.subr.bf16.mxu0 %v3934_v0  ;;  %3217 = vmatprep.subr.bf16.mxu1 %v3934_v0 }
  0xb0   : > { %3200 = vmatpush3.bf16.msra.mxu0 %v3495_v7  ;;  %3218 = vmatpush3.bf16.msra.mxu1 %v3511_v25  ;;  %v888_v7 = vunpack.c.0.s8 %v887_v3 }
  0xb1   : > { %3201 = vmatprep.subr.bf16.mxu0 %v3934_v0  ;;  %3219 = vmatprep.subr.bf16.mxu1 %v3934_v0 }
  0xb4   : > { %3202 = vmatpush3.bf16.msra.mxu0 %v3496_v8  ;;  %3220 = vmatpush3.bf16.msra.mxu1 %v3512_v26  ;;  %v4276_v8 = vsub.s32 %v856_v4, %v4247_v28 }
  0xb5   : > { %3227 = vmatprep.subr.bf16.mxu0 %v3934_v0  ;;  %3221 = vmatprep.subr.bf16.mxu1 %v3934_v0 }
  0xb7   : > { %3204 = vmatmul.mubr.bf16.vlgmr.msra.gmra.mxu0 %v4223_v12 }
  0xb8   : > { %3228 = vmatpush3.bf16.msra.mxu0 %v3497_v11  ;;  %3243 = vmatprep.mubr.msk.bf16.mxu0 %vm3935_vm0, %v3934_v0 }
  0xb9   : > { %3229 = vmatprep.subr.bf16.mxu0 %v3934_v0  ;;  %3222 = vmatpush3.bf16.msra.mxu1 %v3513_v34 }
  0xba   : > { %3247 = vmatprep.subr.bf16.mxu1 %v3934_v0 }
  0xbc   : > { %3230 = vmatpush3.bf16.msra.mxu0 %v3498_v13  ;;  %3224 = vmatmul.mubr.bf16.vlgmr.msra.gmra.mxu1 %v4223_v12 }
  0xbd   : > { %3231 = vmatprep.subr.bf16.mxu0 %v3934_v0  ;;  %3251 = vmatprep.mubr.msk.bf16.mxu1 %vm3935_vm0, %v3934_v0 }
  0xc0   : > { %3232 = vmatpush3.bf16.msra.mxu0 %v3499_v14 }
  0xc1   : > { %3233 = vmatprep.subr.bf16.mxu0 %v3934_v0 }
  0xc4   : > { %3234 = vmatpush3.bf16.msra.mxu0 %v3500_v15  ;;  %v4279_v15 = vsub.s32 %v888_v7, %v4247_v28 }
  0xc5   : > { %3235 = vmatprep.subr.bf16.mxu0 %v3934_v0 }
  0xc8   : > { %3236 = vmatpush3.bf16.msra.mxu0 %v3501_v16 }
  0xc9   : > { %3237 = vmatprep.subr.bf16.mxu0 %v3934_v0 }
  0xcc   : > { %3238 = vmatpush3.bf16.msra.mxu0 %v3502_v17 }
  0xcd   : > { %3239 = vmatprep.subr.bf16.mxu0 %v3934_v0 }
  0xd0   : > { %3240 = vmatpush3.bf16.msra.mxu0 %v3503_v18 }
  0xd1   : > { %3241 = vmatprep.subr.bf16.mxu0 %v3934_v0 }
  0xd4   : > { %3242 = vmatpush3.bf16.msra.mxu0 %v3504_v19 }
  0xd5   : > { %3303 = vmatprep.subr.bf16.mxu0 %v3934_v0 }
  0xd7   : > { %3244 = vmatmul.mubr.bf16.vlgmr.msra.gmra.mxu0 %v4223_v12 }
  0xd8   : > { %3319 = vmatprep.mubr.msk.bf16.mxu0 %vm3935_vm0, %v3934_v0 }
 0x177   : > { %v580_v31 = vpop.f32.mrf.mxu0 }
 0x178   : > { %v581_v36 = vadd.f32 %v580_v31, %v497_v32 }
 0x179   : > { %v3205_v33 = vpop.f32.mrf.mxu0 }
 0x17b   : > { %v583_v35 = vpop.f32.mrf.mxu0 }
 0x17c   : > { %v584_v37 = vadd.f32 %v583_v35, %v497_v32 }
 0x17d   : > { %v3206_v38 = vpop.f32.mrf.mxu0 }
 0x17e   : > { %v3098_v39 = vpack.c.bf16 %v584_v37, %v581_v36 }
 0x180   : > { %3099 = vst [vmem:[#allocation2] sm:$0xff] %v3098_v39  }
 0x187   : > { %v1004_v40 = vld [vmem:[#allocation2] sm:$0xf]  ;;  %v1005_v41 = vld [vmem:[#allocation2 + $0x4] sm:$0xf] }
 0x188   : > { %1012 = vrot.lane.b32.xlu1 %v1004_v40, %s3936_s5  ;;  %1008 = vrot.lane.b32.xlu0 %v1004_v40, %s3937_s7  ;;  %v3019_v52 = vcombine.low %v1004_v40, %v1005_v41 }
 0x18c   : > { %1014 = vrot.lane.b32.xlu1 %v1005_v41, %s3936_s5  ;;  %1010 = vrot.lane.b32.xlu0 %v1005_v41, %s3937_s7 }
 0x190   : > { %1018 = vrot.lane.b32.xlu1 %v1005_v41, %s3938_s16  ;;  %1016 = vrot.lane.b32.xlu0 %v1004_v40, %s3938_s16 }
 0x197   : > { %v823_v44 = vpop.f32.mrf.mxu0 }
 0x198   : > { %v824_v45 = vadd.f32 %v823_v44, %v740_v43 }
 0x199   : > { %v3245_v46 = vpop.f32.mrf.mxu0 }
 0x19a   : > { %v830_v47 = vmul.f32 0.17677669, %v824_v45 }
 0x19b   : > { %v826_v48 = vpop.f32.mrf.mxu0 }
 0x19c   : > { %v827_v49 = vadd.f32 %v826_v48, %v740_v43  ;;  %834 = vrot.lane.b32.xlu0 %v830_v47, %s3937_s7 }
 0x19d   : > { %v3246_v50 = vpop.f32.mrf.mxu0 }
 0x19e   : > { %v831_v51 = vmul.f32 0.17677669, %v827_v49 }
 0x1a0   : > { %836 = vrot.lane.b32.xlu1 %v831_v51, %s3937_s7  ;;  %840 = vrot.lane.b32.xlu0 %v830_v47, %s3936_s5 }
 0x1a4   : > { %842 = vrot.lane.b32.xlu1 %v831_v51, %s3936_s5  ;;  %846 = vrot.lane.b32.xlu0 %v830_v47, %s3938_s16 }
 0x1a8   : > { %848 = vrot.lane.b32.xlu1 %v831_v51, %s3938_s16 }
 0x1c2   : > { %1164 = vxpose.xlu0.c.b16.start.end [1/1] (short) (narrow) %v3019_v52, 32 }
 0x1fa   : > { %v1013_v53 = vpop.permute.xlu1 %1012  ;;  %v1009_v54 = vpop.permute.xlu0 %1008 }
 0x1fe   : > { %v1015_v55 = vpop.permute.xlu1 %1014  ;;  %v1011_v56 = vpop.permute.xlu0 %1010 }
 0x1ff   : > { %v3021_v57 = vcombine.low %v1013_v53, %v1015_v55  ;;  %v3020_v58 = vcombine.low %v1009_v54, %v1011_v56 }
 0x201   : > { %1180 = vxpose.xlu1.c.b16.start.end [1/1] (short) (narrow) %v3020_v58, 32  ;;  %1196 = vxpose.xlu0.c.b16.start.end [1/1] (short) (narrow) %v3021_v57, 32 }
 0x202   : > { %v1019_v59 = vpop.permute.xlu1 %1018  ;;  %v1017_v60 = vpop.permute.xlu0 %1016 }
 0x203   : > { %v3022_v61 = vcombine.low %v1017_v60, %v1019_v59 }
 0x206   : > { %1212 = vxpose.xlu0.c.b16.start.end [1/1] (short) (narrow) %v3022_v61, 32 }
 0x20e   : > { %v835_v1 = vpop.permute.xlu0 %834 }
 0x212   : > { %v837_v5 = vpop.permute.xlu1 %836  ;;  %v841_v6 = vpop.permute.xlu0 %840 }
 0x213   : > { %v852_v9 = vcombine.low %v830_v47, %v841_v6  ;;  %v853_v10 = vcombine.high %v830_v47, %v841_v6 }
 0x215   : > { %v860_v16 = vrot.slane %v852_v9, %v4276_v8  ;;  %v867_v17 = vrot.slane %v853_v10, %v4276_v8 }
 0x216   : > { %v843_v11 = vpop.permute.xlu1 %842  ;;  %v847_v12 = vpop.permute.xlu0 %846 }
 0x217   : > { %v868_v13 = vcombine.low %v835_v1, %v847_v12  ;;  %v869_v14 = vcombine.high %v835_v1, %v847_v12  ;;  %v920_v20 = vcombine.low %v831_v51, %v843_v11  ;;  %v921_v21 = vcombine.high %v831_v51, %v843_v11 }
 0x219   : > { %v876_v18 = vrot.slane %v868_v13, %v4276_v8  ;;  %v883_v19 = vrot.slane %v869_v14, %v4276_v8  ;;  %v928_v36 = vrot.slane %v920_v20, %v4276_v8  ;;  %v935_v37 = vrot.slane %v921_v21, %v4276_v8 }
 0x21a   : > { %v849_v22 = vpop.permute.xlu1 %848 }
 0x21b   : > { %v884_v23 = vcombine.low %v860_v16, %v876_v18  ;;  %v885_v24 = vcombine.high %v860_v16, %v876_v18  ;;  %v900_v25 = vcombine.low %v867_v17, %v883_v19  ;;  %v901_v26 = vcombine.high %v867_v17, %v883_v19 }
 0x21c   : > { %v936_v27 = vcombine.low %v837_v5, %v849_v22  ;;  %v937_v31 = vcombine.high %v837_v5, %v849_v22 }
 0x21d   : > { %v892_v32 = vrot.slane %v884_v23, %v4279_v15  ;;  %v899_v33 = vrot.slane %v885_v24, %v4279_v15  ;;  %v908_v34 = vrot.slane %v900_v25, %v4279_v15  ;;  %v915_v35 = vrot.slane %v901_v26, %v4279_v15 }
 0x21e   : > { %v944_v38 = vrot.slane %v936_v27, %v4276_v8  ;;  %v951_v39 = vrot.slane %v937_v31, %v4276_v8 }
 0x21f   : > { %v916_v40 = vcombine.high %v892_v32, %v3934_v0  ;;  %v917_v41 = vcombine.high %v899_v33, %v3934_v0  ;;  %v918_v43 = vcombine.high %v908_v34, %v3934_v0  ;;  %v919_v44 = vcombine.high %v915_v35, %v3934_v0 }
 0x220   : > { %v3011_v45 = vpack.c.bf16 %v908_v34, %v892_v32  ;;  %v3012_v46 = vpack.c.bf16 %v915_v35, %v899_v33  ;;  %v952_v47 = vcombine.low %v928_v36, %v944_v38  ;;  %v953_v48 = vcombine.high %v928_v36, %v944_v38  ;;  %v689_v36 = vpop.f32.mrf.mxu1 }
 0x221   : > { %v3015_v49 = vpack.c.bf16 %v918_v43, %v916_v40  ;;  %v3016_v50 = vpack.c.bf16 %v919_v44, %v917_v41  ;;  %v968_v51 = vcombine.low %v935_v37, %v951_v39  ;;  %v969_v52 = vcombine.high %v935_v37, %v951_v39 }
 0x222   : > { %v960_v53 = vrot.slane %v952_v47, %v4279_v15  ;;  %v967_v54 = vrot.slane %v953_v48, %v4279_v15  ;;  %v1043_v55 = vrot.slane %v3011_v45, %v4276_v8  ;;  %v1051_v58 = vrot.slane %v3012_v46, %v4276_v8  ;;  %v3225_v37 = vpop.f32.mrf.mxu1 }
 0x223   : > { %v976_v56 = vrot.slane %v968_v51, %v4279_v15  ;;  %v983_v57 = vrot.slane %v969_v52, %v4279_v15  ;;  %v1093_v59 = vrot.slane %v3015_v49, %v4276_v8  ;;  %v1101_v63 = vrot.slane %v3016_v50, %v4276_v8 }
 0x224   : > { %v984_v60 = vcombine.high %v960_v53, %v3934_v0  ;;  %v985_v61 = vcombine.high %v967_v54, %v3934_v0  ;;  %v1172_v62 = vpop.trf.xlu0  ;;  %v1068_v9 = vcombine.low %v1043_v55, %v1051_v58  ;;  %v605_v34 = vsub.s32 2, %v4247_v28  ;;  %v692_v39 = vpop.f32.mrf.mxu1 }
 0x225   : > { %v986_v1 = vcombine.high %v976_v56, %v3934_v0  ;;  %v987_v2 = vcombine.high %v983_v57, %v3934_v0  ;;  %v3013_v3 = vpack.c.bf16 %v976_v56, %v960_v53  ;;  %v3014_v4 = vpack.c.bf16 %v983_v57, %v967_v54 }
 0x226   : > { %v1118_v12 = vcombine.low %v1093_v59, %v1101_v63  ;;  %v1075_v18 = vrot.slane %v1068_v9, %v4279_v15  ;;  %v606_v35 = vrot.slane %v4250_v30, %v605_v34  ;;  %v3226_v41 = vpop.f32.mrf.mxu1 }
 0x227   : > { %v1059_v5 = vrot.slane %v3013_v3, %v4276_v8  ;;  %v3017_v6 = vpack.c.bf16 %v986_v1, %v984_v60  ;;  %v3018_v7 = vpack.c.bf16 %v987_v2, %v985_v61  ;;  %v1067_v10 = vrot.slane %v3014_v4, %v4276_v8 }
 0x228   : > { %v1173_v11 = vpop.trf.xlu0  ;;  %v1125_v20 = vrot.slane %v1118_v12, %v4279_v15  ;;  %v690_v38 = vadd.f32 %v689_v36, %v606_v35  ;;  %v693_v40 = vadd.f32 %v692_v39, %v606_v35 }
 0x229   : > { %v1109_v13 = vrot.slane %v3017_v6, %v4276_v8  ;;  %v1117_v14 = vrot.slane %v3018_v7, %v4276_v8  ;;  %3248 = vmatpush3.bf16.msra.mxu1 %v1173_v11  ;;  %v1076_v16 = vcombine.low %v1059_v5, %v1067_v10 }
 0x22a   : > { %3249 = vmatprep.subr.bf16.mxu1 %v3934_v0  ;;  %v3103_v43 = vpack.c.bf16 %v693_v40, %v690_v38 }
 0x22b   : > { %v1126_v17 = vcombine.low %v1109_v13, %v1117_v14  ;;  %v1083_v19 = vrot.slane %v1076_v16, %v4279_v15 }
 0x22c   : > { %3104 = vst [vmem:[#allocation3] sm:$0xff] %v3103_v43  }
 0x22d   : > { %3250 = vmatpush3.bf16.msra.mxu1 %v1172_v62  ;;  %v1133_v21 = vrot.slane %v1126_v17, %v4279_v15  ;;  %v1085_v22 = vcombine.high %v1075_v18, %v1083_v19  ;;  %v1084_v23 = vcombine.low %v1075_v18, %v1083_v19 }
 0x22e   : > { %3255 = vmatprep.subr.bf16.mxu1 %v3934_v0 }
 0x22f   : > { %v1134_v24 = vcombine.low %v1125_v20, %v1133_v21  ;;  %v1135_v25 = vcombine.high %v1125_v20, %v1133_v21  ;;  %v1145_v31 = vshrl.u32 %v1085_v22, 16  ;;  %v1139_v50 = vshrl.u32 %v1084_v23, 16 }
 0x231   : > { %v1138_v26 = vpack.i.b16 %v1134_v24, %v1084_v23  ;;  %v1144_v27 = vpack.i.b16 %v1135_v25, %v1085_v22  ;;  %v1146_v32 = vshrl.u32 %v1135_v25, 16  ;;  %v1140_v48 = vshrl.u32 %v1134_v24, 16 }
 0x233   : > { %3252 = vmatmul.mubr.msk.bf16.vlgmr.msra.gmra.mxu1 %vm1228_vm1, %v1138_v26  ;;  %v1147_v33 = vpack.i.b16 %v1146_v32, %v1145_v31  ;;  %v4324_v44 = vld [vmem:[#allocation3 + $0x4] sm:$0xf]  ;;  %v4326_v45 = vld [vmem:[#allocation3] sm:$0xf]  ;;  %v1141_v51 = vpack.i.b16 %v1140_v48, %v1139_v50 }
 0x234   : > { %3259 = vmatprep.mubr.msk.bf16.mxu1 %vm3935_vm0, %v3934_v0  ;;  %1026 = vrot.lane.b32.xlu1 %v4324_v44, %s3937_s7 }
 0x235   : > { %1024 = vrot.lane.b32.xlu0 %v4326_v45, %s3937_s7 }
 0x263   : > { %v1188_v46 = vpop.trf.xlu1  ;;  %v1204_v30 = vpop.trf.xlu0 }
 0x267   : > { %v1189_v47 = vpop.trf.xlu1  ;;  %v1205_v49 = vpop.trf.xlu0 }
 0x268   : > { %3256 = vmatpush3.bf16.msra.mxu1 %v1189_v47 }
 0x269   : > { %3257 = vmatprep.subr.bf16.mxu1 %v3934_v0 }
 0x26b   : > { %v1220_v52 = vpop.trf.xlu0 }
 0x26c   : > { %3258 = vmatpush3.bf16.msra.mxu1 %v1188_v46 }
 0x26d   : > { %3263 = vmatprep.subr.bf16.mxu1 %v3934_v0 }
 0x26f   : > { %3260 = vmatmul.mubr.msk.bf16.vlgmr.msra.gmra.mxu1 %vm1228_vm1, %v1141_v51  ;;  %v1221_v53 = vpop.trf.xlu0 }
 0x270   : > { %3264 = vmatpush3.bf16.msra.mxu1 %v1205_v49  ;;  %3267 = vmatprep.mubr.msk.bf16.mxu1 %vm3935_vm0, %v3934_v0 }
 0x271   : > { %3265 = vmatprep.subr.bf16.mxu1 %v3934_v0 }
 0x274   : > { %3266 = vmatpush3.bf16.msra.mxu1 %v1204_v30 }
 0x275   : > { %3271 = vmatprep.subr.bf16.mxu1 %v3934_v0 }
 0x277   : > { %3268 = vmatmul.mubr.msk.bf16.vlgmr.msra.gmra.mxu1 %vm1228_vm1, %v1144_v27 }
 0x278   : > { %3272 = vmatpush3.bf16.msra.mxu1 %v1221_v53  ;;  %3275 = vmatprep.mubr.msk.bf16.mxu1 %vm3935_vm0, %v3934_v0 }
 0x279   : > { %3273 = vmatprep.subr.bf16.mxu1 %v3934_v0 }
 0x27c   : > { %3274 = vmatpush3.bf16.msra.mxu1 %v1220_v52 }
 0x27f   : > { %3276 = vmatmul.mubr.msk.bf16.vlgmr.msra.gmra.mxu1 %vm1228_vm1, %v1147_v33 }
 0x2a6   : > { %v4359_v17 = vpop.permute.xlu1 %1026 }
 0x2a7   : > { %v4361_v18 = vpop.permute.xlu0 %1024 }
 0x2f3   : > { %v1266_v54 = vpop.f32.mrf.mxu1 }
 0x2f4   : > { %v1406_v55 = vsel %vm1405_vm2, %v1266_v54, -inf }
 0x2f5   : > { %1407 = vmax.xlane.f32.xlu1 %v1406_v55  ;;  %v3253_v56 = vpop.f32.mrf.mxu1 }
 0x2f7   : > { %v1269_v57 = vpop.f32.mrf.mxu1 }
 0x2f8   : > { %v1409_v58 = vsel %vm1405_vm2, %v1269_v57, -inf }
 0x2f9   : > { %1410 = vmax.xlane.f32.xlu0 %v1409_v58  ;;  %v3254_v59 = vpop.f32.mrf.mxu1 }
 0x32f   : > { %v1310_v60 = vpop.f32.mrf.mxu1 }
 0x330   : > { %v1412_v61 = vsel %vm1405_vm2, %v1310_v60, -inf }
 0x331   : > { %1413 = vmax.xlane.f32.xlu1 %v1412_v61  ;;  %v3261_v62 = vpop.f32.mrf.mxu1 }
 0x333   : > { %v1313_v63 = vpop.f32.mrf.mxu1 }
 0x334   : > { %v1415_v1 = vsel %vm1405_vm2, %v1313_v63, -inf }
 0x335   : > { %1416 = vmax.xlane.f32.xlu1 %v1415_v1  ;;  %v3262_v2 = vpop.f32.mrf.mxu1  ;;  %v3027_v1 = vcombine.low %v4326_v45, %v4324_v44 }
 0x337   : > { %v1354_v3 = vpop.f32.mrf.mxu1 }
 0x338   : > { %v1418_v4 = vsel %vm1405_vm2, %v1354_v3, -inf }
 0x339   : > { %1419 = vmax.xlane.f32.xlu0 %v1418_v4  ;;  %v3269_v5 = vpop.f32.mrf.mxu1 }
 0x33b   : > { %v1357_v6 = vpop.f32.mrf.mxu1 }
 0x33c   : > { %v1421_v7 = vsel %vm1405_vm2, %v1357_v6, -inf }
 0x33d   : > { %1422 = vmax.xlane.f32.xlu1 %v1421_v7  ;;  %v3270_v9 = vpop.f32.mrf.mxu1 }
 0x33f   : > { %v4350_v10 = vpop.f32.mrf.mxu1 }
 0x340   : > { %v1424_v11 = vsel %vm1405_vm2, %v4350_v10, -inf }
 0x341   : > { %1425 = vmax.xlane.f32.xlu0 %v1424_v11  ;;  %v3277_v12 = vpop.f32.mrf.mxu1 }
 0x343   : > { %v1401_v13 = vpop.f32.mrf.mxu1 }
 0x344   : > { %v1427_v14 = vsel %vm1405_vm2, %v1401_v13, -inf }
 0x345   : > { %1428 = vmax.xlane.f32.xlu1 %v1427_v14  ;;  %v3278_v16 = vpop.f32.mrf.mxu1 }
 0x356   : > { %1030 = vrot.lane.b32.xlu1 %v4324_v44, %s3936_s5 }
 0x357   : > { %1028 = vrot.lane.b32.xlu0 %v4326_v45, %s3936_s5 }
 0x37e   : > { %v1408_v19 = vpop.xlane.xlu1 %1407 }
 0x37f   : > { %v1430_v20 = vsub.f32 %v1266_v54, %v1408_v19 }
 0x381   : > { %v1438_v21 = vmul.f32 1.442695, %v1430_v20 }
 0x382   : > { %v1411_v22 = vpop.xlane.xlu0 %1410 }
 0x383   : > { %3563 = vpow2.f32 %v1438_v21  ;;  %v1431_v23 = vsub.f32 %v1269_v57, %v1411_v22 }
 0x385   : > { %v1440_v24 = vmul.f32 1.442695, %v1431_v23 }
 0x387   : > { %3565 = vpow2.f32 %v1440_v24 }
 0x390   : > { %v3564_v25 = vpop.eup %3563 }
 0x391   : > { %v1454_v26 = vsel %vm1405_vm2, %v3564_v25, 0.0 }
 0x392   : > { %1455 = vadd.xlane.f32.xlu0 %v1454_v26 }
 0x394   : > { %v3566_v27 = vpop.eup %3565 }
 0x395   : > { %v1457_v31 = vsel %vm1405_vm2, %v3566_v27, 0.0 }
 0x396   : > { %1458 = vadd.xlane.f32.xlu1 %v1457_v31 }
 0x3a8   : > { %1032 = vrot.lane.b32.xlu0 %v4326_v45, %s3938_s16 }
 0x3ba   : > { %v1414_v32 = vpop.xlane.xlu1 %1413 }
 0x3bb   : > { %v1432_v33 = vsub.f32 %v1310_v60, %v1414_v32 }
 0x3bd   : > { %v1442_v34 = vmul.f32 1.442695, %v1432_v33 }
 0x3be   : > { %v1417_v35 = vpop.xlane.xlu1 %1416 }
 0x3bf   : > { %3567 = vpow2.f32 %v1442_v34  ;;  %v1433_v36 = vsub.f32 %v1313_v63, %v1417_v35 }
 0x3c1   : > { %v1444_v37 = vmul.f32 1.442695, %v1433_v36 }
 0x3c2   : > { %v1420_v38 = vpop.xlane.xlu0 %1419 }
 0x3c3   : > { %3569 = vpow2.f32 %v1444_v37  ;;  %v1434_v39 = vsub.f32 %v1354_v3, %v1420_v38 }
 0x3c5   : > { %v1446_v40 = vmul.f32 1.442695, %v1434_v39 }
 0x3c6   : > { %v1423_v41 = vpop.xlane.xlu1 %1422 }
 0x3c7   : > { %3571 = vpow2.f32 %v1446_v40  ;;  %v1435_v43 = vsub.f32 %v1357_v6, %v1423_v41 }
 0x3c9   : > { %v1448_v46 = vmul.f32 1.442695, %v1435_v43 }
 0x3ca   : > { %v1426_v59 = vpop.xlane.xlu0 %1425 }
 0x3cb   : > { %3573 = vpow2.f32 %v1448_v46  ;;  %v1436_v60 = vsub.f32 %v4350_v10, %v1426_v59 }
 0x3cc   : > { %v3568_v30 = vpop.eup %3567 }
 0x3cd   : > { %v1460_v47 = vsel %vm1405_vm2, %v3568_v30, 0.0  ;;  %v1450_v61 = vmul.f32 1.442695, %v1436_v60 }
 0x3ce   : > { %v1429_v48 = vpop.xlane.xlu1 %1428  ;;  %1461 = vadd.xlane.f32.xlu1 %v1460_v47  ;;  %v1029_v3 = vpop.permute.xlu0 %1028 }
 0x3cf   : > { %v1437_v49 = vsub.f32 %v1401_v13, %v1429_v48 }
 0x3d0   : > { %v3570_v50 = vpop.eup %3569 }
 0x3d1   : > { %v1452_v51 = vmul.f32 1.442695, %v1437_v49  ;;  %v1463_v52 = vsel %vm1405_vm2, %v3570_v50, 0.0 }
 0x3d2   : > { %1464 = vadd.xlane.f32.xlu0 %v1463_v52  ;;  %v1031_v2 = vpop.permute.xlu1 %1030 }
 0x3d3   : > { %3575 = vpow2.f32 %v1452_v51  ;;  %v3029_v4 = vcombine.low %v1029_v3, %v1031_v2 }
 0x3d4   : > { %v3572_v53 = vpop.eup %3571  ;;  %3577 = vpow2.f32 %v1450_v61 }
 0x3d5   : > { %v1466_v54 = vsel %vm1405_vm2, %v3572_v53, 0.0 }
 0x3d6   : > { %1467 = vadd.xlane.f32.xlu1 %v1466_v54 }
 0x3d8   : > { %v3574_v55 = vpop.eup %3573 }
 0x3d9   : > { %v1469_v56 = vsel %vm1405_vm2, %v3574_v55, 0.0 }
 0x3da   : > { %1470 = vadd.xlane.f32.xlu0 %v1469_v56 }
 0x3e0   : > { %v4371_v57 = vpop.eup %3575 }
 0x3e1   : > { %v1475_v58 = vsel %vm1405_vm2, %v4371_v57, 0.0  ;;  %v4378_v62 = vpop.eup %3577 }
 0x3e2   : > { %1476 = vadd.xlane.f32.xlu0 %v1475_v58  ;;  %v1472_v63 = vsel %vm1405_vm2, %v4378_v62, 0.0 }
 0x3e7   : > { %1034 = vrot.lane.b32.xlu1 %v4324_v44, %s3938_s16  ;;  %v3028_v44 = vcombine.low %v4361_v18, %v4359_v17 }
 0x40b   : > { %1473 = vadd.xlane.f32.xlu1 %v1472_v63 }
 0x40f   : > { %1514 = vxpose.xlu0.c.b16.start.end [1/1] (short) (narrow) %v3027_v1, 32 }
 0x414   : > { %1546 = vxpose.xlu0.c.b16.start.end [1/1] (short) (narrow) %v3029_v4, 32 }
 0x41b   : > { %v1456_v5 = vpop.xlane.xlu0 %1455 }
 0x41c   : > { %3579 = vrcp.f32 %v1456_v5 }
 0x41f   : > { %v1459_v6 = vpop.xlane.xlu1 %1458  ;;  %v1033_v45 = vpop.permute.xlu0 %1032 }
 0x420   : > { %3581 = vrcp.f32 %v1459_v6 }
 0x429   : > { %v3580_v7 = vpop.eup %3579 }
 0x42a   : > { %v1486_v10 = vmul.f32 %v3580_v7, %v3564_v25  ;;  %v3515_v7 = vld [vmem:[#allocation12 + $0x38] sm:$0xff]  }
 0x42b   : > { %3304 = vmatpush3.bf16.msra.mxu0 %v3515_v7 }
 0x42c   : > { %3305 = vmatprep.subr.bf16.mxu0 %v3934_v0 }
 0x42d   : > { %v3582_v9 = vpop.eup %3581 }
 0x42e   : > { %v1487_v11 = vmul.f32 %v3582_v9, %v3566_v27  ;;  %v3516_v9 = vld [vmem:[#allocation12 + $0x30] sm:$0xff]  }
 0x42f   : > { %3306 = vmatpush3.bf16.msra.mxu0 %v3516_v9 }
 0x430   : > { %v1494_v12 = vpack.c.bf16 %v1487_v11, %v1486_v10  ;;  %v3517_v10 = vld [vmem:[#allocation12 + $0x28] sm:$0xff]   ;;  %3307 = vmatprep.subr.bf16.mxu0 %v3934_v0  ;;  %v3518_v11 = vld [vmem:[#allocation12 + $0x20] sm:$0xff]  }
 0x432   : > { %3323 = vmatprep.subr.msk.bf16.mxu1 %vm1405_vm2, %v1494_v12  ;;  %v1585_v13 = vsel %vm1405_vm2, %v1494_v12, 0  ;;  %v3519_v12 = vld [vmem:[#allocation12 + $0x18] sm:$0xff]  }
 0x433   : > { %3280 = vmatpush3.bf16.xpose.msra.mxu1 %v1585_v13  ;;  %3308 = vmatpush3.bf16.msra.mxu0 %v3517_v10  ;;  %v3520_v13 = vld [vmem:[#allocation12 + $0x10] sm:$0xff]  }
 0x434   : > { %3309 = vmatprep.subr.bf16.mxu0 %v3934_v0 }
 0x437   : > { %3310 = vmatpush3.bf16.msra.mxu0 %v3518_v11 }
 0x438   : > { %1530 = vxpose.xlu1.c.b16.start.end [1/1] (short) (narrow) %v3028_v44, 32  ;;  %3311 = vmatprep.subr.bf16.mxu0 %v3934_v0 }
 0x43b   : > { %3312 = vmatpush3.bf16.msra.mxu0 %v3519_v12 }
 0x43c   : > { %3313 = vmatprep.subr.bf16.mxu0 %v3934_v0 }
 0x43f   : > { %3314 = vmatpush3.bf16.msra.mxu0 %v3520_v13 }
 0x440   : > { %3315 = vmatprep.subr.bf16.mxu0 %v3934_v0 }
 0x457   : > { %v1462_v14 = vpop.xlane.xlu1 %1461 }
 0x458   : > { %3583 = vrcp.f32 %v1462_v14 }
 0x45b   : > { %v1465_v16 = vpop.xlane.xlu0 %1464 }
 0x45c   : > { %3585 = vrcp.f32 %v1465_v16 }
 0x45f   : > { %v1468_v19 = vpop.xlane.xlu1 %1467 }
 0x460   : > { %3587 = vrcp.f32 %v1468_v19 }
 0x463   : > { %v1035_v20 = vpop.permute.xlu1 %1034  ;;  %v1471_v21 = vpop.xlane.xlu0 %1470 }
 0x464   : > { %v3030_v22 = vcombine.low %v1033_v45, %v1035_v20  ;;  %3589 = vrcp.f32 %v1471_v21 }
 0x465   : > { %v3584_v23 = vpop.eup %3583 }
 0x466   : > { %1562 = vxpose.xlu1.c.b16.start.end [1/1] (short) (narrow) %v3030_v22, 32  ;;  %v1488_v25 = vmul.f32 %v3584_v23, %v3568_v30 }
 0x469   : > { %v3586_v24 = vpop.eup %3585 }
 0x46a   : > { %v1489_v26 = vmul.f32 %v3586_v24, %v3570_v50 }
 0x46b   : > { %v1477_v31 = vpop.xlane.xlu0 %1476 }
 0x46c   : > { %v1495_v27 = vpack.c.bf16 %v1489_v26, %v1488_v25  ;;  %3591 = vrcp.f32 %v1477_v31 }
 0x46d   : > { %v3588_v17 = vpop.eup %3587 }
 0x46e   : > { %3324 = vmatprep.subr.msk.bf16.mxu1 %vm1405_vm2, %v1495_v27  ;;  %v1490_v33 = vmul.f32 %v3588_v17, %v3572_v53  ;;  %v1643_v37 = vsel %vm1405_vm2, %v1495_v27, 0 }
 0x471   : > { %v3590_v18 = vpop.eup %3589  ;;  %v1522_v32 = vpop.trf.xlu0 }
 0x472   : > { %3281 = vmatprep.mubr.msk.bf16.mxu1 %vm1405_vm2, %v1522_v32  ;;  %v1491_v34 = vmul.f32 %v3590_v18, %v3574_v55 }
 0x474   : > { %v1496_v35 = vpack.c.bf16 %v1491_v34, %v1490_v33 }
 0x475   : > { %v1523_v36 = vpop.trf.xlu0 }
 0x476   : > { %3282 = vmatmul.mubr.msk.bf16.vlgmr.msra.gmra.mxu1 %vm1405_vm2, %v1523_v36  ;;  %v1701_v43 = vsel %vm1405_vm2, %v1496_v35, 0 }
 0x477   : > { %3286 = vmatpush3.bf16.xpose.msra.mxu1 %v1643_v37 }
 0x478   : > { %3325 = vmatprep.subr.msk.bf16.mxu1 %vm1405_vm2, %v1496_v35 }
 0x479   : > { %v1554_v41 = vpop.trf.xlu0  ;;  %v3592_v46 = vpop.eup %3591 }
 0x47a   : > { %v1493_v48 = vmul.f32 %v3592_v46, %v4371_v57 }
 0x47d   : > { %v1555_v49 = vpop.trf.xlu0 }
 0x494   : > { %v1474_v38 = vpop.xlane.xlu1 %1473 }
 0x495   : > { %3593 = vrcp.f32 %v1474_v38 }
 0x49a   : > { %v1538_v39 = vpop.trf.xlu1 }
 0x49b   : > { %3287 = vmatprep.mubr.msk.bf16.mxu1 %vm1405_vm2, %v1538_v39 }
 0x49e   : > { %v1539_v40 = vpop.trf.xlu1 }
 0x49f   : > { %3288 = vmatmul.mubr.msk.bf16.vlgmr.msra.gmra.mxu1 %vm1405_vm2, %v1539_v40 }
 0x4a0   : > { %3292 = vmatpush3.bf16.xpose.msra.mxu1 %v1701_v43  ;;  %3293 = vmatprep.mubr.msk.bf16.mxu1 %vm1405_vm2, %v1554_v41 }
 0x4a2   : > { %v3594_v30 = vpop.eup %3593 }
 0x4a3   : > { %v1492_v47 = vmul.f32 %v3594_v30, %v4378_v62 }
 0x4a5   : > { %v1497_v50 = vpack.c.bf16 %v1493_v48, %v1492_v47 }
 0x4a7   : > { %3326 = vmatprep.subr.msk.bf16.mxu1 %vm1405_vm2, %v1497_v50  ;;  %3294 = vmatmul.mubr.msk.bf16.vlgmr.msra.gmra.mxu1 %vm1405_vm2, %v1555_v49  ;;  %v1759_v51 = vsel %vm1405_vm2, %v1497_v50, 0 }
 0x4a8   : > { %3298 = vmatpush3.bf16.xpose.msra.mxu1 %v1759_v51 }
 0x4c8   : > { %v1570_v52 = vpop.trf.xlu1 }
 0x4c9   : > { %3299 = vmatprep.mubr.msk.bf16.mxu1 %vm1405_vm2, %v1570_v52 }
 0x4cc   : > { %v1571_v53 = vpop.trf.xlu1 }
 0x4cd   : > { %3300 = vmatmul.mubr.msk.bf16.vlgmr.msra.gmra.mxu1 %vm1405_vm2, %v1571_v53 }
 0x536   : > { %v3283_v54 = vpop.f32.mrf.mxu1 }
 0x538   : > { %v1621_v55 = vpop.f32.mrf.mxu1 }
 0x539   : > { %1810 = vxpose.xlu0.b32.start [1/4] (short) (narrow) %v1621_v55, 16 }
 0x53a   : > { %v3284_v56 = vpop.f32.mrf.mxu1 }
 0x53c   : > { %v1624_v57 = vpop.f32.mrf.mxu1 }
 0x53d   : > { %1811 = vxpose.xlu0.b32.cont [2/4] (short) (narrow) %v1624_v57, 16 }
 0x541   : > { %1812 = vxpose.xlu0.b32.cont [3/4] (short) (narrow) %v3283_v54, 16 }
 0x545   : > { %1813 = vxpose.xlu0.b32.end [4/4] (short) (narrow) %v3284_v56, 16 }
 0x55f   : > { %v3289_v58 = vpop.f32.mrf.mxu1 }
 0x561   : > { %v1679_v59 = vpop.f32.mrf.mxu1 }
 0x562   : > { %1842 = vxpose.xlu1.b32.start [1/4] (short) (narrow) %v1679_v59, 16 }
 0x563   : > { %v3290_v60 = vpop.f32.mrf.mxu1 }
 0x565   : > { %v1682_v61 = vpop.f32.mrf.mxu1 }
 0x566   : > { %1843 = vxpose.xlu1.b32.cont [2/4] (short) (narrow) %v1682_v61, 16 }
 0x567   : > { %v3295_v62 = vpop.f32.mrf.mxu1 }
 0x569   : > { %v1737_v63 = vpop.f32.mrf.mxu1 }
 0x56a   : > { %1844 = vxpose.xlu1.b32.cont [3/4] (short) (narrow) %v3289_v58, 16  ;;  %1874 = vxpose.xlu0.b32.start [1/4] (short) (narrow) %v1737_v63, 16 }
 0x56b   : > { %v3296_v1 = vpop.f32.mrf.mxu1 }
 0x56d   : > { %v1740_v2 = vpop.f32.mrf.mxu1 }
 0x56e   : > { %1845 = vxpose.xlu1.b32.end [4/4] (short) (narrow) %v3290_v60, 16  ;;  %1875 = vxpose.xlu0.b32.cont [2/4] (short) (narrow) %v1740_v2, 16 }
 0x572   : > { %1876 = vxpose.xlu0.b32.cont [3/4] (short) (narrow) %v3295_v62, 16 }
 0x576   : > { %1877 = vxpose.xlu0.b32.end [4/4] (short) (narrow) %v3296_v1, 16 }
 0x58d   : > { %v3301_v3 = vpop.f32.mrf.mxu1 }
 0x58f   : > { %v1795_v4 = vpop.f32.mrf.mxu1 }
 0x590   : > { %1906 = vxpose.xlu1.b32.start [1/4] (short) (narrow) %v1795_v4, 16 }
 0x591   : > { %v3302_v5 = vpop.f32.mrf.mxu1 }
 0x593   : > { %v1798_v6 = vpop.f32.mrf.mxu1 }
 0x594   : > { %1907 = vxpose.xlu1.b32.cont [2/4] (short) (narrow) %v1798_v6, 16 }
 0x598   : > { %1908 = vxpose.xlu1.b32.cont [3/4] (short) (narrow) %v3301_v3, 16 }
 0x59c   : > { %1909 = vxpose.xlu1.b32.end [4/4] (short) (narrow) %v3302_v5, 16 }
 0x5b5   : > { %v1826_v44 = vpop.trf.xlu0 }
 0x5b9   : > { %v1827_v14 = vpop.trf.xlu0 }
 0x5de   : > { %v1858_v45 = vpop.trf.xlu1 }
 0x5e2   : > { %v1859_v16 = vpop.trf.xlu1 }
 0x5e6   : > { %v1890_v19 = vpop.trf.xlu0 }
 0x5e7   : > { %v1938_v20 = vcombine.low %v1826_v44, %v1890_v19  ;;  %v1939_v21 = vcombine.high %v1826_v44, %v1890_v19  ;;  %v3521_v44 = vld [vmem:[#allocation12 + $0x8] sm:$0xff]  }
 0x5e8   : > { %3316 = vmatpush3.bf16.msra.mxu0 %v3521_v44 }
 0x5e9   : > { %v1946_v26 = vrot.slane %v1938_v20, %v4276_v8  ;;  %v1953_v27 = vrot.slane %v1939_v21, %v4276_v8  ;;  %3317 = vmatprep.subr.bf16.mxu0 %v3934_v0 }
 0x5ea   : > { %v1891_v23 = vpop.trf.xlu0 }
 0x5eb   : > { %v2006_v18 = vcombine.low %v1827_v14, %v1891_v23  ;;  %v2007_v32 = vcombine.high %v1827_v14, %v1891_v23 }
 0x5ed   : > { %v2014_v30 = vrot.slane %v2006_v18, %v4276_v8  ;;  %v2021_v47 = vrot.slane %v2007_v32, %v4276_v8 }
 0x60c   : > { %v1922_v22 = vpop.trf.xlu1 }
 0x60d   : > { %v1954_v24 = vcombine.low %v1858_v45, %v1922_v22  ;;  %v1955_v25 = vcombine.high %v1858_v45, %v1922_v22 }
 0x60f   : > { %v1962_v31 = vrot.slane %v1954_v24, %v4276_v8  ;;  %v1969_v17 = vrot.slane %v1955_v25, %v4276_v8 }
 0x610   : > { %v1923_v33 = vpop.trf.xlu1 }
 0x611   : > { %v1970_v34 = vcombine.low %v1946_v26, %v1962_v31  ;;  %v1971_v35 = vcombine.high %v1946_v26, %v1962_v31  ;;  %v1986_v36 = vcombine.low %v1953_v27, %v1969_v17  ;;  %v1987_v37 = vcombine.high %v1953_v27, %v1969_v17  ;;  %v3522_v27 = vld [vmem:[#allocation12] sm:$0xff]  }
 0x612   : > { %v2022_v38 = vcombine.low %v1859_v16, %v1923_v33  ;;  %v2023_v39 = vcombine.high %v1859_v16, %v1923_v33  ;;  %3318 = vmatpush3.bf16.msra.mxu0 %v3522_v27  ;;  %v3941_v27 = vmov 0  }
 0x613   : > { %v1978_v40 = vrot.slane %v1970_v34, %v4279_v15  ;;  %v1985_v41 = vrot.slane %v1971_v35, %v4279_v15  ;;  %v1994_v43 = vrot.slane %v1986_v36, %v4279_v15  ;;  %v2001_v46 = vrot.slane %v1987_v37, %v4279_v15  ;;  %2530 = vmatprep.mubr.bf16.mxu1 %v3941_v27 }
 0x614   : > { %v2030_v48 = vrot.slane %v2022_v38, %v4276_v8  ;;  %v2037_v49 = vrot.slane %v2023_v39, %v4276_v8 }
 0x615   : > { %v2074_v50 = vcombine.low %v1978_v40, %v1985_v41  ;;  %v3039_v51 = vcombine.high %v1978_v40, %v1985_v41  ;;  %v2090_v52 = vcombine.low %v1994_v43, %v2001_v46  ;;  %v3040_v53 = vcombine.high %v1994_v43, %v2001_v46 }
 0x616   : > { %v2038_v54 = vcombine.low %v2014_v30, %v2030_v48  ;;  %v2039_v55 = vcombine.high %v2014_v30, %v2030_v48  ;;  %v2054_v56 = vcombine.low %v2021_v47, %v2037_v49  ;;  %v2055_v57 = vcombine.high %v2021_v47, %v2037_v49 }
 0x617   : > { %v2081_v58 = vrot.slane %v2074_v50, %v4276_v8  ;;  %v2089_v59 = vrot.slane %v3039_v51, %v4276_v8  ;;  %v2097_v60 = vrot.slane %v2090_v52, %v4276_v8  ;;  %v2105_v61 = vrot.slane %v3040_v53, %v4276_v8 }
 0x618   : > { %v2046_v62 = vrot.slane %v2038_v54, %v4279_v15  ;;  %v2053_v63 = vrot.slane %v2039_v55, %v4279_v15  ;;  %v2062_v1 = vrot.slane %v2054_v56, %v4279_v15  ;;  %v2069_v2 = vrot.slane %v2055_v57, %v4279_v15 }
 0x619   : > { %v2107_v3 = vcombine.high %v2081_v58, %v2089_v59  ;;  %v2123_v4 = vcombine.high %v2097_v60, %v2105_v61  ;;  %v2106_v5 = vcombine.low %v2081_v58, %v2089_v59  ;;  %v2122_v6 = vcombine.low %v2097_v60, %v2105_v61  ;;  %v4449_v59 = vld [vmem:[#allocation16] sm:$0xff] }
 0x61a   : > { %v2142_v7 = vcombine.low %v2046_v62, %v2053_v63  ;;  %v3041_v9 = vcombine.high %v2046_v62, %v2053_v63  ;;  %v2158_v10 = vcombine.low %v2062_v1, %v2069_v2  ;;  %v3042_v11 = vcombine.high %v2062_v1, %v2069_v2  ;;  %v3612_v1 = vld [vmem:[%s4186_s6] sm:$0xff] }
 0x61b   : > { %v2114_v12 = vrot.slane %v2106_v5, %v4279_v15  ;;  %v2130_v13 = vrot.slane %v2122_v6, %v4279_v15  ;;  %v2121_v20 = vrot.slane %v2107_v3, %v4279_v15  ;;  %v2137_v21 = vrot.slane %v2123_v4, %v4279_v15  ;;  %v3613_v6 = vld [vmem:[%s4186_s6 + $0x8] sm:$0xff] }
 0x61c   : > { %v2149_v45 = vrot.slane %v2142_v7, %v4276_v8  ;;  %v2157_v14 = vrot.slane %v3041_v9, %v4276_v8  ;;  %v2165_v16 = vrot.slane %v2158_v10, %v4276_v8  ;;  %v2173_v19 = vrot.slane %v3042_v11, %v4276_v8  ;;  %v3523_v9 = vld [vmem:[#allocation13 + $0x70] ss:$8 sps:$4 sm:$0xff]   ;;  %v3525_v10 = vld [vmem:[#allocation13 + $0x74] ss:$8 sps:$4 sm:$0xff]  }
 0x61d   : > { %v2138_v22 = vcombine.low %v2114_v12, %v2130_v13  ;;  %v2140_v32 = vcombine.low %v2121_v20, %v2137_v21  ;;  %v2139_v34 = vcombine.high %v2114_v12, %v2130_v13  ;;  %v2141_v0 = vcombine.high %v2121_v20, %v2137_v21  ;;  %2498 = vmatprep.subr.bf16.mxu1 %v3525_v10  ;;  %v3528_v20 = vld [vmem:[#allocation13 + $0x64] ss:$8 sps:$4 sm:$0xff]   ;;  %v3526_v21 = vld [vmem:[#allocation13 + $0x60] ss:$8 sps:$4 sm:$0xff]  }
 0x61e   : > { %v2175_v23 = vcombine.high %v2149_v45, %v2157_v14  ;;  %v2191_v24 = vcombine.high %v2165_v16, %v2173_v19  ;;  %v2174_v25 = vcombine.low %v2149_v45, %v2157_v14  ;;  %v2190_v26 = vcombine.low %v2165_v16, %v2173_v19  ;;  %2499 = vmatpush1.bf16.msra.mxu1 %v3523_v9  ;;  %v2406_v9 = vld [vmem:[%s4541_s8] sm:$0x3] }
 0x61f   : > { %v2261_v58 = vsub.s32 3, %v4247_v28  ;;  %2500 = vmatprep.subr.bf16.mxu1 %v3528_v20  ;;  %v2411_v10 = vrot.slane %v2406_v9, %v739_v42 }
 0x620   : > { %v2189_v31 = vrot.slane %v2175_v23, %v4279_v15  ;;  %v2205_v17 = vrot.slane %v2191_v24, %v4279_v15  ;;  %v2182_v18 = vrot.slane %v2174_v25, %v4279_v15  ;;  %v2198_v8 = vrot.slane %v2190_v26, %v4279_v15  ;;  %v3529_v23 = vld [vmem:[#allocation13 + $0x50] ss:$8 sps:$4 sm:$0xff]   ;;  %v3534_v24 = vld [vmem:[#allocation13 + $0x44] ss:$8 sps:$4 sm:$0xff]   ;;  %v3532_v25 = vld [vmem:[#allocation13 + $0x40] ss:$8 sps:$4 sm:$0xff]  }
 0x621   : > { %v2262_v60 = vrot.slane %v4449_v59, %v2261_v58  ;;  %v3537_v26 = vld [vmem:[#allocation13 + $0x34] ss:$8 sps:$4 sm:$0xff]   ;;  %v3551_v58 = vld [vmem:[#allocation15 + $0x68] sm:$0xff]  }
 0x622   : > { %v2208_v33 = vcombine.low %v2189_v31, %v2205_v17  ;;  %v2207_v35 = vcombine.high %v2182_v18, %v2198_v8  ;;  %v2206_v36 = vcombine.low %v2182_v18, %v2198_v8  ;;  %v2209_v39 = vcombine.high %v2189_v31, %v2205_v17  ;;  %2501 = vmatpush1.bf16.msra.mxu1 %v3526_v21  ;;  %v3535_v31 = vld [vmem:[#allocation13 + $0x30] ss:$8 sps:$4 sm:$0xff]   ;;  %v3540_v17 = vld [vmem:[#allocation13 + $0x24] ss:$8 sps:$4 sm:$0xff]   ;;  %v3538_v18 = vld [vmem:[#allocation13 + $0x20] ss:$8 sps:$4 sm:$0xff]  }
 0x623   : > { %v3543_v8 = vld [vmem:[#allocation13 + $0x14] ss:$8 sps:$4 sm:$0xff]  }
 0x624   : > { %v3479_v37 = vpack.i.bf16 %v2208_v33, %v2140_v32  ;;  %v3474_v38 = vpack.i.bf16 %v2207_v35, %v2139_v34  ;;  %v3484_v40 = vpack.i.bf16 %v2209_v39, %v2141_v0  ;;  %v3541_v32 = vld [vmem:[#allocation13 + $0x10] ss:$8 sps:$4 sm:$0xff]   ;;  %v3546_v33 = vld [vmem:[#allocation13 + $0x4] ss:$8 sps:$4 sm:$0xff]   ;;  %v3544_v34 = vld [vmem:[#allocation13] ss:$8 sps:$4 sm:$0xff]  }
 0x626   : > { %3480 = vrot.lane.b32.xlu1 %v3479_v37, %s3936_s5  ;;  %3475 = vrot.lane.b32.xlu0 %v3474_v38, %s3938_s16 }
 0x62a   : > { %3485 = vrot.lane.b32.xlu1 %v3484_v40, %s3937_s7  ;;  %v2379_v40 = vsub.s32 5, %v4247_v28 }
 0x698   : > { %v3481_v41 = vpop.permute.xlu1 %3480  ;;  %v3476_v43 = vpop.permute.xlu0 %3475 }
 0x699   : > { %v3478_v15 = vunpack.i.h.bf16 %v3476_v43  ;;  %v3477_v46 = vunpack.i.l.bf16 %v3476_v43  ;;  %v3483_v30 = vunpack.i.h.bf16 %v3481_v41  ;;  %v3482_v47 = vunpack.i.l.bf16 %v3481_v41 }
 0x69b   : > { %v2234_v48 = vsel %vm1228_vm1, %v2138_v22, %v3477_v46  ;;  %v2235_v49 = vsel %vm1228_vm1, %v2206_v36, %v3478_v15  ;;  %v3531_v22 = vld [vmem:[#allocation13 + $0x54] ss:$8 sps:$4 sm:$0xff]   ;;  %v2380_v15 = vrot.slane %v4449_v59, %v2379_v40  ;;  %v2385_v46 = vsub.s32 6, %v4247_v28 }
 0x69c   : > { %v3486_v50 = vpop.permute.xlu1 %3485  ;;  %v2237_v53 = vsel %vm2236_vm3, %v2234_v48, %v3482_v47  ;;  %v2238_v54 = vsel %vm2236_vm3, %v2235_v49, %v3483_v30  ;;  %2502 = vmatprep.subr.bf16.mxu1 %v3531_v22 }
 0x69d   : > { %v3488_v51 = vunpack.i.h.bf16 %v3486_v50  ;;  %v3487_v52 = vunpack.i.l.bf16 %v3486_v50  ;;  %2503 = vmatpush1.bf16.msra.mxu1 %v3529_v23  ;;  %v2386_v49 = vrot.slane %v4449_v59, %v2385_v46 }
 0x69e   : > { %2504 = vmatprep.subr.bf16.mxu1 %v3534_v24 }
 0x69f   : > { %v2240_v55 = vsel %vm2239_vm4, %v2237_v53, %v3487_v52  ;;  %v2241_v56 = vsel %vm2239_vm4, %v2238_v54, %v3488_v51  ;;  %v3547_v54 = vld [vmem:[#allocation15 + $0x78] sm:$0xff]  }
 0x6a0   : > { %v2242_v57 = vpack.c.bf16 %v2241_v56, %v2240_v55  ;;  %v3548_v55 = vld [vmem:[#allocation15 + $0x38] sm:$0xff]   ;;  %3165 = vmatprep.subr.bf16.mxu0 %v3547_v54  ;;  %v3549_v56 = vld [vmem:[#allocation15 + $0x70] sm:$0xff]  }
 0x6a1   : > { %2505 = vmatpush1.bf16.msra.mxu1 %v3532_v25 }
 0x6a2   : > { %3320 = vmatmul.mubr.bf16.vlgmr.msra.gmra.mxu0 %v2242_v57  ;;  %2506 = vmatprep.subr.bf16.mxu1 %v3537_v26  ;;  %v3550_v57 = vld [vmem:[#allocation15 + $0x30] sm:$0xff]  }
 0x6a3   : > { %3166 = vmatpush3.bf16.msra.mxu0 %v3548_v55 }
 0x6a4   : > { %3167 = vmatprep.subr.bf16.mxu0 %v3549_v56 }
 0x6a5   : > { %2507 = vmatpush1.bf16.msra.mxu1 %v3535_v31 }
 0x6a6   : > { %2508 = vmatprep.subr.bf16.mxu1 %v3540_v17 }
 0x6a7   : > { %3168 = vmatpush3.bf16.msra.mxu0 %v3550_v57 }
 0x6a8   : > { %3169 = vmatprep.subr.bf16.mxu0 %v3551_v58 }
 0x6a9   : > { %2509 = vmatpush1.bf16.msra.mxu1 %v3538_v18 }
 0x6aa   : > { %2510 = vmatprep.subr.bf16.mxu1 %v3543_v8 }
 0x6ad   : > { %2511 = vmatpush1.bf16.msra.mxu1 %v3541_v32 }
 0x6ae   : > { %2512 = vmatprep.subr.bf16.mxu1 %v3546_v33 }
 0x6b1   : > { %2513 = vmatpush1.bf16.msra.mxu1 %v3544_v34 }
 0x762   : > { %v2345_v61 = vpop.f32.mrf.mxu0 }
 0x763   : > { %v2346_v62 = vadd.f32 %v2345_v61, %v2262_v60  ;;  %v3553_v61 = vld [vmem:[#allocation15 + $0x60] sm:$0xff]  }
 0x764   : > { %v3321_v63 = vpop.f32.mrf.mxu0 }
 0x765   : > { %v2352_v2 = vadd.f32 %v3612_v1, %v2346_v62  ;;  %v3554_v62 = vld [vmem:[#allocation15 + $0x20] sm:$0xff]   ;;  %v3555_v63 = vld [vmem:[#allocation15 + $0x58] sm:$0xff]  }
 0x766   : > { %v2348_v3 = vpop.f32.mrf.mxu0  ;;  %v3556_v1 = vld [vmem:[#allocation15 + $0x18] sm:$0xff]  }
 0x767   : > { %v2349_v4 = vadd.f32 %v2348_v3, %v2262_v60  ;;  %2354 = vadd.xlane.f32.xlu0 %v2352_v2  ;;  %v3552_v60 = vld [vmem:[#allocation15 + $0x28] sm:$0xff]   ;;  %v3558_v3 = vld [vmem:[#allocation15 + $0x10] sm:$0xff]  }
 0x768   : > { %v3322_v5 = vpop.f32.mrf.mxu0  ;;  %3170 = vmatpush3.bf16.msra.mxu0 %v3552_v60  ;;  %v2613_v60 = vsub.s32 4, %v4247_v28 }
 0x769   : > { %v2353_v7 = vadd.f32 %v3613_v6, %v2349_v4  ;;  %3171 = vmatprep.subr.bf16.mxu0 %v3553_v61  ;;  %v3559_v4 = vld [vmem:[#allocation15 + $0x48] sm:$0xff]   ;;  %v3561_v6 = vld [vmem:[#allocation15 + $0x40] sm:$0xff]  }
 0x76a   : > { %v3560_v5 = vld [vmem:[#allocation15 + $0x8] sm:$0xff]  }
 0x76b   : > { %2356 = vadd.xlane.f32.xlu1 %v2353_v7 }
 0x76c   : > { %3172 = vmatpush3.bf16.msra.mxu0 %v3554_v62  ;;  %v2614_v62 = vrot.slane %v4449_v59, %v2613_v60 }
 0x76d   : > { %3173 = vmatprep.subr.bf16.mxu0 %v3555_v63 }
 0x770   : > { %3174 = vmatpush3.bf16.msra.mxu0 %v3556_v1 }
 0x7f0   : > { %v2355_v11 = vpop.xlane.xlu0 %2354 }
 0x7f1   : > { %v2359_v12 = vmul.f32 0.0078125, %v2355_v11  ;;  %v2415_v11 = vrot.slane %v2406_v9, %v496_v29 }
 0x7f3   : > { %v2361_v13 = vsub.f32 %v2352_v2, %v2359_v12  ;;  %v3557_v2 = vld [vmem:[#allocation15 + $0x50] sm:$0xff]  }
 0x7f4   : > { %v2357_v44 = vpop.xlane.xlu1 %2356  ;;  %3175 = vmatprep.subr.bf16.mxu0 %v3557_v2 }
 0x7f5   : > { %v2360_v45 = vmul.f32 0.0078125, %v2357_v44  ;;  %v2363_v14 = vmul.f32 %v2361_v13, %v2361_v13  ;;  %3176 = vmatpush3.bf16.msra.mxu0 %v3558_v3 }
 0x7f6   : > { %3177 = vmatprep.subr.bf16.mxu0 %v3559_v4 }
 0x7f7   : > { %v2362_v16 = vsub.f32 %v2353_v7, %v2360_v45  ;;  %2365 = vadd.xlane.f32.xlu0 %v2363_v14  ;;  %v3562_v7 = vld [vmem:[#allocation15] sm:$0xff]  }
 0x7f9   : > { %v2364_v19 = vmul.f32 %v2362_v16, %v2362_v16  ;;  %3178 = vmatpush3.bf16.msra.mxu0 %v3560_v5 }
 0x7fa   : > { %3179 = vmatprep.subr.bf16.mxu0 %v3561_v6 }
 0x7fb   : > { %2367 = vadd.xlane.f32.xlu0 %v2364_v19 }
 0x7fd   : > { %3180 = vmatpush3.bf16.msra.mxu0 %v3562_v7 }
 0x880   : > { %v2366_v35 = vpop.xlane.xlu0 %2365 }
 0x881   : > { %v2369_v36 = vmul.f32 0.0078125, %v2366_v35 }
 0x883   : > { %v2371_v37 = vadd.f32 1e-05, %v2369_v36 }
 0x884   : > { %v2368_v38 = vpop.xlane.xlu0 %2367 }
 0x885   : > { %3595 = vrsqrt.f32 %v2371_v37  ;;  %v2370_v39 = vmul.f32 0.0078125, %v2368_v38 }
 0x887   : > { %v2372_v0 = vadd.f32 1e-05, %v2370_v39 }
 0x889   : > { %3597 = vrsqrt.f32 %v2372_v0 }
 0x892   : > { %v3596_v41 = vpop.eup %3595 }
 0x893   : > { %v2375_v43 = vmul.f32 %v3596_v41, %v2361_v13 }
 0x895   : > { %v2381_v48 = vmul.f32 %v2380_v15, %v2375_v43 }
 0x896   : > { %v3598_v30 = vpop.eup %3597 }
 0x897   : > { %v2376_v47 = vmul.f32 %v3598_v30, %v2362_v16  ;;  %v4458_v51 = vadd.f32 %v2386_v49, %v2381_v48 }
 0x899   : > { %v2382_v50 = vmul.f32 %v2380_v15, %v2376_v47 }
 0x89b   : > { %v4460_v52 = vadd.f32 %v2386_v49, %v2382_v50 }
 0x89d   : > { %v2389_v53 = vpack.c.bf16 %v4460_v52, %v4458_v51 }
 0x89f   : > { %2531 = vmatmul.mubr.bf16.vlgmr.msra.gmra.mxu1 %v2389_v53 }
 0x95f   : > { %v2532_v12 = vpop.f32.mrf.mxu1 }
 0x960   : > { %v2533_v13 = vadd.f32 %v2532_v12, %v2411_v10 }
 0x961   : > { %v2534_v44 = vpop.f32.mrf.mxu1 }
 0x962   : > { %v2541_v45 = vmul.f32 %v2533_v13, %v2533_v13  ;;  %v2535_v14 = vadd.f32 %v2534_v44, %v2415_v11 }
 0x963   : > { %v2536_v16 = vpop.f32.mrf.mxu1 }
 0x964   : > { %v2545_v19 = vmul.f32 %v2541_v45, %v2533_v13  ;;  %v2542_v20 = vmul.f32 %v2535_v14, %v2535_v14  ;;  %v2537_v21 = vadd.f32 %v2536_v16, %v2411_v10 }
 0x965   : > { %v2538_v22 = vpop.f32.mrf.mxu1 }
 0x966   : > { %v2549_v23 = vmul.f32 0.044715, %v2545_v19  ;;  %v2546_v24 = vmul.f32 %v2542_v20, %v2535_v14  ;;  %v2543_v25 = vmul.f32 %v2537_v21, %v2537_v21  ;;  %v2539_v26 = vadd.f32 %v2538_v22, %v2415_v11 }
 0x968   : > { %v2553_v27 = vadd.f32 %v2549_v23, %v2533_v13  ;;  %v2550_v31 = vmul.f32 0.044715, %v2546_v24  ;;  %v2547_v42 = vmul.f32 %v2543_v25, %v2537_v21  ;;  %v2544_v17 = vmul.f32 %v2539_v26, %v2539_v26 }
 0x969   : > { %v2778_v23 = vsub.s32 7, %v4247_v28 }
 0x96a   : > { %v2557_v18 = vmul.f32 0.7978846, %v2553_v27  ;;  %v2554_v29 = vadd.f32 %v2550_v31, %v2535_v14  ;;  %v2551_v8 = vmul.f32 0.044715, %v2547_v42  ;;  %v2548_v32 = vmul.f32 %v2544_v17, %v2539_v26  ;;  %v3083_v27 = vld [vmem:[#allocation16 + $0x8] ss:$0 sm:$0xff] }
 0x96b   : > { %v2779_v24 = vrot.slane %v4449_v59, %v2778_v23 }
 0x96c   : > { %v2558_v33 = vmul.f32 0.7978846, %v2554_v29  ;;  %v2555_v34 = vadd.f32 %v2551_v8, %v2537_v21  ;;  %v2552_v35 = vmul.f32 0.044715, %v2548_v32  ;;  %3599 = vtanh.f32 %v2557_v18 }
 0x96e   : > { %3601 = vtanh.f32 %v2558_v33  ;;  %v2559_v36 = vmul.f32 0.7978846, %v2555_v34  ;;  %v2556_v37 = vadd.f32 %v2552_v35, %v2539_v26 }
 0x970   : > { %3603 = vtanh.f32 %v2559_v36  ;;  %v2560_v38 = vmul.f32 0.7978846, %v2556_v37 }
 0x972   : > { %3605 = vtanh.f32 %v2560_v38 }
 0x979   : > { %v3600_v39 = vpop.eup %3599 }
 0x97a   : > { %v2565_v43 = vadd.f32 1.0, %v3600_v39 }
 0x97b   : > { %v3602_v0 = vpop.eup %3601 }
 0x97c   : > { %v2566_v40 = vadd.f32 1.0, %v3602_v0  ;;  %v2569_v49 = vmul.f32 0.5, %v2565_v43 }
 0x97d   : > { %v3604_v41 = vpop.eup %3603 }
 0x97e   : > { %v2567_v15 = vadd.f32 1.0, %v3604_v41  ;;  %v2570_v48 = vmul.f32 0.5, %v2566_v40  ;;  %v2573_v56 = vmul.f32 %v2569_v49, %v2533_v13 }
 0x97f   : > { %v3606_v46 = vpop.eup %3605 }
 0x980   : > { %v2571_v30 = vmul.f32 0.5, %v2567_v15  ;;  %v2568_v47 = vadd.f32 1.0, %v3606_v46  ;;  %v2574_v54 = vmul.f32 %v2570_v48, %v2535_v14 }
 0x982   : > { %v2572_v50 = vmul.f32 0.5, %v2568_v47  ;;  %v2575_v53 = vmul.f32 %v2571_v30, %v2537_v21 }
 0x984   : > { %v2576_v55 = vmul.f32 %v2572_v50, %v2539_v26  ;;  %v2577_v58 = vpack.c.bf16 %v2575_v53, %v2573_v56 }
 0x986   : > { %v2578_v57 = vpack.c.bf16 %v2576_v55, %v2574_v54 }
 0x988   : > { %2743 = vmatprep.mubr.bf16.mxu0 %v2578_v57 }
 0x989   : > { %2744 = vmatmul.mubr.bf16.vlgmr.msra.gmra.mxu0 %v2577_v58 }
 0xa49   : > { %v3181_v61 = vpop.f32.mrf.mxu0 }
 0xa4b   : > { %v3182_v63 = vpop.f32.mrf.mxu0 }
 0xa4c   : > { %v3183_v1 = vadd.f32 %v3182_v63, %v3181_v61 }
 0xa4d   : > { %v3184_v2 = vpop.f32.mrf.mxu0 }
 0xa4e   : > { %v2746_v3 = vadd.f32 %v3183_v1, %v2614_v62 }
 0xa4f   : > { %v3185_v4 = vpop.f32.mrf.mxu0 }
 0xa50   : > { %v3186_v5 = vadd.f32 %v3185_v4, %v3184_v2  ;;  %v2752_v6 = vadd.f32 %v2746_v3, %v4458_v51 }
 0xa52   : > { %v2749_v7 = vadd.f32 %v3186_v5, %v2614_v62  ;;  %2754 = vadd.xlane.f32.xlu1 %v2752_v6 }
 0xa54   : > { %v2753_v9 = vadd.f32 %v2749_v7, %v4460_v52 }
 0xa56   : > { %2756 = vadd.xlane.f32.xlu0 %v2753_v9 }
 0xadb   : > { %v2755_v10 = vpop.xlane.xlu1 %2754 }
 0xadc   : > { %v2758_v11 = vmul.f32 0.0078125, %v2755_v10 }
 0xade   : > { %v2760_v12 = vsub.f32 %v2752_v6, %v2758_v11 }
 0xadf   : > { %v2757_v13 = vpop.xlane.xlu0 %2756 }
 0xae0   : > { %v2759_v44 = vmul.f32 0.0078125, %v2757_v13  ;;  %v2762_v45 = vmul.f32 %v2760_v12, %v2760_v12 }
 0xae2   : > { %v2761_v14 = vsub.f32 %v2753_v9, %v2759_v44  ;;  %2764 = vadd.xlane.f32.xlu1 %v2762_v45 }
 0xae4   : > { %v2763_v16 = vmul.f32 %v2761_v14, %v2761_v14 }
 0xae6   : > { %2766 = vadd.xlane.f32.xlu0 %v2763_v16 }
 0xb6b   : > { %v2765_v19 = vpop.xlane.xlu1 %2764 }
 0xb6c   : > { %v2768_v20 = vmul.f32 0.0078125, %v2765_v19 }
 0xb6e   : > { %v2770_v21 = vadd.f32 1e-05, %v2768_v20 }
 0xb6f   : > { %v2767_v51 = vpop.xlane.xlu0 %2766 }
 0xb70   : > { %3607 = vrsqrt.f32 %v2770_v21  ;;  %v2769_v22 = vmul.f32 0.0078125, %v2767_v51 }
 0xb72   : > { %v2771_v52 = vadd.f32 1e-05, %v2769_v22 }
 0xb74   : > { %3609 = vrsqrt.f32 %v2771_v52 }
 0xb7d   : > { %v3608_v25 = vpop.eup %3607 }
 0xb7e   : > { %v2774_v26 = vmul.f32 %v3608_v25, %v2760_v12 }
 0xb80   : > { %v2780_v31 = vmul.f32 %v2779_v24, %v2774_v26 }
 0xb81   : > { %v3610_v42 = vpop.eup %3609 }
 0xb82   : > { %v2786_v17 = vadd.f32 %v3083_v27, %v2780_v31  ;;  %v2775_v18 = vmul.f32 %v3610_v42, %v2761_v14 }
 0xb84   : > { %v2781_v29 = vmul.f32 %v2779_v24, %v2775_v18  ;;  %2788 = vst [vmem:[%s466_s25] sm:$0xff] %v2786_v17 }
 0xb86   : > { %v2787_v28 = vadd.f32 %v3083_v27, %v2781_v29 }
 0xb88   : > { %2789 = vst [vmem:[%s466_s25 + $0x8] sm:$0xff] %v2787_v28 }
 0xb89   : > { %3837 = shalt.err (!%p3834_p7)
}
 0xb8a   : > { %s3838_s3 = scalar_lea.hbm %s4483_s19, 256  ;;  %s3842_s5 = scalar_lea.hbm %s4542_s9, 512 }
 0xb8b   : > { %p3839_p12 = scmp.ne.s32.totalorder %s4483_s19, %s3838_s3  ;;  %p3843_p4 = scmp.lt.s32.totalorder %s4483_s19, %s4542_s9 }
 0xb8c   : > { %p3844_p9 = scmp.lt.s32.totalorder %s3842_s5, %s3838_s3 }
 0xb8d   : > { %p3840_p0 = pnand %p3839_p12, %p4580_p3 }
 0xb8e   : > { %p3845_p10 = por %p3844_p9, %p3843_p4 }
 0xb8f   : > { %p3841_p13 = pneg %p3840_p0 }
 0xb91   : > { %p3846_p1 = pnand %p3845_p10, %p3841_p13 }
 0xb93   : > { %3849 = shalt.err (!%p3846_p1)
}
 0xb94   : > { %s3943_s17 = smov 128   ;;  %s3944_s18 = smov 8  }
 0xb95   : > { %3357 = dma.vmem_to_hbm [thread:$0]  (%p4580_p3), %s4485_s22, 256, %s4483_s19, %s2791_s24, %s3943_s17, %s3943_s17, %s3944_s18  }
 0xb96 PF: > { %s2821_s23 = sand.u32 1, %s3900_s30   ;;  %p4581_p5 = scmp.ne.s32.totalorder %s4578_s26, 0 }
 0xb97   : > { %p4582_p2 = scmp.ge.s32.totalorder %s3920_s14, 2  ;;  %s2822_s25 = scalar_lea.sflag [#allocation6], %s2821_s23 }
 0xb99   : > { %p3386_p6 = pnand %p4582_p2, %p4581_p5 }
 0xb9b   : > { %p3387_p8 = pneg %p3386_p6 }
 0xb9d   : > { %3895 = dma.done.wait (%p3387_p8), %s2822_s25, 256  }
 0xb9e   : > { %3897 = vsyncadd (%p3387_p8), %s2822_s25, 4294967040  ;;  %s29_s14 = sadd.s32 1, %s3920_s14   ;;  %s4583_s15 = sld [smem:[#allocation25_spill]] }
 0xb9f   : > { %p26_p11 = scmp.ge.s32.totalorder %s29_s14, 4   ;;  %s4584_s30 = smov %s3904_s10 }
 0xba0   : > { %s4585_s10 = smov %s3908_s11  ;;  %s4586_s11 = smov %s4153_s27 }
 0xba1   : > { %s4587_s12 = smov %s3916_s13  ;;  %28 = sbr.rel (!%p26_p11) target bundleno = 18 (0x12), region = 134 }
 0xba4   : > { %s4588_s13 = smov %s4583_s15 }
 0xba6   :  { %2827 = vsyncpa [#allocation5], 1 }
 0xba7   :  { %2829 = vsyncpa [#allocation5 + $0x1], 1 }
 0xba8   :  { %2830 = vsyncpa [#allocation8], 1 }
 0xba9   :  { %2831 = vsyncpa [#allocation11], 1 }
 0xbaa   :  { %2832 = vsyncpa [#allocation14], 1 }
 0xbab   :  { %2833 = vsyncpa [#allocation17], 1 }
 0xbac   :  { %2834 = vsyncpa [#allocation6], 1 }
 0xbad   :  { %2836 = vsyncpa [#allocation6 + $0x1], 1 }

// kernel: tpu_custom_call.1
= control target key start
LH: loop header
LB: loop body
LE: loop exit
PB: predicated region body
PF: predicated region fallthrough
CT: control target
= control target key end

     0   :  { %s4533_s0 = inlined_call_operand.hbm [shape: f32[2,16,128], index: 0, kind: input, shape index: {}]   ;;  %s4534_s1 = inlined_call_operand.hbm [shape: bf16[128,128], index: 1, kind: input, shape index: {}]   ;;  %s4535_s2 = inlined_call_operand.hbm [shape: bf16[128,128], index: 2, kind: input, shape index: {}]   ;;  %s4536_s3 = inlined_call_operand.hbm [shape: bf16[128,128], index: 3, kind: input, shape index: {}]   ;;  %s4537_s4 = inlined_call_operand.hbm [shape: bf16[128,128], index: 4, kind: input, shape index: {}]   ;;  %s4538_s5 = inlined_call_operand.hbm [shape: bf16[128,256], index: 5, kind: input, shape index: {}]   ;;  %s4539_s6 = inlined_call_operand.hbm [shape: bf16[256,128], index: 6, kind: input, shape index: {}]   ;;  %s4540_s7 = inlined_call_operand.hbm [shape: f32[9,128], index: 7, kind: input, shape index: {}]   ;;  %s4541_s8 = inlined_call_operand.vmem [shape: f32[1,256], index: 8, kind: input, shape index: {}]   ;;  %s4542_s9 = inlined_call_operand.hbm [shape: f32[2,16,128], index: 9, kind: output, shape index: {}]  }
   0x1   :  { %4552 = sst [smem:[#allocation26_spill]] %s4534_s1 }
   0x2   :  { %4553 = sst [smem:[#allocation27_spill]] %s4535_s2 }
   0x3   :  { %4554 = sst [smem:[#allocation28_spill]] %s4536_s3 }
   0x4   :  { %4555 = sst [smem:[#allocation29_spill]] %s4537_s4 }
   0x5   :  { %4556 = sst [smem:[#allocation30_spill]] %s4538_s5 }
   0x6   :  { %4557 = sst [smem:[#allocation31_spill]] %s4539_s6 }
   0x7   :  { %4558 = sst [smem:[#allocation32_spill]] %s4540_s7 }
   0x8   :  { %14 = vsyncpa [#allocation5], 0 }
   0x9   :  { %16 = vsyncpa [#allocation5 + $0x1], 0 }
   0xa   :  { %17 = vsyncpa [#allocation8], 0 }
   0xb   :  { %18 = vsyncpa [#allocation11], 0 }
   0xc   :  { %19 = vsyncpa [#allocation14], 0 }
   0xd   :  { %20 = vsyncpa [#allocation17], 0 }
   0xe   :  { %21 = vsyncpa [#allocation6], 0 }
   0xf   :  { %23 = vsyncpa [#allocation6 + $0x1], 0  ;;  %s3995_s30 = smov 0   ;;  %s3997_s10 = smov 0  }
  0x10   :  { %s3999_s11 = smov 0   ;;  %s4001_s12 = smov 0  }
  0x11   :  { %s4003_s13 = smov 0   ;;  %s4005_s14 = smov 0  }
  0x12 LB: > { %s4543_s15 = sadd.s32 4294967295, %s3920_s14   ;;  %p2961_p0 = scmp.ge.s32.totalorder %s3920_s14, 1  ;;  %s3920_s14 = sphi %s4005_s14, %s29_s14   ;;  %s3916_s13 = sphi %s4003_s13, %s4588_s13   ;;  %s3912_s12 = sphi %s4001_s12, %s4587_s12   ;;  %s3908_s11 = sphi %s3999_s11, %s4586_s11   ;;  %s3904_s10 = sphi %s3997_s10, %s4585_s10   ;;  %s3900_s30 = sphi %s3995_s30, %s4584_s30  }
  0x13   : > { %p4029_p1 = scmp.eq.s32.totalorder %s4543_s15, 0  ;;  %p268_p2 = scmp.lt.s32.totalorder %s3920_s14, 3 }
  0x14   : > { %s3922_s18 = smov [#allocation7]   ;;  %s3923_s21 = smov [#allocation10]  }
  0x15   : > { %p4034_p3 = pnand %p2961_p0, %p268_p2  ;;  %s280_s19 = sshll.u32 %s3922_s18, 4  ;;  %s281_s19 = int_to_ptr.vmem [resolvable:$true] %s280_s19 }
  0x16   : > { %s306_s22 = sshll.u32 %s3923_s21, 4  ;;  %s3924_s23 = smov [#allocation13]   ;;  %s307_s22 = int_to_ptr.vmem [resolvable:$true] %s306_s22 }
  0x17   : > { %p3359_p4 = pneg %p4034_p3  ;;  %s332_s24 = sshll.u32 %s3924_s23, 4  ;;  %s333_s24 = int_to_ptr.vmem [resolvable:$true] %s332_s24 }
  0x18   : > { %s3625_s26 = scalar_lea.vmem %s281_s19, 1024  ;;  %p3633_p11 = scmp.lt.s32.totalorder %s281_s19, %s281_s19 }
  0x19   : > { %p4043_p6 = pnand %p3359_p4, %p4029_p1  ;;  %p3626_p8 = scmp.ne.s32.totalorder %s281_s19, %s3625_s26 }
  0x1a   : > { %p3634_p12 = scmp.lt.s32.totalorder %s3625_s26, %s3625_s26 }
  0x1b   : > { %p4049_p7 = pneg %p4043_p6 }
  0x1c   : > { %p3635_p13 = por %p3634_p12, %p3633_p11 }
  0x1d   : > { %p3628_p9 = pnand %p3626_p8, %p4049_p7 }
  0x1f   : > { %p3629_p10 = pneg %p3628_p9 }
  0x21   : > { %p3636_p0 = pnand %p3635_p13, %p3629_p10 }
  0x23   : > { %3639 = shalt.err (!%p3636_p0)
}
  0x24   : > { %s4544_s27 = smov 64   ;;  %s3926_s28 = smov 4  }
  0x25   : > { %s4563_s1 = sld [smem:[#allocation26_spill]]  ;;  %s3651_s21 = scalar_lea.vmem %s307_s22, 1024 }
  0x26   : > { %p3652_p2 = scmp.ne.s32.totalorder %s307_s22, %s3651_s21  ;;  %p3659_p9 = scmp.lt.s32.totalorder %s307_s22, %s307_s22 }
  0x27   : > { %p3660_p10 = scmp.lt.s32.totalorder %s3651_s21, %s3651_s21 }
  0x28   : > { %p3654_p4 = pnand %p3652_p2, %p4049_p7 }
  0x29   : > { %p3661_p11 = por %p3660_p10, %p3659_p9 }
  0x2a   : > { %p3655_p8 = pneg %p3654_p4 }
  0x2b   : > { %3362 = dma.hbm_to_vmem [thread:$0]  (!%p4043_p6), %s4563_s1, 1024, %s281_s19, [#allocation8], %s4544_s27, %s4544_s27, %s3926_s28  }
  0x2c   : > { %p3662_p12 = pnand %p3661_p11, %p3655_p8 }
  0x2e   : > { %3665 = shalt.err (!%p3662_p12)
}
  0x2f   : > { %s4564_s3 = sld [smem:[#allocation28_spill]]  ;;  %s3677_s19 = scalar_lea.vmem %s333_s24, 2048 }
  0x30   : > { %p3678_p13 = scmp.ne.s32.totalorder %s333_s24, %s3677_s19  ;;  %p3685_p4 = scmp.lt.s32.totalorder %s333_s24, %s333_s24 }
  0x31   : > { %p3686_p9 = scmp.lt.s32.totalorder %s3677_s19, %s3677_s19 }
  0x32   : > { %p3680_p0 = pnand %p3678_p13, %p4049_p7 }
  0x33   : > { %p3687_p8 = por %p3686_p9, %p3685_p4 }
  0x34   : > { %p3681_p2 = pneg %p3680_p0 }
  0x35   : > { %3368 = dma.hbm_to_vmem [thread:$0]  (!%p4043_p6), %s4564_s3, 1024, %s307_s22, [#allocation11], %s4544_s27, %s4544_s27, %s3926_s28  }
  0x36   : > { %p3688_p10 = pnand %p3687_p8, %p3681_p2 }
  0x38   : > { %3691 = shalt.err (!%p3688_p10)
}
  0x39   : > { %s4546_s29 = smov 128   ;;  %s4548_s18 = smov 8  }
  0x3a   : > { %s4565_s5 = sld [smem:[#allocation30_spill]]  ;;  %s3929_s23 = smov [#allocation9]  }
  0x3b   : > { %s293_s26 = sshll.u32 %s3929_s23, 4  ;;  %s3930_s15 = smov [#allocation12]   ;;  %s294_s26 = int_to_ptr.vmem [resolvable:$true] %s293_s26 }
  0x3c   : > { %s319_s19 = sshll.u32 %s3930_s15, 4  ;;  %s3703_s27 = scalar_lea.vmem %s294_s26, 1024  ;;  %s320_s19 = int_to_ptr.vmem [resolvable:$true] %s319_s19 }
  0x3d   : > { %p3704_p11 = scmp.ne.s32.totalorder %s294_s26, %s3703_s27  ;;  %p3711_p0 = scmp.lt.s32.totalorder %s294_s26, %s294_s26 }
  0x3e   : > { %p3712_p2 = scmp.lt.s32.totalorder %s3703_s27, %s3703_s27 }
  0x3f   : > { %p3706_p12 = pnand %p3704_p11, %p4049_p7 }
  0x40   : > { %3374 = dma.hbm_to_vmem [thread:$0]  (!%p4043_p6), %s4565_s5, 2048, %s333_s24, [#allocation14], %s4546_s29, %s4546_s29, %s4548_s18  }
  0x41   : > { %p3707_p13 = pneg %p3706_p12  ;;  %p3713_p4 = por %p3712_p2, %p3711_p0 }
  0x43   : > { %p3714_p9 = pnand %p3713_p4, %p3707_p13 }
  0x45   : > { %3717 = shalt.err (!%p3714_p9)
}
  0x46   : > { %s4566_s22 = smov 64   ;;  %s4567_s2 = sld [smem:[#allocation27_spill]] }
  0x47   : > { %s3729_s15 = scalar_lea.vmem %s320_s19, 1024  ;;  %p3737_p12 = scmp.lt.s32.totalorder %s320_s19, %s320_s19 }
  0x48   : > { %p3730_p8 = scmp.ne.s32.totalorder %s320_s19, %s3729_s15  ;;  %p3738_p0 = scmp.lt.s32.totalorder %s3729_s15, %s3729_s15 }
  0x4a   : > { %p3732_p10 = pnand %p3730_p8, %p4049_p7  ;;  %p3739_p13 = por %p3738_p0, %p3737_p12 }
  0x4c   : > { %3365 = dma.hbm_to_vmem [thread:$0]  (!%p4043_p6), %s4567_s2, 1024, %s294_s26, [#allocation8], %s4566_s22, %s4566_s22, %s3926_s28  }
  0x4d   : > { %p3733_p11 = pneg %p3732_p10 }
  0x4f   : > { %p3740_p2 = pnand %p3739_p13, %p3733_p11 }
  0x51   : > { %3743 = shalt.err (!%p3740_p2)
}
  0x52   : > { %s4568_s4 = sld [smem:[#allocation29_spill]]  ;;  %s3931_s26 = smov [#allocation15]  }
  0x53   : > { %s345_s24 = sshll.u32 %s3931_s26, 4  ;;  %s3932_s21 = smov [#allocation16]   ;;  %s346_s24 = int_to_ptr.vmem [resolvable:$true] %s345_s24 }
  0x54   : > { %s358_s29 = sshll.u32 %s3932_s21, 4  ;;  %s3755_s18 = scalar_lea.vmem %s346_s24, 2048  ;;  %s359_s29 = int_to_ptr.vmem [resolvable:$true] %s358_s29 }
  0x55   : > { %p3756_p4 = scmp.ne.s32.totalorder %s346_s24, %s3755_s18  ;;  %p3763_p10 = scmp.lt.s32.totalorder %s346_s24, %s346_s24 }
  0x56   : > { %p3764_p11 = scmp.lt.s32.totalorder %s3755_s18, %s3755_s18 }
  0x57   : > { %p3758_p9 = pnand %p3756_p4, %p4049_p7 }
  0x58   : > { %3371 = dma.hbm_to_vmem [thread:$0]  (!%p4043_p6), %s4568_s4, 1024, %s320_s19, [#allocation11], %s4566_s22, %s4566_s22, %s3926_s28  }
  0x59   : > { %p3759_p8 = pneg %p3758_p9  ;;  %p3765_p12 = por %p3764_p11, %p3763_p10 }
  0x5b   : > { %p3766_p0 = pnand %p3765_p12, %p3759_p8 }
  0x5d   : > { %3769 = shalt.err (!%p3766_p0)
}
  0x5e   : > { %s4569_s6 = sld [smem:[#allocation31_spill]]  ;;  %s3781_s27 = scalar_lea.vmem %s359_s29, 256 }
  0x5f   : > { %p3782_p13 = scmp.ne.s32.totalorder %s359_s29, %s3781_s27  ;;  %p3789_p9 = scmp.lt.s32.totalorder %s359_s29, %s359_s29 }
  0x60   : > { %p3790_p10 = scmp.lt.s32.totalorder %s3781_s27, %s3781_s27 }
  0x61   : > { %p3784_p2 = pnand %p3782_p13, %p4049_p7 }
  0x62   : > { %p3791_p8 = por %p3790_p10, %p3789_p9 }
  0x63   : > { %p3785_p4 = pneg %p3784_p2 }
  0x64   : > { %3377 = dma.hbm_to_vmem [thread:$0]  (!%p4043_p6), %s4569_s6, 2048, %s346_s24, [#allocation14], %s4566_s22, %s4566_s22, %s3926_s28  }
  0x65   : > { %p3792_p11 = pnand %p3791_p8, %p3785_p4 }
  0x67   : > { %3795 = shalt.err (!%p3792_p11)
}
  0x68   : > { %s4570_s18 = smov 8   ;;  %s4571_s23 = smov 128  }
  0x69   : > { %s4572_s7 = sld [smem:[#allocation32_spill]]  ;;  %s2960_s20 = sadd.s32 4294967294, %s3920_s14  }
  0x6a   : > { %s41_s25 = sadd.s32 1, %s3916_s13  ;;  %s48_s28 = sadd.s32 1, %s3908_s11 }
  0x6b   : > { %p43_p7 = scmp.ge.s32.totalorder %s41_s25, 2  ;;  %p55_p12 = scmp.ne.s32.totalorder %s3908_s11, %s3904_s10 }
  0x6c   : > { %p56_p0 = scmp.eq.s32.totalorder %s3920_s14, 0  ;;  %p61_p13 = scmp.ne.s32.totalorder %s3904_s10, %s3900_s30 }
  0x6d   : > { %s4590_s25 = smov (%p43_p7, %s41_s25), 0  ;;  %s4576_s19 = sadd.s32 4294967295, %s3920_s14  }
  0x6e   : > { %4573 = sst [smem:[#allocation25_spill]] %s4590_s25  ;;  %p4133_p2 = por %p56_p0, %p55_p12 }
  0x6f   : > { %3380 = dma.hbm_to_vmem [thread:$0]  (!%p4043_p6), %s4572_s7, 256, %s359_s29, [#allocation17], %s4571_s23, %s4571_s23, %s4570_s18  }
  0x70   : > { %p4139_p6 = por %p4029_p1, %p61_p13  ;;  %s45_s24 = ssub.s32 %s3916_s13, %s4590_s25 }
  0x71   : > { %p255_p4 = scmp.eq.s32.totalorder %s4576_s19, 1  ;;  %p46_p9 = scmp.eq.s32.totalorder %s45_s24, 0 }
  0x72   : > { %p261_p10 = scmp.eq.s32.totalorder %s2960_s20, 1  ;;  %p3396_p11 = scmp.lt.s32.totalorder %s3920_s14, 2 }
  0x73   : > { %p4147_p8 = por %p255_p4, %p55_p12  ;;  %s375_s21 = sand.u32 1, %s3908_s11  }
  0x74   : > { %s4153_s27 = scalar_select %p46_p9, %s3908_s11, %s48_s28  }
  0x75   : > { %s4577_s15 = scalar_select %p4147_p8, 1, 0 }
  0x76   : > { %p4155_p7 = por %p261_p10, %p61_p13  ;;  %s2970_s1 = sshll.u32 %s375_s21, 4 }
  0x77   : > { %s3089_s2 = sshll.u32 %s3916_s13, 8  ;;  %s379_s24 = scalar_lea.vmem [#allocation4], %s2970_s1 }
  0x78   : > { %s4578_s26 = scalar_select %p4155_p7, 1, 0 }
  0x79   : > { %s385_s19 = scalar_lea.hbm %s4533_s0, %s3089_s2  ;;  %s386_s20 = sshll.u32 %s379_s24, 4  ;;  %s387_s20 = int_to_ptr.vmem [resolvable:$true] %s386_s20 }
  0x7a   : > { %p4166_p12 = pnand %p3396_p11, %p4133_p2  ;;  %s376_s28 = scalar_lea.sflag [#allocation5], %s375_s21 }
  0x7b   : > { %s3809_s6 = scalar_lea.vmem %s387_s20, 256  ;;  %s3933_s7 = smov [#allocation4]  }
  0x7c   : > { %p3798_p0 = pneg %p4166_p12  ;;  %p3810_p13 = scmp.ne.s32.totalorder %s387_s20, %s3809_s6 }
  0x7d   : > { %s3814_s25 = sshll.u32 %s3933_s7, 4  ;;  %s3815_s25 = int_to_ptr.vmem [resolvable:$false] %s3814_s25 }
  0x7e   : > { %p3812_p4 = pnand %p3810_p13, %p3798_p0  ;;  %s3816_s2 = scalar_lea.vmem %s3815_s25, 512 }
  0x7f   : > { %p3817_p10 = scmp.lt.s32.totalorder %s387_s20, %s3815_s25  ;;  %p3818_p5 = scmp.lt.s32.totalorder %s3816_s2, %s3809_s6 }
  0x80   : > { %p3813_p9 = pneg %p3812_p4 }
  0x81   : > { %p3819_p7 = por %p3818_p5, %p3817_p10 }
  0x83   : > { %p3820_p8 = pnand %p3819_p7, %p3813_p9 }
  0x85   : > { %3823 = shalt.err (!%p3820_p8)
}
  0x86   : > { %3384 = dma.hbm_to_vmem [thread:$0]  (!%p4166_p12), %s385_s19, 256, %s387_s20, %s376_s28, %s4571_s23, %s4571_s23, %s4570_s18  }
  0x87   : > { %398 = sbr.rel (%p4034_p3) target bundleno = 2966 (0xb96), region = 56  ;;  %s4180_s1 = sand.u32 (!%p4034_p3), 1, %s3904_s10  }
  0x88   : > { %s2974_s3 = sshll.u32 (!%p4034_p3), %s4180_s1, 4  ;;  %s401_s4 = scalar_lea.sflag (!%p4034_p3), [#allocation5], %s4180_s1 }
  0x89   : > { %s4186_s6 = scalar_lea.vmem (!%p4034_p3), [#allocation4], %s2974_s3 }
  0x8c   : > { %3875 = dma.done.wait (%p4139_p6), %s401_s4, 256  }
  0x8d   : > { %3877 = vsyncadd (%p4139_p6), %s401_s4, 4294967040 }
  0x8e   : > { %3879 = dma.done.wait (%p4029_p1), [#allocation8], 2048  }
  0x8f   : > { %3881 = vsyncadd (%p4029_p1), [#allocation8], 4294965248 }
  0x90   : > { %3883 = dma.done.wait (%p4029_p1), [#allocation11], 2048  }
  0x91   : > { %3885 = vsyncadd (%p4029_p1), [#allocation11], 4294965248 }
  0x92   : > { %3887 = dma.done.wait (%p4029_p1), [#allocation14], 4096  }
  0x93   : > { %3889 = vsyncadd (%p4029_p1), [#allocation14], 4294963200 }
  0x94   : > { %3891 = dma.done.wait (%p4029_p1), [#allocation17], 256  }
  0x95   : > { %3893 = vsyncadd (%p4029_p1), [#allocation17], 4294967040  ;;  %v3934_v0 = vmov 0.0   ;;  %vm3935_vm0 = vmmov 0   ;;  %v3489_v1 = vld [vmem:[#allocation9 + $0x38] sm:$0xff]   ;;  %v3490_v2 = vld [vmem:[#allocation9 + $0x30] sm:$0xff]   ;;  %v494_v27 = vlaneseq }
  0x96   : > { %3187 = vmatprep.subr.bf16.mxu0 %v3934_v0  ;;  %3203 = vmatprep.mubr.msk.bf16.mxu0 %vm3935_vm0, %v3934_v0  ;;  %v3491_v3 = vld [vmem:[#allocation9 + $0x28] sm:$0xff]   ;;  %v3492_v4 = vld [vmem:[#allocation9 + $0x20] sm:$0xff]   ;;  %v3493_v5 = vld [vmem:[#allocation9 + $0x18] sm:$0xff]   ;;  %s3936_s5 = smov 64   ;;  %s3937_s7 = smov 96   ;;  %vm1228_vm1 = vcmask 261120  }
  0x97   : > { %3207 = vmatprep.subr.bf16.mxu1 %v3934_v0  ;;  %3223 = vmatprep.mubr.msk.bf16.mxu1 %vm3935_vm0, %v3934_v0  ;;  %v3494_v6 = vld [vmem:[#allocation9 + $0x10] sm:$0xff]   ;;  %v3495_v7 = vld [vmem:[#allocation9 + $0x8] sm:$0xff]   ;;  %v3496_v8 = vld [vmem:[#allocation9] sm:$0xff]   ;;  %v4247_v28 = vshrl.u32 %v494_v27, 7  ;;  %s3938_s16 = smov 32   ;;  %vm1405_vm2 = vcmask 130048  }
  0x98   : > { %3188 = vmatpush3.bf16.msra.mxu0 %v3489_v1  ;;  %v475_v9 = vld [vmem:[%s4186_s6] sm:$0xff]  ;;  %v476_v10 = vld [vmem:[%s4186_s6 + $0x8] sm:$0xff]  ;;  %v3939_v62 = vmov 1983009808   ;;  %vm2236_vm3 = vcmask 523264   ;;  %vm2239_vm4 = vcmask 785408  }
  0x99   : > { %3189 = vmatprep.subr.bf16.mxu0 %v3934_v0  ;;  %v3497_v11 = vld [vmem:[#allocation7 + $0x38] sm:$0xff]   ;;  %v4223_v12 = vpack.c.bf16 %v476_v10, %v475_v9  ;;  %v3498_v13 = vld [vmem:[#allocation7 + $0x30] sm:$0xff]   ;;  %v3499_v14 = vld [vmem:[#allocation7 + $0x28] sm:$0xff]   ;;  %v496_v29 = vsub.s32 1, %v4247_v28  ;;  %v739_v42 = vsub.s32 0, %v4247_v28  ;;  %v855_v63 = vunpack.c.l.s4 %v3939_v62  ;;  %s3094_s23 = sshll.u32 %s3912_s12, 8 }
  0x9a   : > { %v3500_v15 = vld [vmem:[#allocation7 + $0x20] sm:$0xff]   ;;  %v3501_v16 = vld [vmem:[#allocation7 + $0x18] sm:$0xff]   ;;  %v3502_v17 = vld [vmem:[#allocation7 + $0x10] sm:$0xff]   ;;  %s466_s25 = scalar_lea.vmem [#allocation18], %s2974_s3  ;;  %s4483_s19 = scalar_lea.hbm %s4542_s9, %s3094_s23 }
  0x9b   : > { %v3503_v18 = vld [vmem:[#allocation7 + $0x8] sm:$0xff]   ;;  %v3504_v19 = vld [vmem:[#allocation7] sm:$0xff]   ;;  %v3506_v20 = vld [vmem:[#allocation10 + $0x38] sm:$0xff]   ;;  %s2806_s22 = sshll.u32 %s466_s25, 4  ;;  %s2791_s24 = scalar_lea.sflag [#allocation6], %s4180_s1  ;;  %s4485_s22 = int_to_ptr.vmem [resolvable:$true] %s2806_s22 }
  0x9c   : > { %3190 = vmatpush3.bf16.msra.mxu0 %v3490_v2  ;;  %3208 = vmatpush3.bf16.msra.mxu1 %v3506_v20  ;;  %v3507_v21 = vld [vmem:[#allocation10 + $0x30] sm:$0xff]   ;;  %v3508_v22 = vld [vmem:[#allocation10 + $0x28] sm:$0xff]   ;;  %v3509_v23 = vld [vmem:[#allocation10 + $0x20] sm:$0xff]   ;;  %v3940_v2 = vmov 1934713408   ;;  %s3824_s20 = scalar_lea.vmem %s4485_s22, 256 }
  0x9d   : > { %3191 = vmatprep.subr.bf16.mxu0 %v3934_v0  ;;  %3209 = vmatprep.subr.bf16.mxu1 %v3934_v0  ;;  %v3510_v24 = vld [vmem:[#allocation10 + $0x18] sm:$0xff]   ;;  %v3511_v25 = vld [vmem:[#allocation10 + $0x10] sm:$0xff]   ;;  %v3512_v26 = vld [vmem:[#allocation10 + $0x8] sm:$0xff]   ;;  %p3825_p1 = scmp.ne.s32.totalorder %s4485_s22, %s3824_s20  ;;  %p4580_p3 = scmp.ne.s32.totalorder %s4577_s15, 0 }
  0x9e   : > { %v4250_v30 = vld [vmem:[#allocation16] sm:$0xff]  ;;  %s3942_s12 = smov [#allocation18]  }
  0x9f   : > { %v497_v32 = vrot.slane %v4250_v30, %v496_v29  ;;  %v3513_v34 = vld [vmem:[#allocation10] sm:$0xff]   ;;  %v740_v43 = vrot.slane %v4250_v30, %v739_v42  ;;  %p3826_p5 = pnand %p3825_p1, %p4580_p3  ;;  %s3828_s28 = sshll.u32 %s3942_s12, 4  ;;  %s3829_s28 = int_to_ptr.vmem [resolvable:$false] %s3828_s28 }
  0xa0   : > { %3192 = vmatpush3.bf16.msra.mxu0 %v3491_v3  ;;  %3210 = vmatpush3.bf16.msra.mxu1 %v3507_v21  ;;  %v887_v3 = vunpack.c.l.s4 %v3940_v2  ;;  %s3830_s2 = scalar_lea.vmem %s3829_s28, 512  ;;  %p3831_p6 = scmp.lt.s32.totalorder %s4485_s22, %s3829_s28 }
  0xa1   : > { %3193 = vmatprep.subr.bf16.mxu0 %v3934_v0  ;;  %3211 = vmatprep.subr.bf16.mxu1 %v3934_v0  ;;  %p3827_p2 = pneg %p3826_p5  ;;  %p3832_p8 = scmp.lt.s32.totalorder %s3830_s2, %s3824_s20 }
  0xa3   : > { %p3833_p11 = por %p3832_p8, %p3831_p6 }
  0xa4   : > { %3194 = vmatpush3.bf16.msra.mxu0 %v3492_v4  ;;  %3212 = vmatpush3.bf16.msra.mxu1 %v3508_v22  ;;  %v856_v4 = vunpack.c.0.s8 %v855_v63 }
  0xa5   : > { %3195 = vmatprep.subr.bf16.mxu0 %v3934_v0  ;;  %3213 = vmatprep.subr.bf16.mxu1 %v3934_v0  ;;  %p3834_p7 = pnand %p3833_p11, %p3827_p2 }
  0xa8   : > { %3196 = vmatpush3.bf16.msra.mxu0 %v3493_v5  ;;  %3214 = vmatpush3.bf16.msra.mxu1 %v3509_v23 }
  0xa9   : > { %3197 = vmatprep.subr.bf16.mxu0 %v3934_v0  ;;  %3215 = vmatprep.subr.bf16.mxu1 %v3934_v0 }
  0xac   : > { %3198 = vmatpush3.bf16.msra.mxu0 %v3494_v6  ;;  %3216 = vmatpush3.bf16.msra.mxu1 %v3510_v24 }
  0xad   : > { %3199 = vmatprep.subr.bf16.mxu0 %v3934_v0  ;;  %3217 = vmatprep.subr.bf16.mxu1 %v3934_v0 }
  0xb0   : > { %3200 = vmatpush3.bf16.msra.mxu0 %v3495_v7  ;;  %3218 = vmatpush3.bf16.msra.mxu1 %v3511_v25  ;;  %v888_v7 = vunpack.c.0.s8 %v887_v3 }
  0xb1   : > { %3201 = vmatprep.subr.bf16.mxu0 %v3934_v0  ;;  %3219 = vmatprep.subr.bf16.mxu1 %v3934_v0 }
  0xb4   : > { %3202 = vmatpush3.bf16.msra.mxu0 %v3496_v8  ;;  %3220 = vmatpush3.bf16.msra.mxu1 %v3512_v26  ;;  %v4276_v8 = vsub.s32 %v856_v4, %v4247_v28 }
  0xb5   : > { %3227 = vmatprep.subr.bf16.mxu0 %v3934_v0  ;;  %3221 = vmatprep.subr.bf16.mxu1 %v3934_v0 }
  0xb7   : > { %3204 = vmatmul.mubr.bf16.vlgmr.msra.gmra.mxu0 %v4223_v12 }
  0xb8   : > { %3228 = vmatpush3.bf16.msra.mxu0 %v3497_v11  ;;  %3243 = vmatprep.mubr.msk.bf16.mxu0 %vm3935_vm0, %v3934_v0 }
  0xb9   : > { %3229 = vmatprep.subr.bf16.mxu0 %v3934_v0  ;;  %3222 = vmatpush3.bf16.msra.mxu1 %v3513_v34 }
  0xba   : > { %3247 = vmatprep.subr.bf16.mxu1 %v3934_v0 }
  0xbc   : > { %3230 = vmatpush3.bf16.msra.mxu0 %v3498_v13  ;;  %3224 = vmatmul.mubr.bf16.vlgmr.msra.gmra.mxu1 %v4223_v12 }
  0xbd   : > { %3231 = vmatprep.subr.bf16.mxu0 %v3934_v0  ;;  %3251 = vmatprep.mubr.msk.bf16.mxu1 %vm3935_vm0, %v3934_v0 }
  0xc0   : > { %3232 = vmatpush3.bf16.msra.mxu0 %v3499_v14 }
  0xc1   : > { %3233 = vmatprep.subr.bf16.mxu0 %v3934_v0 }
  0xc4   : > { %3234 = vmatpush3.bf16.msra.mxu0 %v3500_v15  ;;  %v4279_v15 = vsub.s32 %v888_v7, %v4247_v28 }
  0xc5   : > { %3235 = vmatprep.subr.bf16.mxu0 %v3934_v0 }
  0xc8   : > { %3236 = vmatpush3.bf16.msra.mxu0 %v3501_v16 }
  0xc9   : > { %3237 = vmatprep.subr.bf16.mxu0 %v3934_v0 }
  0xcc   : > { %3238 = vmatpush3.bf16.msra.mxu0 %v3502_v17 }
  0xcd   : > { %3239 = vmatprep.subr.bf16.mxu0 %v3934_v0 }
  0xd0   : > { %3240 = vmatpush3.bf16.msra.mxu0 %v3503_v18 }
  0xd1   : > { %3241 = vmatprep.subr.bf16.mxu0 %v3934_v0 }
  0xd4   : > { %3242 = vmatpush3.bf16.msra.mxu0 %v3504_v19 }
  0xd5   : > { %3303 = vmatprep.subr.bf16.mxu0 %v3934_v0 }
  0xd7   : > { %3244 = vmatmul.mubr.bf16.vlgmr.msra.gmra.mxu0 %v4223_v12 }
  0xd8   : > { %3319 = vmatprep.mubr.msk.bf16.mxu0 %vm3935_vm0, %v3934_v0 }
 0x177   : > { %v580_v31 = vpop.f32.mrf.mxu0 }
 0x178   : > { %v581_v36 = vadd.f32 %v580_v31, %v497_v32 }
 0x179   : > { %v3205_v33 = vpop.f32.mrf.mxu0 }
 0x17b   : > { %v583_v35 = vpop.f32.mrf.mxu0 }
 0x17c   : > { %v584_v37 = vadd.f32 %v583_v35, %v497_v32 }
 0x17d   : > { %v3206_v38 = vpop.f32.mrf.mxu0 }
 0x17e   : > { %v3098_v39 = vpack.c.bf16 %v584_v37, %v581_v36 }
 0x180   : > { %3099 = vst [vmem:[#allocation2] sm:$0xff] %v3098_v39  }
 0x187   : > { %v1004_v40 = vld [vmem:[#allocation2] sm:$0xf]  ;;  %v1005_v41 = vld [vmem:[#allocation2 + $0x4] sm:$0xf] }
 0x188   : > { %1012 = vrot.lane.b32.xlu1 %v1004_v40, %s3936_s5  ;;  %1008 = vrot.lane.b32.xlu0 %v1004_v40, %s3937_s7  ;;  %v3019_v52 = vcombine.low %v1004_v40, %v1005_v41 }
 0x18c   : > { %1014 = vrot.lane.b32.xlu1 %v1005_v41, %s3936_s5  ;;  %1010 = vrot.lane.b32.xlu0 %v1005_v41, %s3937_s7 }
 0x190   : > { %1018 = vrot.lane.b32.xlu1 %v1005_v41, %s3938_s16  ;;  %1016 = vrot.lane.b32.xlu0 %v1004_v40, %s3938_s16 }
 0x197   : > { %v823_v44 = vpop.f32.mrf.mxu0 }
 0x198   : > { %v824_v45 = vadd.f32 %v823_v44, %v740_v43 }
 0x199   : > { %v3245_v46 = vpop.f32.mrf.mxu0 }
 0x19a   : > { %v830_v47 = vmul.f32 0.17677669, %v824_v45 }
 0x19b   : > { %v826_v48 = vpop.f32.mrf.mxu0 }
 0x19c   : > { %v827_v49 = vadd.f32 %v826_v48, %v740_v43  ;;  %834 = vrot.lane.b32.xlu0 %v830_v47, %s3937_s7 }
 0x19d   : > { %v3246_v50 = vpop.f32.mrf.mxu0 }
 0x19e   : > { %v831_v51 = vmul.f32 0.17677669, %v827_v49 }
 0x1a0   : > { %836 = vrot.lane.b32.xlu1 %v831_v51, %s3937_s7  ;;  %840 = vrot.lane.b32.xlu0 %v830_v47, %s3936_s5 }
 0x1a4   : > { %842 = vrot.lane.b32.xlu1 %v831_v51, %s3936_s5  ;;  %846 = vrot.lane.b32.xlu0 %v830_v47, %s3938_s16 }
 0x1a8   : > { %848 = vrot.lane.b32.xlu1 %v831_v51, %s3938_s16 }
 0x1c2   : > { %1164 = vxpose.xlu0.c.b16.start.end [1/1] (short) (narrow) %v3019_v52, 32 }
 0x1fa   : > { %v1013_v53 = vpop.permute.xlu1 %1012  ;;  %v1009_v54 = vpop.permute.xlu0 %1008 }
 0x1fe   : > { %v1015_v55 = vpop.permute.xlu1 %1014  ;;  %v1011_v56 = vpop.permute.xlu0 %1010 }
 0x1ff   : > { %v3021_v57 = vcombine.low %v1013_v53, %v1015_v55  ;;  %v3020_v58 = vcombine.low %v1009_v54, %v1011_v56 }
 0x201   : > { %1180 = vxpose.xlu1.c.b16.start.end [1/1] (short) (narrow) %v3020_v58, 32  ;;  %1196 = vxpose.xlu0.c.b16.start.end [1/1] (short) (narrow) %v3021_v57, 32 }
 0x202   : > { %v1019_v59 = vpop.permute.xlu1 %1018  ;;  %v1017_v60 = vpop.permute.xlu0 %1016 }
 0x203   : > { %v3022_v61 = vcombine.low %v1017_v60, %v1019_v59 }
 0x206   : > { %1212 = vxpose.xlu0.c.b16.start.end [1/1] (short) (narrow) %v3022_v61, 32 }
 0x20e   : > { %v835_v1 = vpop.permute.xlu0 %834 }
 0x212   : > { %v837_v5 = vpop.permute.xlu1 %836  ;;  %v841_v6 = vpop.permute.xlu0 %840 }
 0x213   : > { %v852_v9 = vcombine.low %v830_v47, %v841_v6  ;;  %v853_v10 = vcombine.high %v830_v47, %v841_v6 }
 0x215   : > { %v860_v16 = vrot.slane %v852_v9, %v4276_v8  ;;  %v867_v17 = vrot.slane %v853_v10, %v4276_v8 }
 0x216   : > { %v843_v11 = vpop.permute.xlu1 %842  ;;  %v847_v12 = vpop.permute.xlu0 %846 }
 0x217   : > { %v868_v13 = vcombine.low %v835_v1, %v847_v12  ;;  %v869_v14 = vcombine.high %v835_v1, %v847_v12  ;;  %v920_v20 = vcombine.low %v831_v51, %v843_v11  ;;  %v921_v21 = vcombine.high %v831_v51, %v843_v11 }
 0x219   : > { %v876_v18 = vrot.slane %v868_v13, %v4276_v8  ;;  %v883_v19 = vrot.slane %v869_v14, %v4276_v8  ;;  %v928_v36 = vrot.slane %v920_v20, %v4276_v8  ;;  %v935_v37 = vrot.slane %v921_v21, %v4276_v8 }
 0x21a   : > { %v849_v22 = vpop.permute.xlu1 %848 }
 0x21b   : > { %v884_v23 = vcombine.low %v860_v16, %v876_v18  ;;  %v885_v24 = vcombine.high %v860_v16, %v876_v18  ;;  %v900_v25 = vcombine.low %v867_v17, %v883_v19  ;;  %v901_v26 = vcombine.high %v867_v17, %v883_v19 }
 0x21c   : > { %v936_v27 = vcombine.low %v837_v5, %v849_v22  ;;  %v937_v31 = vcombine.high %v837_v5, %v849_v22 }
 0x21d   : > { %v892_v32 = vrot.slane %v884_v23, %v4279_v15  ;;  %v899_v33 = vrot.slane %v885_v24, %v4279_v15  ;;  %v908_v34 = vrot.slane %v900_v25, %v4279_v15  ;;  %v915_v35 = vrot.slane %v901_v26, %v4279_v15 }
 0x21e   : > { %v944_v38 = vrot.slane %v936_v27, %v4276_v8  ;;  %v951_v39 = vrot.slane %v937_v31, %v4276_v8 }
 0x21f   : > { %v916_v40 = vcombine.high %v892_v32, %v3934_v0  ;;  %v917_v41 = vcombine.high %v899_v33, %v3934_v0  ;;  %v918_v43 = vcombine.high %v908_v34, %v3934_v0  ;;  %v919_v44 = vcombine.high %v915_v35, %v3934_v0 }
 0x220   : > { %v3011_v45 = vpack.c.bf16 %v908_v34, %v892_v32  ;;  %v3012_v46 = vpack.c.bf16 %v915_v35, %v899_v33  ;;  %v952_v47 = vcombine.low %v928_v36, %v944_v38  ;;  %v953_v48 = vcombine.high %v928_v36, %v944_v38  ;;  %v689_v36 = vpop.f32.mrf.mxu1 }
 0x221   : > { %v3015_v49 = vpack.c.bf16 %v918_v43, %v916_v40  ;;  %v3016_v50 = vpack.c.bf16 %v919_v44, %v917_v41  ;;  %v968_v51 = vcombine.low %v935_v37, %v951_v39  ;;  %v969_v52 = vcombine.high %v935_v37, %v951_v39 }
 0x222   : > { %v960_v53 = vrot.slane %v952_v47, %v4279_v15  ;;  %v967_v54 = vrot.slane %v953_v48, %v4279_v15  ;;  %v1043_v55 = vrot.slane %v3011_v45, %v4276_v8  ;;  %v1051_v58 = vrot.slane %v3012_v46, %v4276_v8  ;;  %v3225_v37 = vpop.f32.mrf.mxu1 }
 0x223   : > { %v976_v56 = vrot.slane %v968_v51, %v4279_v15  ;;  %v983_v57 = vrot.slane %v969_v52, %v4279_v15  ;;  %v1093_v59 = vrot.slane %v3015_v49, %v4276_v8  ;;  %v1101_v63 = vrot.slane %v3016_v50, %v4276_v8 }
 0x224   : > { %v984_v60 = vcombine.high %v960_v53, %v3934_v0  ;;  %v985_v61 = vcombine.high %v967_v54, %v3934_v0  ;;  %v1172_v62 = vpop.trf.xlu0  ;;  %v1068_v9 = vcombine.low %v1043_v55, %v1051_v58  ;;  %v605_v34 = vsub.s32 2, %v4247_v28  ;;  %v692_v39 = vpop.f32.mrf.mxu1 }
 0x225   : > { %v986_v1 = vcombine.high %v976_v56, %v3934_v0  ;;  %v987_v2 = vcombine.high %v983_v57, %v3934_v0  ;;  %v3013_v3 = vpack.c.bf16 %v976_v56, %v960_v53  ;;  %v3014_v4 = vpack.c.bf16 %v983_v57, %v967_v54 }
 0x226   : > { %v1118_v12 = vcombine.low %v1093_v59, %v1101_v63  ;;  %v1075_v18 = vrot.slane %v1068_v9, %v4279_v15  ;;  %v606_v35 = vrot.slane %v4250_v30, %v605_v34  ;;  %v3226_v41 = vpop.f32.mrf.mxu1 }
 0x227   : > { %v1059_v5 = vrot.slane %v3013_v3, %v4276_v8  ;;  %v3017_v6 = vpack.c.bf16 %v986_v1, %v984_v60  ;;  %v3018_v7 = vpack.c.bf16 %v987_v2, %v985_v61  ;;  %v1067_v10 = vrot.slane %v3014_v4, %v4276_v8 }
 0x228   : > { %v1173_v11 = vpop.trf.xlu0  ;;  %v1125_v20 = vrot.slane %v1118_v12, %v4279_v15  ;;  %v690_v38 = vadd.f32 %v689_v36, %v606_v35  ;;  %v693_v40 = vadd.f32 %v692_v39, %v606_v35 }
 0x229   : > { %v1109_v13 = vrot.slane %v3017_v6, %v4276_v8  ;;  %v1117_v14 = vrot.slane %v3018_v7, %v4276_v8  ;;  %3248 = vmatpush3.bf16.msra.mxu1 %v1173_v11  ;;  %v1076_v16 = vcombine.low %v1059_v5, %v1067_v10 }
 0x22a   : > { %3249 = vmatprep.subr.bf16.mxu1 %v3934_v0  ;;  %v3103_v43 = vpack.c.bf16 %v693_v40, %v690_v38 }
 0x22b   : > { %v1126_v17 = vcombine.low %v1109_v13, %v1117_v14  ;;  %v1083_v19 = vrot.slane %v1076_v16, %v4279_v15 }
 0x22c   : > { %3104 = vst [vmem:[#allocation3] sm:$0xff] %v3103_v43  }
 0x22d   : > { %3250 = vmatpush3.bf16.msra.mxu1 %v1172_v62  ;;  %v1133_v21 = vrot.slane %v1126_v17, %v4279_v15  ;;  %v1085_v22 = vcombine.high %v1075_v18, %v1083_v19  ;;  %v1084_v23 = vcombine.low %v1075_v18, %v1083_v19 }
 0x22e   : > { %3255 = vmatprep.subr.bf16.mxu1 %v3934_v0 }
 0x22f   : > { %v1134_v24 = vcombine.low %v1125_v20, %v1133_v21  ;;  %v1135_v25 = vcombine.high %v1125_v20, %v1133_v21  ;;  %v1145_v31 = vshrl.u32 %v1085_v22, 16  ;;  %v1139_v50 = vshrl.u32 %v1084_v23, 16 }
 0x231   : > { %v1138_v26 = vpack.i.b16 %v1134_v24, %v1084_v23  ;;  %v1144_v27 = vpack.i.b16 %v1135_v25, %v1085_v22  ;;  %v1146_v32 = vshrl.u32 %v1135_v25, 16  ;;  %v1140_v48 = vshrl.u32 %v1134_v24, 16 }
 0x233   : > { %3252 = vmatmul.mubr.msk.bf16.vlgmr.msra.gmra.mxu1 %vm1228_vm1, %v1138_v26  ;;  %v1147_v33 = vpack.i.b16 %v1146_v32, %v1145_v31  ;;  %v4324_v44 = vld [vmem:[#allocation3 + $0x4] sm:$0xf]  ;;  %v4326_v45 = vld [vmem:[#allocation3] sm:$0xf]  ;;  %v1141_v51 = vpack.i.b16 %v1140_v48, %v1139_v50 }
 0x234   : > { %3259 = vmatprep.mubr.msk.bf16.mxu1 %vm3935_vm0, %v3934_v0  ;;  %1026 = vrot.lane.b32.xlu1 %v4324_v44, %s3937_s7 }
 0x235   : > { %1024 = vrot.lane.b32.xlu0 %v4326_v45, %s3937_s7 }
 0x263   : > { %v1188_v46 = vpop.trf.xlu1  ;;  %v1204_v30 = vpop.trf.xlu0 }
 0x267   : > { %v1189_v47 = vpop.trf.xlu1  ;;  %v1205_v49 = vpop.trf.xlu0 }
 0x268   : > { %3256 = vmatpush3.bf16.msra.mxu1 %v1189_v47 }
 0x269   : > { %3257 = vmatprep.subr.bf16.mxu1 %v3934_v0 }
 0x26b   : > { %v1220_v52 = vpop.trf.xlu0 }
 0x26c   : > { %3258 = vmatpush3.bf16.msra.mxu1 %v1188_v46 }
 0x26d   : > { %3263 = vmatprep.subr.bf16.mxu1 %v3934_v0 }
 0x26f   : > { %3260 = vmatmul.mubr.msk.bf16.vlgmr.msra.gmra.mxu1 %vm1228_vm1, %v1141_v51  ;;  %v1221_v53 = vpop.trf.xlu0 }
 0x270   : > { %3264 = vmatpush3.bf16.msra.mxu1 %v1205_v49  ;;  %3267 = vmatprep.mubr.msk.bf16.mxu1 %vm3935_vm0, %v3934_v0 }
 0x271   : > { %3265 = vmatprep.subr.bf16.mxu1 %v3934_v0 }
 0x274   : > { %3266 = vmatpush3.bf16.msra.mxu1 %v1204_v30 }
 0x275   : > { %3271 = vmatprep.subr.bf16.mxu1 %v3934_v0 }
 0x277   : > { %3268 = vmatmul.mubr.msk.bf16.vlgmr.msra.gmra.mxu1 %vm1228_vm1, %v1144_v27 }
 0x278   : > { %3272 = vmatpush3.bf16.msra.mxu1 %v1221_v53  ;;  %3275 = vmatprep.mubr.msk.bf16.mxu1 %vm3935_vm0, %v3934_v0 }
 0x279   : > { %3273 = vmatprep.subr.bf16.mxu1 %v3934_v0 }
 0x27c   : > { %3274 = vmatpush3.bf16.msra.mxu1 %v1220_v52 }
 0x27f   : > { %3276 = vmatmul.mubr.msk.bf16.vlgmr.msra.gmra.mxu1 %vm1228_vm1, %v1147_v33 }
 0x2a6   : > { %v4359_v17 = vpop.permute.xlu1 %1026 }
 0x2a7   : > { %v4361_v18 = vpop.permute.xlu0 %1024 }
 0x2f3   : > { %v1266_v54 = vpop.f32.mrf.mxu1 }
 0x2f4   : > { %v1406_v55 = vsel %vm1405_vm2, %v1266_v54, -inf }
 0x2f5   : > { %1407 = vmax.xlane.f32.xlu1 %v1406_v55  ;;  %v3253_v56 = vpop.f32.mrf.mxu1 }
 0x2f7   : > { %v1269_v57 = vpop.f32.mrf.mxu1 }
 0x2f8   : > { %v1409_v58 = vsel %vm1405_vm2, %v1269_v57, -inf }
 0x2f9   : > { %1410 = vmax.xlane.f32.xlu0 %v1409_v58  ;;  %v3254_v59 = vpop.f32.mrf.mxu1 }
 0x32f   : > { %v1310_v60 = vpop.f32.mrf.mxu1 }
 0x330   : > { %v1412_v61 = vsel %vm1405_vm2, %v1310_v60, -inf }
 0x331   : > { %1413 = vmax.xlane.f32.xlu1 %v1412_v61  ;;  %v3261_v62 = vpop.f32.mrf.mxu1 }
 0x333   : > { %v1313_v63 = vpop.f32.mrf.mxu1 }
 0x334   : > { %v1415_v1 = vsel %vm1405_vm2, %v1313_v63, -inf }
 0x335   : > { %1416 = vmax.xlane.f32.xlu1 %v1415_v1  ;;  %v3262_v2 = vpop.f32.mrf.mxu1  ;;  %v3027_v1 = vcombine.low %v4326_v45, %v4324_v44 }
 0x337   : > { %v1354_v3 = vpop.f32.mrf.mxu1 }
 0x338   : > { %v1418_v4 = vsel %vm1405_vm2, %v1354_v3, -inf }
 0x339   : > { %1419 = vmax.xlane.f32.xlu0 %v1418_v4  ;;  %v3269_v5 = vpop.f32.mrf.mxu1 }
 0x33b   : > { %v1357_v6 = vpop.f32.mrf.mxu1 }
 0x33c   : > { %v1421_v7 = vsel %vm1405_vm2, %v1357_v6, -inf }
 0x33d   : > { %1422 = vmax.xlane.f32.xlu1 %v1421_v7  ;;  %v3270_v9 = vpop.f32.mrf.mxu1 }
 0x33f   : > { %v4350_v10 = vpop.f32.mrf.mxu1 }
 0x340   : > { %v1424_v11 = vsel %vm1405_vm2, %v4350_v10, -inf }
 0x341   : > { %1425 = vmax.xlane.f32.xlu0 %v1424_v11  ;;  %v3277_v12 = vpop.f32.mrf.mxu1 }
 0x343   : > { %v1401_v13 = vpop.f32.mrf.mxu1 }
 0x344   : > { %v1427_v14 = vsel %vm1405_vm2, %v1401_v13, -inf }
 0x345   : > { %1428 = vmax.xlane.f32.xlu1 %v1427_v14  ;;  %v3278_v16 = vpop.f32.mrf.mxu1 }
 0x356   : > { %1030 = vrot.lane.b32.xlu1 %v4324_v44, %s3936_s5 }
 0x357   : > { %1028 = vrot.lane.b32.xlu0 %v4326_v45, %s3936_s5 }
 0x37e   : > { %v1408_v19 = vpop.xlane.xlu1 %1407 }
 0x37f   : > { %v1430_v20 = vsub.f32 %v1266_v54, %v1408_v19 }
 0x381   : > { %v1438_v21 = vmul.f32 1.442695, %v1430_v20 }
 0x382   : > { %v1411_v22 = vpop.xlane.xlu0 %1410 }
 0x383   : > { %3563 = vpow2.f32 %v1438_v21  ;;  %v1431_v23 = vsub.f32 %v1269_v57, %v1411_v22 }
 0x385   : > { %v1440_v24 = vmul.f32 1.442695, %v1431_v23 }
 0x387   : > { %3565 = vpow2.f32 %v1440_v24 }
 0x390   : > { %v3564_v25 = vpop.eup %3563 }
 0x391   : > { %v1454_v26 = vsel %vm1405_vm2, %v3564_v25, 0.0 }
 0x392   : > { %1455 = vadd.xlane.f32.xlu0 %v1454_v26 }
 0x394   : > { %v3566_v27 = vpop.eup %3565 }
 0x395   : > { %v1457_v31 = vsel %vm1405_vm2, %v3566_v27, 0.0 }
 0x396   : > { %1458 = vadd.xlane.f32.xlu1 %v1457_v31 }
 0x3a8   : > { %1032 = vrot.lane.b32.xlu0 %v4326_v45, %s3938_s16 }
 0x3ba   : > { %v1414_v32 = vpop.xlane.xlu1 %1413 }
 0x3bb   : > { %v1432_v33 = vsub.f32 %v1310_v60, %v1414_v32 }
 0x3bd   : > { %v1442_v34 = vmul.f32 1.442695, %v1432_v33 }
 0x3be   : > { %v1417_v35 = vpop.xlane.xlu1 %1416 }
 0x3bf   : > { %3567 = vpow2.f32 %v1442_v34  ;;  %v1433_v36 = vsub.f32 %v1313_v63, %v1417_v35 }
 0x3c1   : > { %v1444_v37 = vmul.f32 1.442695, %v1433_v36 }
 0x3c2   : > { %v1420_v38 = vpop.xlane.xlu0 %1419 }
 0x3c3   : > { %3569 = vpow2.f32 %v1444_v37  ;;  %v1434_v39 = vsub.f32 %v1354_v3, %v1420_v38 }
 0x3c5   : > { %v1446_v40 = vmul.f32 1.442695, %v1434_v39 }
 0x3c6   : > { %v1423_v41 = vpop.xlane.xlu1 %1422 }
 0x3c7   : > { %3571 = vpow2.f32 %v1446_v40  ;;  %v1435_v43 = vsub.f32 %v1357_v6, %v1423_v41 }
 0x3c9   : > { %v1448_v46 = vmul.f32 1.442695, %v1435_v43 }
 0x3ca   : > { %v1426_v59 = vpop.xlane.xlu0 %1425 }
 0x3cb   : > { %3573 = vpow2.f32 %v1448_v46  ;;  %v1436_v60 = vsub.f32 %v4350_v10, %v1426_v59 }
 0x3cc   : > { %v3568_v30 = vpop.eup %3567 }
 0x3cd   : > { %v1460_v47 = vsel %vm1405_vm2, %v3568_v30, 0.0  ;;  %v1450_v61 = vmul.f32 1.442695, %v1436_v60 }
 0x3ce   : > { %v1429_v48 = vpop.xlane.xlu1 %1428  ;;  %1461 = vadd.xlane.f32.xlu1 %v1460_v47  ;;  %v1029_v3 = vpop.permute.xlu0 %1028 }
 0x3cf   : > { %v1437_v49 = vsub.f32 %v1401_v13, %v1429_v48 }
 0x3d0   : > { %v3570_v50 = vpop.eup %3569 }
 0x3d1   : > { %v1452_v51 = vmul.f32 1.442695, %v1437_v49  ;;  %v1463_v52 = vsel %vm1405_vm2, %v3570_v50, 0.0 }
 0x3d2   : > { %1464 = vadd.xlane.f32.xlu0 %v1463_v52  ;;  %v1031_v2 = vpop.permute.xlu1 %1030 }
 0x3d3   : > { %3575 = vpow2.f32 %v1452_v51  ;;  %v3029_v4 = vcombine.low %v1029_v3, %v1031_v2 }
 0x3d4   : > { %v3572_v53 = vpop.eup %3571  ;;  %3577 = vpow2.f32 %v1450_v61 }
 0x3d5   : > { %v1466_v54 = vsel %vm1405_vm2, %v3572_v53, 0.0 }
 0x3d6   : > { %1467 = vadd.xlane.f32.xlu1 %v1466_v54 }
 0x3d8   : > { %v3574_v55 = vpop.eup %3573 }
 0x3d9   : > { %v1469_v56 = vsel %vm1405_vm2, %v3574_v55, 0.0 }
 0x3da   : > { %1470 = vadd.xlane.f32.xlu0 %v1469_v56 }
 0x3e0   : > { %v4371_v57 = vpop.eup %3575 }
 0x3e1   : > { %v1475_v58 = vsel %vm1405_vm2, %v4371_v57, 0.0  ;;  %v4378_v62 = vpop.eup %3577 }
 0x3e2   : > { %1476 = vadd.xlane.f32.xlu0 %v1475_v58  ;;  %v1472_v63 = vsel %vm1405_vm2, %v4378_v62, 0.0 }
 0x3e7   : > { %1034 = vrot.lane.b32.xlu1 %v4324_v44, %s3938_s16  ;;  %v3028_v44 = vcombine.low %v4361_v18, %v4359_v17 }
 0x40b   : > { %1473 = vadd.xlane.f32.xlu1 %v1472_v63 }
 0x40f   : > { %1514 = vxpose.xlu0.c.b16.start.end [1/1] (short) (narrow) %v3027_v1, 32 }
 0x414   : > { %1546 = vxpose.xlu0.c.b16.start.end [1/1] (short) (narrow) %v3029_v4, 32 }
 0x41b   : > { %v1456_v5 = vpop.xlane.xlu0 %1455 }
 0x41c   : > { %3579 = vrcp.f32 %v1456_v5 }
 0x41f   : > { %v1459_v6 = vpop.xlane.xlu1 %1458  ;;  %v1033_v45 = vpop.permute.xlu0 %1032 }
 0x420   : > { %3581 = vrcp.f32 %v1459_v6 }
 0x429   : > { %v3580_v7 = vpop.eup %3579 }
 0x42a   : > { %v1486_v10 = vmul.f32 %v3580_v7, %v3564_v25  ;;  %v3515_v7 = vld [vmem:[#allocation12 + $0x38] sm:$0xff]  }
 0x42b   : > { %3304 = vmatpush3.bf16.msra.mxu0 %v3515_v7 }
 0x42c   : > { %3305 = vmatprep.subr.bf16.mxu0 %v3934_v0 }
 0x42d   : > { %v3582_v9 = vpop.eup %3581 }
 0x42e   : > { %v1487_v11 = vmul.f32 %v3582_v9, %v3566_v27  ;;  %v3516_v9 = vld [vmem:[#allocation12 + $0x30] sm:$0xff]  }
 0x42f   : > { %3306 = vmatpush3.bf16.msra.mxu0 %v3516_v9 }
 0x430   : > { %v1494_v12 = vpack.c.bf16 %v1487_v11, %v1486_v10  ;;  %v3517_v10 = vld [vmem:[#allocation12 + $0x28] sm:$0xff]   ;;  %3307 = vmatprep.subr.bf16.mxu0 %v3934_v0  ;;  %v3518_v11 = vld [vmem:[#allocation12 + $0x20] sm:$0xff]  }
 0x432   : > { %3323 = vmatprep.subr.msk.bf16.mxu1 %vm1405_vm2, %v1494_v12  ;;  %v1585_v13 = vsel %vm1405_vm2, %v1494_v12, 0  ;;  %v3519_v12 = vld [vmem:[#allocation12 + $0x18] sm:$0xff]  }
 0x433   : > { %3280 = vmatpush3.bf16.xpose.msra.mxu1 %v1585_v13  ;;  %3308 = vmatpush3.bf16.msra.mxu0 %v3517_v10  ;;  %v3520_v13 = vld [vmem:[#allocation12 + $0x10] sm:$0xff]  }
 0x434   : > { %3309 = vmatprep.subr.bf16.mxu0 %v3934_v0 }
 0x437   : > { %3310 = vmatpush3.bf16.msra.mxu0 %v3518_v11 }
 0x438   : > { %1530 = vxpose.xlu1.c.b16.start.end [1/1] (short) (narrow) %v3028_v44, 32  ;;  %3311 = vmatprep.subr.bf16.mxu0 %v3934_v0 }
 0x43b   : > { %3312 = vmatpush3.bf16.msra.mxu0 %v3519_v12 }
 0x43c   : > { %3313 = vmatprep.subr.bf16.mxu0 %v3934_v0 }
 0x43f   : > { %3314 = vmatpush3.bf16.msra.mxu0 %v3520_v13 }
 0x440   : > { %3315 = vmatprep.subr.bf16.mxu0 %v3934_v0 }
 0x457   : > { %v1462_v14 = vpop.xlane.xlu1 %1461 }
 0x458   : > { %3583 = vrcp.f32 %v1462_v14 }
 0x45b   : > { %v1465_v16 = vpop.xlane.xlu0 %1464 }
 0x45c   : > { %3585 = vrcp.f32 %v1465_v16 }
 0x45f   : > { %v1468_v19 = vpop.xlane.xlu1 %1467 }
 0x460   : > { %3587 = vrcp.f32 %v1468_v19 }
 0x463   : > { %v1035_v20 = vpop.permute.xlu1 %1034  ;;  %v1471_v21 = vpop.xlane.xlu0 %1470 }
 0x464   : > { %v3030_v22 = vcombine.low %v1033_v45, %v1035_v20  ;;  %3589 = vrcp.f32 %v1471_v21 }
 0x465   : > { %v3584_v23 = vpop.eup %3583 }
 0x466   : > { %1562 = vxpose.xlu1.c.b16.start.end [1/1] (short) (narrow) %v3030_v22, 32  ;;  %v1488_v25 = vmul.f32 %v3584_v23, %v3568_v30 }
 0x469   : > { %v3586_v24 = vpop.eup %3585 }
 0x46a   : > { %v1489_v26 = vmul.f32 %v3586_v24, %v3570_v50 }
 0x46b   : > { %v1477_v31 = vpop.xlane.xlu0 %1476 }
 0x46c   : > { %v1495_v27 = vpack.c.bf16 %v1489_v26, %v1488_v25  ;;  %3591 = vrcp.f32 %v1477_v31 }
 0x46d   : > { %v3588_v17 = vpop.eup %3587 }
 0x46e   : > { %3324 = vmatprep.subr.msk.bf16.mxu1 %vm1405_vm2, %v1495_v27  ;;  %v1490_v33 = vmul.f32 %v3588_v17, %v3572_v53  ;;  %v1643_v37 = vsel %vm1405_vm2, %v1495_v27, 0 }
 0x471   : > { %v3590_v18 = vpop.eup %3589  ;;  %v1522_v32 = vpop.trf.xlu0 }
 0x472   : > { %3281 = vmatprep.mubr.msk.bf16.mxu1 %vm1405_vm2, %v1522_v32  ;;  %v1491_v34 = vmul.f32 %v3590_v18, %v3574_v55 }
 0x474   : > { %v1496_v35 = vpack.c.bf16 %v1491_v34, %v1490_v33 }
 0x475   : > { %v1523_v36 = vpop.trf.xlu0 }
 0x476   : > { %3282 = vmatmul.mubr.msk.bf16.vlgmr.msra.gmra.mxu1 %vm1405_vm2, %v1523_v36  ;;  %v1701_v43 = vsel %vm1405_vm2, %v1496_v35, 0 }
 0x477   : > { %3286 = vmatpush3.bf16.xpose.msra.mxu1 %v1643_v37 }
 0x478   : > { %3325 = vmatprep.subr.msk.bf16.mxu1 %vm1405_vm2, %v1496_v35 }
 0x479   : > { %v1554_v41 = vpop.trf.xlu0  ;;  %v3592_v46 = vpop.eup %3591 }
 0x47a   : > { %v1493_v48 = vmul.f32 %v3592_v46, %v4371_v57 }
 0x47d   : > { %v1555_v49 = vpop.trf.xlu0 }
 0x494   : > { %v1474_v38 = vpop.xlane.xlu1 %1473 }
 0x495   : > { %3593 = vrcp.f32 %v1474_v38 }
 0x49a   : > { %v1538_v39 = vpop.trf.xlu1 }
 0x49b   : > { %3287 = vmatprep.mubr.msk.bf16.mxu1 %vm1405_vm2, %v1538_v39 }
 0x49e   : > { %v1539_v40 = vpop.trf.xlu1 }
 0x49f   : > { %3288 = vmatmul.mubr.msk.bf16.vlgmr.msra.gmra.mxu1 %vm1405_vm2, %v1539_v40 }
 0x4a0   : > { %3292 = vmatpush3.bf16.xpose.msra.mxu1 %v1701_v43  ;;  %3293 = vmatprep.mubr.msk.bf16.mxu1 %vm1405_vm2, %v1554_v41 }
 0x4a2   : > { %v3594_v30 = vpop.eup %3593 }
 0x4a3   : > { %v1492_v47 = vmul.f32 %v3594_v30, %v4378_v62 }
 0x4a5   : > { %v1497_v50 = vpack.c.bf16 %v1493_v48, %v1492_v47 }
 0x4a7   : > { %3326 = vmatprep.subr.msk.bf16.mxu1 %vm1405_vm2, %v1497_v50  ;;  %3294 = vmatmul.mubr.msk.bf16.vlgmr.msra.gmra.mxu1 %vm1405_vm2, %v1555_v49  ;;  %v1759_v51 = vsel %vm1405_vm2, %v1497_v50, 0 }
 0x4a8   : > { %3298 = vmatpush3.bf16.xpose.msra.mxu1 %v1759_v51 }
 0x4c8   : > { %v1570_v52 = vpop.trf.xlu1 }
 0x4c9   : > { %3299 = vmatprep.mubr.msk.bf16.mxu1 %vm1405_vm2, %v1570_v52 }
 0x4cc   : > { %v1571_v53 = vpop.trf.xlu1 }
 0x4cd   : > { %3300 = vmatmul.mubr.msk.bf16.vlgmr.msra.gmra.mxu1 %vm1405_vm2, %v1571_v53 }
 0x536   : > { %v3283_v54 = vpop.f32.mrf.mxu1 }
 0x538   : > { %v1621_v55 = vpop.f32.mrf.mxu1 }
 0x539   : > { %1810 = vxpose.xlu0.b32.start [1/4] (short) (narrow) %v1621_v55, 16 }
 0x53a   : > { %v3284_v56 = vpop.f32.mrf.mxu1 }
 0x53c   : > { %v1624_v57 = vpop.f32.mrf.mxu1 }
 0x53d   : > { %1811 = vxpose.xlu0.b32.cont [2/4] (short) (narrow) %v1624_v57, 16 }
 0x541   : > { %1812 = vxpose.xlu0.b32.cont [3/4] (short) (narrow) %v3283_v54, 16 }
 0x545   : > { %1813 = vxpose.xlu0.b32.end [4/4] (short) (narrow) %v3284_v56, 16 }
 0x55f   : > { %v3289_v58 = vpop.f32.mrf.mxu1 }
 0x561   : > { %v1679_v59 = vpop.f32.mrf.mxu1 }
 0x562   : > { %1842 = vxpose.xlu1.b32.start [1/4] (short) (narrow) %v1679_v59, 16 }
 0x563   : > { %v3290_v60 = vpop.f32.mrf.mxu1 }
 0x565   : > { %v1682_v61 = vpop.f32.mrf.mxu1 }
 0x566   : > { %1843 = vxpose.xlu1.b32.cont [2/4] (short) (narrow) %v1682_v61, 16 }
 0x567   : > { %v3295_v62 = vpop.f32.mrf.mxu1 }
 0x569   : > { %v1737_v63 = vpop.f32.mrf.mxu1 }
 0x56a   : > { %1844 = vxpose.xlu1.b32.cont [3/4] (short) (narrow) %v3289_v58, 16  ;;  %1874 = vxpose.xlu0.b32.start [1/4] (short) (narrow) %v1737_v63, 16 }
 0x56b   : > { %v3296_v1 = vpop.f32.mrf.mxu1 }
 0x56d   : > { %v1740_v2 = vpop.f32.mrf.mxu1 }
 0x56e   : > { %1845 = vxpose.xlu1.b32.end [4/4] (short) (narrow) %v3290_v60, 16  ;;  %1875 = vxpose.xlu0.b32.cont [2/4] (short) (narrow) %v1740_v2, 16 }
 0x572   : > { %1876 = vxpose.xlu0.b32.cont [3/4] (short) (narrow) %v3295_v62, 16 }
 0x576   : > { %1877 = vxpose.xlu0.b32.end [4/4] (short) (narrow) %v3296_v1, 16 }
 0x58d   : > { %v3301_v3 = vpop.f32.mrf.mxu1 }
 0x58f   : > { %v1795_v4 = vpop.f32.mrf.mxu1 }
 0x590   : > { %1906 = vxpose.xlu1.b32.start [1/4] (short) (narrow) %v1795_v4, 16 }
 0x591   : > { %v3302_v5 = vpop.f32.mrf.mxu1 }
 0x593   : > { %v1798_v6 = vpop.f32.mrf.mxu1 }
 0x594   : > { %1907 = vxpose.xlu1.b32.cont [2/4] (short) (narrow) %v1798_v6, 16 }
 0x598   : > { %1908 = vxpose.xlu1.b32.cont [3/4] (short) (narrow) %v3301_v3, 16 }
 0x59c   : > { %1909 = vxpose.xlu1.b32.end [4/4] (short) (narrow) %v3302_v5, 16 }
 0x5b5   : > { %v1826_v44 = vpop.trf.xlu0 }
 0x5b9   : > { %v1827_v14 = vpop.trf.xlu0 }
 0x5de   : > { %v1858_v45 = vpop.trf.xlu1 }
 0x5e2   : > { %v1859_v16 = vpop.trf.xlu1 }
 0x5e6   : > { %v1890_v19 = vpop.trf.xlu0 }
 0x5e7   : > { %v1938_v20 = vcombine.low %v1826_v44, %v1890_v19  ;;  %v1939_v21 = vcombine.high %v1826_v44, %v1890_v19  ;;  %v3521_v44 = vld [vmem:[#allocation12 + $0x8] sm:$0xff]  }
 0x5e8   : > { %3316 = vmatpush3.bf16.msra.mxu0 %v3521_v44 }
 0x5e9   : > { %v1946_v26 = vrot.slane %v1938_v20, %v4276_v8  ;;  %v1953_v27 = vrot.slane %v1939_v21, %v4276_v8  ;;  %3317 = vmatprep.subr.bf16.mxu0 %v3934_v0 }
 0x5ea   : > { %v1891_v23 = vpop.trf.xlu0 }
 0x5eb   : > { %v2006_v18 = vcombine.low %v1827_v14, %v1891_v23  ;;  %v2007_v32 = vcombine.high %v1827_v14, %v1891_v23 }
 0x5ed   : > { %v2014_v30 = vrot.slane %v2006_v18, %v4276_v8  ;;  %v2021_v47 = vrot.slane %v2007_v32, %v4276_v8 }
 0x60c   : > { %v1922_v22 = vpop.trf.xlu1 }
 0x60d   : > { %v1954_v24 = vcombine.low %v1858_v45, %v1922_v22  ;;  %v1955_v25 = vcombine.high %v1858_v45, %v1922_v22 }
 0x60f   : > { %v1962_v31 = vrot.slane %v1954_v24, %v4276_v8  ;;  %v1969_v17 = vrot.slane %v1955_v25, %v4276_v8 }
 0x610   : > { %v1923_v33 = vpop.trf.xlu1 }
 0x611   : > { %v1970_v34 = vcombine.low %v1946_v26, %v1962_v31  ;;  %v1971_v35 = vcombine.high %v1946_v26, %v1962_v31  ;;  %v1986_v36 = vcombine.low %v1953_v27, %v1969_v17  ;;  %v1987_v37 = vcombine.high %v1953_v27, %v1969_v17  ;;  %v3522_v27 = vld [vmem:[#allocation12] sm:$0xff]  }
 0x612   : > { %v2022_v38 = vcombine.low %v1859_v16, %v1923_v33  ;;  %v2023_v39 = vcombine.high %v1859_v16, %v1923_v33  ;;  %3318 = vmatpush3.bf16.msra.mxu0 %v3522_v27  ;;  %v3941_v27 = vmov 0  }
 0x613   : > { %v1978_v40 = vrot.slane %v1970_v34, %v4279_v15  ;;  %v1985_v41 = vrot.slane %v1971_v35, %v4279_v15  ;;  %v1994_v43 = vrot.slane %v1986_v36, %v4279_v15  ;;  %v2001_v46 = vrot.slane %v1987_v37, %v4279_v15  ;;  %2530 = vmatprep.mubr.bf16.mxu1 %v3941_v27 }
 0x614   : > { %v2030_v48 = vrot.slane %v2022_v38, %v4276_v8  ;;  %v2037_v49 = vrot.slane %v2023_v39, %v4276_v8 }
 0x615   : > { %v2074_v50 = vcombine.low %v1978_v40, %v1985_v41  ;;  %v3039_v51 = vcombine.high %v1978_v40, %v1985_v41  ;;  %v2090_v52 = vcombine.low %v1994_v43, %v2001_v46  ;;  %v3040_v53 = vcombine.high %v1994_v43, %v2001_v46 }
 0x616   : > { %v2038_v54 = vcombine.low %v2014_v30, %v2030_v48  ;;  %v2039_v55 = vcombine.high %v2014_v30, %v2030_v48  ;;  %v2054_v56 = vcombine.low %v2021_v47, %v2037_v49  ;;  %v2055_v57 = vcombine.high %v2021_v47, %v2037_v49 }
 0x617   : > { %v2081_v58 = vrot.slane %v2074_v50, %v4276_v8  ;;  %v2089_v59 = vrot.slane %v3039_v51, %v4276_v8  ;;  %v2097_v60 = vrot.slane %v2090_v52, %v4276_v8  ;;  %v2105_v61 = vrot.slane %v3040_v53, %v4276_v8 }
 0x618   : > { %v2046_v62 = vrot.slane %v2038_v54, %v4279_v15  ;;  %v2053_v63 = vrot.slane %v2039_v55, %v4279_v15  ;;  %v2062_v1 = vrot.slane %v2054_v56, %v4279_v15  ;;  %v2069_v2 = vrot.slane %v2055_v57, %v4279_v15 }
 0x619   : > { %v2107_v3 = vcombine.high %v2081_v58, %v2089_v59  ;;  %v2123_v4 = vcombine.high %v2097_v60, %v2105_v61  ;;  %v2106_v5 = vcombine.low %v2081_v58, %v2089_v59  ;;  %v2122_v6 = vcombine.low %v2097_v60, %v2105_v61  ;;  %v4449_v59 = vld [vmem:[#allocation16] sm:$0xff] }
 0x61a   : > { %v2142_v7 = vcombine.low %v2046_v62, %v2053_v63  ;;  %v3041_v9 = vcombine.high %v2046_v62, %v2053_v63  ;;  %v2158_v10 = vcombine.low %v2062_v1, %v2069_v2  ;;  %v3042_v11 = vcombine.high %v2062_v1, %v2069_v2  ;;  %v3612_v1 = vld [vmem:[%s4186_s6] sm:$0xff] }
 0x61b   : > { %v2114_v12 = vrot.slane %v2106_v5, %v4279_v15  ;;  %v2130_v13 = vrot.slane %v2122_v6, %v4279_v15  ;;  %v2121_v20 = vrot.slane %v2107_v3, %v4279_v15  ;;  %v2137_v21 = vrot.slane %v2123_v4, %v4279_v15  ;;  %v3613_v6 = vld [vmem:[%s4186_s6 + $0x8] sm:$0xff] }
 0x61c   : > { %v2149_v45 = vrot.slane %v2142_v7, %v4276_v8  ;;  %v2157_v14 = vrot.slane %v3041_v9, %v4276_v8  ;;  %v2165_v16 = vrot.slane %v2158_v10, %v4276_v8  ;;  %v2173_v19 = vrot.slane %v3042_v11, %v4276_v8  ;;  %v3523_v9 = vld [vmem:[#allocation13 + $0x70] ss:$8 sps:$4 sm:$0xff]   ;;  %v3525_v10 = vld [vmem:[#allocation13 + $0x74] ss:$8 sps:$4 sm:$0xff]  }
 0x61d   : > { %v2138_v22 = vcombine.low %v2114_v12, %v2130_v13  ;;  %v2140_v32 = vcombine.low %v2121_v20, %v2137_v21  ;;  %v2139_v34 = vcombine.high %v2114_v12, %v2130_v13  ;;  %v2141_v0 = vcombine.high %v2121_v20, %v2137_v21  ;;  %2498 = vmatprep.subr.bf16.mxu1 %v3525_v10  ;;  %v3528_v20 = vld [vmem:[#allocation13 + $0x64] ss:$8 sps:$4 sm:$0xff]   ;;  %v3526_v21 = vld [vmem:[#allocation13 + $0x60] ss:$8 sps:$4 sm:$0xff]  }
 0x61e   : > { %v2175_v23 = vcombine.high %v2149_v45, %v2157_v14  ;;  %v2191_v24 = vcombine.high %v2165_v16, %v2173_v19  ;;  %v2174_v25 = vcombine.low %v2149_v45, %v2157_v14  ;;  %v2190_v26 = vcombine.low %v2165_v16, %v2173_v19  ;;  %2499 = vmatpush1.bf16.msra.mxu1 %v3523_v9  ;;  %v2406_v9 = vld [vmem:[%s4541_s8] sm:$0x3] }
 0x61f   : > { %v2261_v58 = vsub.s32 3, %v4247_v28  ;;  %2500 = vmatprep.subr.bf16.mxu1 %v3528_v20  ;;  %v2411_v10 = vrot.slane %v2406_v9, %v739_v42 }
 0x620   : > { %v2189_v31 = vrot.slane %v2175_v23, %v4279_v15  ;;  %v2205_v17 = vrot.slane %v2191_v24, %v4279_v15  ;;  %v2182_v18 = vrot.slane %v2174_v25, %v4279_v15  ;;  %v2198_v8 = vrot.slane %v2190_v26, %v4279_v15  ;;  %v3529_v23 = vld [vmem:[#allocation13 + $0x50] ss:$8 sps:$4 sm:$0xff]   ;;  %v3534_v24 = vld [vmem:[#allocation13 + $0x44] ss:$8 sps:$4 sm:$0xff]   ;;  %v3532_v25 = vld [vmem:[#allocation13 + $0x40] ss:$8 sps:$4 sm:$0xff]  }
 0x621   : > { %v2262_v60 = vrot.slane %v4449_v59, %v2261_v58  ;;  %v3537_v26 = vld [vmem:[#allocation13 + $0x34] ss:$8 sps:$4 sm:$0xff]   ;;  %v3551_v58 = vld [vmem:[#allocation15 + $0x68] sm:$0xff]  }
 0x622   : > { %v2208_v33 = vcombine.low %v2189_v31, %v2205_v17  ;;  %v2207_v35 = vcombine.high %v2182_v18, %v2198_v8  ;;  %v2206_v36 = vcombine.low %v2182_v18, %v2198_v8  ;;  %v2209_v39 = vcombine.high %v2189_v31, %v2205_v17  ;;  %2501 = vmatpush1.bf16.msra.mxu1 %v3526_v21  ;;  %v3535_v31 = vld [vmem:[#allocation13 + $0x30] ss:$8 sps:$4 sm:$0xff]   ;;  %v3540_v17 = vld [vmem:[#allocation13 + $0x24] ss:$8 sps:$4 sm:$0xff]   ;;  %v3538_v18 = vld [vmem:[#allocation13 + $0x20] ss:$8 sps:$4 sm:$0xff]  }
 0x623   : > { %v3543_v8 = vld [vmem:[#allocation13 + $0x14] ss:$8 sps:$4 sm:$0xff]  }
 0x624   : > { %v3479_v37 = vpack.i.bf16 %v2208_v33, %v2140_v32  ;;  %v3474_v38 = vpack.i.bf16 %v2207_v35, %v2139_v34  ;;  %v3484_v40 = vpack.i.bf16 %v2209_v39, %v2141_v0  ;;  %v3541_v32 = vld [vmem:[#allocation13 + $0x10] ss:$8 sps:$4 sm:$0xff]   ;;  %v3546_v33 = vld [vmem:[#allocation13 + $0x4] ss:$8 sps:$4 sm:$0xff]   ;;  %v3544_v34 = vld [vmem:[#allocation13] ss:$8 sps:$4 sm:$0xff]  }
 0x626   : > { %3480 = vrot.lane.b32.xlu1 %v3479_v37, %s3936_s5  ;;  %3475 = vrot.lane.b32.xlu0 %v3474_v38, %s3938_s16 }
 0x62a   : > { %3485 = vrot.lane.b32.xlu1 %v3484_v40, %s3937_s7  ;;  %v2379_v40 = vsub.s32 5, %v4247_v28 }
 0x698   : > { %v3481_v41 = vpop.permute.xlu1 %3480  ;;  %v3476_v43 = vpop.permute.xlu0 %3475 }
 0x699   : > { %v3478_v15 = vunpack.i.h.bf16 %v3476_v43  ;;  %v3477_v46 = vunpack.i.l.bf16 %v3476_v43  ;;  %v3483_v30 = vunpack.i.h.bf16 %v3481_v41  ;;  %v3482_v47 = vunpack.i.l.bf16 %v3481_v41 }
 0x69b   : > { %v2234_v48 = vsel %vm1228_vm1, %v2138_v22, %v3477_v46  ;;  %v2235_v49 = vsel %vm1228_vm1, %v2206_v36, %v3478_v15  ;;  %v3531_v22 = vld [vmem:[#allocation13 + $0x54] ss:$8 sps:$4 sm:$0xff]   ;;  %v2380_v15 = vrot.slane %v4449_v59, %v2379_v40  ;;  %v2385_v46 = vsub.s32 6, %v4247_v28 }
 0x69c   : > { %v3486_v50 = vpop.permute.xlu1 %3485  ;;  %v2237_v53 = vsel %vm2236_vm3, %v2234_v48, %v3482_v47  ;;  %v2238_v54 = vsel %vm2236_vm3, %v2235_v49, %v3483_v30  ;;  %2502 = vmatprep.subr.bf16.mxu1 %v3531_v22 }
 0x69d   : > { %v3488_v51 = vunpack.i.h.bf16 %v3486_v50  ;;  %v3487_v52 = vunpack.i.l.bf16 %v3486_v50  ;;  %2503 = vmatpush1.bf16.msra.mxu1 %v3529_v23  ;;  %v2386_v49 = vrot.slane %v4449_v59, %v2385_v46 }
 0x69e   : > { %2504 = vmatprep.subr.bf16.mxu1 %v3534_v24 }
 0x69f   : > { %v2240_v55 = vsel %vm2239_vm4, %v2237_v53, %v3487_v52  ;;  %v2241_v56 = vsel %vm2239_vm4, %v2238_v54, %v3488_v51  ;;  %v3547_v54 = vld [vmem:[#allocation15 + $0x78] sm:$0xff]  }
 0x6a0   : > { %v2242_v57 = vpack.c.bf16 %v2241_v56, %v2240_v55  ;;  %v3548_v55 = vld [vmem:[#allocation15 + $0x38] sm:$0xff]   ;;  %3165 = vmatprep.subr.bf16.mxu0 %v3547_v54  ;;  %v3549_v56 = vld [vmem:[#allocation15 + $0x70] sm:$0xff]  }
 0x6a1   : > { %2505 = vmatpush1.bf16.msra.mxu1 %v3532_v25 }
 0x6a2   : > { %3320 = vmatmul.mubr.bf16.vlgmr.msra.gmra.mxu0 %v2242_v57  ;;  %2506 = vmatprep.subr.bf16.mxu1 %v3537_v26  ;;  %v3550_v57 = vld [vmem:[#allocation15 + $0x30] sm:$0xff]  }
 0x6a3   : > { %3166 = vmatpush3.bf16.msra.mxu0 %v3548_v55 }
 0x6a4   : > { %3167 = vmatprep.subr.bf16.mxu0 %v3549_v56 }
 0x6a5   : > { %2507 = vmatpush1.bf16.msra.mxu1 %v3535_v31 }
 0x6a6   : > { %2508 = vmatprep.subr.bf16.mxu1 %v3540_v17 }
 0x6a7   : > { %3168 = vmatpush3.bf16.msra.mxu0 %v3550_v57 }
 0x6a8   : > { %3169 = vmatprep.subr.bf16.mxu0 %v3551_v58 }
 0x6a9   : > { %2509 = vmatpush1.bf16.msra.mxu1 %v3538_v18 }
 0x6aa   : > { %2510 = vmatprep.subr.bf16.mxu1 %v3543_v8 }
 0x6ad   : > { %2511 = vmatpush1.bf16.msra.mxu1 %v3541_v32 }
 0x6ae   : > { %2512 = vmatprep.subr.bf16.mxu1 %v3546_v33 }
 0x6b1   : > { %2513 = vmatpush1.bf16.msra.mxu1 %v3544_v34 }
 0x762   : > { %v2345_v61 = vpop.f32.mrf.mxu0 }
 0x763   : > { %v2346_v62 = vadd.f32 %v2345_v61, %v2262_v60  ;;  %v3553_v61 = vld [vmem:[#allocation15 + $0x60] sm:$0xff]  }
 0x764   : > { %v3321_v63 = vpop.f32.mrf.mxu0 }
 0x765   : > { %v2352_v2 = vadd.f32 %v3612_v1, %v2346_v62  ;;  %v3554_v62 = vld [vmem:[#allocation15 + $0x20] sm:$0xff]   ;;  %v3555_v63 = vld [vmem:[#allocation15 + $0x58] sm:$0xff]  }
 0x766   : > { %v2348_v3 = vpop.f32.mrf.mxu0  ;;  %v3556_v1 = vld [vmem:[#allocation15 + $0x18] sm:$0xff]  }
 0x767   : > { %v2349_v4 = vadd.f32 %v2348_v3, %v2262_v60  ;;  %2354 = vadd.xlane.f32.xlu0 %v2352_v2  ;;  %v3552_v60 = vld [vmem:[#allocation15 + $0x28] sm:$0xff]   ;;  %v3558_v3 = vld [vmem:[#allocation15 + $0x10] sm:$0xff]  }
 0x768   : > { %v3322_v5 = vpop.f32.mrf.mxu0  ;;  %3170 = vmatpush3.bf16.msra.mxu0 %v3552_v60  ;;  %v2613_v60 = vsub.s32 4, %v4247_v28 }
 0x769   : > { %v2353_v7 = vadd.f32 %v3613_v6, %v2349_v4  ;;  %3171 = vmatprep.subr.bf16.mxu0 %v3553_v61  ;;  %v3559_v4 = vld [vmem:[#allocation15 + $0x48] sm:$0xff]   ;;  %v3561_v6 = vld [vmem:[#allocation15 + $0x40] sm:$0xff]  }
 0x76a   : > { %v3560_v5 = vld [vmem:[#allocation15 + $0x8] sm:$0xff]  }
 0x76b   : > { %2356 = vadd.xlane.f32.xlu1 %v2353_v7 }
 0x76c   : > { %3172 = vmatpush3.bf16.msra.mxu0 %v3554_v62  ;;  %v2614_v62 = vrot.slane %v4449_v59, %v2613_v60 }
 0x76d   : > { %3173 = vmatprep.subr.bf16.mxu0 %v3555_v63 }
 0x770   : > { %3174 = vmatpush3.bf16.msra.mxu0 %v3556_v1 }
 0x7f0   : > { %v2355_v11 = vpop.xlane.xlu0 %2354 }
 0x7f1   : > { %v2359_v12 = vmul.f32 0.0078125, %v2355_v11  ;;  %v2415_v11 = vrot.slane %v2406_v9, %v496_v29 }
 0x7f3   : > { %v2361_v13 = vsub.f32 %v2352_v2, %v2359_v12  ;;  %v3557_v2 = vld [vmem:[#allocation15 + $0x50] sm:$0xff]  }
 0x7f4   : > { %v2357_v44 = vpop.xlane.xlu1 %2356  ;;  %3175 = vmatprep.subr.bf16.mxu0 %v3557_v2 }
 0x7f5   : > { %v2360_v45 = vmul.f32 0.0078125, %v2357_v44  ;;  %v2363_v14 = vmul.f32 %v2361_v13, %v2361_v13  ;;  %3176 = vmatpush3.bf16.msra.mxu0 %v3558_v3 }
 0x7f6   : > { %3177 = vmatprep.subr.bf16.mxu0 %v3559_v4 }
 0x7f7   : > { %v2362_v16 = vsub.f32 %v2353_v7, %v2360_v45  ;;  %2365 = vadd.xlane.f32.xlu0 %v2363_v14  ;;  %v3562_v7 = vld [vmem:[#allocation15] sm:$0xff]  }
 0x7f9   : > { %v2364_v19 = vmul.f32 %v2362_v16, %v2362_v16  ;;  %3178 = vmatpush3.bf16.msra.mxu0 %v3560_v5 }
 0x7fa   : > { %3179 = vmatprep.subr.bf16.mxu0 %v3561_v6 }
 0x7fb   : > { %2367 = vadd.xlane.f32.xlu0 %v2364_v19 }
 0x7fd   : > { %3180 = vmatpush3.bf16.msra.mxu0 %v3562_v7 }
 0x880   : > { %v2366_v35 = vpop.xlane.xlu0 %2365 }
 0x881   : > { %v2369_v36 = vmul.f32 0.0078125, %v2366_v35 }
 0x883   : > { %v2371_v37 = vadd.f32 1e-05, %v2369_v36 }
 0x884   : > { %v2368_v38 = vpop.xlane.xlu0 %2367 }
 0x885   : > { %3595 = vrsqrt.f32 %v2371_v37  ;;  %v2370_v39 = vmul.f32 0.0078125, %v2368_v38 }
 0x887   : > { %v2372_v0 = vadd.f32 1e-05, %v2370_v39 }
 0x889   : > { %3597 = vrsqrt.f32 %v2372_v0 }
 0x892   : > { %v3596_v41 = vpop.eup %3595 }
 0x893   : > { %v2375_v43 = vmul.f32 %v3596_v41, %v2361_v13 }
 0x895   : > { %v2381_v48 = vmul.f32 %v2380_v15, %v2375_v43 }
 0x896   : > { %v3598_v30 = vpop.eup %3597 }
 0x897   : > { %v2376_v47 = vmul.f32 %v3598_v30, %v2362_v16  ;;  %v4458_v51 = vadd.f32 %v2386_v49, %v2381_v48 }
 0x899   : > { %v2382_v50 = vmul.f32 %v2380_v15, %v2376_v47 }
 0x89b   : > { %v4460_v52 = vadd.f32 %v2386_v49, %v2382_v50 }
 0x89d   : > { %v2389_v53 = vpack.c.bf16 %v4460_v52, %v4458_v51 }
 0x89f   : > { %2531 = vmatmul.mubr.bf16.vlgmr.msra.gmra.mxu1 %v2389_v53 }
 0x95f   : > { %v2532_v12 = vpop.f32.mrf.mxu1 }
 0x960   : > { %v2533_v13 = vadd.f32 %v2532_v12, %v2411_v10 }
 0x961   : > { %v2534_v44 = vpop.f32.mrf.mxu1 }
 0x962   : > { %v2541_v45 = vmul.f32 %v2533_v13, %v2533_v13  ;;  %v2535_v14 = vadd.f32 %v2534_v44, %v2415_v11 }
 0x963   : > { %v2536_v16 = vpop.f32.mrf.mxu1 }
 0x964   : > { %v2545_v19 = vmul.f32 %v2541_v45, %v2533_v13  ;;  %v2542_v20 = vmul.f32 %v2535_v14, %v2535_v14  ;;  %v2537_v21 = vadd.f32 %v2536_v16, %v2411_v10 }
 0x965   : > { %v2538_v22 = vpop.f32.mrf.mxu1 }
 0x966   : > { %v2549_v23 = vmul.f32 0.044715, %v2545_v19  ;;  %v2546_v24 = vmul.f32 %v2542_v20, %v2535_v14  ;;  %v2543_v25 = vmul.f32 %v2537_v21, %v2537_v21  ;;  %v2539_v26 = vadd.f32 %v2538_v22, %v2415_v11 }
 0x968   : > { %v2553_v27 = vadd.f32 %v2549_v23, %v2533_v13  ;;  %v2550_v31 = vmul.f32 0.044715, %v2546_v24  ;;  %v2547_v42 = vmul.f32 %v2543_v25, %v2537_v21  ;;  %v2544_v17 = vmul.f32 %v2539_v26, %v2539_v26 }
 0x969   : > { %v2778_v23 = vsub.s32 7, %v4247_v28 }
 0x96a   : > { %v2557_v18 = vmul.f32 0.7978846, %v2553_v27  ;;  %v2554_v29 = vadd.f32 %v2550_v31, %v2535_v14  ;;  %v2551_v8 = vmul.f32 0.044715, %v2547_v42  ;;  %v2548_v32 = vmul.f32 %v2544_v17, %v2539_v26  ;;  %v3083_v27 = vld [vmem:[#allocation16 + $0x8] ss:$0 sm:$0xff] }
 0x96b   : > { %v2779_v24 = vrot.slane %v4449_v59, %v2778_v23 }
 0x96c   : > { %v2558_v33 = vmul.f32 0.7978846, %v2554_v29  ;;  %v2555_v34 = vadd.f32 %v2551_v8, %v2537_v21  ;;  %v2552_v35 = vmul.f32 0.044715, %v2548_v32  ;;  %3599 = vtanh.f32 %v2557_v18 }
 0x96e   : > { %3601 = vtanh.f32 %v2558_v33  ;;  %v2559_v36 = vmul.f32 0.7978846, %v2555_v34  ;;  %v2556_v37 = vadd.f32 %v2552_v35, %v2539_v26 }
 0x970   : > { %3603 = vtanh.f32 %v2559_v36  ;;  %v2560_v38 = vmul.f32 0.7978846, %v2556_v37 }
 0x972   : > { %3605 = vtanh.f32 %v2560_v38 }
 0x979   : > { %v3600_v39 = vpop.eup %3599 }
 0x97a   : > { %v2565_v43 = vadd.f32 1.0, %v3600_v39 }
 0x97b   : > { %v3602_v0 = vpop.eup %3601 }
 0x97c   : > { %v2566_v40 = vadd.f32 1.0, %v3602_v0  ;;  %v2569_v49 = vmul.f32 0.5, %v2565_v43 }
 0x97d   : > { %v3604_v41 = vpop.eup %3603 }
 0x97e   : > { %v2567_v15 = vadd.f32 1.0, %v3604_v41  ;;  %v2570_v48 = vmul.f32 0.5, %v2566_v40  ;;  %v2573_v56 = vmul.f32 %v2569_v49, %v2533_v13 }
 0x97f   : > { %v3606_v46 = vpop.eup %3605 }
 0x980   : > { %v2571_v30 = vmul.f32 0.5, %v2567_v15  ;;  %v2568_v47 = vadd.f32 1.0, %v3606_v46  ;;  %v2574_v54 = vmul.f32 %v2570_v48, %v2535_v14 }
 0x982   : > { %v2572_v50 = vmul.f32 0.5, %v2568_v47  ;;  %v2575_v53 = vmul.f32 %v2571_v30, %v2537_v21 }
 0x984   : > { %v2576_v55 = vmul.f32 %v2572_v50, %v2539_v26  ;;  %v2577_v58 = vpack.c.bf16 %v2575_v53, %v2573_v56 }
 0x986   : > { %v2578_v57 = vpack.c.bf16 %v2576_v55, %v2574_v54 }
 0x988   : > { %2743 = vmatprep.mubr.bf16.mxu0 %v2578_v57 }
 0x989   : > { %2744 = vmatmul.mubr.bf16.vlgmr.msra.gmra.mxu0 %v2577_v58 }
 0xa49   : > { %v3181_v61 = vpop.f32.mrf.mxu0 }
 0xa4b   : > { %v3182_v63 = vpop.f32.mrf.mxu0 }
 0xa4c   : > { %v3183_v1 = vadd.f32 %v3182_v63, %v3181_v61 }
 0xa4d   : > { %v3184_v2 = vpop.f32.mrf.mxu0 }
 0xa4e   : > { %v2746_v3 = vadd.f32 %v3183_v1, %v2614_v62 }
 0xa4f   : > { %v3185_v4 = vpop.f32.mrf.mxu0 }
 0xa50   : > { %v3186_v5 = vadd.f32 %v3185_v4, %v3184_v2  ;;  %v2752_v6 = vadd.f32 %v2746_v3, %v4458_v51 }
 0xa52   : > { %v2749_v7 = vadd.f32 %v3186_v5, %v2614_v62  ;;  %2754 = vadd.xlane.f32.xlu1 %v2752_v6 }
 0xa54   : > { %v2753_v9 = vadd.f32 %v2749_v7, %v4460_v52 }
 0xa56   : > { %2756 = vadd.xlane.f32.xlu0 %v2753_v9 }
 0xadb   : > { %v2755_v10 = vpop.xlane.xlu1 %2754 }
 0xadc   : > { %v2758_v11 = vmul.f32 0.0078125, %v2755_v10 }
 0xade   : > { %v2760_v12 = vsub.f32 %v2752_v6, %v2758_v11 }
 0xadf   : > { %v2757_v13 = vpop.xlane.xlu0 %2756 }
 0xae0   : > { %v2759_v44 = vmul.f32 0.0078125, %v2757_v13  ;;  %v2762_v45 = vmul.f32 %v2760_v12, %v2760_v12 }
 0xae2   : > { %v2761_v14 = vsub.f32 %v2753_v9, %v2759_v44  ;;  %2764 = vadd.xlane.f32.xlu1 %v2762_v45 }
 0xae4   : > { %v2763_v16 = vmul.f32 %v2761_v14, %v2761_v14 }
 0xae6   : > { %2766 = vadd.xlane.f32.xlu0 %v2763_v16 }
 0xb6b   : > { %v2765_v19 = vpop.xlane.xlu1 %2764 }
 0xb6c   : > { %v2768_v20 = vmul.f32 0.0078125, %v2765_v19 }
 0xb6e   : > { %v2770_v21 = vadd.f32 1e-05, %v2768_v20 }
 0xb6f   : > { %v2767_v51 = vpop.xlane.xlu0 %2766 }
 0xb70   : > { %3607 = vrsqrt.f32 %v2770_v21  ;;  %v2769_v22 = vmul.f32 0.0078125, %v2767_v51 }
 0xb72   : > { %v2771_v52 = vadd.f32 1e-05, %v2769_v22 }
 0xb74   : > { %3609 = vrsqrt.f32 %v2771_v52 }
 0xb7d   : > { %v3608_v25 = vpop.eup %3607 }
 0xb7e   : > { %v2774_v26 = vmul.f32 %v3608_v25, %v2760_v12 }
 0xb80   : > { %v2780_v31 = vmul.f32 %v2779_v24, %v2774_v26 }
 0xb81   : > { %v3610_v42 = vpop.eup %3609 }
 0xb82   : > { %v2786_v17 = vadd.f32 %v3083_v27, %v2780_v31  ;;  %v2775_v18 = vmul.f32 %v3610_v42, %v2761_v14 }
 0xb84   : > { %v2781_v29 = vmul.f32 %v2779_v24, %v2775_v18  ;;  %2788 = vst [vmem:[%s466_s25] sm:$0xff] %v2786_v17 }
 0xb86   : > { %v2787_v28 = vadd.f32 %v3083_v27, %v2781_v29 }
 0xb88   : > { %2789 = vst [vmem:[%s466_s25 + $0x8] sm:$0xff] %v2787_v28 }
 0xb89   : > { %3837 = shalt.err (!%p3834_p7)
}
 0xb8a   : > { %s3838_s3 = scalar_lea.hbm %s4483_s19, 256  ;;  %s3842_s5 = scalar_lea.hbm %s4542_s9, 512 }
 0xb8b   : > { %p3839_p12 = scmp.ne.s32.totalorder %s4483_s19, %s3838_s3  ;;  %p3843_p4 = scmp.lt.s32.totalorder %s4483_s19, %s4542_s9 }
 0xb8c   : > { %p3844_p9 = scmp.lt.s32.totalorder %s3842_s5, %s3838_s3 }
 0xb8d   : > { %p3840_p0 = pnand %p3839_p12, %p4580_p3 }
 0xb8e   : > { %p3845_p10 = por %p3844_p9, %p3843_p4 }
 0xb8f   : > { %p3841_p13 = pneg %p3840_p0 }
 0xb91   : > { %p3846_p1 = pnand %p3845_p10, %p3841_p13 }
 0xb93   : > { %3849 = shalt.err (!%p3846_p1)
}
 0xb94   : > { %s3943_s17 = smov 128   ;;  %s3944_s18 = smov 8  }
 0xb95   : > { %3357 = dma.vmem_to_hbm [thread:$0]  (%p4580_p3), %s4485_s22, 256, %s4483_s19, %s2791_s24, %s3943_s17, %s3943_s17, %s3944_s18  }
 0xb96 PF: > { %s2821_s23 = sand.u32 1, %s3900_s30   ;;  %p4581_p5 = scmp.ne.s32.totalorder %s4578_s26, 0 }
 0xb97   : > { %p4582_p2 = scmp.ge.s32.totalorder %s3920_s14, 2  ;;  %s2822_s25 = scalar_lea.sflag [#allocation6], %s2821_s23 }
 0xb99   : > { %p3386_p6 = pnand %p4582_p2, %p4581_p5 }
 0xb9b   : > { %p3387_p8 = pneg %p3386_p6 }
 0xb9d   : > { %3895 = dma.done.wait (%p3387_p8), %s2822_s25, 256  }
 0xb9e   : > { %3897 = vsyncadd (%p3387_p8), %s2822_s25, 4294967040  ;;  %s29_s14 = sadd.s32 1, %s3920_s14   ;;  %s4583_s15 = sld [smem:[#allocation25_spill]] }
 0xb9f   : > { %p26_p11 = scmp.ge.s32.totalorder %s29_s14, 4   ;;  %s4584_s30 = smov %s3904_s10 }
 0xba0   : > { %s4585_s10 = smov %s3908_s11  ;;  %s4586_s11 = smov %s4153_s27 }
 0xba1   : > { %s4587_s12 = smov %s3916_s13  ;;  %28 = sbr.rel (!%p26_p11) target bundleno = 18 (0x12), region = 134 }
 0xba4   : > { %s4588_s13 = smov %s4583_s15 }
 0xba6   :  { %2827 = vsyncpa [#allocation5], 1 }
 0xba7   :  { %2829 = vsyncpa [#allocation5 + $0x1], 1 }
 0xba8   :  { %2830 = vsyncpa [#allocation8], 1 }
 0xba9   :  { %2831 = vsyncpa [#allocation11], 1 }
 0xbaa   :  { %2832 = vsyncpa [#allocation14], 1 }
 0xbab   :  { %2833 = vsyncpa [#allocation17], 1 }
 0xbac   :  { %2834 = vsyncpa [#allocation6], 1 }
 0xbad   :  { %2836 = vsyncpa [#allocation6 + $0x1], 1 }

// kernel: tpu_custom_call.1
= control target key start
LH: loop header
LB: loop body
LE: loop exit
PB: predicated region body
PF: predicated region fallthrough
CT: control target
= control target key end

     0   :  { %s3751_s0 = inlined_call_operand.hbm [shape: f32[2,16,128], index: 0, kind: input, shape index: {}]   ;;  %s3752_s1 = inlined_call_operand.hbm [shape: bf16[128,128], index: 1, kind: input, shape index: {}]   ;;  %s3753_s2 = inlined_call_operand.hbm [shape: bf16[128,128], index: 2, kind: input, shape index: {}]   ;;  %s3754_s3 = inlined_call_operand.hbm [shape: bf16[128,128], index: 3, kind: input, shape index: {}]   ;;  %s3755_s4 = inlined_call_operand.hbm [shape: bf16[128,128], index: 4, kind: input, shape index: {}]   ;;  %s3756_s5 = inlined_call_operand.hbm [shape: bf16[128,256], index: 5, kind: input, shape index: {}]   ;;  %s3757_s6 = inlined_call_operand.hbm [shape: bf16[256,128], index: 6, kind: input, shape index: {}]   ;;  %s3758_s7 = inlined_call_operand.hbm [shape: f32[9,128], index: 7, kind: input, shape index: {}]   ;;  %s3759_s8 = inlined_call_operand.vmem [shape: f32[1,256], index: 8, kind: input, shape index: {}]   ;;  %s3760_s9 = inlined_call_operand.hbm [shape: f32[2,16,128], index: 9, kind: output, shape index: {}]  }
   0x1   :  { %3770 = sst [smem:[#allocation26_spill]] %s3752_s1 }
   0x2   :  { %3771 = sst [smem:[#allocation27_spill]] %s3753_s2 }
   0x3   :  { %3772 = sst [smem:[#allocation28_spill]] %s3754_s3 }
   0x4   :  { %3773 = sst [smem:[#allocation29_spill]] %s3755_s4 }
   0x5   :  { %3774 = sst [smem:[#allocation30_spill]] %s3756_s5 }
   0x6   :  { %3775 = sst [smem:[#allocation31_spill]] %s3757_s6 }
   0x7   :  { %3776 = sst [smem:[#allocation32_spill]] %s3758_s7 }
   0x8   :  { %14 = vsyncpa [#allocation5], 0 }
   0x9   :  { %16 = vsyncpa [#allocation5 + $0x1], 0 }
   0xa   :  { %17 = vsyncpa [#allocation8], 0 }
   0xb   :  { %18 = vsyncpa [#allocation11], 0 }
   0xc   :  { %19 = vsyncpa [#allocation14], 0 }
   0xd   :  { %20 = vsyncpa [#allocation17], 0 }
   0xe   :  { %21 = vsyncpa [#allocation6], 0 }
   0xf   :  { %23 = vsyncpa [#allocation6 + $0x1], 0  ;;  %s3283_s30 = smov 0   ;;  %s3285_s10 = smov 0  }
  0x10   :  { %s3287_s11 = smov 0   ;;  %s3289_s12 = smov 0  }
  0x11   :  { %s3291_s13 = smov 0   ;;  %s3293_s14 = smov 0  }
  0x12 LB: > { %s3761_s15 = sadd.s32 4294967295, %s3210_s14   ;;  %p2226_p0 = scmp.ge.s32.totalorder %s3210_s14, 1  ;;  %s3210_s14 = sphi %s3293_s14, %s29_s14   ;;  %s3206_s13 = sphi %s3291_s13, %s3806_s13   ;;  %s3202_s12 = sphi %s3289_s12, %s3805_s12   ;;  %s3198_s11 = sphi %s3287_s11, %s3804_s11   ;;  %s3194_s10 = sphi %s3285_s10, %s3803_s10   ;;  %s3190_s30 = sphi %s3283_s30, %s3802_s30  }
  0x13   : > { %p3317_p1 = scmp.eq.s32.totalorder %s3761_s15, 0  ;;  %p268_p2 = scmp.lt.s32.totalorder %s3210_s14, 3 }
  0x14   : > { %s3212_s18 = smov [#allocation7]   ;;  %s3213_s21 = smov [#allocation10]  }
  0x15   : > { %p3322_p3 = pnand %p2226_p0, %p268_p2  ;;  %s280_s19 = sshll.u32 %s3212_s18, 4  ;;  %s281_s19 = int_to_ptr.vmem [resolvable:$true] %s280_s19 }
  0x16   : > { %s306_s22 = sshll.u32 %s3213_s21, 4  ;;  %s3214_s23 = smov [#allocation13]   ;;  %s307_s22 = int_to_ptr.vmem [resolvable:$true] %s306_s22 }
  0x17   : > { %p2602_p4 = pneg %p3322_p3  ;;  %s332_s24 = sshll.u32 %s3214_s23, 4  ;;  %s333_s24 = int_to_ptr.vmem [resolvable:$true] %s332_s24 }
  0x18   : > { %s2915_s26 = scalar_lea.vmem %s281_s19, 1024  ;;  %p2923_p11 = scmp.lt.s32.totalorder %s281_s19, %s281_s19 }
  0x19   : > { %p3331_p6 = pnand %p2602_p4, %p3317_p1  ;;  %p2916_p8 = scmp.ne.s32.totalorder %s281_s19, %s2915_s26 }
  0x1a   : > { %p2924_p12 = scmp.lt.s32.totalorder %s2915_s26, %s2915_s26 }
  0x1b   : > { %p3337_p7 = pneg %p3331_p6 }
  0x1c   : > { %p2925_p13 = por %p2924_p12, %p2923_p11 }
  0x1d   : > { %p2918_p9 = pnand %p2916_p8, %p3337_p7 }
  0x1f   : > { %p2919_p10 = pneg %p2918_p9 }
  0x21   : > { %p2926_p0 = pnand %p2925_p13, %p2919_p10 }
  0x23   : > { %2929 = shalt.err (!%p2926_p0)
}
  0x24   : > { %s3762_s27 = smov 64   ;;  %s3216_s28 = smov 4  }
  0x25   : > { %s3781_s1 = sld [smem:[#allocation26_spill]]  ;;  %s2941_s21 = scalar_lea.vmem %s307_s22, 1024 }
  0x26   : > { %p2942_p2 = scmp.ne.s32.totalorder %s307_s22, %s2941_s21  ;;  %p2949_p9 = scmp.lt.s32.totalorder %s307_s22, %s307_s22 }
  0x27   : > { %p2950_p10 = scmp.lt.s32.totalorder %s2941_s21, %s2941_s21 }
  0x28   : > { %p2944_p4 = pnand %p2942_p2, %p3337_p7 }
  0x29   : > { %p2951_p11 = por %p2950_p10, %p2949_p9 }
  0x2a   : > { %p2945_p8 = pneg %p2944_p4 }
  0x2b   : > { %2605 = dma.hbm_to_vmem [thread:$0]  (!%p3331_p6), %s3781_s1, 1024, %s281_s19, [#allocation8], %s3762_s27, %s3762_s27, %s3216_s28  }
  0x2c   : > { %p2952_p12 = pnand %p2951_p11, %p2945_p8 }
  0x2e   : > { %2955 = shalt.err (!%p2952_p12)
}
  0x2f   : > { %s3782_s3 = sld [smem:[#allocation28_spill]]  ;;  %s2967_s19 = scalar_lea.vmem %s333_s24, 2048 }
  0x30   : > { %p2968_p13 = scmp.ne.s32.totalorder %s333_s24, %s2967_s19  ;;  %p2975_p4 = scmp.lt.s32.totalorder %s333_s24, %s333_s24 }
  0x31   : > { %p2976_p9 = scmp.lt.s32.totalorder %s2967_s19, %s2967_s19 }
  0x32   : > { %p2970_p0 = pnand %p2968_p13, %p3337_p7 }
  0x33   : > { %p2977_p8 = por %p2976_p9, %p2975_p4 }
  0x34   : > { %p2971_p2 = pneg %p2970_p0 }
  0x35   : > { %2611 = dma.hbm_to_vmem [thread:$0]  (!%p3331_p6), %s3782_s3, 1024, %s307_s22, [#allocation11], %s3762_s27, %s3762_s27, %s3216_s28  }
  0x36   : > { %p2978_p10 = pnand %p2977_p8, %p2971_p2 }
  0x38   : > { %2981 = shalt.err (!%p2978_p10)
}
  0x39   : > { %s3764_s29 = smov 128   ;;  %s3766_s18 = smov 8  }
  0x3a   : > { %s3783_s5 = sld [smem:[#allocation30_spill]]  ;;  %s3219_s23 = smov [#allocation9]  }
  0x3b   : > { %s293_s26 = sshll.u32 %s3219_s23, 4  ;;  %s3220_s15 = smov [#allocation12]   ;;  %s294_s26 = int_to_ptr.vmem [resolvable:$true] %s293_s26 }
  0x3c   : > { %s319_s19 = sshll.u32 %s3220_s15, 4  ;;  %s2993_s27 = scalar_lea.vmem %s294_s26, 1024  ;;  %s320_s19 = int_to_ptr.vmem [resolvable:$true] %s319_s19 }
  0x3d   : > { %p2994_p11 = scmp.ne.s32.totalorder %s294_s26, %s2993_s27  ;;  %p3001_p0 = scmp.lt.s32.totalorder %s294_s26, %s294_s26 }
  0x3e   : > { %p3002_p2 = scmp.lt.s32.totalorder %s2993_s27, %s2993_s27 }
  0x3f   : > { %p2996_p12 = pnand %p2994_p11, %p3337_p7 }
  0x40   : > { %2617 = dma.hbm_to_vmem [thread:$0]  (!%p3331_p6), %s3783_s5, 2048, %s333_s24, [#allocation14], %s3764_s29, %s3764_s29, %s3766_s18  }
  0x41   : > { %p2997_p13 = pneg %p2996_p12  ;;  %p3003_p4 = por %p3002_p2, %p3001_p0 }
  0x43   : > { %p3004_p9 = pnand %p3003_p4, %p2997_p13 }
  0x45   : > { %3007 = shalt.err (!%p3004_p9)
}
  0x46   : > { %s3784_s22 = smov 64   ;;  %s3785_s2 = sld [smem:[#allocation27_spill]] }
  0x47   : > { %s3019_s15 = scalar_lea.vmem %s320_s19, 1024  ;;  %p3027_p12 = scmp.lt.s32.totalorder %s320_s19, %s320_s19 }
  0x48   : > { %p3020_p8 = scmp.ne.s32.totalorder %s320_s19, %s3019_s15  ;;  %p3028_p0 = scmp.lt.s32.totalorder %s3019_s15, %s3019_s15 }
  0x4a   : > { %p3022_p10 = pnand %p3020_p8, %p3337_p7  ;;  %p3029_p13 = por %p3028_p0, %p3027_p12 }
  0x4c   : > { %2608 = dma.hbm_to_vmem [thread:$0]  (!%p3331_p6), %s3785_s2, 1024, %s294_s26, [#allocation8], %s3784_s22, %s3784_s22, %s3216_s28  }
  0x4d   : > { %p3023_p11 = pneg %p3022_p10 }
  0x4f   : > { %p3030_p2 = pnand %p3029_p13, %p3023_p11 }
  0x51   : > { %3033 = shalt.err (!%p3030_p2)
}
  0x52   : > { %s3786_s4 = sld [smem:[#allocation29_spill]]  ;;  %s3221_s26 = smov [#allocation15]  }
  0x53   : > { %s345_s24 = sshll.u32 %s3221_s26, 4  ;;  %s3222_s21 = smov [#allocation16]   ;;  %s346_s24 = int_to_ptr.vmem [resolvable:$true] %s345_s24 }
  0x54   : > { %s358_s29 = sshll.u32 %s3222_s21, 4  ;;  %s3045_s18 = scalar_lea.vmem %s346_s24, 2048  ;;  %s359_s29 = int_to_ptr.vmem [resolvable:$true] %s358_s29 }
  0x55   : > { %p3046_p4 = scmp.ne.s32.totalorder %s346_s24, %s3045_s18  ;;  %p3053_p10 = scmp.lt.s32.totalorder %s346_s24, %s346_s24 }
  0x56   : > { %p3054_p11 = scmp.lt.s32.totalorder %s3045_s18, %s3045_s18 }
  0x57   : > { %p3048_p9 = pnand %p3046_p4, %p3337_p7 }
  0x58   : > { %2614 = dma.hbm_to_vmem [thread:$0]  (!%p3331_p6), %s3786_s4, 1024, %s320_s19, [#allocation11], %s3784_s22, %s3784_s22, %s3216_s28  }
  0x59   : > { %p3049_p8 = pneg %p3048_p9  ;;  %p3055_p12 = por %p3054_p11, %p3053_p10 }
  0x5b   : > { %p3056_p0 = pnand %p3055_p12, %p3049_p8 }
  0x5d   : > { %3059 = shalt.err (!%p3056_p0)
}
  0x5e   : > { %s3787_s6 = sld [smem:[#allocation31_spill]]  ;;  %s3071_s27 = scalar_lea.vmem %s359_s29, 256 }
  0x5f   : > { %p3072_p13 = scmp.ne.s32.totalorder %s359_s29, %s3071_s27  ;;  %p3079_p9 = scmp.lt.s32.totalorder %s359_s29, %s359_s29 }
  0x60   : > { %p3080_p10 = scmp.lt.s32.totalorder %s3071_s27, %s3071_s27 }
  0x61   : > { %p3074_p2 = pnand %p3072_p13, %p3337_p7 }
  0x62   : > { %p3081_p8 = por %p3080_p10, %p3079_p9 }
  0x63   : > { %p3075_p4 = pneg %p3074_p2 }
  0x64   : > { %2620 = dma.hbm_to_vmem [thread:$0]  (!%p3331_p6), %s3787_s6, 2048, %s346_s24, [#allocation14], %s3784_s22, %s3784_s22, %s3216_s28  }
  0x65   : > { %p3082_p11 = pnand %p3081_p8, %p3075_p4 }
  0x67   : > { %3085 = shalt.err (!%p3082_p11)
}
  0x68   : > { %s3788_s18 = smov 8   ;;  %s3789_s23 = smov 128  }
  0x69   : > { %s3790_s7 = sld [smem:[#allocation32_spill]]  ;;  %s2225_s20 = sadd.s32 4294967294, %s3210_s14  }
  0x6a   : > { %s41_s25 = sadd.s32 1, %s3206_s13  ;;  %s48_s28 = sadd.s32 1, %s3198_s11 }
  0x6b   : > { %p43_p7 = scmp.ge.s32.totalorder %s41_s25, 2  ;;  %p55_p12 = scmp.ne.s32.totalorder %s3198_s11, %s3194_s10 }
  0x6c   : > { %p56_p0 = scmp.eq.s32.totalorder %s3210_s14, 0  ;;  %p61_p13 = scmp.ne.s32.totalorder %s3194_s10, %s3190_s30 }
  0x6d   : > { %s3808_s25 = smov (%p43_p7, %s41_s25), 0  ;;  %s3794_s19 = sadd.s32 4294967295, %s3210_s14  }
  0x6e   : > { %3791 = sst [smem:[#allocation25_spill]] %s3808_s25  ;;  %p3421_p2 = por %p56_p0, %p55_p12 }
  0x6f   : > { %2623 = dma.hbm_to_vmem [thread:$0]  (!%p3331_p6), %s3790_s7, 256, %s359_s29, [#allocation17], %s3789_s23, %s3789_s23, %s3788_s18  }
  0x70   : > { %p3427_p6 = por %p3317_p1, %p61_p13  ;;  %s45_s24 = ssub.s32 %s3206_s13, %s3808_s25 }
  0x71   : > { %p255_p4 = scmp.eq.s32.totalorder %s3794_s19, 1  ;;  %p46_p9 = scmp.eq.s32.totalorder %s45_s24, 0 }
  0x72   : > { %p261_p10 = scmp.eq.s32.totalorder %s2225_s20, 1  ;;  %p2639_p11 = scmp.lt.s32.totalorder %s3210_s14, 2 }
  0x73   : > { %p3435_p8 = por %p255_p4, %p55_p12  ;;  %s375_s21 = sand.u32 1, %s3198_s11  }
  0x74   : > { %s3441_s27 = scalar_select %p46_p9, %s3198_s11, %s48_s28  }
  0x75   : > { %s3795_s15 = scalar_select %p3435_p8, 1, 0 }
  0x76   : > { %p3443_p7 = por %p261_p10, %p61_p13  ;;  %s2235_s1 = sshll.u32 %s375_s21, 4 }
  0x77   : > { %s2350_s2 = sshll.u32 %s3206_s13, 8  ;;  %s379_s24 = scalar_lea.vmem [#allocation4], %s2235_s1 }
  0x78   : > { %s3796_s26 = scalar_select %p3443_p7, 1, 0 }
  0x79   : > { %s385_s19 = scalar_lea.hbm %s3751_s0, %s2350_s2  ;;  %s386_s20 = sshll.u32 %s379_s24, 4  ;;  %s387_s20 = int_to_ptr.vmem [resolvable:$true] %s386_s20 }
  0x7a   : > { %p3454_p12 = pnand %p2639_p11, %p3421_p2  ;;  %s376_s28 = scalar_lea.sflag [#allocation5], %s375_s21 }
  0x7b   : > { %s3099_s6 = scalar_lea.vmem %s387_s20, 256  ;;  %s3223_s7 = smov [#allocation4]  }
  0x7c   : > { %p3088_p0 = pneg %p3454_p12  ;;  %p3100_p13 = scmp.ne.s32.totalorder %s387_s20, %s3099_s6 }
  0x7d   : > { %s3104_s25 = sshll.u32 %s3223_s7, 4  ;;  %s3105_s25 = int_to_ptr.vmem [resolvable:$false] %s3104_s25 }
  0x7e   : > { %p3102_p4 = pnand %p3100_p13, %p3088_p0  ;;  %s3106_s2 = scalar_lea.vmem %s3105_s25, 512 }
  0x7f   : > { %p3107_p10 = scmp.lt.s32.totalorder %s387_s20, %s3105_s25  ;;  %p3108_p5 = scmp.lt.s32.totalorder %s3106_s2, %s3099_s6 }
  0x80   : > { %p3103_p9 = pneg %p3102_p4 }
  0x81   : > { %p3109_p7 = por %p3108_p5, %p3107_p10 }
  0x83   : > { %p3110_p8 = pnand %p3109_p7, %p3103_p9 }
  0x85   : > { %3113 = shalt.err (!%p3110_p8)
}
  0x86   : > { %2627 = dma.hbm_to_vmem [thread:$0]  (!%p3454_p12), %s385_s19, 256, %s387_s20, %s376_s28, %s3789_s23, %s3789_s23, %s3788_s18  }
  0x87   : > { %398 = sbr.rel (%p3322_p3) target bundleno = 2660 (0xa64), region = 56  ;;  %s3468_s1 = sand.u32 (!%p3322_p3), 1, %s3194_s10  }
  0x88   : > { %s2239_s3 = sshll.u32 (!%p3322_p3), %s3468_s1, 4  ;;  %s401_s4 = scalar_lea.sflag (!%p3322_p3), [#allocation5], %s3468_s1 }
  0x89   : > { %s3474_s6 = scalar_lea.vmem (!%p3322_p3), [#allocation4], %s2239_s3 }
  0x8c   : > { %3165 = dma.done.wait (%p3427_p6), %s401_s4, 256  }
  0x8d   : > { %3167 = vsyncadd (%p3427_p6), %s401_s4, 4294967040 }
  0x8e   : > { %3169 = dma.done.wait (%p3317_p1), [#allocation8], 2048  }
  0x8f   : > { %3171 = vsyncadd (%p3317_p1), [#allocation8], 4294965248 }
  0x90   : > { %3173 = dma.done.wait (%p3317_p1), [#allocation11], 2048  }
  0x91   : > { %3175 = vsyncadd (%p3317_p1), [#allocation11], 4294965248 }
  0x92   : > { %3177 = dma.done.wait (%p3317_p1), [#allocation14], 4096  }
  0x93   : > { %3179 = vsyncadd (%p3317_p1), [#allocation14], 4294963200 }
  0x94   : > { %3181 = dma.done.wait (%p3317_p1), [#allocation17], 256  }
  0x95   : > { %3183 = vsyncadd (%p3317_p1), [#allocation17], 4294967040  ;;  %v3224_v0 = vmov 0.0   ;;  %vm3225_vm0 = vmmov 0   ;;  %v2775_v1 = vld [vmem:[#allocation9 + $0x38] sm:$0xff]   ;;  %v2776_v2 = vld [vmem:[#allocation9 + $0x30] sm:$0xff]   ;;  %v494_v28 = vlaneseq }
  0x96   : > { %2442 = vmatprep.subr.bf16.mxu0 %v3224_v0  ;;  %2458 = vmatprep.mubr.msk.bf16.mxu0 %vm3225_vm0, %v3224_v0  ;;  %v2777_v3 = vld [vmem:[#allocation9 + $0x28] sm:$0xff]   ;;  %v2778_v4 = vld [vmem:[#allocation9 + $0x20] sm:$0xff]   ;;  %v2779_v5 = vld [vmem:[#allocation9 + $0x18] sm:$0xff]   ;;  %vm748_vm1 = vcmask 257024   ;;  %s3226_s5 = smov 32   ;;  %s3227_s7 = smov 96  }
  0x97   : > { %2462 = vmatprep.subr.bf16.mxu1 %v3224_v0  ;;  %2478 = vmatprep.mubr.msk.bf16.mxu1 %vm3225_vm0, %v3224_v0  ;;  %v2791_v6 = vld [vmem:[#allocation10 + $0x38] sm:$0xff]   ;;  %v2780_v7 = vld [vmem:[#allocation9 + $0x10] sm:$0xff]   ;;  %v2781_v9 = vld [vmem:[#allocation9 + $0x8] sm:$0xff]   ;;  %v3540_v29 = vshrl.u32 %v494_v28, 7  ;;  %s3228_s16 = smov 64   ;;  %vm978_vm2 = vcmask 261120  }
  0x98   : > { %2443 = vmatpush3.bf16.msra.mxu0 %v2775_v1  ;;  %2463 = vmatpush3.bf16.msra.mxu1 %v2791_v6  ;;  %v2792_v8 = vld [vmem:[#allocation10 + $0x30] sm:$0xff]   ;;  %v2793_v10 = vld [vmem:[#allocation10 + $0x28] sm:$0xff]   ;;  %v2782_v11 = vld [vmem:[#allocation9] sm:$0xff]   ;;  %vm1182_vm3 = vcmask 130048   ;;  %vm1501_vm4 = vcmask 523264   ;;  %vm1504_vm5 = vcmask 785408  }
  0x99   : > { %2444 = vmatprep.subr.bf16.mxu0 %v3224_v0  ;;  %2464 = vmatprep.subr.bf16.mxu1 %v3224_v0  ;;  %v3510_v12 = vld [vmem:[%s3474_s6] sm:$0xff]  ;;  %v3513_v13 = vld [vmem:[%s3474_s6 + $0x8] sm:$0xff]  ;;  %v496_v30 = vsub.s32 1, %v3540_v29  ;;  %v840_v44 = vsub.s32 0, %v3540_v29  ;;  %v605_v56 = vsub.s32 2, %v3540_v29  ;;  %s2367_s23 = sshll.u32 %s3202_s12, 8 }
  0x9a   : > { %v2783_v14 = vld [vmem:[#allocation7 + $0x38] sm:$0xff]   ;;  %v477_v15 = vpack.c.bf16 %v3513_v13, %v3510_v12  ;;  %v2784_v16 = vld [vmem:[#allocation7 + $0x30] sm:$0xff]   ;;  %v2785_v17 = vld [vmem:[#allocation7 + $0x28] sm:$0xff]   ;;  %s466_s25 = scalar_lea.vmem [#allocation18], %s2239_s3  ;;  %s3701_s19 = scalar_lea.hbm %s3760_s9, %s2367_s23 }
  0x9b   : > { %v2786_v18 = vld [vmem:[#allocation7 + $0x20] sm:$0xff]   ;;  %v2787_v19 = vld [vmem:[#allocation7 + $0x18] sm:$0xff]   ;;  %v2788_v20 = vld [vmem:[#allocation7 + $0x10] sm:$0xff]   ;;  %s2071_s22 = sshll.u32 %s466_s25, 4  ;;  %s2056_s24 = scalar_lea.sflag [#allocation6], %s3468_s1  ;;  %s3703_s22 = int_to_ptr.vmem [resolvable:$true] %s2071_s22 }
  0x9c   : > { %2445 = vmatpush3.bf16.msra.mxu0 %v2776_v2  ;;  %2465 = vmatpush3.bf16.msra.mxu1 %v2792_v8  ;;  %v2789_v21 = vld [vmem:[#allocation7 + $0x8] sm:$0xff]   ;;  %v2790_v22 = vld [vmem:[#allocation7] sm:$0xff]   ;;  %v2795_v24 = vld [vmem:[#allocation10 + $0x18] sm:$0xff]   ;;  %s3114_s20 = scalar_lea.vmem %s3703_s22, 256  ;;  %p3798_p3 = scmp.ne.s32.totalorder %s3795_s15, 0 }
  0x9d   : > { %2446 = vmatprep.subr.bf16.mxu0 %v3224_v0  ;;  %2466 = vmatprep.subr.bf16.mxu1 %v3224_v0  ;;  %v2794_v23 = vld [vmem:[#allocation10 + $0x20] sm:$0xff]   ;;  %v2796_v25 = vld [vmem:[#allocation10 + $0x10] sm:$0xff]   ;;  %v2797_v26 = vld [vmem:[#allocation10 + $0x8] sm:$0xff]   ;;  %p3115_p1 = scmp.ne.s32.totalorder %s3703_s22, %s3114_s20  ;;  %s3230_s12 = smov [#allocation18]  }
  0x9e   : > { %v2798_v27 = vld [vmem:[#allocation10] sm:$0xff]   ;;  %s3118_s28 = sshll.u32 %s3230_s12, 4  ;;  %s3119_s28 = int_to_ptr.vmem [resolvable:$false] %s3118_s28 }
  0x9f   : > { %v3543_v31 = vld [vmem:[#allocation16] sm:$0xff]  ;;  %p3116_p5 = pnand %p3115_p1, %p3798_p3  ;;  %s3120_s2 = scalar_lea.vmem %s3119_s28, 512 }
  0xa0   : > { %2447 = vmatpush3.bf16.msra.mxu0 %v2777_v3  ;;  %2467 = vmatpush3.bf16.msra.mxu1 %v2793_v10  ;;  %v497_v32 = vrot.slane %v3543_v31, %v496_v30  ;;  %v841_v45 = vrot.slane %v3543_v31, %v840_v44  ;;  %v606_v57 = vrot.slane %v3543_v31, %v605_v56  ;;  %p3121_p6 = scmp.lt.s32.totalorder %s3703_s22, %s3119_s28  ;;  %p3122_p8 = scmp.lt.s32.totalorder %s3120_s2, %s3114_s20 }
  0xa1   : > { %2448 = vmatprep.subr.bf16.mxu0 %v3224_v0  ;;  %2468 = vmatprep.subr.bf16.mxu1 %v3224_v0  ;;  %p3117_p2 = pneg %p3116_p5 }
  0xa2   : > { %p3123_p11 = por %p3122_p8, %p3121_p6 }
  0xa4   : > { %2449 = vmatpush3.bf16.msra.mxu0 %v2778_v4  ;;  %2469 = vmatpush3.bf16.msra.mxu1 %v2794_v23  ;;  %p3124_p7 = pnand %p3123_p11, %p3117_p2 }
  0xa5   : > { %2450 = vmatprep.subr.bf16.mxu0 %v3224_v0  ;;  %2470 = vmatprep.subr.bf16.mxu1 %v3224_v0 }
  0xa8   : > { %2451 = vmatpush3.bf16.msra.mxu0 %v2779_v5  ;;  %2471 = vmatpush3.bf16.msra.mxu1 %v2795_v24 }
  0xa9   : > { %2452 = vmatprep.subr.bf16.mxu0 %v3224_v0  ;;  %2472 = vmatprep.subr.bf16.mxu1 %v3224_v0 }
  0xac   : > { %2453 = vmatpush3.bf16.msra.mxu0 %v2780_v7  ;;  %2473 = vmatpush3.bf16.msra.mxu1 %v2796_v25 }
  0xad   : > { %2454 = vmatprep.subr.bf16.mxu0 %v3224_v0  ;;  %2474 = vmatprep.subr.bf16.mxu1 %v3224_v0 }
  0xb0   : > { %2455 = vmatpush3.bf16.msra.mxu0 %v2781_v9  ;;  %2475 = vmatpush3.bf16.msra.mxu1 %v2797_v26 }
  0xb1   : > { %2456 = vmatprep.subr.bf16.mxu0 %v3224_v0  ;;  %2476 = vmatprep.subr.bf16.mxu1 %v3224_v0 }
  0xb4   : > { %2457 = vmatpush3.bf16.msra.mxu0 %v2782_v11  ;;  %2477 = vmatpush3.bf16.msra.mxu1 %v2798_v27 }
  0xb5   : > { %2482 = vmatprep.subr.bf16.mxu0 %v3224_v0  ;;  %2502 = vmatprep.subr.bf16.mxu1 %v3224_v0 }
  0xb7   : > { %2459 = vmatmul.mubr.bf16.vlgmr.msra.gmra.mxu0 %v477_v15  ;;  %2479 = vmatmul.mubr.bf16.vlgmr.msra.gmra.mxu1 %v477_v15 }
  0xb8   : > { %2483 = vmatpush3.bf16.msra.mxu0 %v2783_v14  ;;  %2498 = vmatprep.mubr.msk.bf16.mxu0 %vm3225_vm0, %v3224_v0 }
  0xb9   : > { %2484 = vmatprep.subr.bf16.mxu0 %v3224_v0  ;;  %2504 = vmatprep.mubr.msk.bf16.mxu1 %vm3225_vm0, %v3224_v0 }
  0xbc   : > { %2485 = vmatpush3.bf16.msra.mxu0 %v2784_v16 }
  0xbd   : > { %2486 = vmatprep.subr.bf16.mxu0 %v3224_v0 }
  0xc0   : > { %2487 = vmatpush3.bf16.msra.mxu0 %v2785_v17 }
  0xc1   : > { %2488 = vmatprep.subr.bf16.mxu0 %v3224_v0 }
  0xc4   : > { %2489 = vmatpush3.bf16.msra.mxu0 %v2786_v18 }
  0xc5   : > { %2490 = vmatprep.subr.bf16.mxu0 %v3224_v0 }
  0xc8   : > { %2491 = vmatpush3.bf16.msra.mxu0 %v2787_v19 }
  0xc9   : > { %2492 = vmatprep.subr.bf16.mxu0 %v3224_v0 }
  0xcc   : > { %2493 = vmatpush3.bf16.msra.mxu0 %v2788_v20 }
  0xcd   : > { %2494 = vmatprep.subr.bf16.mxu0 %v3224_v0 }
  0xd0   : > { %2495 = vmatpush3.bf16.msra.mxu0 %v2789_v21 }
  0xd1   : > { %2496 = vmatprep.subr.bf16.mxu0 %v3224_v0 }
  0xd4   : > { %2497 = vmatpush3.bf16.msra.mxu0 %v2790_v22 }
  0xd5   : > { %2550 = vmatprep.subr.bf16.mxu0 %v3224_v0 }
  0xd7   : > { %2499 = vmatmul.mubr.bf16.vlgmr.msra.gmra.mxu0 %v477_v15 }
  0xd8   : > { %2566 = vmatprep.mubr.msk.bf16.mxu0 %vm3225_vm0, %v3224_v0 }
 0x177   : > { %v580_v33 = vpop.f32.mrf.mxu0  ;;  %v689_v58 = vpop.f32.mrf.mxu1 }
 0x178   : > { %v581_v34 = vadd.f32 %v580_v33, %v497_v32  ;;  %v3567_v59 = vadd.f32 %v689_v58, %v606_v57 }
 0x179   : > { %v2460_v35 = vpop.f32.mrf.mxu0  ;;  %v2480_v60 = vpop.f32.mrf.mxu1 }
 0x17a   : > { %v2351_v36 = vpack.c.bf16 %v581_v34, %v581_v34  ;;  %v2359_v61 = vpack.c.bf16 %v3567_v59, %v3567_v59 }
 0x17b   : > { %v583_v37 = vpop.f32.mrf.mxu0  ;;  %v692_v62 = vpop.f32.mrf.mxu1 }
 0x17c   : > { %749 = vst.msk [vmem:[#allocation2] sm:$0xf] %vm748_vm1, %v2351_v36  ;;  %v584_v38 = vadd.f32 %v583_v37, %v497_v32  ;;  %809 = vst.msk [vmem:[#allocation3] sm:$0xf] %vm748_vm1, %v2359_v61  ;;  %v3572_v63 = vadd.f32 %v692_v62, %v606_v57 }
 0x17d   : > { %v2461_v39 = vpop.f32.mrf.mxu0  ;;  %v2481_v1 = vpop.f32.mrf.mxu1 }
 0x17e   : > { %v2352_v40 = vpack.c.bf16 %v584_v38, %v584_v38  ;;  %v2725_v41 = vpack.i.bf16 %v584_v38, %v581_v34  ;;  %v2360_v2 = vpack.c.bf16 %v3572_v63, %v3572_v63 }
 0x180   : > { %750 = vst.msk [vmem:[#allocation2 + $0x4] sm:$0xf] %vm748_vm1, %v2352_v40  ;;  %2726 = vrot.lane.b32.xlu1 %v2725_v41, %s3226_s5  ;;  %2716 = vrot.lane.b32.xlu0 %v2725_v41, %s3227_s7  ;;  %810 = vst.msk [vmem:[#allocation3 + $0x4] sm:$0xf] %vm748_vm1, %v2360_v2 }
 0x184   : > { %2721 = vrot.lane.b32.xlu0 %v2725_v41, %s3228_s16 }
 0x187   : > { %v2799_v42 = vld [vmem:[#allocation2] sm:$0xff]  }
 0x188   : > { %v983_v43 = vsel %vm978_vm2, %v2799_v42, 0  ;;  %v2803_v40 = vld [vmem:[#allocation3] sm:$0xff]  }
 0x189   : > { %2503 = vmatpush3.bf16.xpose.msra.mxu1 %v983_v43 }
 0x18a   : > { %2508 = vmatprep.subr.bf16.mxu1 %v3224_v0 }
 0x197   : > { %v924_v46 = vpop.f32.mrf.mxu0 }
 0x198   : > { %v925_v48 = vadd.f32 %v924_v46, %v841_v45 }
 0x199   : > { %v2500_v47 = vpop.f32.mrf.mxu0 }
 0x19a   : > { %v931_v52 = vmul.f32 0.17677669, %v925_v48 }
 0x19b   : > { %v927_v49 = vpop.f32.mrf.mxu0 }
 0x19c   : > { %v928_v50 = vadd.f32 %v927_v49, %v841_v45 }
 0x19d   : > { %v2501_v51 = vpop.f32.mrf.mxu0 }
 0x19e   : > { %v932_v53 = vmul.f32 0.17677669, %v928_v50 }
 0x1a0   : > { %v953_v54 = vpack.c.bf16 %v932_v53, %v931_v52  ;;  %v2730_v55 = vpack.i.bf16 %v932_v53, %v931_v52 }
 0x1a2   : > { %2731 = vrot.lane.b32.xlu1 %v2730_v55, %s3227_s7  ;;  %2736 = vrot.lane.b32.xlu0 %v2730_v55, %s3228_s16 }
 0x1a3   : > { %2505 = vmatmul.mubr.msk.bf16.vlgmr.msra.gmra.mxu1 %vm978_vm2, %v953_v54 }
 0x1a4   : > { %2510 = vmatprep.mubr.msk.bf16.mxu1 %vm3225_vm0, %v3224_v0 }
 0x1a6   : > { %2741 = vrot.lane.b32.xlu1 %v2730_v55, %s3226_s5 }
 0x1f2   : > { %v2727_v3 = vpop.permute.xlu1 %2726  ;;  %v2717_v4 = vpop.permute.xlu0 %2716 }
 0x1f3   : > { %v2729_v5 = vunpack.i.h.bf16 %v2727_v3  ;;  %v2728_v6 = vunpack.i.l.bf16 %v2727_v3  ;;  %v2719_v7 = vunpack.i.h.bf16 %v2717_v4  ;;  %v2718_v8 = vunpack.i.l.bf16 %v2717_v4 }
 0x1f5   : > { %v2358_v9 = vpack.c.bf16 %v2729_v5, %v2729_v5  ;;  %v2357_v10 = vpack.c.bf16 %v2728_v6, %v2728_v6  ;;  %v2354_v11 = vpack.c.bf16 %v2719_v7, %v2719_v7  ;;  %v2353_v14 = vpack.c.bf16 %v2718_v8, %v2718_v8 }
 0x1f6   : > { %v2722_v15 = vpop.permute.xlu0 %2721 }
 0x1f7   : > { %756 = vst.msk [vmem:[#allocation2 + $0x1c] sm:$0xf] %vm748_vm1, %v2358_v9  ;;  %755 = vst.msk [vmem:[#allocation2 + $0x18] sm:$0xf] %vm748_vm1, %v2357_v10  ;;  %v2724_v16 = vunpack.i.h.bf16 %v2722_v15  ;;  %v2723_v17 = vunpack.i.l.bf16 %v2722_v15  ;;  %v2745_v9 = vpack.i.bf16 %v3572_v63, %v3567_v59 }
 0x1f8   : > { %752 = vst.msk [vmem:[#allocation2 + $0xc] sm:$0xf] %vm748_vm1, %v2354_v11  ;;  %751 = vst.msk [vmem:[#allocation2 + $0x8] sm:$0xf] %vm748_vm1, %v2353_v14 }
 0x1f9   : > { %v2356_v18 = vpack.c.bf16 %v2724_v16, %v2724_v16  ;;  %v2355_v19 = vpack.c.bf16 %v2723_v17, %v2723_v17 }
 0x1fb   : > { %754 = vst.msk [vmem:[#allocation2 + $0x14] sm:$0xf] %vm748_vm1, %v2356_v18  ;;  %753 = vst.msk [vmem:[#allocation2 + $0x10] sm:$0xf] %vm748_vm1, %v2355_v19 }
 0x1fe   : > { %v2802_v34 = vld [vmem:[#allocation2 + $0x18] sm:$0xff]  }
 0x1ff   : > { %v2800_v20 = vld [vmem:[#allocation2 + $0x8] sm:$0xff]   ;;  %v1139_v37 = vsel %vm978_vm2, %v2802_v34, 0 }
 0x200   : > { %v1035_v21 = vsel %vm978_vm2, %v2800_v20, 0 }
 0x201   : > { %2509 = vmatpush3.bf16.xpose.msra.mxu1 %v1035_v21 }
 0x202   : > { %2514 = vmatprep.subr.bf16.mxu1 %v3224_v0  ;;  %v2801_v25 = vld [vmem:[#allocation2 + $0x10] sm:$0xff]  }
 0x203   : > { %v1087_v28 = vsel %vm978_vm2, %v2801_v25, 0 }
 0x214   : > { %v2732_v22 = vpop.permute.xlu1 %2731  ;;  %v2737_v27 = vpop.permute.xlu0 %2736 }
 0x215   : > { %v2734_v23 = vunpack.i.h.bf16 %v2732_v22  ;;  %v2733_v24 = vunpack.i.l.bf16 %v2732_v22  ;;  %v2739_v32 = vunpack.i.h.bf16 %v2737_v27  ;;  %v2738_v33 = vunpack.i.l.bf16 %v2737_v27 }
 0x217   : > { %v954_v26 = vpack.c.bf16 %v2734_v23, %v2733_v24  ;;  %v955_v35 = vpack.c.bf16 %v2739_v32, %v2738_v33 }
 0x218   : > { %v2742_v36 = vpop.permute.xlu1 %2741 }
 0x219   : > { %2511 = vmatmul.mubr.msk.bf16.vlgmr.msra.gmra.mxu1 %vm978_vm2, %v954_v26  ;;  %v2744_v38 = vunpack.i.h.bf16 %v2742_v36  ;;  %v2743_v39 = vunpack.i.l.bf16 %v2742_v36 }
 0x21a   : > { %2515 = vmatpush3.bf16.xpose.msra.mxu1 %v1087_v28  ;;  %2516 = vmatprep.mubr.msk.bf16.mxu1 %vm3225_vm0, %v3224_v0 }
 0x21b   : > { %2520 = vmatprep.subr.bf16.mxu1 %v3224_v0  ;;  %v956_v41 = vpack.c.bf16 %v2744_v38, %v2743_v39 }
 0x221   : > { %2517 = vmatmul.mubr.msk.bf16.vlgmr.msra.gmra.mxu1 %vm978_vm2, %v955_v35 }
 0x222   : > { %2521 = vmatpush3.bf16.xpose.msra.mxu1 %v1139_v37  ;;  %2522 = vmatprep.mubr.msk.bf16.mxu1 %vm3225_vm0, %v3224_v0 }
 0x223   : > { %2526 = vmatprep.subr.bf16.mxu1 %v3224_v0 }
 0x229   : > { %2523 = vmatmul.mubr.msk.bf16.vlgmr.msra.gmra.mxu1 %vm978_vm2, %v956_v41 }
 0x22a   : > { %2527 = vmatpush3.bf16.msra.mxu1 %v2803_v40  ;;  %2528 = vmatprep.mubr.msk.bf16.mxu1 %vm3225_vm0, %v3224_v0 }
 0x22b   : > { %2532 = vmatprep.subr.bf16.mxu1 %v3224_v0 }
 0x263   : > { %v1019_v42 = vpop.f32.mrf.mxu1 }
 0x264   : > { %v1183_v43 = vsel %vm1182_vm3, %v1019_v42, -inf }
 0x265   : > { %1184 = vmax.xlane.f32.xlu0 %v1183_v43  ;;  %v2506_v45 = vpop.f32.mrf.mxu1 }
 0x267   : > { %v1022_v46 = vpop.f32.mrf.mxu1 }
 0x268   : > { %v1186_v47 = vsel %vm1182_vm3, %v1022_v46, -inf }
 0x269   : > { %1187 = vmax.xlane.f32.xlu1 %v1186_v47  ;;  %v2507_v48 = vpop.f32.mrf.mxu1 }
 0x2d9   : > { %v1071_v49 = vpop.f32.mrf.mxu1 }
 0x2da   : > { %v1189_v50 = vsel %vm1182_vm3, %v1071_v49, -inf }
 0x2db   : > { %1190 = vmax.xlane.f32.xlu0 %v1189_v50  ;;  %v2512_v51 = vpop.f32.mrf.mxu1 }
 0x2dd   : > { %v1074_v52 = vpop.f32.mrf.mxu1 }
 0x2de   : > { %v1192_v53 = vsel %vm1182_vm3, %v1074_v52, -inf }
 0x2df   : > { %1193 = vmax.xlane.f32.xlu0 %v1192_v53  ;;  %v2513_v54 = vpop.f32.mrf.mxu1 }
 0x2e1   : > { %v1123_v55 = vpop.f32.mrf.mxu1 }
 0x2e2   : > { %v1195_v56 = vsel %vm1182_vm3, %v1123_v55, -inf }
 0x2e3   : > { %1196 = vmax.xlane.f32.xlu1 %v1195_v56  ;;  %v2518_v57 = vpop.f32.mrf.mxu1 }
 0x2e5   : > { %v1126_v58 = vpop.f32.mrf.mxu1 }
 0x2e6   : > { %v1198_v60 = vsel %vm1182_vm3, %v1126_v58, -inf }
 0x2e7   : > { %1199 = vmax.xlane.f32.xlu0 %v1198_v60  ;;  %v2519_v61 = vpop.f32.mrf.mxu1 }
 0x2e9   : > { %v1175_v62 = vpop.f32.mrf.mxu1 }
 0x2ea   : > { %v1201_v1 = vsel %vm1182_vm3, %v1175_v62, -inf }
 0x2eb   : > { %1202 = vmax.xlane.f32.xlu1 %v1201_v1  ;;  %v2524_v2 = vpop.f32.mrf.mxu1 }
 0x2ed   : > { %v1178_v3 = vpop.f32.mrf.mxu1 }
 0x2ee   : > { %v1204_v4 = vsel %vm1182_vm3, %v1178_v3, -inf  ;;  %v1185_v11 = vpop.xlane.xlu0 %1184 }
 0x2ef   : > { %1205 = vmax.xlane.f32.xlu0 %v1204_v4  ;;  %v2525_v5 = vpop.f32.mrf.mxu1  ;;  %v1207_v15 = vsub.f32 %v1019_v42, %v1185_v11 }
 0x2f1   : > { %v1215_v16 = vmul.f32 1.442695, %v1207_v15 }
 0x2f2   : > { %v1188_v6 = vpop.xlane.xlu1 %1187 }
 0x2f3   : > { %v1208_v7 = vsub.f32 %v1022_v46, %v1188_v6 }
 0x2f5   : > { %v1217_v8 = vmul.f32 1.442695, %v1208_v7 }
 0x2f7   : > { %2855 = vpow2.f32 %v1217_v8 }
 0x2f8   : > { %2857 = vpow2.f32 %v1215_v16 }
 0x2fc   : > { %2746 = vrot.lane.b32.xlu1 %v2745_v9, %s3227_s7 }
 0x304   : > { %v3610_v10 = vpop.eup %2855 }
 0x305   : > { %v1234_v14 = vsel %vm1182_vm3, %v3610_v10, 0.0  ;;  %v2858_v17 = vpop.eup %2857 }
 0x306   : > { %1235 = vadd.xlane.f32.xlu0 %v1234_v14  ;;  %v1231_v18 = vsel %vm1182_vm3, %v2858_v17, 0.0 }
 0x320   : > { %1232 = vadd.xlane.f32.xlu1 %v1231_v18 }
 0x364   : > { %v1191_v19 = vpop.xlane.xlu0 %1190 }
 0x365   : > { %v1209_v20 = vsub.f32 %v1071_v49, %v1191_v19 }
 0x367   : > { %v1219_v21 = vmul.f32 1.442695, %v1209_v20 }
 0x368   : > { %v1194_v59 = vpop.xlane.xlu0 %1193 }
 0x369   : > { %2859 = vpow2.f32 %v1219_v21  ;;  %v1210_v63 = vsub.f32 %v1074_v52, %v1194_v59 }
 0x36b   : > { %v1221_v22 = vmul.f32 1.442695, %v1210_v63 }
 0x36c   : > { %v1197_v23 = vpop.xlane.xlu1 %1196 }
 0x36d   : > { %2861 = vpow2.f32 %v1221_v22  ;;  %v1211_v24 = vsub.f32 %v1123_v55, %v1197_v23 }
 0x36f   : > { %v1223_v25 = vmul.f32 1.442695, %v1211_v24 }
 0x370   : > { %v1200_v26 = vpop.xlane.xlu0 %1199 }
 0x371   : > { %2863 = vpow2.f32 %v1223_v25  ;;  %v1212_v27 = vsub.f32 %v1126_v58, %v1200_v26 }
 0x373   : > { %v1225_v28 = vmul.f32 1.442695, %v1212_v27 }
 0x374   : > { %v1203_v32 = vpop.xlane.xlu1 %1202 }
 0x375   : > { %2865 = vpow2.f32 %v1225_v28  ;;  %v1213_v33 = vsub.f32 %v1175_v62, %v1203_v32 }
 0x376   : > { %v3615_v34 = vpop.eup %2859 }
 0x377   : > { %v1227_v35 = vmul.f32 1.442695, %v1213_v33  ;;  %v1237_v36 = vsel %vm1182_vm3, %v3615_v34, 0.0 }
 0x378   : > { %1238 = vadd.xlane.f32.xlu1 %v1237_v36  ;;  %v2747_v37 = vpop.permute.xlu1 %2746  ;;  %v1206_v38 = vpop.xlane.xlu0 %1205 }
 0x379   : > { %2867 = vpow2.f32 %v1227_v35  ;;  %v2749_v39 = vunpack.i.h.bf16 %v2747_v37  ;;  %v2748_v40 = vunpack.i.l.bf16 %v2747_v37  ;;  %v1214_v41 = vsub.f32 %v1178_v3, %v1206_v38 }
 0x37a   : > { %v2862_v42 = vpop.eup %2861 }
 0x37b   : > { %v2362_v43 = vpack.c.bf16 %v2749_v39, %v2749_v39  ;;  %v2361_v45 = vpack.c.bf16 %v2748_v40, %v2748_v40  ;;  %v1229_v46 = vmul.f32 1.442695, %v1214_v41  ;;  %v1240_v47 = vsel %vm1182_vm3, %v2862_v42, 0.0 }
 0x37c   : > { %1241 = vadd.xlane.f32.xlu0 %v1240_v47 }
 0x37d   : > { %812 = vst.msk [vmem:[#allocation3 + $0xc] sm:$0xf] %vm748_vm1, %v2362_v43  ;;  %811 = vst.msk [vmem:[#allocation3 + $0x8] sm:$0xf] %vm748_vm1, %v2361_v45  ;;  %2869 = vpow2.f32 %v1229_v46  ;;  %v2807_v43 = vld [vmem:[#allocation12 + $0x38] sm:$0xff]   ;;  %v2808_v45 = vld [vmem:[#allocation12 + $0x30] sm:$0xff]  }
 0x37e   : > { %v3622_v48 = vpop.eup %2863  ;;  %2551 = vmatpush3.bf16.msra.mxu0 %v2807_v43  ;;  %v2809_v46 = vld [vmem:[#allocation12 + $0x28] sm:$0xff]  }
 0x37f   : > { %v1243_v49 = vsel %vm1182_vm3, %v3622_v48, 0.0  ;;  %2552 = vmatprep.subr.bf16.mxu0 %v3224_v0  ;;  %v2820_v43 = vld [vmem:[#allocation13 + $0x64] ss:$8 sps:$4 sm:$0xff]  }
 0x380   : > { %1244 = vadd.xlane.f32.xlu1 %v1243_v49  ;;  %v2810_v49 = vld [vmem:[#allocation12 + $0x20] sm:$0xff]  }
 0x382   : > { %v2866_v50 = vpop.eup %2865  ;;  %2553 = vmatpush3.bf16.msra.mxu0 %v2808_v45  ;;  %v2818_v45 = vld [vmem:[#allocation13 + $0x60] ss:$8 sps:$4 sm:$0xff]  }
 0x383   : > { %v1246_v51 = vsel %vm1182_vm3, %v2866_v50, 0.0  ;;  %2554 = vmatprep.subr.bf16.mxu0 %v3224_v0 }
 0x384   : > { %1247 = vadd.xlane.f32.xlu0 %v1246_v51  ;;  %v2804_v2 = vld [vmem:[#allocation3 + $0x8] sm:$0xff]  }
 0x386   : > { %v3627_v52 = vpop.eup %2867  ;;  %2555 = vmatpush3.bf16.msra.mxu0 %v2809_v46  ;;  %v2821_v46 = vld [vmem:[#allocation13 + $0x50] ss:$8 sps:$4 sm:$0xff]  }
 0x387   : > { %v1249_v53 = vsel %vm1182_vm3, %v3627_v52, 0.0  ;;  %2556 = vmatprep.subr.bf16.mxu0 %v3224_v0 }
 0x388   : > { %1250 = vadd.xlane.f32.xlu0 %v1249_v53  ;;  %v2811_v53 = vld [vmem:[#allocation12 + $0x18] sm:$0xff]  }
 0x38a   : > { %v3631_v54 = vpop.eup %2869  ;;  %2557 = vmatpush3.bf16.msra.mxu0 %v2810_v49  ;;  %v2829_v49 = vld [vmem:[#allocation13 + $0x34] ss:$8 sps:$4 sm:$0xff]  }
 0x38b   : > { %v1252_v55 = vsel %vm1182_vm3, %v3631_v54, 0.0  ;;  %2558 = vmatprep.subr.bf16.mxu0 %v3224_v0 }
 0x38c   : > { %1253 = vadd.xlane.f32.xlu0 %v1252_v55  ;;  %v2813_v55 = vld [vmem:[#allocation12 + $0x8] sm:$0xff]  }
 0x38e   : > { %2559 = vmatpush3.bf16.msra.mxu0 %v2811_v53  ;;  %v2830_v53 = vld [vmem:[#allocation13 + $0x20] ss:$8 sps:$4 sm:$0xff]  }
 0x38f   : > { %v1236_v56 = vpop.xlane.xlu0 %1235  ;;  %2560 = vmatprep.subr.bf16.mxu0 %v3224_v0 }
 0x390   : > { %2871 = vrcp.f32 %v1236_v56 }
 0x391   : > { %2756 = vrot.lane.b32.xlu1 %v2745_v9, %s3226_s5 }
 0x39d   : > { %v2872_v58 = vpop.eup %2871 }
 0x39e   : > { %v1264_v62 = vmul.f32 %v2872_v58, %v3610_v10  ;;  %v2814_v58 = vld [vmem:[#allocation12] sm:$0xff]  }
 0x3a2   : > { %2751 = vrot.lane.b32.xlu0 %v2745_v9, %s3228_s16 }
 0x3a9   : > { %v1233_v57 = vpop.xlane.xlu1 %1232 }
 0x3aa   : > { %2873 = vrcp.f32 %v1233_v57 }
 0x3b7   : > { %v2874_v60 = vpop.eup %2873 }
 0x3b8   : > { %v1263_v61 = vmul.f32 %v2874_v60, %v2858_v17 }
 0x3ba   : > { %v1271_v1 = vpack.c.bf16 %v1264_v62, %v1263_v61 }
 0x3bc   : > { %2529 = vmatmul.mubr.msk.bf16.vlgmr.msra.gmra.mxu1 %vm1182_vm3, %v1271_v1 }
 0x3bd   : > { %2533 = vmatpush3.bf16.msra.mxu1 %v2804_v2  ;;  %2534 = vmatprep.mubr.msk.bf16.mxu1 %vm3225_vm0, %v3224_v0 }
 0x3be   : > { %2538 = vmatprep.subr.bf16.mxu1 %v3224_v0 }
 0x401   : > { %v1239_v3 = vpop.xlane.xlu1 %1238 }
 0x402   : > { %2875 = vrcp.f32 %v1239_v3 }
 0x405   : > { %v1242_v4 = vpop.xlane.xlu0 %1241 }
 0x406   : > { %2877 = vrcp.f32 %v1242_v4 }
 0x409   : > { %v1245_v5 = vpop.xlane.xlu1 %1244 }
 0x40d   : > { %v2757_v6 = vpop.permute.xlu1 %2756  ;;  %v1248_v7 = vpop.xlane.xlu0 %1247 }
 0x40e   : > { %v2759_v8 = vunpack.i.h.bf16 %v2757_v6  ;;  %v2758_v9 = vunpack.i.l.bf16 %v2757_v6  ;;  %2879 = vrcp.f32 %v1248_v7 }
 0x40f   : > { %v2876_v14 = vpop.eup %2875  ;;  %2881 = vrcp.f32 %v1245_v5 }
 0x410   : > { %v2366_v10 = vpack.c.bf16 %v2759_v8, %v2759_v8  ;;  %v2365_v11 = vpack.c.bf16 %v2758_v9, %v2758_v9  ;;  %v1265_v17 = vmul.f32 %v2876_v14, %v3615_v34 }
 0x411   : > { %v1251_v15 = vpop.xlane.xlu0 %1250 }
 0x412   : > { %816 = vst.msk [vmem:[#allocation3 + $0x1c] sm:$0xf] %vm748_vm1, %v2366_v10  ;;  %815 = vst.msk [vmem:[#allocation3 + $0x18] sm:$0xf] %vm748_vm1, %v2365_v11 }
 0x413   : > { %v2878_v16 = vpop.eup %2877 }
 0x414   : > { %v1266_v18 = vmul.f32 %v2878_v16, %v2862_v42 }
 0x415   : > { %v1254_v19 = vpop.xlane.xlu0 %1253 }
 0x416   : > { %v1272_v20 = vpack.c.bf16 %v1266_v18, %v1265_v17  ;;  %2883 = vrcp.f32 %v1254_v19 }
 0x417   : > { %2885 = vrcp.f32 %v1251_v15 }
 0x418   : > { %2535 = vmatmul.mubr.msk.bf16.vlgmr.msra.gmra.mxu1 %vm1182_vm3, %v1272_v20 }
 0x419   : > { %v2752_v21 = vpop.permute.xlu0 %2751  ;;  %2540 = vmatprep.mubr.msk.bf16.mxu1 %vm3225_vm0, %v3224_v0  ;;  %v2806_v34 = vld [vmem:[#allocation3 + $0x18] sm:$0xff]  }
 0x41a   : > { %v2754_v59 = vunpack.i.h.bf16 %v2752_v21  ;;  %v2753_v63 = vunpack.i.l.bf16 %v2752_v21 }
 0x41b   : > { %v2880_v24 = vpop.eup %2879 }
 0x41c   : > { %v2364_v22 = vpack.c.bf16 %v2754_v59, %v2754_v59  ;;  %v2363_v23 = vpack.c.bf16 %v2753_v63, %v2753_v63  ;;  %v2882_v25 = vpop.eup %2881  ;;  %v1268_v26 = vmul.f32 %v2880_v24, %v2866_v50  ;;  %v1526_v63 = vsub.s32 3, %v3540_v29 }
 0x41d   : > { %v1267_v28 = vmul.f32 %v2882_v25, %v3622_v48 }
 0x41e   : > { %814 = vst.msk [vmem:[#allocation3 + $0x14] sm:$0xf] %vm748_vm1, %v2364_v22  ;;  %813 = vst.msk [vmem:[#allocation3 + $0x10] sm:$0xf] %vm748_vm1, %v2363_v23  ;;  %v1527_v22 = vrot.slane %v3543_v31, %v1526_v63  ;;  %v2846_v63 = vld [vmem:[#allocation15 + $0x20] sm:$0xff]  }
 0x41f   : > { %v1273_v32 = vpack.c.bf16 %v1268_v26, %v1267_v28 }
 0x423   : > { %v2884_v33 = vpop.eup %2883 }
 0x424   : > { %v2886_v35 = vpop.eup %2885  ;;  %v1270_v36 = vmul.f32 %v2884_v33, %v3631_v54  ;;  %v2812_v54 = vld [vmem:[#allocation12 + $0x10] sm:$0xff]  }
 0x425   : > { %v2805_v27 = vld [vmem:[#allocation3 + $0x10] sm:$0xff]   ;;  %v1269_v37 = vmul.f32 %v2886_v35, %v3627_v52  ;;  %2561 = vmatpush3.bf16.msra.mxu0 %v2812_v54 }
 0x426   : > { %2539 = vmatpush3.bf16.msra.mxu1 %v2805_v27  ;;  %2562 = vmatprep.subr.bf16.mxu0 %v3224_v0  ;;  %v2817_v35 = vld [vmem:[#allocation13 + $0x74] ss:$8 sps:$4 sm:$0xff]  }
 0x427   : > { %2544 = vmatprep.subr.bf16.mxu1 %v3224_v0  ;;  %v1274_v38 = vpack.c.bf16 %v1270_v36, %v1269_v37  ;;  %v2835_v54 = vld [vmem:[#allocation13 + $0x14] ss:$8 sps:$4 sm:$0xff]  }
 0x429   : > { %2541 = vmatmul.mubr.msk.bf16.vlgmr.msra.gmra.mxu1 %vm1182_vm3, %v1273_v32  ;;  %2563 = vmatpush3.bf16.msra.mxu0 %v2813_v55  ;;  %v2833_v55 = vld [vmem:[#allocation13 + $0x10] ss:$8 sps:$4 sm:$0xff]  }
 0x42a   : > { %2545 = vmatpush3.bf16.msra.mxu1 %v2806_v34  ;;  %2546 = vmatprep.mubr.msk.bf16.mxu1 %vm3225_vm0, %v3224_v0  ;;  %v2815_v34 = vld [vmem:[#allocation13 + $0x70] ss:$8 sps:$4 sm:$0xff]  }
 0x42b   : > { %2564 = vmatprep.subr.bf16.mxu0 %v3224_v0  ;;  %1763 = vmatprep.subr.bf16.mxu1 %v2817_v35 }
 0x42d   : > { %2565 = vmatpush3.bf16.msra.mxu0 %v2814_v58 }
 0x431   : > { %2547 = vmatmul.mubr.msk.bf16.vlgmr.msra.gmra.mxu1 %vm1182_vm3, %v1274_v38 }
 0x432   : > { %1764 = vmatpush1.bf16.msra.mxu1 %v2815_v34 }
 0x433   : > { %1765 = vmatprep.subr.bf16.mxu1 %v2820_v43 }
 0x436   : > { %1766 = vmatpush1.bf16.msra.mxu1 %v2818_v45 }
 0x47c   : > { %v1318_v39 = vpop.f32.mrf.mxu1 }
 0x47e   : > { %v2530_v40 = vpop.f32.mrf.mxu1 }
 0x480   : > { %v1321_v41 = vpop.f32.mrf.mxu1 }
 0x482   : > { %v2531_v42 = vpop.f32.mrf.mxu1 }
 0x4d8   : > { %v1368_v47 = vpop.f32.mrf.mxu1 }
 0x4da   : > { %v2536_v48 = vpop.f32.mrf.mxu1 }
 0x4db   : > { %v2826_v48 = vld [vmem:[#allocation13 + $0x44] ss:$8 sps:$4 sm:$0xff]  }
 0x4dc   : > { %v1371_v50 = vpop.f32.mrf.mxu1 }
 0x4dd   : > { %v2760_v51 = vpack.i.bf16 %v1371_v50, %v1368_v47  ;;  %v2824_v47 = vld [vmem:[#allocation13 + $0x40] ss:$8 sps:$4 sm:$0xff]   ;;  %v2827_v50 = vld [vmem:[#allocation13 + $0x30] ss:$8 sps:$4 sm:$0xff]  }
 0x4de   : > { %v2537_v52 = vpop.f32.mrf.mxu1 }
 0x4df   : > { %2761 = vrot.lane.b32.xlu1 %v2760_v51, %s3226_s5  ;;  %v3229_v51 = vmov 0   ;;  %v2832_v52 = vld [vmem:[#allocation13 + $0x24] ss:$8 sps:$4 sm:$0xff]  }
 0x4e0   : > { %1795 = vmatprep.mubr.bf16.mxu1 %v3229_v51 }
 0x4e9   : > { %v1418_v56 = vpop.f32.mrf.mxu1 }
 0x4eb   : > { %v2542_v57 = vpop.f32.mrf.mxu1 }
 0x4ec   : > { %v2836_v57 = vld [vmem:[#allocation13] ss:$8 sps:$4 sm:$0xff]  }
 0x4ed   : > { %v1421_v60 = vpop.f32.mrf.mxu1 }
 0x4ee   : > { %v2765_v61 = vpack.i.bf16 %v1421_v60, %v1418_v56  ;;  %v2838_v56 = vld [vmem:[#allocation13 + $0x4] ss:$8 sps:$4 sm:$0xff]  }
 0x4ef   : > { %v2543_v62 = vpop.f32.mrf.mxu1 }
 0x4f0   : > { %2766 = vrot.lane.b32.xlu1 %v2765_v61, %s3228_s16 }
 0x4f1   : > { %v1468_v1 = vpop.f32.mrf.mxu1 }
 0x4f3   : > { %v2548_v2 = vpop.f32.mrf.mxu1 }
 0x4f5   : > { %v1471_v3 = vpop.f32.mrf.mxu1 }
 0x4f6   : > { %v2770_v4 = vpack.i.bf16 %v1471_v3, %v1468_v1  ;;  %v1644_v3 = vsub.s32 5, %v3540_v29 }
 0x4f7   : > { %v2549_v5 = vpop.f32.mrf.mxu1 }
 0x4f8   : > { %2771 = vrot.lane.b32.xlu1 %v2770_v4, %s3227_s7 }
 0x551   : > { %v2762_v6 = vpop.permute.xlu1 %2761 }
 0x552   : > { %v2764_v8 = vunpack.i.h.bf16 %v2762_v6  ;;  %v2763_v9 = vunpack.i.l.bf16 %v2762_v6  ;;  %v1645_v6 = vrot.slane %v3543_v31, %v1644_v3 }
 0x554   : > { %v1500_v14 = vsel %vm978_vm2, %v1321_v41, %v2764_v8  ;;  %v1499_v15 = vsel %vm978_vm2, %v1318_v39, %v2763_v9 }
 0x562   : > { %v2767_v7 = vpop.permute.xlu1 %2766 }
 0x563   : > { %v2769_v10 = vunpack.i.h.bf16 %v2767_v7  ;;  %v2768_v0 = vunpack.i.l.bf16 %v2767_v7  ;;  %v1650_v7 = vsub.s32 6, %v3540_v29 }
 0x565   : > { %v1503_v18 = vsel %vm1501_vm4, %v1500_v14, %v2769_v10  ;;  %v1502_v19 = vsel %vm1501_vm4, %v1499_v15, %v2768_v0  ;;  %v1651_v0 = vrot.slane %v3543_v31, %v1650_v7  ;;  %v2845_v31 = vld [vmem:[#allocation15 + $0x60] sm:$0xff]  }
 0x56a   : > { %v2772_v11 = vpop.permute.xlu1 %2771 }
 0x56b   : > { %v2774_v16 = vunpack.i.h.bf16 %v2772_v11  ;;  %v2773_v17 = vunpack.i.l.bf16 %v2772_v11 }
 0x56d   : > { %v1506_v20 = vsel %vm1504_vm5, %v1503_v18, %v2774_v16  ;;  %v1505_v21 = vsel %vm1504_vm5, %v1502_v19, %v2773_v17  ;;  %v2839_v17 = vld [vmem:[#allocation15 + $0x78] sm:$0xff]   ;;  %v2841_v19 = vld [vmem:[#allocation15 + $0x70] sm:$0xff]  }
 0x56e   : > { %v1507_v59 = vpack.c.bf16 %v1506_v20, %v1505_v21  ;;  %v2840_v18 = vld [vmem:[#allocation15 + $0x38] sm:$0xff]   ;;  %2420 = vmatprep.subr.bf16.mxu0 %v2839_v17  ;;  %v2842_v20 = vld [vmem:[#allocation15 + $0x30] sm:$0xff]   ;;  %v2843_v21 = vld [vmem:[#allocation15 + $0x68] sm:$0xff]  }
 0x570   : > { %2567 = vmatmul.mubr.bf16.vlgmr.msra.gmra.mxu0 %v1507_v59  ;;  %v2844_v59 = vld [vmem:[#allocation15 + $0x28] sm:$0xff]  }
 0x571   : > { %2421 = vmatpush3.bf16.msra.mxu0 %v2840_v18 }
 0x572   : > { %2422 = vmatprep.subr.bf16.mxu0 %v2841_v19 }
 0x575   : > { %2423 = vmatpush3.bf16.msra.mxu0 %v2842_v20 }
 0x576   : > { %2424 = vmatprep.subr.bf16.mxu0 %v2843_v21  ;;  %v1878_v21 = vsub.s32 4, %v3540_v29 }
 0x579   : > { %2425 = vmatpush3.bf16.msra.mxu0 %v2844_v59 }
 0x57a   : > { %2426 = vmatprep.subr.bf16.mxu0 %v2845_v31  ;;  %v2903_v31 = vld [vmem:[#allocation16] sm:$0xff] }
 0x57d   : > { %2427 = vmatpush3.bf16.msra.mxu0 %v2846_v63  ;;  %v1879_v63 = vrot.slane %v2903_v31, %v1878_v21 }
 0x630   : > { %v1610_v23 = vpop.f32.mrf.mxu0 }
 0x631   : > { %v1611_v24 = vadd.f32 %v1610_v23, %v1527_v22  ;;  %v2848_v23 = vld [vmem:[#allocation15 + $0x18] sm:$0xff]  }
 0x632   : > { %v2568_v25 = vpop.f32.mrf.mxu0 }
 0x633   : > { %v1617_v26 = vadd.f32 %v1611_v24, %v3510_v12  ;;  %v2849_v24 = vld [vmem:[#allocation15 + $0x50] sm:$0xff]  }
 0x634   : > { %v1613_v27 = vpop.f32.mrf.mxu0  ;;  %v2850_v25 = vld [vmem:[#allocation15 + $0x10] sm:$0xff]  }
 0x635   : > { %v1614_v28 = vadd.f32 %v1613_v27, %v1527_v22  ;;  %1619 = vadd.xlane.f32.xlu0 %v1617_v26  ;;  %v2847_v22 = vld [vmem:[#allocation15 + $0x58] sm:$0xff]   ;;  %v2852_v27 = vld [vmem:[#allocation15 + $0x8] sm:$0xff]  }
 0x636   : > { %v2569_v32 = vpop.f32.mrf.mxu0  ;;  %2428 = vmatprep.subr.bf16.mxu0 %v2847_v22 }
 0x637   : > { %v1618_v33 = vadd.f32 %v1614_v28, %v3513_v13  ;;  %v2823_v13 = vld [vmem:[#allocation13 + $0x54] ss:$8 sps:$4 sm:$0xff]   ;;  %2429 = vmatpush3.bf16.msra.mxu0 %v2848_v23  ;;  %v2853_v28 = vld [vmem:[#allocation15 + $0x40] sm:$0xff]  }
 0x638   : > { %1767 = vmatprep.subr.bf16.mxu1 %v2823_v13  ;;  %2430 = vmatprep.subr.bf16.mxu0 %v2849_v24  ;;  %v2854_v32 = vld [vmem:[#allocation15] sm:$0xff]  }
 0x639   : > { %1621 = vadd.xlane.f32.xlu1 %v1618_v33  ;;  %1768 = vmatpush1.bf16.msra.mxu1 %v2821_v46 }
 0x63a   : > { %1769 = vmatprep.subr.bf16.mxu1 %v2826_v48 }
 0x63b   : > { %2431 = vmatpush3.bf16.msra.mxu0 %v2850_v25 }
 0x63d   : > { %1770 = vmatpush1.bf16.msra.mxu1 %v2824_v47 }
 0x63e   : > { %1771 = vmatprep.subr.bf16.mxu1 %v2829_v49 }
 0x641   : > { %1772 = vmatpush1.bf16.msra.mxu1 %v2827_v50 }
 0x642   : > { %1773 = vmatprep.subr.bf16.mxu1 %v2832_v52 }
 0x645   : > { %1774 = vmatpush1.bf16.msra.mxu1 %v2830_v53 }
 0x646   : > { %1775 = vmatprep.subr.bf16.mxu1 %v2835_v54 }
 0x649   : > { %1776 = vmatpush1.bf16.msra.mxu1 %v2833_v55 }
 0x64a   : > { %1777 = vmatprep.subr.bf16.mxu1 %v2838_v56 }
 0x64d   : > { %1778 = vmatpush1.bf16.msra.mxu1 %v2836_v57 }
 0x6be   : > { %v1620_v36 = vpop.xlane.xlu0 %1619 }
 0x6bf   : > { %v1624_v37 = vmul.f32 0.0078125, %v1620_v36 }
 0x6c1   : > { %v1626_v38 = vsub.f32 %v1617_v26, %v1624_v37  ;;  %v2851_v26 = vld [vmem:[#allocation15 + $0x48] sm:$0xff]  }
 0x6c2   : > { %v1622_v39 = vpop.xlane.xlu1 %1621  ;;  %2432 = vmatprep.subr.bf16.mxu0 %v2851_v26 }
 0x6c3   : > { %v1625_v40 = vmul.f32 0.0078125, %v1622_v39  ;;  %v1628_v41 = vmul.f32 %v1626_v38, %v1626_v38  ;;  %2433 = vmatpush3.bf16.msra.mxu0 %v2852_v27 }
 0x6c4   : > { %2434 = vmatprep.subr.bf16.mxu0 %v2853_v28 }
 0x6c5   : > { %v1627_v42 = vsub.f32 %v1618_v33, %v1625_v40  ;;  %1630 = vadd.xlane.f32.xlu0 %v1628_v41  ;;  %v1671_v33 = vld [vmem:[%s3759_s8] sm:$0x3] }
 0x6c6   : > { %v1676_v34 = vrot.slane %v1671_v33, %v840_v44  ;;  %v1680_v35 = vrot.slane %v1671_v33, %v496_v30 }
 0x6c7   : > { %v1629_v12 = vmul.f32 %v1627_v42, %v1627_v42  ;;  %2435 = vmatpush3.bf16.msra.mxu0 %v2854_v32 }
 0x6c9   : > { %1632 = vadd.xlane.f32.xlu0 %v1629_v12 }
 0x74e   : > { %v1631_v58 = vpop.xlane.xlu0 %1630 }
 0x74f   : > { %v1634_v60 = vmul.f32 0.0078125, %v1631_v58 }
 0x751   : > { %v1636_v61 = vadd.f32 1e-05, %v1634_v60 }
 0x752   : > { %v1633_v62 = vpop.xlane.xlu0 %1632 }
 0x753   : > { %2887 = vrsqrt.f32 %v1636_v61  ;;  %v1635_v1 = vmul.f32 0.0078125, %v1633_v62 }
 0x755   : > { %v1637_v2 = vadd.f32 1e-05, %v1635_v1 }
 0x757   : > { %2889 = vrsqrt.f32 %v1637_v2 }
 0x760   : > { %v2888_v4 = vpop.eup %2887 }
 0x761   : > { %v1640_v5 = vmul.f32 %v2888_v4, %v1626_v38 }
 0x763   : > { %v1646_v10 = vmul.f32 %v1645_v6, %v1640_v5 }
 0x764   : > { %v2890_v8 = vpop.eup %2889 }
 0x765   : > { %v1641_v9 = vmul.f32 %v2890_v8, %v1627_v42  ;;  %v3678_v14 = vadd.f32 %v1651_v0, %v1646_v10 }
 0x767   : > { %v1647_v11 = vmul.f32 %v1645_v6, %v1641_v9 }
 0x769   : > { %v3680_v15 = vadd.f32 %v1651_v0, %v1647_v11 }
 0x76b   : > { %v1654_v16 = vpack.c.bf16 %v3680_v15, %v3678_v14 }
 0x76d   : > { %1796 = vmatmul.mubr.bf16.vlgmr.msra.gmra.mxu1 %v1654_v16 }
 0x82d   : > { %v1797_v36 = vpop.f32.mrf.mxu1 }
 0x82e   : > { %v1798_v37 = vadd.f32 %v1797_v36, %v1676_v34 }
 0x82f   : > { %v1799_v38 = vpop.f32.mrf.mxu1 }
 0x830   : > { %v1806_v39 = vmul.f32 %v1798_v37, %v1798_v37  ;;  %v1800_v40 = vadd.f32 %v1799_v38, %v1680_v35 }
 0x831   : > { %v1801_v41 = vpop.f32.mrf.mxu1 }
 0x832   : > { %v1810_v42 = vmul.f32 %v1806_v39, %v1798_v37  ;;  %v1807_v12 = vmul.f32 %v1800_v40, %v1800_v40  ;;  %v1802_v43 = vadd.f32 %v1801_v41, %v1676_v34 }
 0x833   : > { %v1803_v45 = vpop.f32.mrf.mxu1 }
 0x834   : > { %v1814_v13 = vmul.f32 0.044715, %v1810_v42  ;;  %v1811_v46 = vmul.f32 %v1807_v12, %v1800_v40  ;;  %v1808_v47 = vmul.f32 %v1802_v43, %v1802_v43  ;;  %v1804_v48 = vadd.f32 %v1803_v45, %v1680_v35 }
 0x836   : > { %v1818_v49 = vadd.f32 %v1814_v13, %v1798_v37  ;;  %v1815_v50 = vmul.f32 0.044715, %v1811_v46  ;;  %v1812_v44 = vmul.f32 %v1808_v47, %v1802_v43  ;;  %v1809_v51 = vmul.f32 %v1804_v48, %v1804_v48 }
 0x837   : > { %v2043_v13 = vsub.s32 7, %v3540_v29 }
 0x838   : > { %v1822_v52 = vmul.f32 0.7978846, %v1818_v49  ;;  %v1819_v30 = vadd.f32 %v1815_v50, %v1800_v40  ;;  %v1816_v53 = vmul.f32 0.044715, %v1812_v44  ;;  %v1813_v54 = vmul.f32 %v1809_v51, %v1804_v48  ;;  %v2344_v49 = vld [vmem:[#allocation16 + $0x8] ss:$0 sm:$0xff] }
 0x839   : > { %v2044_v46 = vrot.slane %v2903_v31, %v2043_v13 }
 0x83a   : > { %v1823_v55 = vmul.f32 0.7978846, %v1819_v30  ;;  %v1820_v56 = vadd.f32 %v1816_v53, %v1802_v43  ;;  %v1817_v57 = vmul.f32 0.044715, %v1813_v54  ;;  %2891 = vtanh.f32 %v1822_v52 }
 0x83c   : > { %2893 = vtanh.f32 %v1823_v55  ;;  %v1824_v58 = vmul.f32 0.7978846, %v1820_v56  ;;  %v1821_v60 = vadd.f32 %v1817_v57, %v1804_v48 }
 0x83e   : > { %2895 = vtanh.f32 %v1824_v58  ;;  %v1825_v61 = vmul.f32 0.7978846, %v1821_v60 }
 0x840   : > { %2897 = vtanh.f32 %v1825_v61 }
 0x847   : > { %v2892_v62 = vpop.eup %2891 }
 0x848   : > { %v1830_v4 = vadd.f32 1.0, %v2892_v62 }
 0x849   : > { %v2894_v1 = vpop.eup %2893 }
 0x84a   : > { %v1831_v2 = vadd.f32 1.0, %v2894_v1  ;;  %v1834_v10 = vmul.f32 0.5, %v1830_v4 }
 0x84b   : > { %v2896_v3 = vpop.eup %2895 }
 0x84c   : > { %v1832_v5 = vadd.f32 1.0, %v2896_v3  ;;  %v1835_v9 = vmul.f32 0.5, %v1831_v2  ;;  %v1838_v18 = vmul.f32 %v1834_v10, %v1798_v37 }
 0x84d   : > { %v2898_v6 = vpop.eup %2897 }
 0x84e   : > { %v1836_v7 = vmul.f32 0.5, %v1832_v5  ;;  %v1833_v8 = vadd.f32 1.0, %v2898_v6  ;;  %v1839_v16 = vmul.f32 %v1835_v9, %v1800_v40 }
 0x850   : > { %v1837_v0 = vmul.f32 0.5, %v1833_v8  ;;  %v1840_v11 = vmul.f32 %v1836_v7, %v1802_v43 }
 0x852   : > { %v1841_v17 = vmul.f32 %v1837_v0, %v1804_v48  ;;  %v1842_v20 = vpack.c.bf16 %v1840_v11, %v1838_v18 }
 0x854   : > { %v1843_v19 = vpack.c.bf16 %v1841_v17, %v1839_v16 }
 0x856   : > { %2008 = vmatprep.mubr.bf16.mxu0 %v1843_v19 }
 0x857   : > { %2009 = vmatmul.mubr.bf16.vlgmr.msra.gmra.mxu0 %v1842_v20 }
 0x917   : > { %v2436_v59 = vpop.f32.mrf.mxu0 }
 0x919   : > { %v2437_v22 = vpop.f32.mrf.mxu0 }
 0x91a   : > { %v2438_v23 = vadd.f32 %v2437_v22, %v2436_v59 }
 0x91b   : > { %v2439_v24 = vpop.f32.mrf.mxu0 }
 0x91c   : > { %v2011_v25 = vadd.f32 %v2438_v23, %v1879_v63 }
 0x91d   : > { %v2440_v26 = vpop.f32.mrf.mxu0 }
 0x91e   : > { %v2441_v27 = vadd.f32 %v2440_v26, %v2439_v24  ;;  %v2017_v28 = vadd.f32 %v2011_v25, %v3678_v14 }
 0x920   : > { %v2014_v32 = vadd.f32 %v2441_v27, %v1879_v63  ;;  %2019 = vadd.xlane.f32.xlu1 %v2017_v28 }
 0x922   : > { %v2018_v33 = vadd.f32 %v2014_v32, %v3680_v15 }
 0x924   : > { %2021 = vadd.xlane.f32.xlu0 %v2018_v33 }
 0x9a9   : > { %v2020_v34 = vpop.xlane.xlu1 %2019 }
 0x9aa   : > { %v2023_v35 = vmul.f32 0.0078125, %v2020_v34 }
 0x9ac   : > { %v2025_v36 = vsub.f32 %v2017_v28, %v2023_v35 }
 0x9ad   : > { %v2022_v37 = vpop.xlane.xlu0 %2021 }
 0x9ae   : > { %v2024_v38 = vmul.f32 0.0078125, %v2022_v37  ;;  %v2027_v39 = vmul.f32 %v2025_v36, %v2025_v36 }
 0x9b0   : > { %v2026_v40 = vsub.f32 %v2018_v33, %v2024_v38  ;;  %2029 = vadd.xlane.f32.xlu1 %v2027_v39 }
 0x9b2   : > { %v2028_v41 = vmul.f32 %v2026_v40, %v2026_v40 }
 0x9b4   : > { %2031 = vadd.xlane.f32.xlu0 %v2028_v41 }
 0xa39   : > { %v2030_v42 = vpop.xlane.xlu1 %2029 }
 0xa3a   : > { %v2033_v12 = vmul.f32 0.0078125, %v2030_v42 }
 0xa3c   : > { %v2035_v43 = vadd.f32 1e-05, %v2033_v12 }
 0xa3d   : > { %v2032_v14 = vpop.xlane.xlu0 %2031 }
 0xa3e   : > { %2899 = vrsqrt.f32 %v2035_v43  ;;  %v2034_v45 = vmul.f32 0.0078125, %v2032_v14 }
 0xa40   : > { %v2036_v15 = vadd.f32 1e-05, %v2034_v45 }
 0xa42   : > { %2901 = vrsqrt.f32 %v2036_v15 }
 0xa4b   : > { %v2900_v47 = vpop.eup %2899 }
 0xa4c   : > { %v2039_v48 = vmul.f32 %v2900_v47, %v2025_v36 }
 0xa4e   : > { %v2045_v50 = vmul.f32 %v2044_v46, %v2039_v48 }
 0xa4f   : > { %v2902_v44 = vpop.eup %2901 }
 0xa50   : > { %v2051_v51 = vadd.f32 %v2344_v49, %v2045_v50  ;;  %v2040_v52 = vmul.f32 %v2902_v44, %v2026_v40 }
 0xa52   : > { %v2046_v30 = vmul.f32 %v2044_v46, %v2040_v52  ;;  %2053 = vst [vmem:[%s466_s25] sm:$0xff] %v2051_v51 }
 0xa54   : > { %v2052_v29 = vadd.f32 %v2344_v49, %v2046_v30 }
 0xa56   : > { %2054 = vst [vmem:[%s466_s25 + $0x8] sm:$0xff] %v2052_v29 }
 0xa57   : > { %3127 = shalt.err (!%p3124_p7)
}
 0xa58   : > { %s3128_s3 = scalar_lea.hbm %s3701_s19, 256  ;;  %s3132_s5 = scalar_lea.hbm %s3760_s9, 512 }
 0xa59   : > { %p3129_p12 = scmp.ne.s32.totalorder %s3701_s19, %s3128_s3  ;;  %p3133_p4 = scmp.lt.s32.totalorder %s3701_s19, %s3760_s9 }
 0xa5a   : > { %p3134_p9 = scmp.lt.s32.totalorder %s3132_s5, %s3128_s3 }
 0xa5b   : > { %p3130_p0 = pnand %p3129_p12, %p3798_p3 }
 0xa5c   : > { %p3135_p10 = por %p3134_p9, %p3133_p4 }
 0xa5d   : > { %p3131_p13 = pneg %p3130_p0 }
 0xa5f   : > { %p3136_p1 = pnand %p3135_p10, %p3131_p13 }
 0xa61   : > { %3139 = shalt.err (!%p3136_p1)
}
 0xa62   : > { %s3231_s17 = smov 128   ;;  %s3232_s18 = smov 8  }
 0xa63   : > { %2600 = dma.vmem_to_hbm [thread:$0]  (%p3798_p3), %s3703_s22, 256, %s3701_s19, %s2056_s24, %s3231_s17, %s3231_s17, %s3232_s18  }
 0xa64 PF: > { %s2086_s23 = sand.u32 1, %s3190_s30   ;;  %p3799_p5 = scmp.ne.s32.totalorder %s3796_s26, 0 }
 0xa65   : > { %p3800_p2 = scmp.ge.s32.totalorder %s3210_s14, 2  ;;  %s2087_s25 = scalar_lea.sflag [#allocation6], %s2086_s23 }
 0xa67   : > { %p2629_p6 = pnand %p3800_p2, %p3799_p5 }
 0xa69   : > { %p2630_p8 = pneg %p2629_p6 }
 0xa6b   : > { %3185 = dma.done.wait (%p2630_p8), %s2087_s25, 256  }
 0xa6c   : > { %3187 = vsyncadd (%p2630_p8), %s2087_s25, 4294967040  ;;  %s29_s14 = sadd.s32 1, %s3210_s14   ;;  %s3801_s15 = sld [smem:[#allocation25_spill]] }
 0xa6d   : > { %p26_p11 = scmp.ge.s32.totalorder %s29_s14, 4   ;;  %s3802_s30 = smov %s3194_s10 }
 0xa6e   : > { %s3803_s10 = smov %s3198_s11  ;;  %s3804_s11 = smov %s3441_s27 }
 0xa6f   : > { %s3805_s12 = smov %s3206_s13  ;;  %28 = sbr.rel (!%p26_p11) target bundleno = 18 (0x12), region = 134 }
 0xa72   : > { %s3806_s13 = smov %s3801_s15 }
 0xa74   :  { %2092 = vsyncpa [#allocation5], 1 }
 0xa75   :  { %2094 = vsyncpa [#allocation5 + $0x1], 1 }
 0xa76   :  { %2095 = vsyncpa [#allocation8], 1 }
 0xa77   :  { %2096 = vsyncpa [#allocation11], 1 }
 0xa78   :  { %2097 = vsyncpa [#allocation14], 1 }
 0xa79   :  { %2098 = vsyncpa [#allocation17], 1 }
 0xa7a   :  { %2099 = vsyncpa [#allocation6], 1 }
 0xa7b   :  { %2101 = vsyncpa [#allocation6 + $0x1], 1 }

// kernel: tpu_custom_call.1
= control target key start
LH: loop header
LB: loop body
LE: loop exit
PB: predicated region body
PF: predicated region fallthrough
CT: control target
= control target key end

     0   :  { %s3751_s0 = inlined_call_operand.hbm [shape: f32[2,16,128], index: 0, kind: input, shape index: {}]   ;;  %s3752_s1 = inlined_call_operand.hbm [shape: bf16[128,128], index: 1, kind: input, shape index: {}]   ;;  %s3753_s2 = inlined_call_operand.hbm [shape: bf16[128,128], index: 2, kind: input, shape index: {}]   ;;  %s3754_s3 = inlined_call_operand.hbm [shape: bf16[128,128], index: 3, kind: input, shape index: {}]   ;;  %s3755_s4 = inlined_call_operand.hbm [shape: bf16[128,128], index: 4, kind: input, shape index: {}]   ;;  %s3756_s5 = inlined_call_operand.hbm [shape: bf16[128,256], index: 5, kind: input, shape index: {}]   ;;  %s3757_s6 = inlined_call_operand.hbm [shape: bf16[256,128], index: 6, kind: input, shape index: {}]   ;;  %s3758_s7 = inlined_call_operand.hbm [shape: f32[9,128], index: 7, kind: input, shape index: {}]   ;;  %s3759_s8 = inlined_call_operand.vmem [shape: f32[1,256], index: 8, kind: input, shape index: {}]   ;;  %s3760_s9 = inlined_call_operand.hbm [shape: f32[2,16,128], index: 9, kind: output, shape index: {}]  }
   0x1   :  { %3770 = sst [smem:[#allocation26_spill]] %s3752_s1 }
   0x2   :  { %3771 = sst [smem:[#allocation27_spill]] %s3753_s2 }
   0x3   :  { %3772 = sst [smem:[#allocation28_spill]] %s3754_s3 }
   0x4   :  { %3773 = sst [smem:[#allocation29_spill]] %s3755_s4 }
   0x5   :  { %3774 = sst [smem:[#allocation30_spill]] %s3756_s5 }
   0x6   :  { %3775 = sst [smem:[#allocation31_spill]] %s3757_s6 }
   0x7   :  { %3776 = sst [smem:[#allocation32_spill]] %s3758_s7 }
   0x8   :  { %14 = vsyncpa [#allocation5], 0 }
   0x9   :  { %16 = vsyncpa [#allocation5 + $0x1], 0 }
   0xa   :  { %17 = vsyncpa [#allocation8], 0 }
   0xb   :  { %18 = vsyncpa [#allocation11], 0 }
   0xc   :  { %19 = vsyncpa [#allocation14], 0 }
   0xd   :  { %20 = vsyncpa [#allocation17], 0 }
   0xe   :  { %21 = vsyncpa [#allocation6], 0 }
   0xf   :  { %23 = vsyncpa [#allocation6 + $0x1], 0  ;;  %s3283_s30 = smov 0   ;;  %s3285_s10 = smov 0  }
  0x10   :  { %s3287_s11 = smov 0   ;;  %s3289_s12 = smov 0  }
  0x11   :  { %s3291_s13 = smov 0   ;;  %s3293_s14 = smov 0  }
  0x12 LB: > { %s3761_s15 = sadd.s32 4294967295, %s3210_s14   ;;  %p2226_p0 = scmp.ge.s32.totalorder %s3210_s14, 1  ;;  %s3210_s14 = sphi %s3293_s14, %s29_s14   ;;  %s3206_s13 = sphi %s3291_s13, %s3806_s13   ;;  %s3202_s12 = sphi %s3289_s12, %s3805_s12   ;;  %s3198_s11 = sphi %s3287_s11, %s3804_s11   ;;  %s3194_s10 = sphi %s3285_s10, %s3803_s10   ;;  %s3190_s30 = sphi %s3283_s30, %s3802_s30  }
  0x13   : > { %p3317_p1 = scmp.eq.s32.totalorder %s3761_s15, 0  ;;  %p268_p2 = scmp.lt.s32.totalorder %s3210_s14, 3 }
  0x14   : > { %s3212_s18 = smov [#allocation7]   ;;  %s3213_s21 = smov [#allocation10]  }
  0x15   : > { %p3322_p3 = pnand %p2226_p0, %p268_p2  ;;  %s280_s19 = sshll.u32 %s3212_s18, 4  ;;  %s281_s19 = int_to_ptr.vmem [resolvable:$true] %s280_s19 }
  0x16   : > { %s306_s22 = sshll.u32 %s3213_s21, 4  ;;  %s3214_s23 = smov [#allocation13]   ;;  %s307_s22 = int_to_ptr.vmem [resolvable:$true] %s306_s22 }
  0x17   : > { %p2602_p4 = pneg %p3322_p3  ;;  %s332_s24 = sshll.u32 %s3214_s23, 4  ;;  %s333_s24 = int_to_ptr.vmem [resolvable:$true] %s332_s24 }
  0x18   : > { %s2915_s26 = scalar_lea.vmem %s281_s19, 1024  ;;  %p2923_p11 = scmp.lt.s32.totalorder %s281_s19, %s281_s19 }
  0x19   : > { %p3331_p6 = pnand %p2602_p4, %p3317_p1  ;;  %p2916_p8 = scmp.ne.s32.totalorder %s281_s19, %s2915_s26 }
  0x1a   : > { %p2924_p12 = scmp.lt.s32.totalorder %s2915_s26, %s2915_s26 }
  0x1b   : > { %p3337_p7 = pneg %p3331_p6 }
  0x1c   : > { %p2925_p13 = por %p2924_p12, %p2923_p11 }
  0x1d   : > { %p2918_p9 = pnand %p2916_p8, %p3337_p7 }
  0x1f   : > { %p2919_p10 = pneg %p2918_p9 }
  0x21   : > { %p2926_p0 = pnand %p2925_p13, %p2919_p10 }
  0x23   : > { %2929 = shalt.err (!%p2926_p0)
}
  0x24   : > { %s3762_s27 = smov 64   ;;  %s3216_s28 = smov 4  }
  0x25   : > { %s3781_s1 = sld [smem:[#allocation26_spill]]  ;;  %s2941_s21 = scalar_lea.vmem %s307_s22, 1024 }
  0x26   : > { %p2942_p2 = scmp.ne.s32.totalorder %s307_s22, %s2941_s21  ;;  %p2949_p9 = scmp.lt.s32.totalorder %s307_s22, %s307_s22 }
  0x27   : > { %p2950_p10 = scmp.lt.s32.totalorder %s2941_s21, %s2941_s21 }
  0x28   : > { %p2944_p4 = pnand %p2942_p2, %p3337_p7 }
  0x29   : > { %p2951_p11 = por %p2950_p10, %p2949_p9 }
  0x2a   : > { %p2945_p8 = pneg %p2944_p4 }
  0x2b   : > { %2605 = dma.hbm_to_vmem [thread:$0]  (!%p3331_p6), %s3781_s1, 1024, %s281_s19, [#allocation8], %s3762_s27, %s3762_s27, %s3216_s28  }
  0x2c   : > { %p2952_p12 = pnand %p2951_p11, %p2945_p8 }
  0x2e   : > { %2955 = shalt.err (!%p2952_p12)
}
  0x2f   : > { %s3782_s3 = sld [smem:[#allocation28_spill]]  ;;  %s2967_s19 = scalar_lea.vmem %s333_s24, 2048 }
  0x30   : > { %p2968_p13 = scmp.ne.s32.totalorder %s333_s24, %s2967_s19  ;;  %p2975_p4 = scmp.lt.s32.totalorder %s333_s24, %s333_s24 }
  0x31   : > { %p2976_p9 = scmp.lt.s32.totalorder %s2967_s19, %s2967_s19 }
  0x32   : > { %p2970_p0 = pnand %p2968_p13, %p3337_p7 }
  0x33   : > { %p2977_p8 = por %p2976_p9, %p2975_p4 }
  0x34   : > { %p2971_p2 = pneg %p2970_p0 }
  0x35   : > { %2611 = dma.hbm_to_vmem [thread:$0]  (!%p3331_p6), %s3782_s3, 1024, %s307_s22, [#allocation11], %s3762_s27, %s3762_s27, %s3216_s28  }
  0x36   : > { %p2978_p10 = pnand %p2977_p8, %p2971_p2 }
  0x38   : > { %2981 = shalt.err (!%p2978_p10)
}
  0x39   : > { %s3764_s29 = smov 128   ;;  %s3766_s18 = smov 8  }
  0x3a   : > { %s3783_s5 = sld [smem:[#allocation30_spill]]  ;;  %s3219_s23 = smov [#allocation9]  }
  0x3b   : > { %s293_s26 = sshll.u32 %s3219_s23, 4  ;;  %s3220_s15 = smov [#allocation12]   ;;  %s294_s26 = int_to_ptr.vmem [resolvable:$true] %s293_s26 }
  0x3c   : > { %s319_s19 = sshll.u32 %s3220_s15, 4  ;;  %s2993_s27 = scalar_lea.vmem %s294_s26, 1024  ;;  %s320_s19 = int_to_ptr.vmem [resolvable:$true] %s319_s19 }
  0x3d   : > { %p2994_p11 = scmp.ne.s32.totalorder %s294_s26, %s2993_s27  ;;  %p3001_p0 = scmp.lt.s32.totalorder %s294_s26, %s294_s26 }
  0x3e   : > { %p3002_p2 = scmp.lt.s32.totalorder %s2993_s27, %s2993_s27 }
  0x3f   : > { %p2996_p12 = pnand %p2994_p11, %p3337_p7 }
  0x40   : > { %2617 = dma.hbm_to_vmem [thread:$0]  (!%p3331_p6), %s3783_s5, 2048, %s333_s24, [#allocation14], %s3764_s29, %s3764_s29, %s3766_s18  }
  0x41   : > { %p2997_p13 = pneg %p2996_p12  ;;  %p3003_p4 = por %p3002_p2, %p3001_p0 }
  0x43   : > { %p3004_p9 = pnand %p3003_p4, %p2997_p13 }
  0x45   : > { %3007 = shalt.err (!%p3004_p9)
}
  0x46   : > { %s3784_s22 = smov 64   ;;  %s3785_s2 = sld [smem:[#allocation27_spill]] }
  0x47   : > { %s3019_s15 = scalar_lea.vmem %s320_s19, 1024  ;;  %p3027_p12 = scmp.lt.s32.totalorder %s320_s19, %s320_s19 }
  0x48   : > { %p3020_p8 = scmp.ne.s32.totalorder %s320_s19, %s3019_s15  ;;  %p3028_p0 = scmp.lt.s32.totalorder %s3019_s15, %s3019_s15 }
  0x4a   : > { %p3022_p10 = pnand %p3020_p8, %p3337_p7  ;;  %p3029_p13 = por %p3028_p0, %p3027_p12 }
  0x4c   : > { %2608 = dma.hbm_to_vmem [thread:$0]  (!%p3331_p6), %s3785_s2, 1024, %s294_s26, [#allocation8], %s3784_s22, %s3784_s22, %s3216_s28  }
  0x4d   : > { %p3023_p11 = pneg %p3022_p10 }
  0x4f   : > { %p3030_p2 = pnand %p3029_p13, %p3023_p11 }
  0x51   : > { %3033 = shalt.err (!%p3030_p2)
}
  0x52   : > { %s3786_s4 = sld [smem:[#allocation29_spill]]  ;;  %s3221_s26 = smov [#allocation15]  }
  0x53   : > { %s345_s24 = sshll.u32 %s3221_s26, 4  ;;  %s3222_s21 = smov [#allocation16]   ;;  %s346_s24 = int_to_ptr.vmem [resolvable:$true] %s345_s24 }
  0x54   : > { %s358_s29 = sshll.u32 %s3222_s21, 4  ;;  %s3045_s18 = scalar_lea.vmem %s346_s24, 2048  ;;  %s359_s29 = int_to_ptr.vmem [resolvable:$true] %s358_s29 }
  0x55   : > { %p3046_p4 = scmp.ne.s32.totalorder %s346_s24, %s3045_s18  ;;  %p3053_p10 = scmp.lt.s32.totalorder %s346_s24, %s346_s24 }
  0x56   : > { %p3054_p11 = scmp.lt.s32.totalorder %s3045_s18, %s3045_s18 }
  0x57   : > { %p3048_p9 = pnand %p3046_p4, %p3337_p7 }
  0x58   : > { %2614 = dma.hbm_to_vmem [thread:$0]  (!%p3331_p6), %s3786_s4, 1024, %s320_s19, [#allocation11], %s3784_s22, %s3784_s22, %s3216_s28  }
  0x59   : > { %p3049_p8 = pneg %p3048_p9  ;;  %p3055_p12 = por %p3054_p11, %p3053_p10 }
  0x5b   : > { %p3056_p0 = pnand %p3055_p12, %p3049_p8 }
  0x5d   : > { %3059 = shalt.err (!%p3056_p0)
}
  0x5e   : > { %s3787_s6 = sld [smem:[#allocation31_spill]]  ;;  %s3071_s27 = scalar_lea.vmem %s359_s29, 256 }
  0x5f   : > { %p3072_p13 = scmp.ne.s32.totalorder %s359_s29, %s3071_s27  ;;  %p3079_p9 = scmp.lt.s32.totalorder %s359_s29, %s359_s29 }
  0x60   : > { %p3080_p10 = scmp.lt.s32.totalorder %s3071_s27, %s3071_s27 }
  0x61   : > { %p3074_p2 = pnand %p3072_p13, %p3337_p7 }
  0x62   : > { %p3081_p8 = por %p3080_p10, %p3079_p9 }
  0x63   : > { %p3075_p4 = pneg %p3074_p2 }
  0x64   : > { %2620 = dma.hbm_to_vmem [thread:$0]  (!%p3331_p6), %s3787_s6, 2048, %s346_s24, [#allocation14], %s3784_s22, %s3784_s22, %s3216_s28  }
  0x65   : > { %p3082_p11 = pnand %p3081_p8, %p3075_p4 }
  0x67   : > { %3085 = shalt.err (!%p3082_p11)
}
  0x68   : > { %s3788_s18 = smov 8   ;;  %s3789_s23 = smov 128  }
  0x69   : > { %s3790_s7 = sld [smem:[#allocation32_spill]]  ;;  %s2225_s20 = sadd.s32 4294967294, %s3210_s14  }
  0x6a   : > { %s41_s25 = sadd.s32 1, %s3206_s13  ;;  %s48_s28 = sadd.s32 1, %s3198_s11 }
  0x6b   : > { %p43_p7 = scmp.ge.s32.totalorder %s41_s25, 2  ;;  %p55_p12 = scmp.ne.s32.totalorder %s3198_s11, %s3194_s10 }
  0x6c   : > { %p56_p0 = scmp.eq.s32.totalorder %s3210_s14, 0  ;;  %p61_p13 = scmp.ne.s32.totalorder %s3194_s10, %s3190_s30 }
  0x6d   : > { %s3808_s25 = smov (%p43_p7, %s41_s25), 0  ;;  %s3794_s19 = sadd.s32 4294967295, %s3210_s14  }
  0x6e   : > { %3791 = sst [smem:[#allocation25_spill]] %s3808_s25  ;;  %p3421_p2 = por %p56_p0, %p55_p12 }
  0x6f   : > { %2623 = dma.hbm_to_vmem [thread:$0]  (!%p3331_p6), %s3790_s7, 256, %s359_s29, [#allocation17], %s3789_s23, %s3789_s23, %s3788_s18  }
  0x70   : > { %p3427_p6 = por %p3317_p1, %p61_p13  ;;  %s45_s24 = ssub.s32 %s3206_s13, %s3808_s25 }
  0x71   : > { %p255_p4 = scmp.eq.s32.totalorder %s3794_s19, 1  ;;  %p46_p9 = scmp.eq.s32.totalorder %s45_s24, 0 }
  0x72   : > { %p261_p10 = scmp.eq.s32.totalorder %s2225_s20, 1  ;;  %p2639_p11 = scmp.lt.s32.totalorder %s3210_s14, 2 }
  0x73   : > { %p3435_p8 = por %p255_p4, %p55_p12  ;;  %s375_s21 = sand.u32 1, %s3198_s11  }
  0x74   : > { %s3441_s27 = scalar_select %p46_p9, %s3198_s11, %s48_s28  }
  0x75   : > { %s3795_s15 = scalar_select %p3435_p8, 1, 0 }
  0x76   : > { %p3443_p7 = por %p261_p10, %p61_p13  ;;  %s2235_s1 = sshll.u32 %s375_s21, 4 }
  0x77   : > { %s2350_s2 = sshll.u32 %s3206_s13, 8  ;;  %s379_s24 = scalar_lea.vmem [#allocation4], %s2235_s1 }
  0x78   : > { %s3796_s26 = scalar_select %p3443_p7, 1, 0 }
  0x79   : > { %s385_s19 = scalar_lea.hbm %s3751_s0, %s2350_s2  ;;  %s386_s20 = sshll.u32 %s379_s24, 4  ;;  %s387_s20 = int_to_ptr.vmem [resolvable:$true] %s386_s20 }
  0x7a   : > { %p3454_p12 = pnand %p2639_p11, %p3421_p2  ;;  %s376_s28 = scalar_lea.sflag [#allocation5], %s375_s21 }
  0x7b   : > { %s3099_s6 = scalar_lea.vmem %s387_s20, 256  ;;  %s3223_s7 = smov [#allocation4]  }
  0x7c   : > { %p3088_p0 = pneg %p3454_p12  ;;  %p3100_p13 = scmp.ne.s32.totalorder %s387_s20, %s3099_s6 }
  0x7d   : > { %s3104_s25 = sshll.u32 %s3223_s7, 4  ;;  %s3105_s25 = int_to_ptr.vmem [resolvable:$false] %s3104_s25 }
  0x7e   : > { %p3102_p4 = pnand %p3100_p13, %p3088_p0  ;;  %s3106_s2 = scalar_lea.vmem %s3105_s25, 512 }
  0x7f   : > { %p3107_p10 = scmp.lt.s32.totalorder %s387_s20, %s3105_s25  ;;  %p3108_p5 = scmp.lt.s32.totalorder %s3106_s2, %s3099_s6 }
  0x80   : > { %p3103_p9 = pneg %p3102_p4 }
  0x81   : > { %p3109_p7 = por %p3108_p5, %p3107_p10 }
  0x83   : > { %p3110_p8 = pnand %p3109_p7, %p3103_p9 }
  0x85   : > { %3113 = shalt.err (!%p3110_p8)
}
  0x86   : > { %2627 = dma.hbm_to_vmem [thread:$0]  (!%p3454_p12), %s385_s19, 256, %s387_s20, %s376_s28, %s3789_s23, %s3789_s23, %s3788_s18  }
  0x87   : > { %398 = sbr.rel (%p3322_p3) target bundleno = 2660 (0xa64), region = 56  ;;  %s3468_s1 = sand.u32 (!%p3322_p3), 1, %s3194_s10  }
  0x88   : > { %s2239_s3 = sshll.u32 (!%p3322_p3), %s3468_s1, 4  ;;  %s401_s4 = scalar_lea.sflag (!%p3322_p3), [#allocation5], %s3468_s1 }
  0x89   : > { %s3474_s6 = scalar_lea.vmem (!%p3322_p3), [#allocation4], %s2239_s3 }
  0x8c   : > { %3165 = dma.done.wait (%p3427_p6), %s401_s4, 256  }
  0x8d   : > { %3167 = vsyncadd (%p3427_p6), %s401_s4, 4294967040 }
  0x8e   : > { %3169 = dma.done.wait (%p3317_p1), [#allocation8], 2048  }
  0x8f   : > { %3171 = vsyncadd (%p3317_p1), [#allocation8], 4294965248 }
  0x90   : > { %3173 = dma.done.wait (%p3317_p1), [#allocation11], 2048  }
  0x91   : > { %3175 = vsyncadd (%p3317_p1), [#allocation11], 4294965248 }
  0x92   : > { %3177 = dma.done.wait (%p3317_p1), [#allocation14], 4096  }
  0x93   : > { %3179 = vsyncadd (%p3317_p1), [#allocation14], 4294963200 }
  0x94   : > { %3181 = dma.done.wait (%p3317_p1), [#allocation17], 256  }
  0x95   : > { %3183 = vsyncadd (%p3317_p1), [#allocation17], 4294967040  ;;  %v3224_v0 = vmov 0.0   ;;  %vm3225_vm0 = vmmov 0   ;;  %v2775_v1 = vld [vmem:[#allocation9 + $0x38] sm:$0xff]   ;;  %v2776_v2 = vld [vmem:[#allocation9 + $0x30] sm:$0xff]   ;;  %v494_v28 = vlaneseq }
  0x96   : > { %2442 = vmatprep.subr.bf16.mxu0 %v3224_v0  ;;  %2458 = vmatprep.mubr.msk.bf16.mxu0 %vm3225_vm0, %v3224_v0  ;;  %v2777_v3 = vld [vmem:[#allocation9 + $0x28] sm:$0xff]   ;;  %v2778_v4 = vld [vmem:[#allocation9 + $0x20] sm:$0xff]   ;;  %v2779_v5 = vld [vmem:[#allocation9 + $0x18] sm:$0xff]   ;;  %vm748_vm1 = vcmask 257024   ;;  %s3226_s5 = smov 32   ;;  %s3227_s7 = smov 96  }
  0x97   : > { %2462 = vmatprep.subr.bf16.mxu1 %v3224_v0  ;;  %2478 = vmatprep.mubr.msk.bf16.mxu1 %vm3225_vm0, %v3224_v0  ;;  %v2791_v6 = vld [vmem:[#allocation10 + $0x38] sm:$0xff]   ;;  %v2780_v7 = vld [vmem:[#allocation9 + $0x10] sm:$0xff]   ;;  %v2781_v9 = vld [vmem:[#allocation9 + $0x8] sm:$0xff]   ;;  %v3540_v29 = vshrl.u32 %v494_v28, 7  ;;  %s3228_s16 = smov 64   ;;  %vm978_vm2 = vcmask 261120  }
  0x98   : > { %2443 = vmatpush3.bf16.msra.mxu0 %v2775_v1  ;;  %2463 = vmatpush3.bf16.msra.mxu1 %v2791_v6  ;;  %v2792_v8 = vld [vmem:[#allocation10 + $0x30] sm:$0xff]   ;;  %v2793_v10 = vld [vmem:[#allocation10 + $0x28] sm:$0xff]   ;;  %v2782_v11 = vld [vmem:[#allocation9] sm:$0xff]   ;;  %vm1182_vm3 = vcmask 130048   ;;  %vm1501_vm4 = vcmask 523264   ;;  %vm1504_vm5 = vcmask 785408  }
  0x99   : > { %2444 = vmatprep.subr.bf16.mxu0 %v3224_v0  ;;  %2464 = vmatprep.subr.bf16.mxu1 %v3224_v0  ;;  %v3510_v12 = vld [vmem:[%s3474_s6] sm:$0xff]  ;;  %v3513_v13 = vld [vmem:[%s3474_s6 + $0x8] sm:$0xff]  ;;  %v496_v30 = vsub.s32 1, %v3540_v29  ;;  %v840_v44 = vsub.s32 0, %v3540_v29  ;;  %v605_v56 = vsub.s32 2, %v3540_v29  ;;  %s2367_s23 = sshll.u32 %s3202_s12, 8 }
  0x9a   : > { %v2783_v14 = vld [vmem:[#allocation7 + $0x38] sm:$0xff]   ;;  %v477_v15 = vpack.c.bf16 %v3513_v13, %v3510_v12  ;;  %v2784_v16 = vld [vmem:[#allocation7 + $0x30] sm:$0xff]   ;;  %v2785_v17 = vld [vmem:[#allocation7 + $0x28] sm:$0xff]   ;;  %s466_s25 = scalar_lea.vmem [#allocation18], %s2239_s3  ;;  %s3701_s19 = scalar_lea.hbm %s3760_s9, %s2367_s23 }
  0x9b   : > { %v2786_v18 = vld [vmem:[#allocation7 + $0x20] sm:$0xff]   ;;  %v2787_v19 = vld [vmem:[#allocation7 + $0x18] sm:$0xff]   ;;  %v2788_v20 = vld [vmem:[#allocation7 + $0x10] sm:$0xff]   ;;  %s2071_s22 = sshll.u32 %s466_s25, 4  ;;  %s2056_s24 = scalar_lea.sflag [#allocation6], %s3468_s1  ;;  %s3703_s22 = int_to_ptr.vmem [resolvable:$true] %s2071_s22 }
  0x9c   : > { %2445 = vmatpush3.bf16.msra.mxu0 %v2776_v2  ;;  %2465 = vmatpush3.bf16.msra.mxu1 %v2792_v8  ;;  %v2789_v21 = vld [vmem:[#allocation7 + $0x8] sm:$0xff]   ;;  %v2790_v22 = vld [vmem:[#allocation7] sm:$0xff]   ;;  %v2795_v24 = vld [vmem:[#allocation10 + $0x18] sm:$0xff]   ;;  %s3114_s20 = scalar_lea.vmem %s3703_s22, 256  ;;  %p3798_p3 = scmp.ne.s32.totalorder %s3795_s15, 0 }
  0x9d   : > { %2446 = vmatprep.subr.bf16.mxu0 %v3224_v0  ;;  %2466 = vmatprep.subr.bf16.mxu1 %v3224_v0  ;;  %v2794_v23 = vld [vmem:[#allocation10 + $0x20] sm:$0xff]   ;;  %v2796_v25 = vld [vmem:[#allocation10 + $0x10] sm:$0xff]   ;;  %v2797_v26 = vld [vmem:[#allocation10 + $0x8] sm:$0xff]   ;;  %p3115_p1 = scmp.ne.s32.totalorder %s3703_s22, %s3114_s20  ;;  %s3230_s12 = smov [#allocation18]  }
  0x9e   : > { %v2798_v27 = vld [vmem:[#allocation10] sm:$0xff]   ;;  %s3118_s28 = sshll.u32 %s3230_s12, 4  ;;  %s3119_s28 = int_to_ptr.vmem [resolvable:$false] %s3118_s28 }
  0x9f   : > { %v3543_v31 = vld [vmem:[#allocation16] sm:$0xff]  ;;  %p3116_p5 = pnand %p3115_p1, %p3798_p3  ;;  %s3120_s2 = scalar_lea.vmem %s3119_s28, 512 }
  0xa0   : > { %2447 = vmatpush3.bf16.msra.mxu0 %v2777_v3  ;;  %2467 = vmatpush3.bf16.msra.mxu1 %v2793_v10  ;;  %v497_v32 = vrot.slane %v3543_v31, %v496_v30  ;;  %v841_v45 = vrot.slane %v3543_v31, %v840_v44  ;;  %v606_v57 = vrot.slane %v3543_v31, %v605_v56  ;;  %p3121_p6 = scmp.lt.s32.totalorder %s3703_s22, %s3119_s28  ;;  %p3122_p8 = scmp.lt.s32.totalorder %s3120_s2, %s3114_s20 }
  0xa1   : > { %2448 = vmatprep.subr.bf16.mxu0 %v3224_v0  ;;  %2468 = vmatprep.subr.bf16.mxu1 %v3224_v0  ;;  %p3117_p2 = pneg %p3116_p5 }
  0xa2   : > { %p3123_p11 = por %p3122_p8, %p3121_p6 }
  0xa4   : > { %2449 = vmatpush3.bf16.msra.mxu0 %v2778_v4  ;;  %2469 = vmatpush3.bf16.msra.mxu1 %v2794_v23  ;;  %p3124_p7 = pnand %p3123_p11, %p3117_p2 }
  0xa5   : > { %2450 = vmatprep.subr.bf16.mxu0 %v3224_v0  ;;  %2470 = vmatprep.subr.bf16.mxu1 %v3224_v0 }
  0xa8   : > { %2451 = vmatpush3.bf16.msra.mxu0 %v2779_v5  ;;  %2471 = vmatpush3.bf16.msra.mxu1 %v2795_v24 }
  0xa9   : > { %2452 = vmatprep.subr.bf16.mxu0 %v3224_v0  ;;  %2472 = vmatprep.subr.bf16.mxu1 %v3224_v0 }
  0xac   : > { %2453 = vmatpush3.bf16.msra.mxu0 %v2780_v7  ;;  %2473 = vmatpush3.bf16.msra.mxu1 %v2796_v25 }
  0xad   : > { %2454 = vmatprep.subr.bf16.mxu0 %v3224_v0  ;;  %2474 = vmatprep.subr.bf16.mxu1 %v3224_v0 }
  0xb0   : > { %2455 = vmatpush3.bf16.msra.mxu0 %v2781_v9  ;;  %2475 = vmatpush3.bf16.msra.mxu1 %v2797_v26 }
  0xb1   : > { %2456 = vmatprep.subr.bf16.mxu0 %v3224_v0  ;;  %2476 = vmatprep.subr.bf16.mxu1 %v3224_v0 }
  0xb4   : > { %2457 = vmatpush3.bf16.msra.mxu0 %v2782_v11  ;;  %2477 = vmatpush3.bf16.msra.mxu1 %v2798_v27 }
  0xb5   : > { %2482 = vmatprep.subr.bf16.mxu0 %v3224_v0  ;;  %2502 = vmatprep.subr.bf16.mxu1 %v3224_v0 }
  0xb7   : > { %2459 = vmatmul.mubr.bf16.vlgmr.msra.gmra.mxu0 %v477_v15  ;;  %2479 = vmatmul.mubr.bf16.vlgmr.msra.gmra.mxu1 %v477_v15 }
  0xb8   : > { %2483 = vmatpush3.bf16.msra.mxu0 %v2783_v14  ;;  %2498 = vmatprep.mubr.msk.bf16.mxu0 %vm3225_vm0, %v3224_v0 }
  0xb9   : > { %2484 = vmatprep.subr.bf16.mxu0 %v3224_v0  ;;  %2504 = vmatprep.mubr.msk.bf16.mxu1 %vm3225_vm0, %v3224_v0 }
  0xbc   : > { %2485 = vmatpush3.bf16.msra.mxu0 %v2784_v16 }
  0xbd   : > { %2486 = vmatprep.subr.bf16.mxu0 %v3224_v0 }
  0xc0   : > { %2487 = vmatpush3.bf16.msra.mxu0 %v2785_v17 }
  0xc1   : > { %2488 = vmatprep.subr.bf16.mxu0 %v3224_v0 }
  0xc4   : > { %2489 = vmatpush3.bf16.msra.mxu0 %v2786_v18 }
  0xc5   : > { %2490 = vmatprep.subr.bf16.mxu0 %v3224_v0 }
  0xc8   : > { %2491 = vmatpush3.bf16.msra.mxu0 %v2787_v19 }
  0xc9   : > { %2492 = vmatprep.subr.bf16.mxu0 %v3224_v0 }
  0xcc   : > { %2493 = vmatpush3.bf16.msra.mxu0 %v2788_v20 }
  0xcd   : > { %2494 = vmatprep.subr.bf16.mxu0 %v3224_v0 }
  0xd0   : > { %2495 = vmatpush3.bf16.msra.mxu0 %v2789_v21 }
  0xd1   : > { %2496 = vmatprep.subr.bf16.mxu0 %v3224_v0 }
  0xd4   : > { %2497 = vmatpush3.bf16.msra.mxu0 %v2790_v22 }
  0xd5   : > { %2550 = vmatprep.subr.bf16.mxu0 %v3224_v0 }
  0xd7   : > { %2499 = vmatmul.mubr.bf16.vlgmr.msra.gmra.mxu0 %v477_v15 }
  0xd8   : > { %2566 = vmatprep.mubr.msk.bf16.mxu0 %vm3225_vm0, %v3224_v0 }
 0x177   : > { %v580_v33 = vpop.f32.mrf.mxu0  ;;  %v689_v58 = vpop.f32.mrf.mxu1 }
 0x178   : > { %v581_v34 = vadd.f32 %v580_v33, %v497_v32  ;;  %v3567_v59 = vadd.f32 %v689_v58, %v606_v57 }
 0x179   : > { %v2460_v35 = vpop.f32.mrf.mxu0  ;;  %v2480_v60 = vpop.f32.mrf.mxu1 }
 0x17a   : > { %v2351_v36 = vpack.c.bf16 %v581_v34, %v581_v34  ;;  %v2359_v61 = vpack.c.bf16 %v3567_v59, %v3567_v59 }
 0x17b   : > { %v583_v37 = vpop.f32.mrf.mxu0  ;;  %v692_v62 = vpop.f32.mrf.mxu1 }
 0x17c   : > { %749 = vst.msk [vmem:[#allocation2] sm:$0xf] %vm748_vm1, %v2351_v36  ;;  %v584_v38 = vadd.f32 %v583_v37, %v497_v32  ;;  %809 = vst.msk [vmem:[#allocation3] sm:$0xf] %vm748_vm1, %v2359_v61  ;;  %v3572_v63 = vadd.f32 %v692_v62, %v606_v57 }
 0x17d   : > { %v2461_v39 = vpop.f32.mrf.mxu0  ;;  %v2481_v1 = vpop.f32.mrf.mxu1 }
 0x17e   : > { %v2352_v40 = vpack.c.bf16 %v584_v38, %v584_v38  ;;  %v2725_v41 = vpack.i.bf16 %v584_v38, %v581_v34  ;;  %v2360_v2 = vpack.c.bf16 %v3572_v63, %v3572_v63 }
 0x180   : > { %750 = vst.msk [vmem:[#allocation2 + $0x4] sm:$0xf] %vm748_vm1, %v2352_v40  ;;  %2726 = vrot.lane.b32.xlu1 %v2725_v41, %s3226_s5  ;;  %2716 = vrot.lane.b32.xlu0 %v2725_v41, %s3227_s7  ;;  %810 = vst.msk [vmem:[#allocation3 + $0x4] sm:$0xf] %vm748_vm1, %v2360_v2 }
 0x184   : > { %2721 = vrot.lane.b32.xlu0 %v2725_v41, %s3228_s16 }
 0x187   : > { %v2799_v42 = vld [vmem:[#allocation2] sm:$0xff]  }
 0x188   : > { %v983_v43 = vsel %vm978_vm2, %v2799_v42, 0  ;;  %v2803_v40 = vld [vmem:[#allocation3] sm:$0xff]  }
 0x189   : > { %2503 = vmatpush3.bf16.xpose.msra.mxu1 %v983_v43 }
 0x18a   : > { %2508 = vmatprep.subr.bf16.mxu1 %v3224_v0 }
 0x197   : > { %v924_v46 = vpop.f32.mrf.mxu0 }
 0x198   : > { %v925_v48 = vadd.f32 %v924_v46, %v841_v45 }
 0x199   : > { %v2500_v47 = vpop.f32.mrf.mxu0 }
 0x19a   : > { %v931_v52 = vmul.f32 0.17677669, %v925_v48 }
 0x19b   : > { %v927_v49 = vpop.f32.mrf.mxu0 }
 0x19c   : > { %v928_v50 = vadd.f32 %v927_v49, %v841_v45 }
 0x19d   : > { %v2501_v51 = vpop.f32.mrf.mxu0 }
 0x19e   : > { %v932_v53 = vmul.f32 0.17677669, %v928_v50 }
 0x1a0   : > { %v953_v54 = vpack.c.bf16 %v932_v53, %v931_v52  ;;  %v2730_v55 = vpack.i.bf16 %v932_v53, %v931_v52 }
 0x1a2   : > { %2731 = vrot.lane.b32.xlu1 %v2730_v55, %s3227_s7  ;;  %2736 = vrot.lane.b32.xlu0 %v2730_v55, %s3228_s16 }
 0x1a3   : > { %2505 = vmatmul.mubr.msk.bf16.vlgmr.msra.gmra.mxu1 %vm978_vm2, %v953_v54 }
 0x1a4   : > { %2510 = vmatprep.mubr.msk.bf16.mxu1 %vm3225_vm0, %v3224_v0 }
 0x1a6   : > { %2741 = vrot.lane.b32.xlu1 %v2730_v55, %s3226_s5 }
 0x1f2   : > { %v2727_v3 = vpop.permute.xlu1 %2726  ;;  %v2717_v4 = vpop.permute.xlu0 %2716 }
 0x1f3   : > { %v2729_v5 = vunpack.i.h.bf16 %v2727_v3  ;;  %v2728_v6 = vunpack.i.l.bf16 %v2727_v3  ;;  %v2719_v7 = vunpack.i.h.bf16 %v2717_v4  ;;  %v2718_v8 = vunpack.i.l.bf16 %v2717_v4 }
 0x1f5   : > { %v2358_v9 = vpack.c.bf16 %v2729_v5, %v2729_v5  ;;  %v2357_v10 = vpack.c.bf16 %v2728_v6, %v2728_v6  ;;  %v2354_v11 = vpack.c.bf16 %v2719_v7, %v2719_v7  ;;  %v2353_v14 = vpack.c.bf16 %v2718_v8, %v2718_v8 }
 0x1f6   : > { %v2722_v15 = vpop.permute.xlu0 %2721 }
 0x1f7   : > { %756 = vst.msk [vmem:[#allocation2 + $0x1c] sm:$0xf] %vm748_vm1, %v2358_v9  ;;  %755 = vst.msk [vmem:[#allocation2 + $0x18] sm:$0xf] %vm748_vm1, %v2357_v10  ;;  %v2724_v16 = vunpack.i.h.bf16 %v2722_v15  ;;  %v2723_v17 = vunpack.i.l.bf16 %v2722_v15  ;;  %v2745_v9 = vpack.i.bf16 %v3572_v63, %v3567_v59 }
 0x1f8   : > { %752 = vst.msk [vmem:[#allocation2 + $0xc] sm:$0xf] %vm748_vm1, %v2354_v11  ;;  %751 = vst.msk [vmem:[#allocation2 + $0x8] sm:$0xf] %vm748_vm1, %v2353_v14 }
 0x1f9   : > { %v2356_v18 = vpack.c.bf16 %v2724_v16, %v2724_v16  ;;  %v2355_v19 = vpack.c.bf16 %v2723_v17, %v2723_v17 }
 0x1fb   : > { %754 = vst.msk [vmem:[#allocation2 + $0x14] sm:$0xf] %vm748_vm1, %v2356_v18  ;;  %753 = vst.msk [vmem:[#allocation2 + $0x10] sm:$0xf] %vm748_vm1, %v2355_v19 }
 0x1fe   : > { %v2802_v34 = vld [vmem:[#allocation2 + $0x18] sm:$0xff]  }
 0x1ff   : > { %v2800_v20 = vld [vmem:[#allocation2 + $0x8] sm:$0xff]   ;;  %v1139_v37 = vsel %vm978_vm2, %v2802_v34, 0 }
 0x200   : > { %v1035_v21 = vsel %vm978_vm2, %v2800_v20, 0 }
 0x201   : > { %2509 = vmatpush3.bf16.xpose.msra.mxu1 %v1035_v21 }
 0x202   : > { %2514 = vmatprep.subr.bf16.mxu1 %v3224_v0  ;;  %v2801_v25 = vld [vmem:[#allocation2 + $0x10] sm:$0xff]  }
 0x203   : > { %v1087_v28 = vsel %vm978_vm2, %v2801_v25, 0 }
 0x214   : > { %v2732_v22 = vpop.permute.xlu1 %2731  ;;  %v2737_v27 = vpop.permute.xlu0 %2736 }
 0x215   : > { %v2734_v23 = vunpack.i.h.bf16 %v2732_v22  ;;  %v2733_v24 = vunpack.i.l.bf16 %v2732_v22  ;;  %v2739_v32 = vunpack.i.h.bf16 %v2737_v27  ;;  %v2738_v33 = vunpack.i.l.bf16 %v2737_v27 }
 0x217   : > { %v954_v26 = vpack.c.bf16 %v2734_v23, %v2733_v24  ;;  %v955_v35 = vpack.c.bf16 %v2739_v32, %v2738_v33 }
 0x218   : > { %v2742_v36 = vpop.permute.xlu1 %2741 }
 0x219   : > { %2511 = vmatmul.mubr.msk.bf16.vlgmr.msra.gmra.mxu1 %vm978_vm2, %v954_v26  ;;  %v2744_v38 = vunpack.i.h.bf16 %v2742_v36  ;;  %v2743_v39 = vunpack.i.l.bf16 %v2742_v36 }
 0x21a   : > { %2515 = vmatpush3.bf16.xpose.msra.mxu1 %v1087_v28  ;;  %2516 = vmatprep.mubr.msk.bf16.mxu1 %vm3225_vm0, %v3224_v0 }
 0x21b   : > { %2520 = vmatprep.subr.bf16.mxu1 %v3224_v0  ;;  %v956_v41 = vpack.c.bf16 %v2744_v38, %v2743_v39 }
 0x221   : > { %2517 = vmatmul.mubr.msk.bf16.vlgmr.msra.gmra.mxu1 %vm978_vm2, %v955_v35 }
 0x222   : > { %2521 = vmatpush3.bf16.xpose.msra.mxu1 %v1139_v37  ;;  %2522 = vmatprep.mubr.msk.bf16.mxu1 %vm3225_vm0, %v3224_v0 }
 0x223   : > { %2526 = vmatprep.subr.bf16.mxu1 %v3224_v0 }
 0x229   : > { %2523 = vmatmul.mubr.msk.bf16.vlgmr.msra.gmra.mxu1 %vm978_vm2, %v956_v41 }
 0x22a   : > { %2527 = vmatpush3.bf16.msra.mxu1 %v2803_v40  ;;  %2528 = vmatprep.mubr.msk.bf16.mxu1 %vm3225_vm0, %v3224_v0 }
 0x22b   : > { %2532 = vmatprep.subr.bf16.mxu1 %v3224_v0 }
 0x263   : > { %v1019_v42 = vpop.f32.mrf.mxu1 }
 0x264   : > { %v1183_v43 = vsel %vm1182_vm3, %v1019_v42, -inf }
 0x265   : > { %1184 = vmax.xlane.f32.xlu0 %v1183_v43  ;;  %v2506_v45 = vpop.f32.mrf.mxu1 }
 0x267   : > { %v1022_v46 = vpop.f32.mrf.mxu1 }
 0x268   : > { %v1186_v47 = vsel %vm1182_vm3, %v1022_v46, -inf }
 0x269   : > { %1187 = vmax.xlane.f32.xlu1 %v1186_v47  ;;  %v2507_v48 = vpop.f32.mrf.mxu1 }
 0x2d9   : > { %v1071_v49 = vpop.f32.mrf.mxu1 }
 0x2da   : > { %v1189_v50 = vsel %vm1182_vm3, %v1071_v49, -inf }
 0x2db   : > { %1190 = vmax.xlane.f32.xlu0 %v1189_v50  ;;  %v2512_v51 = vpop.f32.mrf.mxu1 }
 0x2dd   : > { %v1074_v52 = vpop.f32.mrf.mxu1 }
 0x2de   : > { %v1192_v53 = vsel %vm1182_vm3, %v1074_v52, -inf }
 0x2df   : > { %1193 = vmax.xlane.f32.xlu0 %v1192_v53  ;;  %v2513_v54 = vpop.f32.mrf.mxu1 }
 0x2e1   : > { %v1123_v55 = vpop.f32.mrf.mxu1 }
 0x2e2   : > { %v1195_v56 = vsel %vm1182_vm3, %v1123_v55, -inf }
 0x2e3   : > { %1196 = vmax.xlane.f32.xlu1 %v1195_v56  ;;  %v2518_v57 = vpop.f32.mrf.mxu1 }
 0x2e5   : > { %v1126_v58 = vpop.f32.mrf.mxu1 }
 0x2e6   : > { %v1198_v60 = vsel %vm1182_vm3, %v1126_v58, -inf }
 0x2e7   : > { %1199 = vmax.xlane.f32.xlu0 %v1198_v60  ;;  %v2519_v61 = vpop.f32.mrf.mxu1 }
 0x2e9   : > { %v1175_v62 = vpop.f32.mrf.mxu1 }
 0x2ea   : > { %v1201_v1 = vsel %vm1182_vm3, %v1175_v62, -inf }
 0x2eb   : > { %1202 = vmax.xlane.f32.xlu1 %v1201_v1  ;;  %v2524_v2 = vpop.f32.mrf.mxu1 }
 0x2ed   : > { %v1178_v3 = vpop.f32.mrf.mxu1 }
 0x2ee   : > { %v1204_v4 = vsel %vm1182_vm3, %v1178_v3, -inf  ;;  %v1185_v11 = vpop.xlane.xlu0 %1184 }
 0x2ef   : > { %1205 = vmax.xlane.f32.xlu0 %v1204_v4  ;;  %v2525_v5 = vpop.f32.mrf.mxu1  ;;  %v1207_v15 = vsub.f32 %v1019_v42, %v1185_v11 }
 0x2f1   : > { %v1215_v16 = vmul.f32 1.442695, %v1207_v15 }
 0x2f2   : > { %v1188_v6 = vpop.xlane.xlu1 %1187 }
 0x2f3   : > { %v1208_v7 = vsub.f32 %v1022_v46, %v1188_v6 }
 0x2f5   : > { %v1217_v8 = vmul.f32 1.442695, %v1208_v7 }
 0x2f7   : > { %2855 = vpow2.f32 %v1217_v8 }
 0x2f8   : > { %2857 = vpow2.f32 %v1215_v16 }
 0x2fc   : > { %2746 = vrot.lane.b32.xlu1 %v2745_v9, %s3227_s7 }
 0x304   : > { %v3610_v10 = vpop.eup %2855 }
 0x305   : > { %v1234_v14 = vsel %vm1182_vm3, %v3610_v10, 0.0  ;;  %v2858_v17 = vpop.eup %2857 }
 0x306   : > { %1235 = vadd.xlane.f32.xlu0 %v1234_v14  ;;  %v1231_v18 = vsel %vm1182_vm3, %v2858_v17, 0.0 }
 0x320   : > { %1232 = vadd.xlane.f32.xlu1 %v1231_v18 }
 0x364   : > { %v1191_v19 = vpop.xlane.xlu0 %1190 }
 0x365   : > { %v1209_v20 = vsub.f32 %v1071_v49, %v1191_v19 }
 0x367   : > { %v1219_v21 = vmul.f32 1.442695, %v1209_v20 }
 0x368   : > { %v1194_v59 = vpop.xlane.xlu0 %1193 }
 0x369   : > { %2859 = vpow2.f32 %v1219_v21  ;;  %v1210_v63 = vsub.f32 %v1074_v52, %v1194_v59 }
 0x36b   : > { %v1221_v22 = vmul.f32 1.442695, %v1210_v63 }
 0x36c   : > { %v1197_v23 = vpop.xlane.xlu1 %1196 }
 0x36d   : > { %2861 = vpow2.f32 %v1221_v22  ;;  %v1211_v24 = vsub.f32 %v1123_v55, %v1197_v23 }
 0x36f   : > { %v1223_v25 = vmul.f32 1.442695, %v1211_v24 }
 0x370   : > { %v1200_v26 = vpop.xlane.xlu0 %1199 }
 0x371   : > { %2863 = vpow2.f32 %v1223_v25  ;;  %v1212_v27 = vsub.f32 %v1126_v58, %v1200_v26 }
 0x373   : > { %v1225_v28 = vmul.f32 1.442695, %v1212_v27 }
 0x374   : > { %v1203_v32 = vpop.xlane.xlu1 %1202 }
 0x375   : > { %2865 = vpow2.f32 %v1225_v28  ;;  %v1213_v33 = vsub.f32 %v1175_v62, %v1203_v32 }
 0x376   : > { %v3615_v34 = vpop.eup %2859 }
 0x377   : > { %v1227_v35 = vmul.f32 1.442695, %v1213_v33  ;;  %v1237_v36 = vsel %vm1182_vm3, %v3615_v34, 0.0 }
 0x378   : > { %1238 = vadd.xlane.f32.xlu1 %v1237_v36  ;;  %v2747_v37 = vpop.permute.xlu1 %2746  ;;  %v1206_v38 = vpop.xlane.xlu0 %1205 }
 0x379   : > { %2867 = vpow2.f32 %v1227_v35  ;;  %v2749_v39 = vunpack.i.h.bf16 %v2747_v37  ;;  %v2748_v40 = vunpack.i.l.bf16 %v2747_v37  ;;  %v1214_v41 = vsub.f32 %v1178_v3, %v1206_v38 }
 0x37a   : > { %v2862_v42 = vpop.eup %2861 }
 0x37b   : > { %v2362_v43 = vpack.c.bf16 %v2749_v39, %v2749_v39  ;;  %v2361_v45 = vpack.c.bf16 %v2748_v40, %v2748_v40  ;;  %v1229_v46 = vmul.f32 1.442695, %v1214_v41  ;;  %v1240_v47 = vsel %vm1182_vm3, %v2862_v42, 0.0 }
 0x37c   : > { %1241 = vadd.xlane.f32.xlu0 %v1240_v47 }
 0x37d   : > { %812 = vst.msk [vmem:[#allocation3 + $0xc] sm:$0xf] %vm748_vm1, %v2362_v43  ;;  %811 = vst.msk [vmem:[#allocation3 + $0x8] sm:$0xf] %vm748_vm1, %v2361_v45  ;;  %2869 = vpow2.f32 %v1229_v46  ;;  %v2807_v43 = vld [vmem:[#allocation12 + $0x38] sm:$0xff]   ;;  %v2808_v45 = vld [vmem:[#allocation12 + $0x30] sm:$0xff]  }
 0x37e   : > { %v3622_v48 = vpop.eup %2863  ;;  %2551 = vmatpush3.bf16.msra.mxu0 %v2807_v43  ;;  %v2809_v46 = vld [vmem:[#allocation12 + $0x28] sm:$0xff]  }
 0x37f   : > { %v1243_v49 = vsel %vm1182_vm3, %v3622_v48, 0.0  ;;  %2552 = vmatprep.subr.bf16.mxu0 %v3224_v0  ;;  %v2820_v43 = vld [vmem:[#allocation13 + $0x64] ss:$8 sps:$4 sm:$0xff]  }
 0x380   : > { %1244 = vadd.xlane.f32.xlu1 %v1243_v49  ;;  %v2810_v49 = vld [vmem:[#allocation12 + $0x20] sm:$0xff]  }
 0x382   : > { %v2866_v50 = vpop.eup %2865  ;;  %2553 = vmatpush3.bf16.msra.mxu0 %v2808_v45  ;;  %v2818_v45 = vld [vmem:[#allocation13 + $0x60] ss:$8 sps:$4 sm:$0xff]  }
 0x383   : > { %v1246_v51 = vsel %vm1182_vm3, %v2866_v50, 0.0  ;;  %2554 = vmatprep.subr.bf16.mxu0 %v3224_v0 }
 0x384   : > { %1247 = vadd.xlane.f32.xlu0 %v1246_v51  ;;  %v2804_v2 = vld [vmem:[#allocation3 + $0x8] sm:$0xff]  }
 0x386   : > { %v3627_v52 = vpop.eup %2867  ;;  %2555 = vmatpush3.bf16.msra.mxu0 %v2809_v46  ;;  %v2821_v46 = vld [vmem:[#allocation13 + $0x50] ss:$8 sps:$4 sm:$0xff]  }
 0x387   : > { %v1249_v53 = vsel %vm1182_vm3, %v3627_v52, 0.0  ;;  %2556 = vmatprep.subr.bf16.mxu0 %v3224_v0 }
 0x388   : > { %1250 = vadd.xlane.f32.xlu0 %v1249_v53  ;;  %v2811_v53 = vld [vmem:[#allocation12 + $0x18] sm:$0xff]  }
 0x38a   : > { %v3631_v54 = vpop.eup %2869  ;;  %2557 = vmatpush3.bf16.msra.mxu0 %v2810_v49  ;;  %v2829_v49 = vld [vmem:[#allocation13 + $0x34] ss:$8 sps:$4 sm:$0xff]  }
 0x38b   : > { %v1252_v55 = vsel %vm1182_vm3, %v3631_v54, 0.0  ;;  %2558 = vmatprep.subr.bf16.mxu0 %v3224_v0 }
 0x38c   : > { %1253 = vadd.xlane.f32.xlu0 %v1252_v55  ;;  %v2813_v55 = vld [vmem:[#allocation12 + $0x8] sm:$0xff]  }
 0x38e   : > { %2559 = vmatpush3.bf16.msra.mxu0 %v2811_v53  ;;  %v2830_v53 = vld [vmem:[#allocation13 + $0x20] ss:$8 sps:$4 sm:$0xff]  }
 0x38f   : > { %v1236_v56 = vpop.xlane.xlu0 %1235  ;;  %2560 = vmatprep.subr.bf16.mxu0 %v3224_v0 }
 0x390   : > { %2871 = vrcp.f32 %v1236_v56 }
 0x391   : > { %2756 = vrot.lane.b32.xlu1 %v2745_v9, %s3226_s5 }
 0x39d   : > { %v2872_v58 = vpop.eup %2871 }
 0x39e   : > { %v1264_v62 = vmul.f32 %v2872_v58, %v3610_v10  ;;  %v2814_v58 = vld [vmem:[#allocation12] sm:$0xff]  }
 0x3a2   : > { %2751 = vrot.lane.b32.xlu0 %v2745_v9, %s3228_s16 }
 0x3a9   : > { %v1233_v57 = vpop.xlane.xlu1 %1232 }
 0x3aa   : > { %2873 = vrcp.f32 %v1233_v57 }
 0x3b7   : > { %v2874_v60 = vpop.eup %2873 }
 0x3b8   : > { %v1263_v61 = vmul.f32 %v2874_v60, %v2858_v17 }
 0x3ba   : > { %v1271_v1 = vpack.c.bf16 %v1264_v62, %v1263_v61 }
 0x3bc   : > { %2529 = vmatmul.mubr.msk.bf16.vlgmr.msra.gmra.mxu1 %vm1182_vm3, %v1271_v1 }
 0x3bd   : > { %2533 = vmatpush3.bf16.msra.mxu1 %v2804_v2  ;;  %2534 = vmatprep.mubr.msk.bf16.mxu1 %vm3225_vm0, %v3224_v0 }
 0x3be   : > { %2538 = vmatprep.subr.bf16.mxu1 %v3224_v0 }
 0x401   : > { %v1239_v3 = vpop.xlane.xlu1 %1238 }
 0x402   : > { %2875 = vrcp.f32 %v1239_v3 }
 0x405   : > { %v1242_v4 = vpop.xlane.xlu0 %1241 }
 0x406   : > { %2877 = vrcp.f32 %v1242_v4 }
 0x409   : > { %v1245_v5 = vpop.xlane.xlu1 %1244 }
 0x40d   : > { %v2757_v6 = vpop.permute.xlu1 %2756  ;;  %v1248_v7 = vpop.xlane.xlu0 %1247 }
 0x40e   : > { %v2759_v8 = vunpack.i.h.bf16 %v2757_v6  ;;  %v2758_v9 = vunpack.i.l.bf16 %v2757_v6  ;;  %2879 = vrcp.f32 %v1248_v7 }
 0x40f   : > { %v2876_v14 = vpop.eup %2875  ;;  %2881 = vrcp.f32 %v1245_v5 }
 0x410   : > { %v2366_v10 = vpack.c.bf16 %v2759_v8, %v2759_v8  ;;  %v2365_v11 = vpack.c.bf16 %v2758_v9, %v2758_v9  ;;  %v1265_v17 = vmul.f32 %v2876_v14, %v3615_v34 }
 0x411   : > { %v1251_v15 = vpop.xlane.xlu0 %1250 }
 0x412   : > { %816 = vst.msk [vmem:[#allocation3 + $0x1c] sm:$0xf] %vm748_vm1, %v2366_v10  ;;  %815 = vst.msk [vmem:[#allocation3 + $0x18] sm:$0xf] %vm748_vm1, %v2365_v11 }
 0x413   : > { %v2878_v16 = vpop.eup %2877 }
 0x414   : > { %v1266_v18 = vmul.f32 %v2878_v16, %v2862_v42 }
 0x415   : > { %v1254_v19 = vpop.xlane.xlu0 %1253 }
 0x416   : > { %v1272_v20 = vpack.c.bf16 %v1266_v18, %v1265_v17  ;;  %2883 = vrcp.f32 %v1254_v19 }
 0x417   : > { %2885 = vrcp.f32 %v1251_v15 }
 0x418   : > { %2535 = vmatmul.mubr.msk.bf16.vlgmr.msra.gmra.mxu1 %vm1182_vm3, %v1272_v20 }
 0x419   : > { %v2752_v21 = vpop.permute.xlu0 %2751  ;;  %2540 = vmatprep.mubr.msk.bf16.mxu1 %vm3225_vm0, %v3224_v0  ;;  %v2806_v34 = vld [vmem:[#allocation3 + $0x18] sm:$0xff]  }
 0x41a   : > { %v2754_v59 = vunpack.i.h.bf16 %v2752_v21  ;;  %v2753_v63 = vunpack.i.l.bf16 %v2752_v21 }
 0x41b   : > { %v2880_v24 = vpop.eup %2879 }
 0x41c   : > { %v2364_v22 = vpack.c.bf16 %v2754_v59, %v2754_v59  ;;  %v2363_v23 = vpack.c.bf16 %v2753_v63, %v2753_v63  ;;  %v2882_v25 = vpop.eup %2881  ;;  %v1268_v26 = vmul.f32 %v2880_v24, %v2866_v50  ;;  %v1526_v63 = vsub.s32 3, %v3540_v29 }
 0x41d   : > { %v1267_v28 = vmul.f32 %v2882_v25, %v3622_v48 }
 0x41e   : > { %814 = vst.msk [vmem:[#allocation3 + $0x14] sm:$0xf] %vm748_vm1, %v2364_v22  ;;  %813 = vst.msk [vmem:[#allocation3 + $0x10] sm:$0xf] %vm748_vm1, %v2363_v23  ;;  %v1527_v22 = vrot.slane %v3543_v31, %v1526_v63  ;;  %v2846_v63 = vld [vmem:[#allocation15 + $0x20] sm:$0xff]  }
 0x41f   : > { %v1273_v32 = vpack.c.bf16 %v1268_v26, %v1267_v28 }
 0x423   : > { %v2884_v33 = vpop.eup %2883 }
 0x424   : > { %v2886_v35 = vpop.eup %2885  ;;  %v1270_v36 = vmul.f32 %v2884_v33, %v3631_v54  ;;  %v2812_v54 = vld [vmem:[#allocation12 + $0x10] sm:$0xff]  }
 0x425   : > { %v2805_v27 = vld [vmem:[#allocation3 + $0x10] sm:$0xff]   ;;  %v1269_v37 = vmul.f32 %v2886_v35, %v3627_v52  ;;  %2561 = vmatpush3.bf16.msra.mxu0 %v2812_v54 }
 0x426   : > { %2539 = vmatpush3.bf16.msra.mxu1 %v2805_v27  ;;  %2562 = vmatprep.subr.bf16.mxu0 %v3224_v0  ;;  %v2817_v35 = vld [vmem:[#allocation13 + $0x74] ss:$8 sps:$4 sm:$0xff]  }
 0x427   : > { %2544 = vmatprep.subr.bf16.mxu1 %v3224_v0  ;;  %v1274_v38 = vpack.c.bf16 %v1270_v36, %v1269_v37  ;;  %v2835_v54 = vld [vmem:[#allocation13 + $0x14] ss:$8 sps:$4 sm:$0xff]  }
 0x429   : > { %2541 = vmatmul.mubr.msk.bf16.vlgmr.msra.gmra.mxu1 %vm1182_vm3, %v1273_v32  ;;  %2563 = vmatpush3.bf16.msra.mxu0 %v2813_v55  ;;  %v2833_v55 = vld [vmem:[#allocation13 + $0x10] ss:$8 sps:$4 sm:$0xff]  }
 0x42a   : > { %2545 = vmatpush3.bf16.msra.mxu1 %v2806_v34  ;;  %2546 = vmatprep.mubr.msk.bf16.mxu1 %vm3225_vm0, %v3224_v0  ;;  %v2815_v34 = vld [vmem:[#allocation13 + $0x70] ss:$8 sps:$4 sm:$0xff]  }
 0x42b   : > { %2564 = vmatprep.subr.bf16.mxu0 %v3224_v0  ;;  %1763 = vmatprep.subr.bf16.mxu1 %v2817_v35 }
 0x42d   : > { %2565 = vmatpush3.bf16.msra.mxu0 %v2814_v58 }
 0x431   : > { %2547 = vmatmul.mubr.msk.bf16.vlgmr.msra.gmra.mxu1 %vm1182_vm3, %v1274_v38 }
 0x432   : > { %1764 = vmatpush1.bf16.msra.mxu1 %v2815_v34 }
 0x433   : > { %1765 = vmatprep.subr.bf16.mxu1 %v2820_v43 }
 0x436   : > { %1766 = vmatpush1.bf16.msra.mxu1 %v2818_v45 }
 0x47c   : > { %v1318_v39 = vpop.f32.mrf.mxu1 }
 0x47e   : > { %v2530_v40 = vpop.f32.mrf.mxu1 }
 0x480   : > { %v1321_v41 = vpop.f32.mrf.mxu1 }
 0x482   : > { %v2531_v42 = vpop.f32.mrf.mxu1 }
 0x4d8   : > { %v1368_v47 = vpop.f32.mrf.mxu1 }
 0x4da   : > { %v2536_v48 = vpop.f32.mrf.mxu1 }
 0x4db   : > { %v2826_v48 = vld [vmem:[#allocation13 + $0x44] ss:$8 sps:$4 sm:$0xff]  }
 0x4dc   : > { %v1371_v50 = vpop.f32.mrf.mxu1 }
 0x4dd   : > { %v2760_v51 = vpack.i.bf16 %v1371_v50, %v1368_v47  ;;  %v2824_v47 = vld [vmem:[#allocation13 + $0x40] ss:$8 sps:$4 sm:$0xff]   ;;  %v2827_v50 = vld [vmem:[#allocation13 + $0x30] ss:$8 sps:$4 sm:$0xff]  }
 0x4de   : > { %v2537_v52 = vpop.f32.mrf.mxu1 }
 0x4df   : > { %2761 = vrot.lane.b32.xlu1 %v2760_v51, %s3226_s5  ;;  %v3229_v51 = vmov 0   ;;  %v2832_v52 = vld [vmem:[#allocation13 + $0x24] ss:$8 sps:$4 sm:$0xff]  }
 0x4e0   : > { %1795 = vmatprep.mubr.bf16.mxu1 %v3229_v51 }
 0x4e9   : > { %v1418_v56 = vpop.f32.mrf.mxu1 }
 0x4eb   : > { %v2542_v57 = vpop.f32.mrf.mxu1 }
 0x4ec   : > { %v2836_v57 = vld [vmem:[#allocation13] ss:$8 sps:$4 sm:$0xff]  }
 0x4ed   : > { %v1421_v60 = vpop.f32.mrf.mxu1 }
 0x4ee   : > { %v2765_v61 = vpack.i.bf16 %v1421_v60, %v1418_v56  ;;  %v2838_v56 = vld [vmem:[#allocation13 + $0x4] ss:$8 sps:$4 sm:$0xff]  }
 0x4ef   : > { %v2543_v62 = vpop.f32.mrf.mxu1 }
 0x4f0   : > { %2766 = vrot.lane.b32.xlu1 %v2765_v61, %s3228_s16 }
 0x4f1   : > { %v1468_v1 = vpop.f32.mrf.mxu1 }
 0x4f3   : > { %v2548_v2 = vpop.f32.mrf.mxu1 }
 0x4f5   : > { %v1471_v3 = vpop.f32.mrf.mxu1 }
 0x4f6   : > { %v2770_v4 = vpack.i.bf16 %v1471_v3, %v1468_v1  ;;  %v1644_v3 = vsub.s32 5, %v3540_v29 }
 0x4f7   : > { %v2549_v5 = vpop.f32.mrf.mxu1 }
 0x4f8   : > { %2771 = vrot.lane.b32.xlu1 %v2770_v4, %s3227_s7 }
 0x551   : > { %v2762_v6 = vpop.permute.xlu1 %2761 }
 0x552   : > { %v2764_v8 = vunpack.i.h.bf16 %v2762_v6  ;;  %v2763_v9 = vunpack.i.l.bf16 %v2762_v6  ;;  %v1645_v6 = vrot.slane %v3543_v31, %v1644_v3 }
 0x554   : > { %v1500_v14 = vsel %vm978_vm2, %v1321_v41, %v2764_v8  ;;  %v1499_v15 = vsel %vm978_vm2, %v1318_v39, %v2763_v9 }
 0x562   : > { %v2767_v7 = vpop.permute.xlu1 %2766 }
 0x563   : > { %v2769_v10 = vunpack.i.h.bf16 %v2767_v7  ;;  %v2768_v0 = vunpack.i.l.bf16 %v2767_v7  ;;  %v1650_v7 = vsub.s32 6, %v3540_v29 }
 0x565   : > { %v1503_v18 = vsel %vm1501_vm4, %v1500_v14, %v2769_v10  ;;  %v1502_v19 = vsel %vm1501_vm4, %v1499_v15, %v2768_v0  ;;  %v1651_v0 = vrot.slane %v3543_v31, %v1650_v7  ;;  %v2845_v31 = vld [vmem:[#allocation15 + $0x60] sm:$0xff]  }
 0x56a   : > { %v2772_v11 = vpop.permute.xlu1 %2771 }
 0x56b   : > { %v2774_v16 = vunpack.i.h.bf16 %v2772_v11  ;;  %v2773_v17 = vunpack.i.l.bf16 %v2772_v11 }
 0x56d   : > { %v1506_v20 = vsel %vm1504_vm5, %v1503_v18, %v2774_v16  ;;  %v1505_v21 = vsel %vm1504_vm5, %v1502_v19, %v2773_v17  ;;  %v2839_v17 = vld [vmem:[#allocation15 + $0x78] sm:$0xff]   ;;  %v2841_v19 = vld [vmem:[#allocation15 + $0x70] sm:$0xff]  }
 0x56e   : > { %v1507_v59 = vpack.c.bf16 %v1506_v20, %v1505_v21  ;;  %v2840_v18 = vld [vmem:[#allocation15 + $0x38] sm:$0xff]   ;;  %2420 = vmatprep.subr.bf16.mxu0 %v2839_v17  ;;  %v2842_v20 = vld [vmem:[#allocation15 + $0x30] sm:$0xff]   ;;  %v2843_v21 = vld [vmem:[#allocation15 + $0x68] sm:$0xff]  }
 0x570   : > { %2567 = vmatmul.mubr.bf16.vlgmr.msra.gmra.mxu0 %v1507_v59  ;;  %v2844_v59 = vld [vmem:[#allocation15 + $0x28] sm:$0xff]  }
 0x571   : > { %2421 = vmatpush3.bf16.msra.mxu0 %v2840_v18 }
 0x572   : > { %2422 = vmatprep.subr.bf16.mxu0 %v2841_v19 }
 0x575   : > { %2423 = vmatpush3.bf16.msra.mxu0 %v2842_v20 }
 0x576   : > { %2424 = vmatprep.subr.bf16.mxu0 %v2843_v21  ;;  %v1878_v21 = vsub.s32 4, %v3540_v29 }
 0x579   : > { %2425 = vmatpush3.bf16.msra.mxu0 %v2844_v59 }
 0x57a   : > { %2426 = vmatprep.subr.bf16.mxu0 %v2845_v31  ;;  %v2903_v31 = vld [vmem:[#allocation16] sm:$0xff] }
 0x57d   : > { %2427 = vmatpush3.bf16.msra.mxu0 %v2846_v63  ;;  %v1879_v63 = vrot.slane %v2903_v31, %v1878_v21 }
 0x630   : > { %v1610_v23 = vpop.f32.mrf.mxu0 }
 0x631   : > { %v1611_v24 = vadd.f32 %v1610_v23, %v1527_v22  ;;  %v2848_v23 = vld [vmem:[#allocation15 + $0x18] sm:$0xff]  }
 0x632   : > { %v2568_v25 = vpop.f32.mrf.mxu0 }
 0x633   : > { %v1617_v26 = vadd.f32 %v1611_v24, %v3510_v12  ;;  %v2849_v24 = vld [vmem:[#allocation15 + $0x50] sm:$0xff]  }
 0x634   : > { %v1613_v27 = vpop.f32.mrf.mxu0  ;;  %v2850_v25 = vld [vmem:[#allocation15 + $0x10] sm:$0xff]  }
 0x635   : > { %v1614_v28 = vadd.f32 %v1613_v27, %v1527_v22  ;;  %1619 = vadd.xlane.f32.xlu0 %v1617_v26  ;;  %v2847_v22 = vld [vmem:[#allocation15 + $0x58] sm:$0xff]   ;;  %v2852_v27 = vld [vmem:[#allocation15 + $0x8] sm:$0xff]  }
 0x636   : > { %v2569_v32 = vpop.f32.mrf.mxu0  ;;  %2428 = vmatprep.subr.bf16.mxu0 %v2847_v22 }
 0x637   : > { %v1618_v33 = vadd.f32 %v1614_v28, %v3513_v13  ;;  %v2823_v13 = vld [vmem:[#allocation13 + $0x54] ss:$8 sps:$4 sm:$0xff]   ;;  %2429 = vmatpush3.bf16.msra.mxu0 %v2848_v23  ;;  %v2853_v28 = vld [vmem:[#allocation15 + $0x40] sm:$0xff]  }
 0x638   : > { %1767 = vmatprep.subr.bf16.mxu1 %v2823_v13  ;;  %2430 = vmatprep.subr.bf16.mxu0 %v2849_v24  ;;  %v2854_v32 = vld [vmem:[#allocation15] sm:$0xff]  }
 0x639   : > { %1621 = vadd.xlane.f32.xlu1 %v1618_v33  ;;  %1768 = vmatpush1.bf16.msra.mxu1 %v2821_v46 }
 0x63a   : > { %1769 = vmatprep.subr.bf16.mxu1 %v2826_v48 }
 0x63b   : > { %2431 = vmatpush3.bf16.msra.mxu0 %v2850_v25 }
 0x63d   : > { %1770 = vmatpush1.bf16.msra.mxu1 %v2824_v47 }
 0x63e   : > { %1771 = vmatprep.subr.bf16.mxu1 %v2829_v49 }
 0x641   : > { %1772 = vmatpush1.bf16.msra.mxu1 %v2827_v50 }
 0x642   : > { %1773 = vmatprep.subr.bf16.mxu1 %v2832_v52 }
 0x645   : > { %1774 = vmatpush1.bf16.msra.mxu1 %v2830_v53 }
 0x646   : > { %1775 = vmatprep.subr.bf16.mxu1 %v2835_v54 }
 0x649   : > { %1776 = vmatpush1.bf16.msra.mxu1 %v2833_v55 }
 0x64a   : > { %1777 = vmatprep.subr.bf16.mxu1 %v2838_v56 }
 0x64d   : > { %1778 = vmatpush1.bf16.msra.mxu1 %v2836_v57 }
 0x6be   : > { %v1620_v36 = vpop.xlane.xlu0 %1619 }
 0x6bf   : > { %v1624_v37 = vmul.f32 0.0078125, %v1620_v36 }
 0x6c1   : > { %v1626_v38 = vsub.f32 %v1617_v26, %v1624_v37  ;;  %v2851_v26 = vld [vmem:[#allocation15 + $0x48] sm:$0xff]  }
 0x6c2   : > { %v1622_v39 = vpop.xlane.xlu1 %1621  ;;  %2432 = vmatprep.subr.bf16.mxu0 %v2851_v26 }
 0x6c3   : > { %v1625_v40 = vmul.f32 0.0078125, %v1622_v39  ;;  %v1628_v41 = vmul.f32 %v1626_v38, %v1626_v38  ;;  %2433 = vmatpush3.bf16.msra.mxu0 %v2852_v27 }
 0x6c4   : > { %2434 = vmatprep.subr.bf16.mxu0 %v2853_v28 }
 0x6c5   : > { %v1627_v42 = vsub.f32 %v1618_v33, %v1625_v40  ;;  %1630 = vadd.xlane.f32.xlu0 %v1628_v41  ;;  %v1671_v33 = vld [vmem:[%s3759_s8] sm:$0x3] }
 0x6c6   : > { %v1676_v34 = vrot.slane %v1671_v33, %v840_v44  ;;  %v1680_v35 = vrot.slane %v1671_v33, %v496_v30 }
 0x6c7   : > { %v1629_v12 = vmul.f32 %v1627_v42, %v1627_v42  ;;  %2435 = vmatpush3.bf16.msra.mxu0 %v2854_v32 }
 0x6c9   : > { %1632 = vadd.xlane.f32.xlu0 %v1629_v12 }
 0x74e   : > { %v1631_v58 = vpop.xlane.xlu0 %1630 }
 0x74f   : > { %v1634_v60 = vmul.f32 0.0078125, %v1631_v58 }
 0x751   : > { %v1636_v61 = vadd.f32 1e-05, %v1634_v60 }
 0x752   : > { %v1633_v62 = vpop.xlane.xlu0 %1632 }
 0x753   : > { %2887 = vrsqrt.f32 %v1636_v61  ;;  %v1635_v1 = vmul.f32 0.0078125, %v1633_v62 }
 0x755   : > { %v1637_v2 = vadd.f32 1e-05, %v1635_v1 }
 0x757   : > { %2889 = vrsqrt.f32 %v1637_v2 }
 0x760   : > { %v2888_v4 = vpop.eup %2887 }
 0x761   : > { %v1640_v5 = vmul.f32 %v2888_v4, %v1626_v38 }
 0x763   : > { %v1646_v10 = vmul.f32 %v1645_v6, %v1640_v5 }
 0x764   : > { %v2890_v8 = vpop.eup %2889 }
 0x765   : > { %v1641_v9 = vmul.f32 %v2890_v8, %v1627_v42  ;;  %v3678_v14 = vadd.f32 %v1651_v0, %v1646_v10 }
 0x767   : > { %v1647_v11 = vmul.f32 %v1645_v6, %v1641_v9 }
 0x769   : > { %v3680_v15 = vadd.f32 %v1651_v0, %v1647_v11 }
 0x76b   : > { %v1654_v16 = vpack.c.bf16 %v3680_v15, %v3678_v14 }
 0x76d   : > { %1796 = vmatmul.mubr.bf16.vlgmr.msra.gmra.mxu1 %v1654_v16 }
 0x82d   : > { %v1797_v36 = vpop.f32.mrf.mxu1 }
 0x82e   : > { %v1798_v37 = vadd.f32 %v1797_v36, %v1676_v34 }
 0x82f   : > { %v1799_v38 = vpop.f32.mrf.mxu1 }
 0x830   : > { %v1806_v39 = vmul.f32 %v1798_v37, %v1798_v37  ;;  %v1800_v40 = vadd.f32 %v1799_v38, %v1680_v35 }
 0x831   : > { %v1801_v41 = vpop.f32.mrf.mxu1 }
 0x832   : > { %v1810_v42 = vmul.f32 %v1806_v39, %v1798_v37  ;;  %v1807_v12 = vmul.f32 %v1800_v40, %v1800_v40  ;;  %v1802_v43 = vadd.f32 %v1801_v41, %v1676_v34 }
 0x833   : > { %v1803_v45 = vpop.f32.mrf.mxu1 }
 0x834   : > { %v1814_v13 = vmul.f32 0.044715, %v1810_v42  ;;  %v1811_v46 = vmul.f32 %v1807_v12, %v1800_v40  ;;  %v1808_v47 = vmul.f32 %v1802_v43, %v1802_v43  ;;  %v1804_v48 = vadd.f32 %v1803_v45, %v1680_v35 }
 0x836   : > { %v1818_v49 = vadd.f32 %v1814_v13, %v1798_v37  ;;  %v1815_v50 = vmul.f32 0.044715, %v1811_v46  ;;  %v1812_v44 = vmul.f32 %v1808_v47, %v1802_v43  ;;  %v1809_v51 = vmul.f32 %v1804_v48, %v1804_v48 }
 0x837   : > { %v2043_v13 = vsub.s32 7, %v3540_v29 }
 0x838   : > { %v1822_v52 = vmul.f32 0.7978846, %v1818_v49  ;;  %v1819_v30 = vadd.f32 %v1815_v50, %v1800_v40  ;;  %v1816_v53 = vmul.f32 0.044715, %v1812_v44  ;;  %v1813_v54 = vmul.f32 %v1809_v51, %v1804_v48  ;;  %v2344_v49 = vld [vmem:[#allocation16 + $0x8] ss:$0 sm:$0xff] }
 0x839   : > { %v2044_v46 = vrot.slane %v2903_v31, %v2043_v13 }
 0x83a   : > { %v1823_v55 = vmul.f32 0.7978846, %v1819_v30  ;;  %v1820_v56 = vadd.f32 %v1816_v53, %v1802_v43  ;;  %v1817_v57 = vmul.f32 0.044715, %v1813_v54  ;;  %2891 = vtanh.f32 %v1822_v52 }
 0x83c   : > { %2893 = vtanh.f32 %v1823_v55  ;;  %v1824_v58 = vmul.f32 0.7978846, %v1820_v56  ;;  %v1821_v60 = vadd.f32 %v1817_v57, %v1804_v48 }
 0x83e   : > { %2895 = vtanh.f32 %v1824_v58  ;;  %v1825_v61 = vmul.f32 0.7978846, %v1821_v60 }
 0x840   : > { %2897 = vtanh.f32 %v1825_v61 }
 0x847   : > { %v2892_v62 = vpop.eup %2891 }
 0x848   : > { %v1830_v4 = vadd.f32 1.0, %v2892_v62 }
 0x849   : > { %v2894_v1 = vpop.eup %2893 }
 0x84a   : > { %v1831_v2 = vadd.f32 1.0, %v2894_v1  ;;  %v1834_v10 = vmul.f32 0.5, %v1830_v4 }
 0x84b   : > { %v2896_v3 = vpop.eup %2895 }
 0x84c   : > { %v1832_v5 = vadd.f32 1.0, %v2896_v3  ;;  %v1835_v9 = vmul.f32 0.5, %v1831_v2  ;;  %v1838_v18 = vmul.f32 %v1834_v10, %v1798_v37 }
 0x84d   : > { %v2898_v6 = vpop.eup %2897 }
 0x84e   : > { %v1836_v7 = vmul.f32 0.5, %v1832_v5  ;;  %v1833_v8 = vadd.f32 1.0, %v2898_v6  ;;  %v1839_v16 = vmul.f32 %v1835_v9, %v1800_v40 }
 0x850   : > { %v1837_v0 = vmul.f32 0.5, %v1833_v8  ;;  %v1840_v11 = vmul.f32 %v1836_v7, %v1802_v43 }
 0x852   : > { %v1841_v17 = vmul.f32 %v1837_v0, %v1804_v48  ;;  %v1842_v20 = vpack.c.bf16 %v1840_v11, %v1838_v18 }
 0x854   : > { %v1843_v19 = vpack.c.bf16 %v1841_v17, %v1839_v16 }
 0x856   : > { %2008 = vmatprep.mubr.bf16.mxu0 %v1843_v19 }
 0x857   : > { %2009 = vmatmul.mubr.bf16.vlgmr.msra.gmra.mxu0 %v1842_v20 }
 0x917   : > { %v2436_v59 = vpop.f32.mrf.mxu0 }
 0x919   : > { %v2437_v22 = vpop.f32.mrf.mxu0 }
 0x91a   : > { %v2438_v23 = vadd.f32 %v2437_v22, %v2436_v59 }
 0x91b   : > { %v2439_v24 = vpop.f32.mrf.mxu0 }
 0x91c   : > { %v2011_v25 = vadd.f32 %v2438_v23, %v1879_v63 }
 0x91d   : > { %v2440_v26 = vpop.f32.mrf.mxu0 }
 0x91e   : > { %v2441_v27 = vadd.f32 %v2440_v26, %v2439_v24  ;;  %v2017_v28 = vadd.f32 %v2011_v25, %v3678_v14 }
 0x920   : > { %v2014_v32 = vadd.f32 %v2441_v27, %v1879_v63  ;;  %2019 = vadd.xlane.f32.xlu1 %v2017_v28 }
 0x922   : > { %v2018_v33 = vadd.f32 %v2014_v32, %v3680_v15 }
 0x924   : > { %2021 = vadd.xlane.f32.xlu0 %v2018_v33 }
 0x9a9   : > { %v2020_v34 = vpop.xlane.xlu1 %2019 }
 0x9aa   : > { %v2023_v35 = vmul.f32 0.0078125, %v2020_v34 }
 0x9ac   : > { %v2025_v36 = vsub.f32 %v2017_v28, %v2023_v35 }
 0x9ad   : > { %v2022_v37 = vpop.xlane.xlu0 %2021 }
 0x9ae   : > { %v2024_v38 = vmul.f32 0.0078125, %v2022_v37  ;;  %v2027_v39 = vmul.f32 %v2025_v36, %v2025_v36 }
 0x9b0   : > { %v2026_v40 = vsub.f32 %v2018_v33, %v2024_v38  ;;  %2029 = vadd.xlane.f32.xlu1 %v2027_v39 }
 0x9b2   : > { %v2028_v41 = vmul.f32 %v2026_v40, %v2026_v40 }
 0x9b4   : > { %2031 = vadd.xlane.f32.xlu0 %v2028_v41 }
 0xa39   : > { %v2030_v42 = vpop.xlane.xlu1 %2029 }
 0xa3a   : > { %v2033_v12 = vmul.f32 0.0078125, %v2030_v42 }
 0xa3c   : > { %v2035_v43 = vadd.f32 1e-05, %v2033_v12 }
 0xa3d   : > { %v2032_v14 = vpop.xlane.xlu0 %2031 }
 0xa3e   : > { %2899 = vrsqrt.f32 %v2035_v43  ;;  %v2034_v45 = vmul.f32 0.0078125, %v2032_v14 }
 0xa40   : > { %v2036_v15 = vadd.f32 1e-05, %v2034_v45 }
 0xa42   : > { %2901 = vrsqrt.f32 %v2036_v15 }
 0xa4b   : > { %v2900_v47 = vpop.eup %2899 }
 0xa4c   : > { %v2039_v48 = vmul.f32 %v2900_v47, %v2025_v36 }
 0xa4e   : > { %v2045_v50 = vmul.f32 %v2044_v46, %v2039_v48 }
 0xa4f   : > { %v2902_v44 = vpop.eup %2901 }
 0xa50   : > { %v2051_v51 = vadd.f32 %v2344_v49, %v2045_v50  ;;  %v2040_v52 = vmul.f32 %v2902_v44, %v2026_v40 }
 0xa52   : > { %v2046_v30 = vmul.f32 %v2044_v46, %v2040_v52  ;;  %2053 = vst [vmem:[%s466_s25] sm:$0xff] %v2051_v51 }
 0xa54   : > { %v2052_v29 = vadd.f32 %v2344_v49, %v2046_v30 }
 0xa56   : > { %2054 = vst [vmem:[%s466_s25 + $0x8] sm:$0xff] %v2052_v29 }
 0xa57   : > { %3127 = shalt.err (!%p3124_p7)
}
 0xa58   : > { %s3128_s3 = scalar_lea.hbm %s3701_s19, 256  ;;  %s3132_s5 = scalar_lea.hbm %s3760_s9, 512 }
 0xa59   : > { %p3129_p12 = scmp.ne.s32.totalorder %s3701_s19, %s3128_s3  ;;  %p3133_p4 = scmp.lt.s32.totalorder %s3701_s19, %s3760_s9 }
 0xa5a   : > { %p3134_p9 = scmp.lt.s32.totalorder %s3132_s5, %s3128_s3 }
 0xa5b   : > { %p3130_p0 = pnand %p3129_p12, %p3798_p3 }
 0xa5c   : > { %p3135_p10 = por %p3134_p9, %p3133_p4 }
 0xa5d   : > { %p3131_p13 = pneg %p3130_p0 }
 0xa5f   : > { %p3136_p1 = pnand %p3135_p10, %p3131_p13 }
 0xa61   : > { %3139 = shalt.err (!%p3136_p1)
}
 0xa62   : > { %s3231_s17 = smov 128   ;;  %s3232_s18 = smov 8  }
 0xa63   : > { %2600 = dma.vmem_to_hbm [thread:$0]  (%p3798_p3), %s3703_s22, 256, %s3701_s19, %s2056_s24, %s3231_s17, %s3231_s17, %s3232_s18  }
 0xa64 PF: > { %s2086_s23 = sand.u32 1, %s3190_s30   ;;  %p3799_p5 = scmp.ne.s32.totalorder %s3796_s26, 0 }
 0xa65   : > { %p3800_p2 = scmp.ge.s32.totalorder %s3210_s14, 2  ;;  %s2087_s25 = scalar_lea.sflag [#allocation6], %s2086_s23 }
 0xa67   : > { %p2629_p6 = pnand %p3800_p2, %p3799_p5 }
 0xa69   : > { %p2630_p8 = pneg %p2629_p6 }
 0xa6b   : > { %3185 = dma.done.wait (%p2630_p8), %s2087_s25, 256  }
 0xa6c   : > { %3187 = vsyncadd (%p2630_p8), %s2087_s25, 4294967040  ;;  %s29_s14 = sadd.s32 1, %s3210_s14   ;;  %s3801_s15 = sld [smem:[#allocation25_spill]] }
 0xa6d   : > { %p26_p11 = scmp.ge.s32.totalorder %s29_s14, 4   ;;  %s3802_s30 = smov %s3194_s10 }
 0xa6e   : > { %s3803_s10 = smov %s3198_s11  ;;  %s3804_s11 = smov %s3441_s27 }
 0xa6f   : > { %s3805_s12 = smov %s3206_s13  ;;  %28 = sbr.rel (!%p26_p11) target bundleno = 18 (0x12), region = 134 }
 0xa72   : > { %s3806_s13 = smov %s3801_s15 }
 0xa74   :  { %2092 = vsyncpa [#allocation5], 1 }
 0xa75   :  { %2094 = vsyncpa [#allocation5 + $0x1], 1 }
 0xa76   :  { %2095 = vsyncpa [#allocation8], 1 }
 0xa77   :  { %2096 = vsyncpa [#allocation11], 1 }
 0xa78   :  { %2097 = vsyncpa [#allocation14], 1 }
 0xa79   :  { %2098 = vsyncpa [#allocation17], 1 }
 0xa7a   :  { %2099 = vsyncpa [#allocation6], 1 }
 0xa7b   :  { %2101 = vsyncpa [#allocation6 + $0x1], 1 }

</bundles_post_ra>
